<compile_context>
chip_gen: v6e
topology: v6e:2x2x1
jax: 0.10.0
libtpu: 0.0.40
codegen_flags: <defaults>
</compile_context>

<pallas_src>
import functools
import math

import jax
import jax.numpy as jnp
from jax.experimental import pallas as pl
from jax.experimental.pallas import tpu as pltpu

_EPS = 1e-5


# --------------------------------------------------------------------- in-kernel helpers

def _ln(x, w, b, eps):
    """LayerNorm over the last axis. x: (S, D) f32, w/b: (1, D) f32."""
    mean = jnp.mean(x, axis=-1, keepdims=True)
    var = jnp.mean(jnp.square(x - mean), axis=-1, keepdims=True)
    return (x - mean) * jax.lax.rsqrt(var + eps) * w + b


def _matmul(x, w, b):
    """bf16 operands, f32 accumulation. x: (S, Din), w: (Din, Dout) bf16, b: (1, Dout) f32."""
    return jnp.dot(x.astype(jnp.bfloat16), w,
                   preferred_element_type=jnp.float32) + b


def _split_heads(x, nhead, dh):
    """(S, D) -> (H, S, dh) via lane slices (no lane-dim reshape needed)."""
    return jnp.stack([x[:, h * dh:(h + 1) * dh] for h in range(nhead)], axis=0)


def _merge_heads(x):
    """(H, S, dh) -> (S, D) lane concat."""
    return jnp.concatenate([x[h] for h in range(x.shape[0])], axis=-1)


def _mha(q, k, v, mask, nhead):
    """All-heads attention in one batched einsum + ONE softmax.

    q: (Sq, D) f32, k/v: (Sk, D) f32, mask: (Sq, Sk) f32 or None. Returns (Sq, D) f32.
    """
    sq, d = q.shape
    dh = d // nhead
    scale = 1.0 / math.sqrt(dh)
    qh = _split_heads(q.astype(jnp.bfloat16), nhead, dh)   # (H, Sq, dh)
    kh = _split_heads(k.astype(jnp.bfloat16), nhead, dh)   # (H, Sk, dh)
    vh = _split_heads(v.astype(jnp.bfloat16), nhead, dh)   # (H, Sk, dh)

    s = jnp.einsum("hqd,hkd->hqk", qh, kh,
                   preferred_element_type=jnp.float32) * scale     # (H, Sq, Sk) f32
    if mask is not None:
        s = s + mask[None, :, :]
    s = s - jnp.max(s, axis=-1, keepdims=True)
    p = jnp.exp(s)
    p = p * pl.reciprocal(jnp.sum(p, axis=-1, keepdims=True), approx=True)
    o = jnp.einsum("hqk,hkd->hqd", p.astype(jnp.bfloat16), vh,
                   preferred_element_type=jnp.float32)              # (H, Sq, dh) f32
    return _merge_heads(o)


# --------------------------------------------------------------- the single fused kernel

def _fused_transformer_kernel(
        # --- inputs (order must match `args` in transformer_forward) ---
        src_ref, in_w, in_b, pe_src, pe_tgt,
        # encoder layer stacks (leading axis = layer)
        e_wqkv, e_bqkv, e_wo, e_bo, e_n1w, e_n1b,
        e_w1, e_b1, e_w2, e_b2, e_n2w, e_n2b,
        enc_nw, enc_nb,
        out_proj_b,
        # decoder layer stacks (leading axis = layer)
        d_swqkv, d_sbqkv, d_swo, d_sbo, d_n1w, d_n1b,
        d_cwq, d_cbq, d_cwkv, d_cbkv, d_cwo, d_cbo,
        d_n2w, d_n2b,
        d_w1, d_b1, d_w2, d_b2, d_n3w, d_n3b,
        dec_nw, dec_nb,
        fc_w, fc_b,
        # --- output ---
        o_ref,
        *, nhead, n_enc, n_dec, eps):
    # ----------------------------------------------------------------- encoder
    src = src_ref[0]                                       # (S_src, In_pad) f32 (one batch elem)
    x = _matmul(src, in_w[...], in_b[...]) + pe_src[...]   # input proj + positional encoding
    d = x.shape[-1]

    for l in range(n_enc):                                 # static loop, static weight slices
        qkv = _matmul(x, e_wqkv[l], e_bqkv[l])             # fused QKV projection
        a = _mha(qkv[:, :d], qkv[:, d:2 * d], qkv[:, 2 * d:], None, nhead)
        a = _matmul(a, e_wo[l], e_bo[l])
        h = _ln(x + a, e_n1w[l], e_n1b[l], eps)            # residual + LN1 (post-norm)
        f = jnp.maximum(_matmul(h, e_w1[l], e_b1[l]), 0.0) # FFN hidden never leaves VMEM
        f = _matmul(f, e_w2[l], e_b2[l])
        x = _ln(h + f, e_n2w[l], e_n2b[l], eps)            # residual + LN2

    memory = _ln(x, enc_nw[...], enc_nb[...], eps)         # encoder final norm, (S_src, D)

    # ----------------------------------------------------------------- decoder
    st = pe_tgt.shape[0]
    # tgt=None path: output_projection(zeros) == bias; add PE.
    y = out_proj_b[...] + pe_tgt[...]                      # (St, D)

    # causal mask == nn.Transformer.generate_square_subsequent_mask
    row = jax.lax.broadcasted_iota(jnp.int32, (st, st), 0)
    col = jax.lax.broadcasted_iota(jnp.int32, (st, st), 1)
    causal = jnp.where(col > row, -1e30, 0.0).astype(jnp.float32)

    for l in range(n_dec):
        # masked self-attention
        qkv = _matmul(y, d_swqkv[l], d_sbqkv[l])
        a = _mha(qkv[:, :d], qkv[:, d:2 * d], qkv[:, 2 * d:], causal, nhead)
        a = _matmul(a, d_swo[l], d_sbo[l])
        h1 = _ln(y + a, d_n1w[l], d_n1b[l], eps)

        # cross-attention (fused K/V projection of encoder memory, no mask)
        q = _matmul(h1, d_cwq[l], d_cbq[l])
        kv = _matmul(memory, d_cwkv[l], d_cbkv[l])
        a2 = _mha(q, kv[:, :d], kv[:, d:], None, nhead)
        a2 = _matmul(a2, d_cwo[l], d_cbo[l])
        h2 = _ln(h1 + a2, d_n2w[l], d_n2b[l], eps)

        # FFN
        f = jnp.maximum(_matmul(h2, d_w1[l], d_b1[l]), 0.0)
        f = _matmul(f, d_w2[l], d_b2[l])
        y = _ln(h2 + f, d_n3w[l], d_n3b[l], eps)

    # decoder final norm + fc_out (lane-padded to 128; sliced to output_size outside)
    out = _matmul(_ln(y, dec_nw[...], dec_nb[...], eps), fc_w[...], fc_b[...])
    o_ref[...] = out[None, :, :]


# ------------------------------------------------------------------------------- wrapper

def _resident_spec(arr):
    """Full-extent block with a constant index_map -> DMA'd once, VMEM-resident."""
    zeros = (0,) * arr.ndim
    return pl.BlockSpec(arr.shape, lambda b, _z=zeros: _z)


def transformer_forward(params, src, *, cfg):
    bsz, s_src, in_size = src.shape
    tgt_len = cfg["tgt_len"]
    out_size = cfg["output_size"]

    in_pad = params["in_proj_w"].shape[0]
    out_pad = params["fc_out_w"].shape[1]
    if in_pad != in_size:
        src = jnp.pad(src, ((0, 0), (0, 0), (0, in_pad - in_size)))

    pe = params["pe"]
    enc = params["encoder"]
    dec = params["decoder"]

    args = [
        src, params["in_proj_w"], params["in_proj_b"], pe[:s_src], pe[:tgt_len],
        enc["wqkv"], enc["bqkv"], enc["wo"], enc["bo"], enc["n1w"], enc["n1b"],
        enc["w1"], enc["b1"], enc["w2"], enc["b2"], enc["n2w"], enc["n2b"],
        params["enc_norm_w"], params["enc_norm_b"],
        params["out_proj_b"],
        dec["s_wqkv"], dec["s_bqkv"], dec["s_wo"], dec["s_bo"], dec["n1w"], dec["n1b"],
        dec["c_wq"], dec["c_bq"], dec["c_wkv"], dec["c_bkv"], dec["c_wo"], dec["c_bo"],
        dec["n2w"], dec["n2b"],
        dec["w1"], dec["b1"], dec["w2"], dec["b2"], dec["n3w"], dec["n3b"],
        params["dec_norm_w"], params["dec_norm_b"],
        params["fc_out_w"], params["fc_out_b"],
    ]

    in_specs = [pl.BlockSpec((1, s_src, in_pad), lambda b: (b, 0, 0))]
    in_specs += [_resident_spec(a) for a in args[1:]]

    kern = functools.partial(
        _fused_transformer_kernel,
        nhead=cfg["nhead"],
        n_enc=cfg["num_encoder_layers"],
        n_dec=cfg["num_decoder_layers"],
        eps=_EPS)

    out = pl.pallas_call(
        kern,
        out_shape=jax.ShapeDtypeStruct((bsz, tgt_len, out_pad), jnp.float32),
        grid_spec=pltpu.PrefetchScalarGridSpec(
            num_scalar_prefetch=0,
            grid=(bsz,),                       # parallel over batch -> both TCs on v7x
            in_specs=in_specs,
            out_specs=pl.BlockSpec((1, tgt_len, out_pad), lambda b: (b, 0, 0)),
        ),
        compiler_params=pltpu.CompilerParams(
            dimension_semantics=("parallel",),
            vmem_limit_bytes=32 * 1024 * 1024),
    )(*args)

    return out[:, :, :out_size]                # drop the lane padding of fc_out


# ---------------------------------------------------------------------------- param init
# NOTE: when loading a trained PyTorch checkpoint, do the (out,in)->(in,out) transposes,
# Wq/Wk/Wv -> packed wqkv fusion, lane padding and bf16 casts ONCE here (never at forward).

def _round_up(x, m):
    return ((x + m - 1) // m) * m


def _rand(key, shape, dtype=jnp.float32, scale=0.05):
    return (jax.random.normal(key, shape, jnp.float32) * scale).astype(dtype)


def positional_encoding_table(d_model, max_len=5000):
    position = jnp.arange(max_len, dtype=jnp.float32)[:, None]
    div_term = jnp.exp(jnp.arange(0, d_model, 2, dtype=jnp.float32)
                       * (-math.log(10000.0) / d_model))
    pe = jnp.zeros((max_len, d_model), jnp.float32)
    pe = pe.at[:, 0::2].set(jnp.sin(position * div_term))
    pe = pe.at[:, 1::2].set(jnp.cos(position * div_term))
    return pe


def _init_encoder_layer(key, d, dff):
    ks = jax.random.split(key, 8)
    return {
        "wqkv": _rand(ks[0], (d, 3 * d), jnp.bfloat16),
        "bqkv": _rand(ks[1], (1, 3 * d)),
        "wo":   _rand(ks[2], (d, d), jnp.bfloat16),
        "bo":   _rand(ks[3], (1, d)),
        "n1w": jnp.ones((1, d), jnp.float32), "n1b": jnp.zeros((1, d), jnp.float32),
        "w1":  _rand(ks[4], (d, dff), jnp.bfloat16),
        "b1":  _rand(ks[5], (1, dff)),
        "w2":  _rand(ks[6], (dff, d), jnp.bfloat16),
        "b2":  _rand(ks[7], (1, d)),
        "n2w": jnp.ones((1, d), jnp.float32), "n2b": jnp.zeros((1, d), jnp.float32),
    }


def _init_decoder_layer(key, d, dff):
    ks = jax.random.split(key, 14)
    return {
        "s_wqkv": _rand(ks[0], (d, 3 * d), jnp.bfloat16),
        "s_bqkv": _rand(ks[1], (1, 3 * d)),
        "s_wo":   _rand(ks[2], (d, d), jnp.bfloat16),
        "s_bo":   _rand(ks[3], (1, d)),
        "n1w": jnp.ones((1, d), jnp.float32), "n1b": jnp.zeros((1, d), jnp.float32),
        "c_wq":  _rand(ks[4], (d, d), jnp.bfloat16),
        "c_bq":  _rand(ks[5], (1, d)),
        "c_wkv": _rand(ks[6], (d, 2 * d), jnp.bfloat16),
        "c_bkv": _rand(ks[7], (1, 2 * d)),
        "c_wo":  _rand(ks[8], (d, d), jnp.bfloat16),
        "c_bo":  _rand(ks[9], (1, d)),
        "n2w": jnp.ones((1, d), jnp.float32), "n2b": jnp.zeros((1, d), jnp.float32),
        "w1":  _rand(ks[10], (d, dff), jnp.bfloat16),
        "b1":  _rand(ks[11], (1, dff)),
        "w2":  _rand(ks[12], (dff, d), jnp.bfloat16),
        "b2":  _rand(ks[13], (1, d)),
        "n3w": jnp.ones((1, d), jnp.float32), "n3b": jnp.zeros((1, d), jnp.float32),
    }


def _stack_layers(layers):
    return {k: jnp.stack([lp[k] for lp in layers], axis=0) for k in layers[0]}


def init_params(key, cfg):
    d, dff = cfg["d_model"], cfg["dim_feedforward"]
    n_enc, n_dec = cfg["num_encoder_layers"], cfg["num_decoder_layers"]
    in_size, out_size = cfg["input_size"], cfg["output_size"]
    in_pad = max(_round_up(in_size, 8), 8)       # lane-pad input feature dim
    out_pad = max(_round_up(out_size, 128), 128)  # lane-pad fc_out output dim
    keys = jax.random.split(key, 6 + n_enc + n_dec)

    in_w = jnp.zeros((in_pad, d), jnp.float32)
    in_w = in_w.at[:in_size].set(jax.random.normal(keys[0], (in_size, d)) * 0.05)
    fc_w = jnp.zeros((d, out_pad), jnp.float32)
    fc_w = fc_w.at[:, :out_size].set(jax.random.normal(keys[3], (d, out_size)) * 0.05)
    fc_b = jnp.zeros((1, out_pad), jnp.float32)
    fc_b = fc_b.at[:, :out_size].set(jax.random.normal(keys[4], (1, out_size)) * 0.05)

    return {
        "pe": positional_encoding_table(d),
        "in_proj_w": in_w.astype(jnp.bfloat16),
        "in_proj_b": _rand(keys[1], (1, d)),
        # output_projection weight never needed on tgt=None path (Linear(zeros) == bias)
        # TODO(synk): nonzero-tgt / teacher-forcing path (needs out_proj_w) not implemented.
        "out_proj_b": _rand(keys[2], (1, d)),
        "fc_out_w": fc_w.astype(jnp.bfloat16),
        "fc_out_b": fc_b,
        "enc_norm_w": jnp.ones((1, d), jnp.float32),
        "enc_norm_b": jnp.zeros((1, d), jnp.float32),
        "dec_norm_w": jnp.ones((1, d), jnp.float32),
        "dec_norm_b": jnp.zeros((1, d), jnp.float32),
        "encoder": _stack_layers([_init_encoder_layer(keys[6 + i], d, dff)
                                  for i in range(n_enc)]),
        "decoder": _stack_layers([_init_decoder_layer(keys[6 + n_enc + i], d, dff)
                                  for i in range(n_dec)]),
    }


# --------------------------------------------------------------------------------- main

if __name__ == "__main__":
    # static config (python ints) stays OUT of the jitted params pytree
    cfg = {
        "input_size": 7, "output_size": 5,
        "d_model": 128, "nhead": 4,
        "num_encoder_layers": 2, "num_decoder_layers": 3,
        "dim_feedforward": 512,
        "tgt_len": 8,
    }

    key = jax.random.PRNGKey(0)
    kp, kx = jax.random.split(key)
    params = init_params(kp, cfg)

    B, SRC_LEN = 2, 8
    src = jax.random.normal(kx, (B, SRC_LEN, cfg["input_size"]), jnp.float32)

    fwd = jax.jit(functools.partial(transformer_forward, cfg=cfg))
    out = jax.block_until_ready(fwd(params, src))

    assert out.shape == (B, cfg["tgt_len"], cfg["output_size"]), out.shape
    assert out.dtype == jnp.float32
    assert bool(jnp.all(jnp.isfinite(out)))
    print("KERNEL_OK")
</pallas_src>

<mosaic_0001>
module attributes {stable_mosaic.version = 11 : i64} {
  func.func @_fused_transformer_kernel(%arg0: i32, %arg1: memref<1x8x8xf32, #tpu.memory_space<vmem>>, %arg2: memref<8x128xbf16, #tpu.memory_space<vmem>>, %arg3: memref<1x128xf32, #tpu.memory_space<vmem>>, %arg4: memref<8x128xf32, #tpu.memory_space<vmem>>, %arg5: memref<8x128xf32, #tpu.memory_space<vmem>>, %arg6: memref<2x128x384xbf16, #tpu.memory_space<vmem>>, %arg7: memref<2x1x384xf32, #tpu.memory_space<vmem>>, %arg8: memref<2x128x128xbf16, #tpu.memory_space<vmem>>, %arg9: memref<2x1x128xf32, #tpu.memory_space<vmem>>, %arg10: memref<2x1x128xf32, #tpu.memory_space<vmem>>, %arg11: memref<2x1x128xf32, #tpu.memory_space<vmem>>, %arg12: memref<2x128x512xbf16, #tpu.memory_space<vmem>>, %arg13: memref<2x1x512xf32, #tpu.memory_space<vmem>>, %arg14: memref<2x512x128xbf16, #tpu.memory_space<vmem>>, %arg15: memref<2x1x128xf32, #tpu.memory_space<vmem>>, %arg16: memref<2x1x128xf32, #tpu.memory_space<vmem>>, %arg17: memref<2x1x128xf32, #tpu.memory_space<vmem>>, %arg18: memref<1x128xf32, #tpu.memory_space<vmem>>, %arg19: memref<1x128xf32, #tpu.memory_space<vmem>>, %arg20: memref<1x128xf32, #tpu.memory_space<vmem>>, %arg21: memref<3x128x384xbf16, #tpu.memory_space<vmem>>, %arg22: memref<3x1x384xf32, #tpu.memory_space<vmem>>, %arg23: memref<3x128x128xbf16, #tpu.memory_space<vmem>>, %arg24: memref<3x1x128xf32, #tpu.memory_space<vmem>>, %arg25: memref<3x1x128xf32, #tpu.memory_space<vmem>>, %arg26: memref<3x1x128xf32, #tpu.memory_space<vmem>>, %arg27: memref<3x128x128xbf16, #tpu.memory_space<vmem>>, %arg28: memref<3x1x128xf32, #tpu.memory_space<vmem>>, %arg29: memref<3x128x256xbf16, #tpu.memory_space<vmem>>, %arg30: memref<3x1x256xf32, #tpu.memory_space<vmem>>, %arg31: memref<3x128x128xbf16, #tpu.memory_space<vmem>>, %arg32: memref<3x1x128xf32, #tpu.memory_space<vmem>>, %arg33: memref<3x1x128xf32, #tpu.memory_space<vmem>>, %arg34: memref<3x1x128xf32, #tpu.memory_space<vmem>>, %arg35: memref<3x128x512xbf16, #tpu.memory_space<vmem>>, %arg36: memref<3x1x512xf32, #tpu.memory_space<vmem>>, %arg37: memref<3x512x128xbf16, #tpu.memory_space<vmem>>, %arg38: memref<3x1x128xf32, #tpu.memory_space<vmem>>, %arg39: memref<3x1x128xf32, #tpu.memory_space<vmem>>, %arg40: memref<3x1x128xf32, #tpu.memory_space<vmem>>, %arg41: memref<1x128xf32, #tpu.memory_space<vmem>>, %arg42: memref<1x128xf32, #tpu.memory_space<vmem>>, %arg43: memref<128x128xbf16, #tpu.memory_space<vmem>>, %arg44: memref<1x128xf32, #tpu.memory_space<vmem>>, %arg45: memref<1x8x128xf32, #tpu.memory_space<vmem>>) attributes {dimension_semantics = [#tpu.dimension_semantics<parallel>], iteration_bounds = array<i64: 2>, scalar_prefetch = 0 : i64, scratch_operands = 0 : i64, tpu.core_type = #tpu.core_type<tc>, window_params = [{transform_indices = @transform_0, window_bounds = array<i64: 1, 8, 8>}, {pipeline_mode = #tpu.pipeline_mode<synchronous>, transform_indices = @transform_1, window_bounds = array<i64: 8, 128>}, {pipeline_mode = #tpu.pipeline_mode<synchronous>, transform_indices = @transform_2, window_bounds = array<i64: 1, 128>}, {pipeline_mode = #tpu.pipeline_mode<synchronous>, transform_indices = @transform_3, window_bounds = array<i64: 8, 128>}, {pipeline_mode = #tpu.pipeline_mode<synchronous>, transform_indices = @transform_4, window_bounds = array<i64: 8, 128>}, {pipeline_mode = #tpu.pipeline_mode<synchronous>, transform_indices = @transform_5, window_bounds = array<i64: 2, 128, 384>}, {pipeline_mode = #tpu.pipeline_mode<synchronous>, transform_indices = @transform_6, window_bounds = array<i64: 2, 1, 384>}, {pipeline_mode = #tpu.pipeline_mode<synchronous>, transform_indices = @transform_7, window_bounds = array<i64: 2, 128, 128>}, {pipeline_mode = #tpu.pipeline_mode<synchronous>, transform_indices = @transform_8, window_bounds = array<i64: 2, 1, 128>}, {pipeline_mode = #tpu.pipeline_mode<synchronous>, transform_indices = @transform_9, window_bounds = array<i64: 2, 1, 128>}, {pipeline_mode = #tpu.pipeline_mode<synchronous>, transform_indices = @transform_10, window_bounds = array<i64: 2, 1, 128>}, {pipeline_mode = #tpu.pipeline_mode<synchronous>, transform_indices = @transform_11, window_bounds = array<i64: 2, 128, 512>}, {pipeline_mode = #tpu.pipeline_mode<synchronous>, transform_indices = @transform_12, window_bounds = array<i64: 2, 1, 512>}, {pipeline_mode = #tpu.pipeline_mode<synchronous>, transform_indices = @transform_13, window_bounds = array<i64: 2, 512, 128>}, {pipeline_mode = #tpu.pipeline_mode<synchronous>, transform_indices = @transform_14, window_bounds = array<i64: 2, 1, 128>}, {pipeline_mode = #tpu.pipeline_mode<synchronous>, transform_indices = @transform_15, window_bounds = array<i64: 2, 1, 128>}, {pipeline_mode = #tpu.pipeline_mode<synchronous>, transform_indices = @transform_16, window_bounds = array<i64: 2, 1, 128>}, {pipeline_mode = #tpu.pipeline_mode<synchronous>, transform_indices = @transform_17, window_bounds = array<i64: 1, 128>}, {pipeline_mode = #tpu.pipeline_mode<synchronous>, transform_indices = @transform_18, window_bounds = array<i64: 1, 128>}, {pipeline_mode = #tpu.pipeline_mode<synchronous>, transform_indices = @transform_19, window_bounds = array<i64: 1, 128>}, {pipeline_mode = #tpu.pipeline_mode<synchronous>, transform_indices = @transform_20, window_bounds = array<i64: 3, 128, 384>}, {pipeline_mode = #tpu.pipeline_mode<synchronous>, transform_indices = @transform_21, window_bounds = array<i64: 3, 1, 384>}, {pipeline_mode = #tpu.pipeline_mode<synchronous>, transform_indices = @transform_22, window_bounds = array<i64: 3, 128, 128>}, {pipeline_mode = #tpu.pipeline_mode<synchronous>, transform_indices = @transform_23, window_bounds = array<i64: 3, 1, 128>}, {pipeline_mode = #tpu.pipeline_mode<synchronous>, transform_indices = @transform_24, window_bounds = array<i64: 3, 1, 128>}, {pipeline_mode = #tpu.pipeline_mode<synchronous>, transform_indices = @transform_25, window_bounds = array<i64: 3, 1, 128>}, {pipeline_mode = #tpu.pipeline_mode<synchronous>, transform_indices = @transform_26, window_bounds = array<i64: 3, 128, 128>}, {pipeline_mode = #tpu.pipeline_mode<synchronous>, transform_indices = @transform_27, window_bounds = array<i64: 3, 1, 128>}, {pipeline_mode = #tpu.pipeline_mode<synchronous>, transform_indices = @transform_28, window_bounds = array<i64: 3, 128, 256>}, {pipeline_mode = #tpu.pipeline_mode<synchronous>, transform_indices = @transform_29, window_bounds = array<i64: 3, 1, 256>}, {pipeline_mode = #tpu.pipeline_mode<synchronous>, transform_indices = @transform_30, window_bounds = array<i64: 3, 128, 128>}, {pipeline_mode = #tpu.pipeline_mode<synchronous>, transform_indices = @transform_31, window_bounds = array<i64: 3, 1, 128>}, {pipeline_mode = #tpu.pipeline_mode<synchronous>, transform_indices = @transform_32, window_bounds = array<i64: 3, 1, 128>}, {pipeline_mode = #tpu.pipeline_mode<synchronous>, transform_indices = @transform_33, window_bounds = array<i64: 3, 1, 128>}, {pipeline_mode = #tpu.pipeline_mode<synchronous>, transform_indices = @transform_34, window_bounds = array<i64: 3, 128, 512>}, {pipeline_mode = #tpu.pipeline_mode<synchronous>, transform_indices = @transform_35, window_bounds = array<i64: 3, 1, 512>}, {pipeline_mode = #tpu.pipeline_mode<synchronous>, transform_indices = @transform_36, window_bounds = array<i64: 3, 512, 128>}, {pipeline_mode = #tpu.pipeline_mode<synchronous>, transform_indices = @transform_37, window_bounds = array<i64: 3, 1, 128>}, {pipeline_mode = #tpu.pipeline_mode<synchronous>, transform_indices = @transform_38, window_bounds = array<i64: 3, 1, 128>}, {pipeline_mode = #tpu.pipeline_mode<synchronous>, transform_indices = @transform_39, window_bounds = array<i64: 3, 1, 128>}, {pipeline_mode = #tpu.pipeline_mode<synchronous>, transform_indices = @transform_40, window_bounds = array<i64: 1, 128>}, {pipeline_mode = #tpu.pipeline_mode<synchronous>, transform_indices = @transform_41, window_bounds = array<i64: 1, 128>}, {pipeline_mode = #tpu.pipeline_mode<synchronous>, transform_indices = @transform_42, window_bounds = array<i64: 128, 128>}, {pipeline_mode = #tpu.pipeline_mode<synchronous>, transform_indices = @transform_43, window_bounds = array<i64: 1, 128>}, {transform_indices = @transform_44, window_bounds = array<i64: 1, 8, 128>}]} {
    %c0 = arith.constant 0 : index
    %c0_0 = arith.constant 0 : index
    %c0_1 = arith.constant 0 : index
    %0 = vector.load %arg1[%c0, %c0_0, %c0_1] : memref<1x8x8xf32, #tpu.memory_space<vmem>>, vector<1x8x8xf32>
    %1 = vector.shape_cast %0 : vector<1x8x8xf32> to vector<8x8xf32>
    %c0_2 = arith.constant 0 : index
    %c0_3 = arith.constant 0 : index
    %2 = vector.load %arg2[%c0_2, %c0_3] : memref<8x128xbf16, #tpu.memory_space<vmem>>, vector<8x128xbf16>
    %c0_4 = arith.constant 0 : index
    %c0_5 = arith.constant 0 : index
    %3 = vector.load %arg3[%c0_4, %c0_5] : memref<1x128xf32, #tpu.memory_space<vmem>>, vector<1x128xf32>
    %4 = arith.truncf %1 : vector<8x8xf32> to vector<8x8xbf16>
    %cst = arith.constant dense<0.000000e+00> : vector<8x128xf32>
    %5 = tpu.matmul %4, %2, %cst {dimension_numbers = #tpu.dot_dimension_numbers<[1], [0], [0], [1], [0, 0, 1, 1], [], []>} : vector<8x8xbf16>, vector<8x128xbf16>, vector<8x128xf32> -> vector<8x128xf32>
    %6 = vector.broadcast %3 : vector<1x128xf32> to vector<8x128xf32>
    %7 = arith.addf %5, %6 : vector<8x128xf32>
    %c0_6 = arith.constant 0 : index
    %c0_7 = arith.constant 0 : index
    %8 = vector.load %arg4[%c0_6, %c0_7] : memref<8x128xf32, #tpu.memory_space<vmem>>, vector<8x128xf32>
    %9 = arith.addf %7, %8 : vector<8x128xf32>
    %c0_8 = arith.constant 0 : index
    %c0_9 = arith.constant 0 : index
    %c0_10 = arith.constant 0 : index
    %10 = vector.load %arg6[%c0_8, %c0_9, %c0_10] : memref<2x128x384xbf16, #tpu.memory_space<vmem>>, vector<1x128x384xbf16>
    %11 = vector.shape_cast %10 : vector<1x128x384xbf16> to vector<128x384xbf16>
    %c0_11 = arith.constant 0 : index
    %c0_12 = arith.constant 0 : index
    %c0_13 = arith.constant 0 : index
    %12 = vector.load %arg7[%c0_11, %c0_12, %c0_13] : memref<2x1x384xf32, #tpu.memory_space<vmem>>, vector<1x1x384xf32>
    %13 = vector.shape_cast %12 : vector<1x1x384xf32> to vector<1x384xf32>
    %14 = arith.truncf %9 : vector<8x128xf32> to vector<8x128xbf16>
    %cst_14 = arith.constant dense<0.000000e+00> : vector<8x384xf32>
    %15 = tpu.matmul %14, %11, %cst_14 {dimension_numbers = #tpu.dot_dimension_numbers<[1], [0], [0], [1], [0, 0, 1, 1], [], []>} : vector<8x128xbf16>, vector<128x384xbf16>, vector<8x384xf32> -> vector<8x384xf32>
    %16 = vector.broadcast %13 : vector<1x384xf32> to vector<8x384xf32>
    %17 = arith.addf %15, %16 : vector<8x384xf32>
    %18 = vector.extract_strided_slice %17 {offsets = [0, 0], sizes = [8, 128], strides = [1, 1]} : vector<8x384xf32> to vector<8x128xf32>
    %19 = vector.extract_strided_slice %17 {offsets = [0, 128], sizes = [8, 128], strides = [1, 1]} : vector<8x384xf32> to vector<8x128xf32>
    %20 = vector.extract_strided_slice %17 {offsets = [0, 256], sizes = [8, 128], strides = [1, 1]} : vector<8x384xf32> to vector<8x128xf32>
    %21 = arith.truncf %18 : vector<8x128xf32> to vector<8x128xbf16>
    %22 = vector.extract_strided_slice %21 {offsets = [0, 0], sizes = [8, 32], strides = [1, 1]} : vector<8x128xbf16> to vector<8x32xbf16>
    %23 = vector.extract_strided_slice %21 {offsets = [0, 32], sizes = [8, 32], strides = [1, 1]} : vector<8x128xbf16> to vector<8x32xbf16>
    %24 = vector.extract_strided_slice %21 {offsets = [0, 64], sizes = [8, 32], strides = [1, 1]} : vector<8x128xbf16> to vector<8x32xbf16>
    %25 = vector.extract_strided_slice %21 {offsets = [0, 96], sizes = [8, 32], strides = [1, 1]} : vector<8x128xbf16> to vector<8x32xbf16>
    %26 = vector.shape_cast %22 : vector<8x32xbf16> to vector<1x8x32xbf16>
    %27 = vector.shape_cast %23 : vector<8x32xbf16> to vector<1x8x32xbf16>
    %28 = vector.shape_cast %24 : vector<8x32xbf16> to vector<1x8x32xbf16>
    %29 = vector.shape_cast %25 : vector<8x32xbf16> to vector<1x8x32xbf16>
    %30 = tpu.concatenate %26, %27, %28, %29 in 0 : vector<1x8x32xbf16>, vector<1x8x32xbf16>, vector<1x8x32xbf16>, vector<1x8x32xbf16> -> vector<4x8x32xbf16>
    %31 = arith.truncf %19 : vector<8x128xf32> to vector<8x128xbf16>
    %32 = vector.extract_strided_slice %31 {offsets = [0, 0], sizes = [8, 32], strides = [1, 1]} : vector<8x128xbf16> to vector<8x32xbf16>
    %33 = vector.extract_strided_slice %31 {offsets = [0, 32], sizes = [8, 32], strides = [1, 1]} : vector<8x128xbf16> to vector<8x32xbf16>
    %34 = vector.extract_strided_slice %31 {offsets = [0, 64], sizes = [8, 32], strides = [1, 1]} : vector<8x128xbf16> to vector<8x32xbf16>
    %35 = vector.extract_strided_slice %31 {offsets = [0, 96], sizes = [8, 32], strides = [1, 1]} : vector<8x128xbf16> to vector<8x32xbf16>
    %36 = vector.shape_cast %32 : vector<8x32xbf16> to vector<1x8x32xbf16>
    %37 = vector.shape_cast %33 : vector<8x32xbf16> to vector<1x8x32xbf16>
    %38 = vector.shape_cast %34 : vector<8x32xbf16> to vector<1x8x32xbf16>
    %39 = vector.shape_cast %35 : vector<8x32xbf16> to vector<1x8x32xbf16>
    %40 = tpu.concatenate %36, %37, %38, %39 in 0 : vector<1x8x32xbf16>, vector<1x8x32xbf16>, vector<1x8x32xbf16>, vector<1x8x32xbf16> -> vector<4x8x32xbf16>
    %41 = arith.truncf %20 : vector<8x128xf32> to vector<8x128xbf16>
    %42 = vector.extract_strided_slice %41 {offsets = [0, 0], sizes = [8, 32], strides = [1, 1]} : vector<8x128xbf16> to vector<8x32xbf16>
    %43 = vector.extract_strided_slice %41 {offsets = [0, 32], sizes = [8, 32], strides = [1, 1]} : vector<8x128xbf16> to vector<8x32xbf16>
    %44 = vector.extract_strided_slice %41 {offsets = [0, 64], sizes = [8, 32], strides = [1, 1]} : vector<8x128xbf16> to vector<8x32xbf16>
    %45 = vector.extract_strided_slice %41 {offsets = [0, 96], sizes = [8, 32], strides = [1, 1]} : vector<8x128xbf16> to vector<8x32xbf16>
    %46 = vector.shape_cast %42 : vector<8x32xbf16> to vector<1x8x32xbf16>
    %47 = vector.shape_cast %43 : vector<8x32xbf16> to vector<1x8x32xbf16>
    %48 = vector.shape_cast %44 : vector<8x32xbf16> to vector<1x8x32xbf16>
    %49 = vector.shape_cast %45 : vector<8x32xbf16> to vector<1x8x32xbf16>
    %50 = tpu.concatenate %46, %47, %48, %49 in 0 : vector<1x8x32xbf16>, vector<1x8x32xbf16>, vector<1x8x32xbf16>, vector<1x8x32xbf16> -> vector<4x8x32xbf16>
    "tpu.trace_start"() <{level = 10 : i32, message = "hqd,hkd->hqk"}> : () -> ()
    %cst_15 = arith.constant dense<0.000000e+00> : vector<4x8x8xf32>
    %51 = tpu.matmul %30, %40, %cst_15 {dimension_numbers = #tpu.dot_dimension_numbers<[2], [2], [1], [1], [0, 0, 0, 1, 1, 1], [0], [0]>} : vector<4x8x32xbf16>, vector<4x8x32xbf16>, vector<4x8x8xf32> -> vector<4x8x8xf32>
    "tpu.trace_stop"() : () -> ()
    %cst_16 = arith.constant 0.176776692 : f32
    %52 = vector.broadcast %cst_16 : f32 to vector<4x8x8xf32>
    %53 = arith.mulf %51, %52 : vector<4x8x8xf32>
    %cst_17 = arith.constant dense<0xFF800000> : vector<4x8xf32>
    %54 = vector.multi_reduction <maximumf>, %53, %cst_17 [2] : vector<4x8x8xf32> to vector<4x8xf32>
    %55 = vector.shape_cast %54 : vector<4x8xf32> to vector<4x8x1xf32>
    %56 = vector.broadcast %55 : vector<4x8x1xf32> to vector<4x8x8xf32>
    %57 = arith.subf %53, %56 : vector<4x8x8xf32>
    %58 = math.exp %57 : vector<4x8x8xf32>
    %cst_18 = arith.constant dense<0.000000e+00> : vector<4x8xf32>
    %59 = vector.multi_reduction <add>, %58, %cst_18 [2] : vector<4x8x8xf32> to vector<4x8xf32>
    %60 = vector.shape_cast %59 : vector<4x8xf32> to vector<4x8x1xf32>
    %61 = tpu.reciprocal %60 {approx = true} : vector<4x8x1xf32> -> vector<4x8x1xf32>
    %62 = vector.broadcast %61 : vector<4x8x1xf32> to vector<4x8x8xf32>
    %63 = arith.mulf %58, %62 : vector<4x8x8xf32>
    %64 = arith.truncf %63 : vector<4x8x8xf32> to vector<4x8x8xbf16>
    "tpu.trace_start"() <{level = 10 : i32, message = "hqk,hkd->hqd"}> : () -> ()
    %cst_19 = arith.constant dense<0.000000e+00> : vector<4x8x32xf32>
    %65 = tpu.matmul %64, %50, %cst_19 {dimension_numbers = #tpu.dot_dimension_numbers<[2], [1], [1], [2], [0, 0, 0, 1, 1, 2], [0], [0]>} : vector<4x8x8xbf16>, vector<4x8x32xbf16>, vector<4x8x32xf32> -> vector<4x8x32xf32>
    "tpu.trace_stop"() : () -> ()
    %66 = vector.extract_strided_slice %65 {offsets = [0, 0, 0], sizes = [1, 8, 32], strides = [1, 1, 1]} : vector<4x8x32xf32> to vector<1x8x32xf32>
    %67 = vector.shape_cast %66 : vector<1x8x32xf32> to vector<8x32xf32>
    %68 = vector.extract_strided_slice %65 {offsets = [1, 0, 0], sizes = [1, 8, 32], strides = [1, 1, 1]} : vector<4x8x32xf32> to vector<1x8x32xf32>
    %69 = vector.shape_cast %68 : vector<1x8x32xf32> to vector<8x32xf32>
    %70 = vector.extract_strided_slice %65 {offsets = [2, 0, 0], sizes = [1, 8, 32], strides = [1, 1, 1]} : vector<4x8x32xf32> to vector<1x8x32xf32>
    %71 = vector.shape_cast %70 : vector<1x8x32xf32> to vector<8x32xf32>
    %72 = vector.extract_strided_slice %65 {offsets = [3, 0, 0], sizes = [1, 8, 32], strides = [1, 1, 1]} : vector<4x8x32xf32> to vector<1x8x32xf32>
    %73 = vector.shape_cast %72 : vector<1x8x32xf32> to vector<8x32xf32>
    %74 = tpu.concatenate %67, %69, %71, %73 in 1 : vector<8x32xf32>, vector<8x32xf32>, vector<8x32xf32>, vector<8x32xf32> -> vector<8x128xf32>
    %c0_20 = arith.constant 0 : index
    %c0_21 = arith.constant 0 : index
    %c0_22 = arith.constant 0 : index
    %75 = vector.load %arg8[%c0_20, %c0_21, %c0_22] : memref<2x128x128xbf16, #tpu.memory_space<vmem>>, vector<1x128x128xbf16>
    %76 = vector.shape_cast %75 : vector<1x128x128xbf16> to vector<128x128xbf16>
    %c0_23 = arith.constant 0 : index
    %c0_24 = arith.constant 0 : index
    %c0_25 = arith.constant 0 : index
    %77 = vector.load %arg9[%c0_23, %c0_24, %c0_25] : memref<2x1x128xf32, #tpu.memory_space<vmem>>, vector<1x1x128xf32>
    %78 = vector.shape_cast %77 : vector<1x1x128xf32> to vector<1x128xf32>
    %79 = arith.truncf %74 : vector<8x128xf32> to vector<8x128xbf16>
    %cst_26 = arith.constant dense<0.000000e+00> : vector<8x128xf32>
    %80 = tpu.matmul %79, %76, %cst_26 {dimension_numbers = #tpu.dot_dimension_numbers<[1], [0], [0], [1], [0, 0, 1, 1], [], []>} : vector<8x128xbf16>, vector<128x128xbf16>, vector<8x128xf32> -> vector<8x128xf32>
    %81 = vector.broadcast %78 : vector<1x128xf32> to vector<8x128xf32>
    %82 = arith.addf %80, %81 : vector<8x128xf32>
    %83 = arith.addf %9, %82 : vector<8x128xf32>
    %c0_27 = arith.constant 0 : index
    %c0_28 = arith.constant 0 : index
    %c0_29 = arith.constant 0 : index
    %84 = vector.load %arg10[%c0_27, %c0_28, %c0_29] : memref<2x1x128xf32, #tpu.memory_space<vmem>>, vector<1x1x128xf32>
    %85 = vector.shape_cast %84 : vector<1x1x128xf32> to vector<1x128xf32>
    %c0_30 = arith.constant 0 : index
    %c0_31 = arith.constant 0 : index
    %c0_32 = arith.constant 0 : index
    %86 = vector.load %arg11[%c0_30, %c0_31, %c0_32] : memref<2x1x128xf32, #tpu.memory_space<vmem>>, vector<1x1x128xf32>
    %87 = vector.shape_cast %86 : vector<1x1x128xf32> to vector<1x128xf32>
    %cst_33 = arith.constant dense<0.000000e+00> : vector<8xf32>
    %88 = vector.multi_reduction <add>, %83, %cst_33 [1] : vector<8x128xf32> to vector<8xf32>
    %89 = vector.shape_cast %88 : vector<8xf32> to vector<8x1xf32>
    %cst_34 = arith.constant 1.280000e+02 : f32
    %90 = vector.broadcast %cst_34 : f32 to vector<8x1xf32>
    %91 = arith.divf %89, %90 : vector<8x1xf32>
    %92 = vector.broadcast %91 : vector<8x1xf32> to vector<8x128xf32>
    %93 = arith.subf %83, %92 : vector<8x128xf32>
    %94 = arith.mulf %93, %93 : vector<8x128xf32>
    %cst_35 = arith.constant dense<0.000000e+00> : vector<8xf32>
    %95 = vector.multi_reduction <add>, %94, %cst_35 [1] : vector<8x128xf32> to vector<8xf32>
    %96 = vector.shape_cast %95 : vector<8xf32> to vector<8x1xf32>
    %cst_36 = arith.constant 1.280000e+02 : f32
    %97 = vector.broadcast %cst_36 : f32 to vector<8x1xf32>
    %98 = arith.divf %96, %97 : vector<8x1xf32>
    %99 = vector.broadcast %91 : vector<8x1xf32> to vector<8x128xf32>
    %100 = arith.subf %83, %99 : vector<8x128xf32>
    %cst_37 = arith.constant 9.99999974E-6 : f32
    %101 = vector.broadcast %cst_37 : f32 to vector<8x1xf32>
    %102 = arith.addf %98, %101 : vector<8x1xf32>
    %103 = math.rsqrt %102 : vector<8x1xf32>
    %104 = vector.broadcast %103 : vector<8x1xf32> to vector<8x128xf32>
    %105 = arith.mulf %100, %104 : vector<8x128xf32>
    %106 = vector.broadcast %85 : vector<1x128xf32> to vector<8x128xf32>
    %107 = arith.mulf %105, %106 : vector<8x128xf32>
    %108 = vector.broadcast %87 : vector<1x128xf32> to vector<8x128xf32>
    %109 = arith.addf %107, %108 : vector<8x128xf32>
    %c0_38 = arith.constant 0 : index
    %c0_39 = arith.constant 0 : index
    %c0_40 = arith.constant 0 : index
    %110 = vector.load %arg12[%c0_38, %c0_39, %c0_40] : memref<2x128x512xbf16, #tpu.memory_space<vmem>>, vector<1x128x512xbf16>
    %111 = vector.shape_cast %110 : vector<1x128x512xbf16> to vector<128x512xbf16>
    %c0_41 = arith.constant 0 : index
    %c0_42 = arith.constant 0 : index
    %c0_43 = arith.constant 0 : index
    %112 = vector.load %arg13[%c0_41, %c0_42, %c0_43] : memref<2x1x512xf32, #tpu.memory_space<vmem>>, vector<1x1x512xf32>
    %113 = vector.shape_cast %112 : vector<1x1x512xf32> to vector<1x512xf32>
    %114 = arith.truncf %109 : vector<8x128xf32> to vector<8x128xbf16>
    %cst_44 = arith.constant dense<0.000000e+00> : vector<8x512xf32>
    %115 = tpu.matmul %114, %111, %cst_44 {dimension_numbers = #tpu.dot_dimension_numbers<[1], [0], [0], [1], [0, 0, 1, 1], [], []>} : vector<8x128xbf16>, vector<128x512xbf16>, vector<8x512xf32> -> vector<8x512xf32>
    %116 = vector.broadcast %113 : vector<1x512xf32> to vector<8x512xf32>
    %117 = arith.addf %115, %116 : vector<8x512xf32>
    %cst_45 = arith.constant 0.000000e+00 : f32
    %118 = vector.broadcast %cst_45 : f32 to vector<8x512xf32>
    %119 = arith.maximumf %117, %118 : vector<8x512xf32>
    %c0_46 = arith.constant 0 : index
    %c0_47 = arith.constant 0 : index
    %c0_48 = arith.constant 0 : index
    %120 = vector.load %arg14[%c0_46, %c0_47, %c0_48] : memref<2x512x128xbf16, #tpu.memory_space<vmem>>, vector<1x512x128xbf16>
    %121 = vector.shape_cast %120 : vector<1x512x128xbf16> to vector<512x128xbf16>
    %c0_49 = arith.constant 0 : index
    %c0_50 = arith.constant 0 : index
    %c0_51 = arith.constant 0 : index
    %122 = vector.load %arg15[%c0_49, %c0_50, %c0_51] : memref<2x1x128xf32, #tpu.memory_space<vmem>>, vector<1x1x128xf32>
    %123 = vector.shape_cast %122 : vector<1x1x128xf32> to vector<1x128xf32>
    %124 = arith.truncf %119 : vector<8x512xf32> to vector<8x512xbf16>
    %cst_52 = arith.constant dense<0.000000e+00> : vector<8x128xf32>
    %125 = tpu.matmul %124, %121, %cst_52 {dimension_numbers = #tpu.dot_dimension_numbers<[1], [0], [0], [1], [0, 0, 1, 1], [], []>} : vector<8x512xbf16>, vector<512x128xbf16>, vector<8x128xf32> -> vector<8x128xf32>
    %126 = vector.broadcast %123 : vector<1x128xf32> to vector<8x128xf32>
    %127 = arith.addf %125, %126 : vector<8x128xf32>
    %128 = arith.addf %109, %127 : vector<8x128xf32>
    %c0_53 = arith.constant 0 : index
    %c0_54 = arith.constant 0 : index
    %c0_55 = arith.constant 0 : index
    %129 = vector.load %arg16[%c0_53, %c0_54, %c0_55] : memref<2x1x128xf32, #tpu.memory_space<vmem>>, vector<1x1x128xf32>
    %130 = vector.shape_cast %129 : vector<1x1x128xf32> to vector<1x128xf32>
    %c0_56 = arith.constant 0 : index
    %c0_57 = arith.constant 0 : index
    %c0_58 = arith.constant 0 : index
    %131 = vector.load %arg17[%c0_56, %c0_57, %c0_58] : memref<2x1x128xf32, #tpu.memory_space<vmem>>, vector<1x1x128xf32>
    %132 = vector.shape_cast %131 : vector<1x1x128xf32> to vector<1x128xf32>
    %cst_59 = arith.constant dense<0.000000e+00> : vector<8xf32>
    %133 = vector.multi_reduction <add>, %128, %cst_59 [1] : vector<8x128xf32> to vector<8xf32>
    %134 = vector.shape_cast %133 : vector<8xf32> to vector<8x1xf32>
    %cst_60 = arith.constant 1.280000e+02 : f32
    %135 = vector.broadcast %cst_60 : f32 to vector<8x1xf32>
    %136 = arith.divf %134, %135 : vector<8x1xf32>
    %137 = vector.broadcast %136 : vector<8x1xf32> to vector<8x128xf32>
    %138 = arith.subf %128, %137 : vector<8x128xf32>
    %139 = arith.mulf %138, %138 : vector<8x128xf32>
    %cst_61 = arith.constant dense<0.000000e+00> : vector<8xf32>
    %140 = vector.multi_reduction <add>, %139, %cst_61 [1] : vector<8x128xf32> to vector<8xf32>
    %141 = vector.shape_cast %140 : vector<8xf32> to vector<8x1xf32>
    %cst_62 = arith.constant 1.280000e+02 : f32
    %142 = vector.broadcast %cst_62 : f32 to vector<8x1xf32>
    %143 = arith.divf %141, %142 : vector<8x1xf32>
    %144 = vector.broadcast %136 : vector<8x1xf32> to vector<8x128xf32>
    %145 = arith.subf %128, %144 : vector<8x128xf32>
    %cst_63 = arith.constant 9.99999974E-6 : f32
    %146 = vector.broadcast %cst_63 : f32 to vector<8x1xf32>
    %147 = arith.addf %143, %146 : vector<8x1xf32>
    %148 = math.rsqrt %147 : vector<8x1xf32>
    %149 = vector.broadcast %148 : vector<8x1xf32> to vector<8x128xf32>
    %150 = arith.mulf %145, %149 : vector<8x128xf32>
    %151 = vector.broadcast %130 : vector<1x128xf32> to vector<8x128xf32>
    %152 = arith.mulf %150, %151 : vector<8x128xf32>
    %153 = vector.broadcast %132 : vector<1x128xf32> to vector<8x128xf32>
    %154 = arith.addf %152, %153 : vector<8x128xf32>
    %c1 = arith.constant 1 : index
    %c0_64 = arith.constant 0 : index
    %c0_65 = arith.constant 0 : index
    %155 = vector.load %arg6[%c1, %c0_64, %c0_65] : memref<2x128x384xbf16, #tpu.memory_space<vmem>>, vector<1x128x384xbf16>
    %156 = vector.shape_cast %155 : vector<1x128x384xbf16> to vector<128x384xbf16>
    %c1_66 = arith.constant 1 : index
    %c0_67 = arith.constant 0 : index
    %c0_68 = arith.constant 0 : index
    %157 = vector.load %arg7[%c1_66, %c0_67, %c0_68] : memref<2x1x384xf32, #tpu.memory_space<vmem>>, vector<1x1x384xf32>
    %158 = vector.shape_cast %157 : vector<1x1x384xf32> to vector<1x384xf32>
    %159 = arith.truncf %154 : vector<8x128xf32> to vector<8x128xbf16>
    %cst_69 = arith.constant dense<0.000000e+00> : vector<8x384xf32>
    %160 = tpu.matmul %159, %156, %cst_69 {dimension_numbers = #tpu.dot_dimension_numbers<[1], [0], [0], [1], [0, 0, 1, 1], [], []>} : vector<8x128xbf16>, vector<128x384xbf16>, vector<8x384xf32> -> vector<8x384xf32>
    %161 = vector.broadcast %158 : vector<1x384xf32> to vector<8x384xf32>
    %162 = arith.addf %160, %161 : vector<8x384xf32>
    %163 = vector.extract_strided_slice %162 {offsets = [0, 0], sizes = [8, 128], strides = [1, 1]} : vector<8x384xf32> to vector<8x128xf32>
    %164 = vector.extract_strided_slice %162 {offsets = [0, 128], sizes = [8, 128], strides = [1, 1]} : vector<8x384xf32> to vector<8x128xf32>
    %165 = vector.extract_strided_slice %162 {offsets = [0, 256], sizes = [8, 128], strides = [1, 1]} : vector<8x384xf32> to vector<8x128xf32>
    %166 = arith.truncf %163 : vector<8x128xf32> to vector<8x128xbf16>
    %167 = vector.extract_strided_slice %166 {offsets = [0, 0], sizes = [8, 32], strides = [1, 1]} : vector<8x128xbf16> to vector<8x32xbf16>
    %168 = vector.extract_strided_slice %166 {offsets = [0, 32], sizes = [8, 32], strides = [1, 1]} : vector<8x128xbf16> to vector<8x32xbf16>
    %169 = vector.extract_strided_slice %166 {offsets = [0, 64], sizes = [8, 32], strides = [1, 1]} : vector<8x128xbf16> to vector<8x32xbf16>
    %170 = vector.extract_strided_slice %166 {offsets = [0, 96], sizes = [8, 32], strides = [1, 1]} : vector<8x128xbf16> to vector<8x32xbf16>
    %171 = vector.shape_cast %167 : vector<8x32xbf16> to vector<1x8x32xbf16>
    %172 = vector.shape_cast %168 : vector<8x32xbf16> to vector<1x8x32xbf16>
    %173 = vector.shape_cast %169 : vector<8x32xbf16> to vector<1x8x32xbf16>
    %174 = vector.shape_cast %170 : vector<8x32xbf16> to vector<1x8x32xbf16>
    %175 = tpu.concatenate %171, %172, %173, %174 in 0 : vector<1x8x32xbf16>, vector<1x8x32xbf16>, vector<1x8x32xbf16>, vector<1x8x32xbf16> -> vector<4x8x32xbf16>
    %176 = arith.truncf %164 : vector<8x128xf32> to vector<8x128xbf16>
    %177 = vector.extract_strided_slice %176 {offsets = [0, 0], sizes = [8, 32], strides = [1, 1]} : vector<8x128xbf16> to vector<8x32xbf16>
    %178 = vector.extract_strided_slice %176 {offsets = [0, 32], sizes = [8, 32], strides = [1, 1]} : vector<8x128xbf16> to vector<8x32xbf16>
    %179 = vector.extract_strided_slice %176 {offsets = [0, 64], sizes = [8, 32], strides = [1, 1]} : vector<8x128xbf16> to vector<8x32xbf16>
    %180 = vector.extract_strided_slice %176 {offsets = [0, 96], sizes = [8, 32], strides = [1, 1]} : vector<8x128xbf16> to vector<8x32xbf16>
    %181 = vector.shape_cast %177 : vector<8x32xbf16> to vector<1x8x32xbf16>
    %182 = vector.shape_cast %178 : vector<8x32xbf16> to vector<1x8x32xbf16>
    %183 = vector.shape_cast %179 : vector<8x32xbf16> to vector<1x8x32xbf16>
    %184 = vector.shape_cast %180 : vector<8x32xbf16> to vector<1x8x32xbf16>
    %185 = tpu.concatenate %181, %182, %183, %184 in 0 : vector<1x8x32xbf16>, vector<1x8x32xbf16>, vector<1x8x32xbf16>, vector<1x8x32xbf16> -> vector<4x8x32xbf16>
    %186 = arith.truncf %165 : vector<8x128xf32> to vector<8x128xbf16>
    %187 = vector.extract_strided_slice %186 {offsets = [0, 0], sizes = [8, 32], strides = [1, 1]} : vector<8x128xbf16> to vector<8x32xbf16>
    %188 = vector.extract_strided_slice %186 {offsets = [0, 32], sizes = [8, 32], strides = [1, 1]} : vector<8x128xbf16> to vector<8x32xbf16>
    %189 = vector.extract_strided_slice %186 {offsets = [0, 64], sizes = [8, 32], strides = [1, 1]} : vector<8x128xbf16> to vector<8x32xbf16>
    %190 = vector.extract_strided_slice %186 {offsets = [0, 96], sizes = [8, 32], strides = [1, 1]} : vector<8x128xbf16> to vector<8x32xbf16>
    %191 = vector.shape_cast %187 : vector<8x32xbf16> to vector<1x8x32xbf16>
    %192 = vector.shape_cast %188 : vector<8x32xbf16> to vector<1x8x32xbf16>
    %193 = vector.shape_cast %189 : vector<8x32xbf16> to vector<1x8x32xbf16>
    %194 = vector.shape_cast %190 : vector<8x32xbf16> to vector<1x8x32xbf16>
    %195 = tpu.concatenate %191, %192, %193, %194 in 0 : vector<1x8x32xbf16>, vector<1x8x32xbf16>, vector<1x8x32xbf16>, vector<1x8x32xbf16> -> vector<4x8x32xbf16>
    "tpu.trace_start"() <{level = 10 : i32, message = "hqd,hkd->hqk"}> : () -> ()
    %cst_70 = arith.constant dense<0.000000e+00> : vector<4x8x8xf32>
    %196 = tpu.matmul %175, %185, %cst_70 {dimension_numbers = #tpu.dot_dimension_numbers<[2], [2], [1], [1], [0, 0, 0, 1, 1, 1], [0], [0]>} : vector<4x8x32xbf16>, vector<4x8x32xbf16>, vector<4x8x8xf32> -> vector<4x8x8xf32>
    "tpu.trace_stop"() : () -> ()
    %cst_71 = arith.constant 0.176776692 : f32
    %197 = vector.broadcast %cst_71 : f32 to vector<4x8x8xf32>
    %198 = arith.mulf %196, %197 : vector<4x8x8xf32>
    %cst_72 = arith.constant dense<0xFF800000> : vector<4x8xf32>
    %199 = vector.multi_reduction <maximumf>, %198, %cst_72 [2] : vector<4x8x8xf32> to vector<4x8xf32>
    %200 = vector.shape_cast %199 : vector<4x8xf32> to vector<4x8x1xf32>
    %201 = vector.broadcast %200 : vector<4x8x1xf32> to vector<4x8x8xf32>
    %202 = arith.subf %198, %201 : vector<4x8x8xf32>
    %203 = math.exp %202 : vector<4x8x8xf32>
    %cst_73 = arith.constant dense<0.000000e+00> : vector<4x8xf32>
    %204 = vector.multi_reduction <add>, %203, %cst_73 [2] : vector<4x8x8xf32> to vector<4x8xf32>
    %205 = vector.shape_cast %204 : vector<4x8xf32> to vector<4x8x1xf32>
    %206 = tpu.reciprocal %205 {approx = true} : vector<4x8x1xf32> -> vector<4x8x1xf32>
    %207 = vector.broadcast %206 : vector<4x8x1xf32> to vector<4x8x8xf32>
    %208 = arith.mulf %203, %207 : vector<4x8x8xf32>
    %209 = arith.truncf %208 : vector<4x8x8xf32> to vector<4x8x8xbf16>
    "tpu.trace_start"() <{level = 10 : i32, message = "hqk,hkd->hqd"}> : () -> ()
    %cst_74 = arith.constant dense<0.000000e+00> : vector<4x8x32xf32>
    %210 = tpu.matmul %209, %195, %cst_74 {dimension_numbers = #tpu.dot_dimension_numbers<[2], [1], [1], [2], [0, 0, 0, 1, 1, 2], [0], [0]>} : vector<4x8x8xbf16>, vector<4x8x32xbf16>, vector<4x8x32xf32> -> vector<4x8x32xf32>
    "tpu.trace_stop"() : () -> ()
    %211 = vector.extract_strided_slice %210 {offsets = [0, 0, 0], sizes = [1, 8, 32], strides = [1, 1, 1]} : vector<4x8x32xf32> to vector<1x8x32xf32>
    %212 = vector.shape_cast %211 : vector<1x8x32xf32> to vector<8x32xf32>
    %213 = vector.extract_strided_slice %210 {offsets = [1, 0, 0], sizes = [1, 8, 32], strides = [1, 1, 1]} : vector<4x8x32xf32> to vector<1x8x32xf32>
    %214 = vector.shape_cast %213 : vector<1x8x32xf32> to vector<8x32xf32>
    %215 = vector.extract_strided_slice %210 {offsets = [2, 0, 0], sizes = [1, 8, 32], strides = [1, 1, 1]} : vector<4x8x32xf32> to vector<1x8x32xf32>
    %216 = vector.shape_cast %215 : vector<1x8x32xf32> to vector<8x32xf32>
    %217 = vector.extract_strided_slice %210 {offsets = [3, 0, 0], sizes = [1, 8, 32], strides = [1, 1, 1]} : vector<4x8x32xf32> to vector<1x8x32xf32>
    %218 = vector.shape_cast %217 : vector<1x8x32xf32> to vector<8x32xf32>
    %219 = tpu.concatenate %212, %214, %216, %218 in 1 : vector<8x32xf32>, vector<8x32xf32>, vector<8x32xf32>, vector<8x32xf32> -> vector<8x128xf32>
    %c1_75 = arith.constant 1 : index
    %c0_76 = arith.constant 0 : index
    %c0_77 = arith.constant 0 : index
    %220 = vector.load %arg8[%c1_75, %c0_76, %c0_77] : memref<2x128x128xbf16, #tpu.memory_space<vmem>>, vector<1x128x128xbf16>
    %221 = vector.shape_cast %220 : vector<1x128x128xbf16> to vector<128x128xbf16>
    %c1_78 = arith.constant 1 : index
    %c0_79 = arith.constant 0 : index
    %c0_80 = arith.constant 0 : index
    %222 = vector.load %arg9[%c1_78, %c0_79, %c0_80] : memref<2x1x128xf32, #tpu.memory_space<vmem>>, vector<1x1x128xf32>
    %223 = vector.shape_cast %222 : vector<1x1x128xf32> to vector<1x128xf32>
    %224 = arith.truncf %219 : vector<8x128xf32> to vector<8x128xbf16>
    %cst_81 = arith.constant dense<0.000000e+00> : vector<8x128xf32>
    %225 = tpu.matmul %224, %221, %cst_81 {dimension_numbers = #tpu.dot_dimension_numbers<[1], [0], [0], [1], [0, 0, 1, 1], [], []>} : vector<8x128xbf16>, vector<128x128xbf16>, vector<8x128xf32> -> vector<8x128xf32>
    %226 = vector.broadcast %223 : vector<1x128xf32> to vector<8x128xf32>
    %227 = arith.addf %225, %226 : vector<8x128xf32>
    %228 = arith.addf %154, %227 : vector<8x128xf32>
    %c1_82 = arith.constant 1 : index
    %c0_83 = arith.constant 0 : index
    %c0_84 = arith.constant 0 : index
    %229 = vector.load %arg10[%c1_82, %c0_83, %c0_84] : memref<2x1x128xf32, #tpu.memory_space<vmem>>, vector<1x1x128xf32>
    %230 = vector.shape_cast %229 : vector<1x1x128xf32> to vector<1x128xf32>
    %c1_85 = arith.constant 1 : index
    %c0_86 = arith.constant 0 : index
    %c0_87 = arith.constant 0 : index
    %231 = vector.load %arg11[%c1_85, %c0_86, %c0_87] : memref<2x1x128xf32, #tpu.memory_space<vmem>>, vector<1x1x128xf32>
    %232 = vector.shape_cast %231 : vector<1x1x128xf32> to vector<1x128xf32>
    %cst_88 = arith.constant dense<0.000000e+00> : vector<8xf32>
    %233 = vector.multi_reduction <add>, %228, %cst_88 [1] : vector<8x128xf32> to vector<8xf32>
    %234 = vector.shape_cast %233 : vector<8xf32> to vector<8x1xf32>
    %cst_89 = arith.constant 1.280000e+02 : f32
    %235 = vector.broadcast %cst_89 : f32 to vector<8x1xf32>
    %236 = arith.divf %234, %235 : vector<8x1xf32>
    %237 = vector.broadcast %236 : vector<8x1xf32> to vector<8x128xf32>
    %238 = arith.subf %228, %237 : vector<8x128xf32>
    %239 = arith.mulf %238, %238 : vector<8x128xf32>
    %cst_90 = arith.constant dense<0.000000e+00> : vector<8xf32>
    %240 = vector.multi_reduction <add>, %239, %cst_90 [1] : vector<8x128xf32> to vector<8xf32>
    %241 = vector.shape_cast %240 : vector<8xf32> to vector<8x1xf32>
    %cst_91 = arith.constant 1.280000e+02 : f32
    %242 = vector.broadcast %cst_91 : f32 to vector<8x1xf32>
    %243 = arith.divf %241, %242 : vector<8x1xf32>
    %244 = vector.broadcast %236 : vector<8x1xf32> to vector<8x128xf32>
    %245 = arith.subf %228, %244 : vector<8x128xf32>
    %cst_92 = arith.constant 9.99999974E-6 : f32
    %246 = vector.broadcast %cst_92 : f32 to vector<8x1xf32>
    %247 = arith.addf %243, %246 : vector<8x1xf32>
    %248 = math.rsqrt %247 : vector<8x1xf32>
    %249 = vector.broadcast %248 : vector<8x1xf32> to vector<8x128xf32>
    %250 = arith.mulf %245, %249 : vector<8x128xf32>
    %251 = vector.broadcast %230 : vector<1x128xf32> to vector<8x128xf32>
    %252 = arith.mulf %250, %251 : vector<8x128xf32>
    %253 = vector.broadcast %232 : vector<1x128xf32> to vector<8x128xf32>
    %254 = arith.addf %252, %253 : vector<8x128xf32>
    %c1_93 = arith.constant 1 : index
    %c0_94 = arith.constant 0 : index
    %c0_95 = arith.constant 0 : index
    %255 = vector.load %arg12[%c1_93, %c0_94, %c0_95] : memref<2x128x512xbf16, #tpu.memory_space<vmem>>, vector<1x128x512xbf16>
    %256 = vector.shape_cast %255 : vector<1x128x512xbf16> to vector<128x512xbf16>
    %c1_96 = arith.constant 1 : index
    %c0_97 = arith.constant 0 : index
    %c0_98 = arith.constant 0 : index
    %257 = vector.load %arg13[%c1_96, %c0_97, %c0_98] : memref<2x1x512xf32, #tpu.memory_space<vmem>>, vector<1x1x512xf32>
    %258 = vector.shape_cast %257 : vector<1x1x512xf32> to vector<1x512xf32>
    %259 = arith.truncf %254 : vector<8x128xf32> to vector<8x128xbf16>
    %cst_99 = arith.constant dense<0.000000e+00> : vector<8x512xf32>
    %260 = tpu.matmul %259, %256, %cst_99 {dimension_numbers = #tpu.dot_dimension_numbers<[1], [0], [0], [1], [0, 0, 1, 1], [], []>} : vector<8x128xbf16>, vector<128x512xbf16>, vector<8x512xf32> -> vector<8x512xf32>
    %261 = vector.broadcast %258 : vector<1x512xf32> to vector<8x512xf32>
    %262 = arith.addf %260, %261 : vector<8x512xf32>
    %cst_100 = arith.constant 0.000000e+00 : f32
    %263 = vector.broadcast %cst_100 : f32 to vector<8x512xf32>
    %264 = arith.maximumf %262, %263 : vector<8x512xf32>
    %c1_101 = arith.constant 1 : index
    %c0_102 = arith.constant 0 : index
    %c0_103 = arith.constant 0 : index
    %265 = vector.load %arg14[%c1_101, %c0_102, %c0_103] : memref<2x512x128xbf16, #tpu.memory_space<vmem>>, vector<1x512x128xbf16>
    %266 = vector.shape_cast %265 : vector<1x512x128xbf16> to vector<512x128xbf16>
    %c1_104 = arith.constant 1 : index
    %c0_105 = arith.constant 0 : index
    %c0_106 = arith.constant 0 : index
    %267 = vector.load %arg15[%c1_104, %c0_105, %c0_106] : memref<2x1x128xf32, #tpu.memory_space<vmem>>, vector<1x1x128xf32>
    %268 = vector.shape_cast %267 : vector<1x1x128xf32> to vector<1x128xf32>
    %269 = arith.truncf %264 : vector<8x512xf32> to vector<8x512xbf16>
    %cst_107 = arith.constant dense<0.000000e+00> : vector<8x128xf32>
    %270 = tpu.matmul %269, %266, %cst_107 {dimension_numbers = #tpu.dot_dimension_numbers<[1], [0], [0], [1], [0, 0, 1, 1], [], []>} : vector<8x512xbf16>, vector<512x128xbf16>, vector<8x128xf32> -> vector<8x128xf32>
    %271 = vector.broadcast %268 : vector<1x128xf32> to vector<8x128xf32>
    %272 = arith.addf %270, %271 : vector<8x128xf32>
    %273 = arith.addf %254, %272 : vector<8x128xf32>
    %c1_108 = arith.constant 1 : index
    %c0_109 = arith.constant 0 : index
    %c0_110 = arith.constant 0 : index
    %274 = vector.load %arg16[%c1_108, %c0_109, %c0_110] : memref<2x1x128xf32, #tpu.memory_space<vmem>>, vector<1x1x128xf32>
    %275 = vector.shape_cast %274 : vector<1x1x128xf32> to vector<1x128xf32>
    %c1_111 = arith.constant 1 : index
    %c0_112 = arith.constant 0 : index
    %c0_113 = arith.constant 0 : index
    %276 = vector.load %arg17[%c1_111, %c0_112, %c0_113] : memref<2x1x128xf32, #tpu.memory_space<vmem>>, vector<1x1x128xf32>
    %277 = vector.shape_cast %276 : vector<1x1x128xf32> to vector<1x128xf32>
    %cst_114 = arith.constant dense<0.000000e+00> : vector<8xf32>
    %278 = vector.multi_reduction <add>, %273, %cst_114 [1] : vector<8x128xf32> to vector<8xf32>
    %279 = vector.shape_cast %278 : vector<8xf32> to vector<8x1xf32>
    %cst_115 = arith.constant 1.280000e+02 : f32
    %280 = vector.broadcast %cst_115 : f32 to vector<8x1xf32>
    %281 = arith.divf %279, %280 : vector<8x1xf32>
    %282 = vector.broadcast %281 : vector<8x1xf32> to vector<8x128xf32>
    %283 = arith.subf %273, %282 : vector<8x128xf32>
    %284 = arith.mulf %283, %283 : vector<8x128xf32>
    %cst_116 = arith.constant dense<0.000000e+00> : vector<8xf32>
    %285 = vector.multi_reduction <add>, %284, %cst_116 [1] : vector<8x128xf32> to vector<8xf32>
    %286 = vector.shape_cast %285 : vector<8xf32> to vector<8x1xf32>
    %cst_117 = arith.constant 1.280000e+02 : f32
    %287 = vector.broadcast %cst_117 : f32 to vector<8x1xf32>
    %288 = arith.divf %286, %287 : vector<8x1xf32>
    %289 = vector.broadcast %281 : vector<8x1xf32> to vector<8x128xf32>
    %290 = arith.subf %273, %289 : vector<8x128xf32>
    %cst_118 = arith.constant 9.99999974E-6 : f32
    %291 = vector.broadcast %cst_118 : f32 to vector<8x1xf32>
    %292 = arith.addf %288, %291 : vector<8x1xf32>
    %293 = math.rsqrt %292 : vector<8x1xf32>
    %294 = vector.broadcast %293 : vector<8x1xf32> to vector<8x128xf32>
    %295 = arith.mulf %290, %294 : vector<8x128xf32>
    %296 = vector.broadcast %275 : vector<1x128xf32> to vector<8x128xf32>
    %297 = arith.mulf %295, %296 : vector<8x128xf32>
    %298 = vector.broadcast %277 : vector<1x128xf32> to vector<8x128xf32>
    %299 = arith.addf %297, %298 : vector<8x128xf32>
    %c0_119 = arith.constant 0 : index
    %c0_120 = arith.constant 0 : index
    %300 = vector.load %arg18[%c0_119, %c0_120] : memref<1x128xf32, #tpu.memory_space<vmem>>, vector<1x128xf32>
    %c0_121 = arith.constant 0 : index
    %c0_122 = arith.constant 0 : index
    %301 = vector.load %arg19[%c0_121, %c0_122] : memref<1x128xf32, #tpu.memory_space<vmem>>, vector<1x128xf32>
    %cst_123 = arith.constant dense<0.000000e+00> : vector<8xf32>
    %302 = vector.multi_reduction <add>, %299, %cst_123 [1] : vector<8x128xf32> to vector<8xf32>
    %303 = vector.shape_cast %302 : vector<8xf32> to vector<8x1xf32>
    %cst_124 = arith.constant 1.280000e+02 : f32
    %304 = vector.broadcast %cst_124 : f32 to vector<8x1xf32>
    %305 = arith.divf %303, %304 : vector<8x1xf32>
    %306 = vector.broadcast %305 : vector<8x1xf32> to vector<8x128xf32>
    %307 = arith.subf %299, %306 : vector<8x128xf32>
    %308 = arith.mulf %307, %307 : vector<8x128xf32>
    %cst_125 = arith.constant dense<0.000000e+00> : vector<8xf32>
    %309 = vector.multi_reduction <add>, %308, %cst_125 [1] : vector<8x128xf32> to vector<8xf32>
    %310 = vector.shape_cast %309 : vector<8xf32> to vector<8x1xf32>
    %cst_126 = arith.constant 1.280000e+02 : f32
    %311 = vector.broadcast %cst_126 : f32 to vector<8x1xf32>
    %312 = arith.divf %310, %311 : vector<8x1xf32>
    %313 = vector.broadcast %305 : vector<8x1xf32> to vector<8x128xf32>
    %314 = arith.subf %299, %313 : vector<8x128xf32>
    %cst_127 = arith.constant 9.99999974E-6 : f32
    %315 = vector.broadcast %cst_127 : f32 to vector<8x1xf32>
    %316 = arith.addf %312, %315 : vector<8x1xf32>
    %317 = math.rsqrt %316 : vector<8x1xf32>
    %318 = vector.broadcast %317 : vector<8x1xf32> to vector<8x128xf32>
    %319 = arith.mulf %314, %318 : vector<8x128xf32>
    %320 = vector.broadcast %300 : vector<1x128xf32> to vector<8x128xf32>
    %321 = arith.mulf %319, %320 : vector<8x128xf32>
    %322 = vector.broadcast %301 : vector<1x128xf32> to vector<8x128xf32>
    %323 = arith.addf %321, %322 : vector<8x128xf32>
    %c0_128 = arith.constant 0 : index
    %c0_129 = arith.constant 0 : index
    %324 = vector.load %arg20[%c0_128, %c0_129] : memref<1x128xf32, #tpu.memory_space<vmem>>, vector<1x128xf32>
    %c0_130 = arith.constant 0 : index
    %c0_131 = arith.constant 0 : index
    %325 = vector.load %arg5[%c0_130, %c0_131] : memref<8x128xf32, #tpu.memory_space<vmem>>, vector<8x128xf32>
    %326 = vector.broadcast %324 : vector<1x128xf32> to vector<8x128xf32>
    %327 = arith.addf %326, %325 : vector<8x128xf32>
    %328 = tpu.iota {dimensions = array<i32: 0>} : vector<8x8xi32>
    %329 = tpu.iota {dimensions = array<i32: 1>} : vector<8x8xi32>
    %330 = arith.cmpi sgt, %329, %328 : vector<8x8xi32>
    %cst_132 = arith.constant -1.000000e+30 : f32
    %cst_133 = arith.constant 0.000000e+00 : f32
    %331 = vector.broadcast %cst_132 : f32 to vector<8x8xf32>
    %332 = vector.broadcast %cst_133 : f32 to vector<8x8xf32>
    %333 = arith.select %330, %331, %332 : vector<8x8xi1>, vector<8x8xf32>
    %c0_134 = arith.constant 0 : index
    %c0_135 = arith.constant 0 : index
    %c0_136 = arith.constant 0 : index
    %334 = vector.load %arg21[%c0_134, %c0_135, %c0_136] : memref<3x128x384xbf16, #tpu.memory_space<vmem>>, vector<1x128x384xbf16>
    %335 = vector.shape_cast %334 : vector<1x128x384xbf16> to vector<128x384xbf16>
    %c0_137 = arith.constant 0 : index
    %c0_138 = arith.constant 0 : index
    %c0_139 = arith.constant 0 : index
    %336 = vector.load %arg22[%c0_137, %c0_138, %c0_139] : memref<3x1x384xf32, #tpu.memory_space<vmem>>, vector<1x1x384xf32>
    %337 = vector.shape_cast %336 : vector<1x1x384xf32> to vector<1x384xf32>
    %338 = arith.truncf %327 : vector<8x128xf32> to vector<8x128xbf16>
    %cst_140 = arith.constant dense<0.000000e+00> : vector<8x384xf32>
    %339 = tpu.matmul %338, %335, %cst_140 {dimension_numbers = #tpu.dot_dimension_numbers<[1], [0], [0], [1], [0, 0, 1, 1], [], []>} : vector<8x128xbf16>, vector<128x384xbf16>, vector<8x384xf32> -> vector<8x384xf32>
    %340 = vector.broadcast %337 : vector<1x384xf32> to vector<8x384xf32>
    %341 = arith.addf %339, %340 : vector<8x384xf32>
    %342 = vector.extract_strided_slice %341 {offsets = [0, 0], sizes = [8, 128], strides = [1, 1]} : vector<8x384xf32> to vector<8x128xf32>
    %343 = vector.extract_strided_slice %341 {offsets = [0, 128], sizes = [8, 128], strides = [1, 1]} : vector<8x384xf32> to vector<8x128xf32>
    %344 = vector.extract_strided_slice %341 {offsets = [0, 256], sizes = [8, 128], strides = [1, 1]} : vector<8x384xf32> to vector<8x128xf32>
    %345 = arith.truncf %342 : vector<8x128xf32> to vector<8x128xbf16>
    %346 = vector.extract_strided_slice %345 {offsets = [0, 0], sizes = [8, 32], strides = [1, 1]} : vector<8x128xbf16> to vector<8x32xbf16>
    %347 = vector.extract_strided_slice %345 {offsets = [0, 32], sizes = [8, 32], strides = [1, 1]} : vector<8x128xbf16> to vector<8x32xbf16>
    %348 = vector.extract_strided_slice %345 {offsets = [0, 64], sizes = [8, 32], strides = [1, 1]} : vector<8x128xbf16> to vector<8x32xbf16>
    %349 = vector.extract_strided_slice %345 {offsets = [0, 96], sizes = [8, 32], strides = [1, 1]} : vector<8x128xbf16> to vector<8x32xbf16>
    %350 = vector.shape_cast %346 : vector<8x32xbf16> to vector<1x8x32xbf16>
    %351 = vector.shape_cast %347 : vector<8x32xbf16> to vector<1x8x32xbf16>
    %352 = vector.shape_cast %348 : vector<8x32xbf16> to vector<1x8x32xbf16>
    %353 = vector.shape_cast %349 : vector<8x32xbf16> to vector<1x8x32xbf16>
    %354 = tpu.concatenate %350, %351, %352, %353 in 0 : vector<1x8x32xbf16>, vector<1x8x32xbf16>, vector<1x8x32xbf16>, vector<1x8x32xbf16> -> vector<4x8x32xbf16>
    %355 = arith.truncf %343 : vector<8x128xf32> to vector<8x128xbf16>
    %356 = vector.extract_strided_slice %355 {offsets = [0, 0], sizes = [8, 32], strides = [1, 1]} : vector<8x128xbf16> to vector<8x32xbf16>
    %357 = vector.extract_strided_slice %355 {offsets = [0, 32], sizes = [8, 32], strides = [1, 1]} : vector<8x128xbf16> to vector<8x32xbf16>
    %358 = vector.extract_strided_slice %355 {offsets = [0, 64], sizes = [8, 32], strides = [1, 1]} : vector<8x128xbf16> to vector<8x32xbf16>
    %359 = vector.extract_strided_slice %355 {offsets = [0, 96], sizes = [8, 32], strides = [1, 1]} : vector<8x128xbf16> to vector<8x32xbf16>
    %360 = vector.shape_cast %356 : vector<8x32xbf16> to vector<1x8x32xbf16>
    %361 = vector.shape_cast %357 : vector<8x32xbf16> to vector<1x8x32xbf16>
    %362 = vector.shape_cast %358 : vector<8x32xbf16> to vector<1x8x32xbf16>
    %363 = vector.shape_cast %359 : vector<8x32xbf16> to vector<1x8x32xbf16>
    %364 = tpu.concatenate %360, %361, %362, %363 in 0 : vector<1x8x32xbf16>, vector<1x8x32xbf16>, vector<1x8x32xbf16>, vector<1x8x32xbf16> -> vector<4x8x32xbf16>
    %365 = arith.truncf %344 : vector<8x128xf32> to vector<8x128xbf16>
    %366 = vector.extract_strided_slice %365 {offsets = [0, 0], sizes = [8, 32], strides = [1, 1]} : vector<8x128xbf16> to vector<8x32xbf16>
    %367 = vector.extract_strided_slice %365 {offsets = [0, 32], sizes = [8, 32], strides = [1, 1]} : vector<8x128xbf16> to vector<8x32xbf16>
    %368 = vector.extract_strided_slice %365 {offsets = [0, 64], sizes = [8, 32], strides = [1, 1]} : vector<8x128xbf16> to vector<8x32xbf16>
    %369 = vector.extract_strided_slice %365 {offsets = [0, 96], sizes = [8, 32], strides = [1, 1]} : vector<8x128xbf16> to vector<8x32xbf16>
    %370 = vector.shape_cast %366 : vector<8x32xbf16> to vector<1x8x32xbf16>
    %371 = vector.shape_cast %367 : vector<8x32xbf16> to vector<1x8x32xbf16>
    %372 = vector.shape_cast %368 : vector<8x32xbf16> to vector<1x8x32xbf16>
    %373 = vector.shape_cast %369 : vector<8x32xbf16> to vector<1x8x32xbf16>
    %374 = tpu.concatenate %370, %371, %372, %373 in 0 : vector<1x8x32xbf16>, vector<1x8x32xbf16>, vector<1x8x32xbf16>, vector<1x8x32xbf16> -> vector<4x8x32xbf16>
    "tpu.trace_start"() <{level = 10 : i32, message = "hqd,hkd->hqk"}> : () -> ()
    %cst_141 = arith.constant dense<0.000000e+00> : vector<4x8x8xf32>
    %375 = tpu.matmul %354, %364, %cst_141 {dimension_numbers = #tpu.dot_dimension_numbers<[2], [2], [1], [1], [0, 0, 0, 1, 1, 1], [0], [0]>} : vector<4x8x32xbf16>, vector<4x8x32xbf16>, vector<4x8x8xf32> -> vector<4x8x8xf32>
    "tpu.trace_stop"() : () -> ()
    %cst_142 = arith.constant 0.176776692 : f32
    %376 = vector.broadcast %cst_142 : f32 to vector<4x8x8xf32>
    %377 = arith.mulf %375, %376 : vector<4x8x8xf32>
    %378 = vector.shape_cast %333 : vector<8x8xf32> to vector<1x8x8xf32>
    %379 = vector.broadcast %378 : vector<1x8x8xf32> to vector<4x8x8xf32>
    %380 = arith.addf %377, %379 : vector<4x8x8xf32>
    %cst_143 = arith.constant dense<0xFF800000> : vector<4x8xf32>
    %381 = vector.multi_reduction <maximumf>, %380, %cst_143 [2] : vector<4x8x8xf32> to vector<4x8xf32>
    %382 = vector.shape_cast %381 : vector<4x8xf32> to vector<4x8x1xf32>
    %383 = vector.broadcast %382 : vector<4x8x1xf32> to vector<4x8x8xf32>
    %384 = arith.subf %380, %383 : vector<4x8x8xf32>
    %385 = math.exp %384 : vector<4x8x8xf32>
    %cst_144 = arith.constant dense<0.000000e+00> : vector<4x8xf32>
    %386 = vector.multi_reduction <add>, %385, %cst_144 [2] : vector<4x8x8xf32> to vector<4x8xf32>
    %387 = vector.shape_cast %386 : vector<4x8xf32> to vector<4x8x1xf32>
    %388 = tpu.reciprocal %387 {approx = true} : vector<4x8x1xf32> -> vector<4x8x1xf32>
    %389 = vector.broadcast %388 : vector<4x8x1xf32> to vector<4x8x8xf32>
    %390 = arith.mulf %385, %389 : vector<4x8x8xf32>
    %391 = arith.truncf %390 : vector<4x8x8xf32> to vector<4x8x8xbf16>
    "tpu.trace_start"() <{level = 10 : i32, message = "hqk,hkd->hqd"}> : () -> ()
    %cst_145 = arith.constant dense<0.000000e+00> : vector<4x8x32xf32>
    %392 = tpu.matmul %391, %374, %cst_145 {dimension_numbers = #tpu.dot_dimension_numbers<[2], [1], [1], [2], [0, 0, 0, 1, 1, 2], [0], [0]>} : vector<4x8x8xbf16>, vector<4x8x32xbf16>, vector<4x8x32xf32> -> vector<4x8x32xf32>
    "tpu.trace_stop"() : () -> ()
    %393 = vector.extract_strided_slice %392 {offsets = [0, 0, 0], sizes = [1, 8, 32], strides = [1, 1, 1]} : vector<4x8x32xf32> to vector<1x8x32xf32>
    %394 = vector.shape_cast %393 : vector<1x8x32xf32> to vector<8x32xf32>
    %395 = vector.extract_strided_slice %392 {offsets = [1, 0, 0], sizes = [1, 8, 32], strides = [1, 1, 1]} : vector<4x8x32xf32> to vector<1x8x32xf32>
    %396 = vector.shape_cast %395 : vector<1x8x32xf32> to vector<8x32xf32>
    %397 = vector.extract_strided_slice %392 {offsets = [2, 0, 0], sizes = [1, 8, 32], strides = [1, 1, 1]} : vector<4x8x32xf32> to vector<1x8x32xf32>
    %398 = vector.shape_cast %397 : vector<1x8x32xf32> to vector<8x32xf32>
    %399 = vector.extract_strided_slice %392 {offsets = [3, 0, 0], sizes = [1, 8, 32], strides = [1, 1, 1]} : vector<4x8x32xf32> to vector<1x8x32xf32>
    %400 = vector.shape_cast %399 : vector<1x8x32xf32> to vector<8x32xf32>
    %401 = tpu.concatenate %394, %396, %398, %400 in 1 : vector<8x32xf32>, vector<8x32xf32>, vector<8x32xf32>, vector<8x32xf32> -> vector<8x128xf32>
    %c0_146 = arith.constant 0 : index
    %c0_147 = arith.constant 0 : index
    %c0_148 = arith.constant 0 : index
    %402 = vector.load %arg23[%c0_146, %c0_147, %c0_148] : memref<3x128x128xbf16, #tpu.memory_space<vmem>>, vector<1x128x128xbf16>
    %403 = vector.shape_cast %402 : vector<1x128x128xbf16> to vector<128x128xbf16>
    %c0_149 = arith.constant 0 : index
    %c0_150 = arith.constant 0 : index
    %c0_151 = arith.constant 0 : index
    %404 = vector.load %arg24[%c0_149, %c0_150, %c0_151] : memref<3x1x128xf32, #tpu.memory_space<vmem>>, vector<1x1x128xf32>
    %405 = vector.shape_cast %404 : vector<1x1x128xf32> to vector<1x128xf32>
    %406 = arith.truncf %401 : vector<8x128xf32> to vector<8x128xbf16>
    %cst_152 = arith.constant dense<0.000000e+00> : vector<8x128xf32>
    %407 = tpu.matmul %406, %403, %cst_152 {dimension_numbers = #tpu.dot_dimension_numbers<[1], [0], [0], [1], [0, 0, 1, 1], [], []>} : vector<8x128xbf16>, vector<128x128xbf16>, vector<8x128xf32> -> vector<8x128xf32>
    %408 = vector.broadcast %405 : vector<1x128xf32> to vector<8x128xf32>
    %409 = arith.addf %407, %408 : vector<8x128xf32>
    %410 = arith.addf %327, %409 : vector<8x128xf32>
    %c0_153 = arith.constant 0 : index
    %c0_154 = arith.constant 0 : index
    %c0_155 = arith.constant 0 : index
    %411 = vector.load %arg25[%c0_153, %c0_154, %c0_155] : memref<3x1x128xf32, #tpu.memory_space<vmem>>, vector<1x1x128xf32>
    %412 = vector.shape_cast %411 : vector<1x1x128xf32> to vector<1x128xf32>
    %c0_156 = arith.constant 0 : index
    %c0_157 = arith.constant 0 : index
    %c0_158 = arith.constant 0 : index
    %413 = vector.load %arg26[%c0_156, %c0_157, %c0_158] : memref<3x1x128xf32, #tpu.memory_space<vmem>>, vector<1x1x128xf32>
    %414 = vector.shape_cast %413 : vector<1x1x128xf32> to vector<1x128xf32>
    %cst_159 = arith.constant dense<0.000000e+00> : vector<8xf32>
    %415 = vector.multi_reduction <add>, %410, %cst_159 [1] : vector<8x128xf32> to vector<8xf32>
    %416 = vector.shape_cast %415 : vector<8xf32> to vector<8x1xf32>
    %cst_160 = arith.constant 1.280000e+02 : f32
    %417 = vector.broadcast %cst_160 : f32 to vector<8x1xf32>
    %418 = arith.divf %416, %417 : vector<8x1xf32>
    %419 = vector.broadcast %418 : vector<8x1xf32> to vector<8x128xf32>
    %420 = arith.subf %410, %419 : vector<8x128xf32>
    %421 = arith.mulf %420, %420 : vector<8x128xf32>
    %cst_161 = arith.constant dense<0.000000e+00> : vector<8xf32>
    %422 = vector.multi_reduction <add>, %421, %cst_161 [1] : vector<8x128xf32> to vector<8xf32>
    %423 = vector.shape_cast %422 : vector<8xf32> to vector<8x1xf32>
    %cst_162 = arith.constant 1.280000e+02 : f32
    %424 = vector.broadcast %cst_162 : f32 to vector<8x1xf32>
    %425 = arith.divf %423, %424 : vector<8x1xf32>
    %426 = vector.broadcast %418 : vector<8x1xf32> to vector<8x128xf32>
    %427 = arith.subf %410, %426 : vector<8x128xf32>
    %cst_163 = arith.constant 9.99999974E-6 : f32
    %428 = vector.broadcast %cst_163 : f32 to vector<8x1xf32>
    %429 = arith.addf %425, %428 : vector<8x1xf32>
    %430 = math.rsqrt %429 : vector<8x1xf32>
    %431 = vector.broadcast %430 : vector<8x1xf32> to vector<8x128xf32>
    %432 = arith.mulf %427, %431 : vector<8x128xf32>
    %433 = vector.broadcast %412 : vector<1x128xf32> to vector<8x128xf32>
    %434 = arith.mulf %432, %433 : vector<8x128xf32>
    %435 = vector.broadcast %414 : vector<1x128xf32> to vector<8x128xf32>
    %436 = arith.addf %434, %435 : vector<8x128xf32>
    %c0_164 = arith.constant 0 : index
    %c0_165 = arith.constant 0 : index
    %c0_166 = arith.constant 0 : index
    %437 = vector.load %arg27[%c0_164, %c0_165, %c0_166] : memref<3x128x128xbf16, #tpu.memory_space<vmem>>, vector<1x128x128xbf16>
    %438 = vector.shape_cast %437 : vector<1x128x128xbf16> to vector<128x128xbf16>
    %c0_167 = arith.constant 0 : index
    %c0_168 = arith.constant 0 : index
    %c0_169 = arith.constant 0 : index
    %439 = vector.load %arg28[%c0_167, %c0_168, %c0_169] : memref<3x1x128xf32, #tpu.memory_space<vmem>>, vector<1x1x128xf32>
    %440 = vector.shape_cast %439 : vector<1x1x128xf32> to vector<1x128xf32>
    %441 = arith.truncf %436 : vector<8x128xf32> to vector<8x128xbf16>
    %cst_170 = arith.constant dense<0.000000e+00> : vector<8x128xf32>
    %442 = tpu.matmul %441, %438, %cst_170 {dimension_numbers = #tpu.dot_dimension_numbers<[1], [0], [0], [1], [0, 0, 1, 1], [], []>} : vector<8x128xbf16>, vector<128x128xbf16>, vector<8x128xf32> -> vector<8x128xf32>
    %443 = vector.broadcast %440 : vector<1x128xf32> to vector<8x128xf32>
    %444 = arith.addf %442, %443 : vector<8x128xf32>
    %c0_171 = arith.constant 0 : index
    %c0_172 = arith.constant 0 : index
    %c0_173 = arith.constant 0 : index
    %445 = vector.load %arg29[%c0_171, %c0_172, %c0_173] : memref<3x128x256xbf16, #tpu.memory_space<vmem>>, vector<1x128x256xbf16>
    %446 = vector.shape_cast %445 : vector<1x128x256xbf16> to vector<128x256xbf16>
    %c0_174 = arith.constant 0 : index
    %c0_175 = arith.constant 0 : index
    %c0_176 = arith.constant 0 : index
    %447 = vector.load %arg30[%c0_174, %c0_175, %c0_176] : memref<3x1x256xf32, #tpu.memory_space<vmem>>, vector<1x1x256xf32>
    %448 = vector.shape_cast %447 : vector<1x1x256xf32> to vector<1x256xf32>
    %449 = arith.truncf %323 : vector<8x128xf32> to vector<8x128xbf16>
    %cst_177 = arith.constant dense<0.000000e+00> : vector<8x256xf32>
    %450 = tpu.matmul %449, %446, %cst_177 {dimension_numbers = #tpu.dot_dimension_numbers<[1], [0], [0], [1], [0, 0, 1, 1], [], []>} : vector<8x128xbf16>, vector<128x256xbf16>, vector<8x256xf32> -> vector<8x256xf32>
    %451 = vector.broadcast %448 : vector<1x256xf32> to vector<8x256xf32>
    %452 = arith.addf %450, %451 : vector<8x256xf32>
    %453 = vector.extract_strided_slice %452 {offsets = [0, 0], sizes = [8, 128], strides = [1, 1]} : vector<8x256xf32> to vector<8x128xf32>
    %454 = vector.extract_strided_slice %452 {offsets = [0, 128], sizes = [8, 128], strides = [1, 1]} : vector<8x256xf32> to vector<8x128xf32>
    %455 = arith.truncf %444 : vector<8x128xf32> to vector<8x128xbf16>
    %456 = vector.extract_strided_slice %455 {offsets = [0, 0], sizes = [8, 32], strides = [1, 1]} : vector<8x128xbf16> to vector<8x32xbf16>
    %457 = vector.extract_strided_slice %455 {offsets = [0, 32], sizes = [8, 32], strides = [1, 1]} : vector<8x128xbf16> to vector<8x32xbf16>
    %458 = vector.extract_strided_slice %455 {offsets = [0, 64], sizes = [8, 32], strides = [1, 1]} : vector<8x128xbf16> to vector<8x32xbf16>
    %459 = vector.extract_strided_slice %455 {offsets = [0, 96], sizes = [8, 32], strides = [1, 1]} : vector<8x128xbf16> to vector<8x32xbf16>
    %460 = vector.shape_cast %456 : vector<8x32xbf16> to vector<1x8x32xbf16>
    %461 = vector.shape_cast %457 : vector<8x32xbf16> to vector<1x8x32xbf16>
    %462 = vector.shape_cast %458 : vector<8x32xbf16> to vector<1x8x32xbf16>
    %463 = vector.shape_cast %459 : vector<8x32xbf16> to vector<1x8x32xbf16>
    %464 = tpu.concatenate %460, %461, %462, %463 in 0 : vector<1x8x32xbf16>, vector<1x8x32xbf16>, vector<1x8x32xbf16>, vector<1x8x32xbf16> -> vector<4x8x32xbf16>
    %465 = arith.truncf %453 : vector<8x128xf32> to vector<8x128xbf16>
    %466 = vector.extract_strided_slice %465 {offsets = [0, 0], sizes = [8, 32], strides = [1, 1]} : vector<8x128xbf16> to vector<8x32xbf16>
    %467 = vector.extract_strided_slice %465 {offsets = [0, 32], sizes = [8, 32], strides = [1, 1]} : vector<8x128xbf16> to vector<8x32xbf16>
    %468 = vector.extract_strided_slice %465 {offsets = [0, 64], sizes = [8, 32], strides = [1, 1]} : vector<8x128xbf16> to vector<8x32xbf16>
    %469 = vector.extract_strided_slice %465 {offsets = [0, 96], sizes = [8, 32], strides = [1, 1]} : vector<8x128xbf16> to vector<8x32xbf16>
    %470 = vector.shape_cast %466 : vector<8x32xbf16> to vector<1x8x32xbf16>
    %471 = vector.shape_cast %467 : vector<8x32xbf16> to vector<1x8x32xbf16>
    %472 = vector.shape_cast %468 : vector<8x32xbf16> to vector<1x8x32xbf16>
    %473 = vector.shape_cast %469 : vector<8x32xbf16> to vector<1x8x32xbf16>
    %474 = tpu.concatenate %470, %471, %472, %473 in 0 : vector<1x8x32xbf16>, vector<1x8x32xbf16>, vector<1x8x32xbf16>, vector<1x8x32xbf16> -> vector<4x8x32xbf16>
    %475 = arith.truncf %454 : vector<8x128xf32> to vector<8x128xbf16>
    %476 = vector.extract_strided_slice %475 {offsets = [0, 0], sizes = [8, 32], strides = [1, 1]} : vector<8x128xbf16> to vector<8x32xbf16>
    %477 = vector.extract_strided_slice %475 {offsets = [0, 32], sizes = [8, 32], strides = [1, 1]} : vector<8x128xbf16> to vector<8x32xbf16>
    %478 = vector.extract_strided_slice %475 {offsets = [0, 64], sizes = [8, 32], strides = [1, 1]} : vector<8x128xbf16> to vector<8x32xbf16>
    %479 = vector.extract_strided_slice %475 {offsets = [0, 96], sizes = [8, 32], strides = [1, 1]} : vector<8x128xbf16> to vector<8x32xbf16>
    %480 = vector.shape_cast %476 : vector<8x32xbf16> to vector<1x8x32xbf16>
    %481 = vector.shape_cast %477 : vector<8x32xbf16> to vector<1x8x32xbf16>
    %482 = vector.shape_cast %478 : vector<8x32xbf16> to vector<1x8x32xbf16>
    %483 = vector.shape_cast %479 : vector<8x32xbf16> to vector<1x8x32xbf16>
    %484 = tpu.concatenate %480, %481, %482, %483 in 0 : vector<1x8x32xbf16>, vector<1x8x32xbf16>, vector<1x8x32xbf16>, vector<1x8x32xbf16> -> vector<4x8x32xbf16>
    "tpu.trace_start"() <{level = 10 : i32, message = "hqd,hkd->hqk"}> : () -> ()
    %cst_178 = arith.constant dense<0.000000e+00> : vector<4x8x8xf32>
    %485 = tpu.matmul %464, %474, %cst_178 {dimension_numbers = #tpu.dot_dimension_numbers<[2], [2], [1], [1], [0, 0, 0, 1, 1, 1], [0], [0]>} : vector<4x8x32xbf16>, vector<4x8x32xbf16>, vector<4x8x8xf32> -> vector<4x8x8xf32>
    "tpu.trace_stop"() : () -> ()
    %cst_179 = arith.constant 0.176776692 : f32
    %486 = vector.broadcast %cst_179 : f32 to vector<4x8x8xf32>
    %487 = arith.mulf %485, %486 : vector<4x8x8xf32>
    %cst_180 = arith.constant dense<0xFF800000> : vector<4x8xf32>
    %488 = vector.multi_reduction <maximumf>, %487, %cst_180 [2] : vector<4x8x8xf32> to vector<4x8xf32>
    %489 = vector.shape_cast %488 : vector<4x8xf32> to vector<4x8x1xf32>
    %490 = vector.broadcast %489 : vector<4x8x1xf32> to vector<4x8x8xf32>
    %491 = arith.subf %487, %490 : vector<4x8x8xf32>
    %492 = math.exp %491 : vector<4x8x8xf32>
    %cst_181 = arith.constant dense<0.000000e+00> : vector<4x8xf32>
    %493 = vector.multi_reduction <add>, %492, %cst_181 [2] : vector<4x8x8xf32> to vector<4x8xf32>
    %494 = vector.shape_cast %493 : vector<4x8xf32> to vector<4x8x1xf32>
    %495 = tpu.reciprocal %494 {approx = true} : vector<4x8x1xf32> -> vector<4x8x1xf32>
    %496 = vector.broadcast %495 : vector<4x8x1xf32> to vector<4x8x8xf32>
    %497 = arith.mulf %492, %496 : vector<4x8x8xf32>
    %498 = arith.truncf %497 : vector<4x8x8xf32> to vector<4x8x8xbf16>
    "tpu.trace_start"() <{level = 10 : i32, message = "hqk,hkd->hqd"}> : () -> ()
    %cst_182 = arith.constant dense<0.000000e+00> : vector<4x8x32xf32>
    %499 = tpu.matmul %498, %484, %cst_182 {dimension_numbers = #tpu.dot_dimension_numbers<[2], [1], [1], [2], [0, 0, 0, 1, 1, 2], [0], [0]>} : vector<4x8x8xbf16>, vector<4x8x32xbf16>, vector<4x8x32xf32> -> vector<4x8x32xf32>
    "tpu.trace_stop"() : () -> ()
    %500 = vector.extract_strided_slice %499 {offsets = [0, 0, 0], sizes = [1, 8, 32], strides = [1, 1, 1]} : vector<4x8x32xf32> to vector<1x8x32xf32>
    %501 = vector.shape_cast %500 : vector<1x8x32xf32> to vector<8x32xf32>
    %502 = vector.extract_strided_slice %499 {offsets = [1, 0, 0], sizes = [1, 8, 32], strides = [1, 1, 1]} : vector<4x8x32xf32> to vector<1x8x32xf32>
    %503 = vector.shape_cast %502 : vector<1x8x32xf32> to vector<8x32xf32>
    %504 = vector.extract_strided_slice %499 {offsets = [2, 0, 0], sizes = [1, 8, 32], strides = [1, 1, 1]} : vector<4x8x32xf32> to vector<1x8x32xf32>
    %505 = vector.shape_cast %504 : vector<1x8x32xf32> to vector<8x32xf32>
    %506 = vector.extract_strided_slice %499 {offsets = [3, 0, 0], sizes = [1, 8, 32], strides = [1, 1, 1]} : vector<4x8x32xf32> to vector<1x8x32xf32>
    %507 = vector.shape_cast %506 : vector<1x8x32xf32> to vector<8x32xf32>
    %508 = tpu.concatenate %501, %503, %505, %507 in 1 : vector<8x32xf32>, vector<8x32xf32>, vector<8x32xf32>, vector<8x32xf32> -> vector<8x128xf32>
    %c0_183 = arith.constant 0 : index
    %c0_184 = arith.constant 0 : index
    %c0_185 = arith.constant 0 : index
    %509 = vector.load %arg31[%c0_183, %c0_184, %c0_185] : memref<3x128x128xbf16, #tpu.memory_space<vmem>>, vector<1x128x128xbf16>
    %510 = vector.shape_cast %509 : vector<1x128x128xbf16> to vector<128x128xbf16>
    %c0_186 = arith.constant 0 : index
    %c0_187 = arith.constant 0 : index
    %c0_188 = arith.constant 0 : index
    %511 = vector.load %arg32[%c0_186, %c0_187, %c0_188] : memref<3x1x128xf32, #tpu.memory_space<vmem>>, vector<1x1x128xf32>
    %512 = vector.shape_cast %511 : vector<1x1x128xf32> to vector<1x128xf32>
    %513 = arith.truncf %508 : vector<8x128xf32> to vector<8x128xbf16>
    %cst_189 = arith.constant dense<0.000000e+00> : vector<8x128xf32>
    %514 = tpu.matmul %513, %510, %cst_189 {dimension_numbers = #tpu.dot_dimension_numbers<[1], [0], [0], [1], [0, 0, 1, 1], [], []>} : vector<8x128xbf16>, vector<128x128xbf16>, vector<8x128xf32> -> vector<8x128xf32>
    %515 = vector.broadcast %512 : vector<1x128xf32> to vector<8x128xf32>
    %516 = arith.addf %514, %515 : vector<8x128xf32>
    %517 = arith.addf %436, %516 : vector<8x128xf32>
    %c0_190 = arith.constant 0 : index
    %c0_191 = arith.constant 0 : index
    %c0_192 = arith.constant 0 : index
    %518 = vector.load %arg33[%c0_190, %c0_191, %c0_192] : memref<3x1x128xf32, #tpu.memory_space<vmem>>, vector<1x1x128xf32>
    %519 = vector.shape_cast %518 : vector<1x1x128xf32> to vector<1x128xf32>
    %c0_193 = arith.constant 0 : index
    %c0_194 = arith.constant 0 : index
    %c0_195 = arith.constant 0 : index
    %520 = vector.load %arg34[%c0_193, %c0_194, %c0_195] : memref<3x1x128xf32, #tpu.memory_space<vmem>>, vector<1x1x128xf32>
    %521 = vector.shape_cast %520 : vector<1x1x128xf32> to vector<1x128xf32>
    %cst_196 = arith.constant dense<0.000000e+00> : vector<8xf32>
    %522 = vector.multi_reduction <add>, %517, %cst_196 [1] : vector<8x128xf32> to vector<8xf32>
    %523 = vector.shape_cast %522 : vector<8xf32> to vector<8x1xf32>
    %cst_197 = arith.constant 1.280000e+02 : f32
    %524 = vector.broadcast %cst_197 : f32 to vector<8x1xf32>
    %525 = arith.divf %523, %524 : vector<8x1xf32>
    %526 = vector.broadcast %525 : vector<8x1xf32> to vector<8x128xf32>
    %527 = arith.subf %517, %526 : vector<8x128xf32>
    %528 = arith.mulf %527, %527 : vector<8x128xf32>
    %cst_198 = arith.constant dense<0.000000e+00> : vector<8xf32>
    %529 = vector.multi_reduction <add>, %528, %cst_198 [1] : vector<8x128xf32> to vector<8xf32>
    %530 = vector.shape_cast %529 : vector<8xf32> to vector<8x1xf32>
    %cst_199 = arith.constant 1.280000e+02 : f32
    %531 = vector.broadcast %cst_199 : f32 to vector<8x1xf32>
    %532 = arith.divf %530, %531 : vector<8x1xf32>
    %533 = vector.broadcast %525 : vector<8x1xf32> to vector<8x128xf32>
    %534 = arith.subf %517, %533 : vector<8x128xf32>
    %cst_200 = arith.constant 9.99999974E-6 : f32
    %535 = vector.broadcast %cst_200 : f32 to vector<8x1xf32>
    %536 = arith.addf %532, %535 : vector<8x1xf32>
    %537 = math.rsqrt %536 : vector<8x1xf32>
    %538 = vector.broadcast %537 : vector<8x1xf32> to vector<8x128xf32>
    %539 = arith.mulf %534, %538 : vector<8x128xf32>
    %540 = vector.broadcast %519 : vector<1x128xf32> to vector<8x128xf32>
    %541 = arith.mulf %539, %540 : vector<8x128xf32>
    %542 = vector.broadcast %521 : vector<1x128xf32> to vector<8x128xf32>
    %543 = arith.addf %541, %542 : vector<8x128xf32>
    %c0_201 = arith.constant 0 : index
    %c0_202 = arith.constant 0 : index
    %c0_203 = arith.constant 0 : index
    %544 = vector.load %arg35[%c0_201, %c0_202, %c0_203] : memref<3x128x512xbf16, #tpu.memory_space<vmem>>, vector<1x128x512xbf16>
    %545 = vector.shape_cast %544 : vector<1x128x512xbf16> to vector<128x512xbf16>
    %c0_204 = arith.constant 0 : index
    %c0_205 = arith.constant 0 : index
    %c0_206 = arith.constant 0 : index
    %546 = vector.load %arg36[%c0_204, %c0_205, %c0_206] : memref<3x1x512xf32, #tpu.memory_space<vmem>>, vector<1x1x512xf32>
    %547 = vector.shape_cast %546 : vector<1x1x512xf32> to vector<1x512xf32>
    %548 = arith.truncf %543 : vector<8x128xf32> to vector<8x128xbf16>
    %cst_207 = arith.constant dense<0.000000e+00> : vector<8x512xf32>
    %549 = tpu.matmul %548, %545, %cst_207 {dimension_numbers = #tpu.dot_dimension_numbers<[1], [0], [0], [1], [0, 0, 1, 1], [], []>} : vector<8x128xbf16>, vector<128x512xbf16>, vector<8x512xf32> -> vector<8x512xf32>
    %550 = vector.broadcast %547 : vector<1x512xf32> to vector<8x512xf32>
    %551 = arith.addf %549, %550 : vector<8x512xf32>
    %cst_208 = arith.constant 0.000000e+00 : f32
    %552 = vector.broadcast %cst_208 : f32 to vector<8x512xf32>
    %553 = arith.maximumf %551, %552 : vector<8x512xf32>
    %c0_209 = arith.constant 0 : index
    %c0_210 = arith.constant 0 : index
    %c0_211 = arith.constant 0 : index
    %554 = vector.load %arg37[%c0_209, %c0_210, %c0_211] : memref<3x512x128xbf16, #tpu.memory_space<vmem>>, vector<1x512x128xbf16>
    %555 = vector.shape_cast %554 : vector<1x512x128xbf16> to vector<512x128xbf16>
    %c0_212 = arith.constant 0 : index
    %c0_213 = arith.constant 0 : index
    %c0_214 = arith.constant 0 : index
    %556 = vector.load %arg38[%c0_212, %c0_213, %c0_214] : memref<3x1x128xf32, #tpu.memory_space<vmem>>, vector<1x1x128xf32>
    %557 = vector.shape_cast %556 : vector<1x1x128xf32> to vector<1x128xf32>
    %558 = arith.truncf %553 : vector<8x512xf32> to vector<8x512xbf16>
    %cst_215 = arith.constant dense<0.000000e+00> : vector<8x128xf32>
    %559 = tpu.matmul %558, %555, %cst_215 {dimension_numbers = #tpu.dot_dimension_numbers<[1], [0], [0], [1], [0, 0, 1, 1], [], []>} : vector<8x512xbf16>, vector<512x128xbf16>, vector<8x128xf32> -> vector<8x128xf32>
    %560 = vector.broadcast %557 : vector<1x128xf32> to vector<8x128xf32>
    %561 = arith.addf %559, %560 : vector<8x128xf32>
    %562 = arith.addf %543, %561 : vector<8x128xf32>
    %c0_216 = arith.constant 0 : index
    %c0_217 = arith.constant 0 : index
    %c0_218 = arith.constant 0 : index
    %563 = vector.load %arg39[%c0_216, %c0_217, %c0_218] : memref<3x1x128xf32, #tpu.memory_space<vmem>>, vector<1x1x128xf32>
    %564 = vector.shape_cast %563 : vector<1x1x128xf32> to vector<1x128xf32>
    %c0_219 = arith.constant 0 : index
    %c0_220 = arith.constant 0 : index
    %c0_221 = arith.constant 0 : index
    %565 = vector.load %arg40[%c0_219, %c0_220, %c0_221] : memref<3x1x128xf32, #tpu.memory_space<vmem>>, vector<1x1x128xf32>
    %566 = vector.shape_cast %565 : vector<1x1x128xf32> to vector<1x128xf32>
    %cst_222 = arith.constant dense<0.000000e+00> : vector<8xf32>
    %567 = vector.multi_reduction <add>, %562, %cst_222 [1] : vector<8x128xf32> to vector<8xf32>
    %568 = vector.shape_cast %567 : vector<8xf32> to vector<8x1xf32>
    %cst_223 = arith.constant 1.280000e+02 : f32
    %569 = vector.broadcast %cst_223 : f32 to vector<8x1xf32>
    %570 = arith.divf %568, %569 : vector<8x1xf32>
    %571 = vector.broadcast %570 : vector<8x1xf32> to vector<8x128xf32>
    %572 = arith.subf %562, %571 : vector<8x128xf32>
    %573 = arith.mulf %572, %572 : vector<8x128xf32>
    %cst_224 = arith.constant dense<0.000000e+00> : vector<8xf32>
    %574 = vector.multi_reduction <add>, %573, %cst_224 [1] : vector<8x128xf32> to vector<8xf32>
    %575 = vector.shape_cast %574 : vector<8xf32> to vector<8x1xf32>
    %cst_225 = arith.constant 1.280000e+02 : f32
    %576 = vector.broadcast %cst_225 : f32 to vector<8x1xf32>
    %577 = arith.divf %575, %576 : vector<8x1xf32>
    %578 = vector.broadcast %570 : vector<8x1xf32> to vector<8x128xf32>
    %579 = arith.subf %562, %578 : vector<8x128xf32>
    %cst_226 = arith.constant 9.99999974E-6 : f32
    %580 = vector.broadcast %cst_226 : f32 to vector<8x1xf32>
    %581 = arith.addf %577, %580 : vector<8x1xf32>
    %582 = math.rsqrt %581 : vector<8x1xf32>
    %583 = vector.broadcast %582 : vector<8x1xf32> to vector<8x128xf32>
    %584 = arith.mulf %579, %583 : vector<8x128xf32>
    %585 = vector.broadcast %564 : vector<1x128xf32> to vector<8x128xf32>
    %586 = arith.mulf %584, %585 : vector<8x128xf32>
    %587 = vector.broadcast %566 : vector<1x128xf32> to vector<8x128xf32>
    %588 = arith.addf %586, %587 : vector<8x128xf32>
    %c1_227 = arith.constant 1 : index
    %c0_228 = arith.constant 0 : index
    %c0_229 = arith.constant 0 : index
    %589 = vector.load %arg21[%c1_227, %c0_228, %c0_229] : memref<3x128x384xbf16, #tpu.memory_space<vmem>>, vector<1x128x384xbf16>
    %590 = vector.shape_cast %589 : vector<1x128x384xbf16> to vector<128x384xbf16>
    %c1_230 = arith.constant 1 : index
    %c0_231 = arith.constant 0 : index
    %c0_232 = arith.constant 0 : index
    %591 = vector.load %arg22[%c1_230, %c0_231, %c0_232] : memref<3x1x384xf32, #tpu.memory_space<vmem>>, vector<1x1x384xf32>
    %592 = vector.shape_cast %591 : vector<1x1x384xf32> to vector<1x384xf32>
    %593 = arith.truncf %588 : vector<8x128xf32> to vector<8x128xbf16>
    %cst_233 = arith.constant dense<0.000000e+00> : vector<8x384xf32>
    %594 = tpu.matmul %593, %590, %cst_233 {dimension_numbers = #tpu.dot_dimension_numbers<[1], [0], [0], [1], [0, 0, 1, 1], [], []>} : vector<8x128xbf16>, vector<128x384xbf16>, vector<8x384xf32> -> vector<8x384xf32>
    %595 = vector.broadcast %592 : vector<1x384xf32> to vector<8x384xf32>
    %596 = arith.addf %594, %595 : vector<8x384xf32>
    %597 = vector.extract_strided_slice %596 {offsets = [0, 0], sizes = [8, 128], strides = [1, 1]} : vector<8x384xf32> to vector<8x128xf32>
    %598 = vector.extract_strided_slice %596 {offsets = [0, 128], sizes = [8, 128], strides = [1, 1]} : vector<8x384xf32> to vector<8x128xf32>
    %599 = vector.extract_strided_slice %596 {offsets = [0, 256], sizes = [8, 128], strides = [1, 1]} : vector<8x384xf32> to vector<8x128xf32>
    %600 = arith.truncf %597 : vector<8x128xf32> to vector<8x128xbf16>
    %601 = vector.extract_strided_slice %600 {offsets = [0, 0], sizes = [8, 32], strides = [1, 1]} : vector<8x128xbf16> to vector<8x32xbf16>
    %602 = vector.extract_strided_slice %600 {offsets = [0, 32], sizes = [8, 32], strides = [1, 1]} : vector<8x128xbf16> to vector<8x32xbf16>
    %603 = vector.extract_strided_slice %600 {offsets = [0, 64], sizes = [8, 32], strides = [1, 1]} : vector<8x128xbf16> to vector<8x32xbf16>
    %604 = vector.extract_strided_slice %600 {offsets = [0, 96], sizes = [8, 32], strides = [1, 1]} : vector<8x128xbf16> to vector<8x32xbf16>
    %605 = vector.shape_cast %601 : vector<8x32xbf16> to vector<1x8x32xbf16>
    %606 = vector.shape_cast %602 : vector<8x32xbf16> to vector<1x8x32xbf16>
    %607 = vector.shape_cast %603 : vector<8x32xbf16> to vector<1x8x32xbf16>
    %608 = vector.shape_cast %604 : vector<8x32xbf16> to vector<1x8x32xbf16>
    %609 = tpu.concatenate %605, %606, %607, %608 in 0 : vector<1x8x32xbf16>, vector<1x8x32xbf16>, vector<1x8x32xbf16>, vector<1x8x32xbf16> -> vector<4x8x32xbf16>
    %610 = arith.truncf %598 : vector<8x128xf32> to vector<8x128xbf16>
    %611 = vector.extract_strided_slice %610 {offsets = [0, 0], sizes = [8, 32], strides = [1, 1]} : vector<8x128xbf16> to vector<8x32xbf16>
    %612 = vector.extract_strided_slice %610 {offsets = [0, 32], sizes = [8, 32], strides = [1, 1]} : vector<8x128xbf16> to vector<8x32xbf16>
    %613 = vector.extract_strided_slice %610 {offsets = [0, 64], sizes = [8, 32], strides = [1, 1]} : vector<8x128xbf16> to vector<8x32xbf16>
    %614 = vector.extract_strided_slice %610 {offsets = [0, 96], sizes = [8, 32], strides = [1, 1]} : vector<8x128xbf16> to vector<8x32xbf16>
    %615 = vector.shape_cast %611 : vector<8x32xbf16> to vector<1x8x32xbf16>
    %616 = vector.shape_cast %612 : vector<8x32xbf16> to vector<1x8x32xbf16>
    %617 = vector.shape_cast %613 : vector<8x32xbf16> to vector<1x8x32xbf16>
    %618 = vector.shape_cast %614 : vector<8x32xbf16> to vector<1x8x32xbf16>
    %619 = tpu.concatenate %615, %616, %617, %618 in 0 : vector<1x8x32xbf16>, vector<1x8x32xbf16>, vector<1x8x32xbf16>, vector<1x8x32xbf16> -> vector<4x8x32xbf16>
    %620 = arith.truncf %599 : vector<8x128xf32> to vector<8x128xbf16>
    %621 = vector.extract_strided_slice %620 {offsets = [0, 0], sizes = [8, 32], strides = [1, 1]} : vector<8x128xbf16> to vector<8x32xbf16>
    %622 = vector.extract_strided_slice %620 {offsets = [0, 32], sizes = [8, 32], strides = [1, 1]} : vector<8x128xbf16> to vector<8x32xbf16>
    %623 = vector.extract_strided_slice %620 {offsets = [0, 64], sizes = [8, 32], strides = [1, 1]} : vector<8x128xbf16> to vector<8x32xbf16>
    %624 = vector.extract_strided_slice %620 {offsets = [0, 96], sizes = [8, 32], strides = [1, 1]} : vector<8x128xbf16> to vector<8x32xbf16>
    %625 = vector.shape_cast %621 : vector<8x32xbf16> to vector<1x8x32xbf16>
    %626 = vector.shape_cast %622 : vector<8x32xbf16> to vector<1x8x32xbf16>
    %627 = vector.shape_cast %623 : vector<8x32xbf16> to vector<1x8x32xbf16>
    %628 = vector.shape_cast %624 : vector<8x32xbf16> to vector<1x8x32xbf16>
    %629 = tpu.concatenate %625, %626, %627, %628 in 0 : vector<1x8x32xbf16>, vector<1x8x32xbf16>, vector<1x8x32xbf16>, vector<1x8x32xbf16> -> vector<4x8x32xbf16>
    "tpu.trace_start"() <{level = 10 : i32, message = "hqd,hkd->hqk"}> : () -> ()
    %cst_234 = arith.constant dense<0.000000e+00> : vector<4x8x8xf32>
    %630 = tpu.matmul %609, %619, %cst_234 {dimension_numbers = #tpu.dot_dimension_numbers<[2], [2], [1], [1], [0, 0, 0, 1, 1, 1], [0], [0]>} : vector<4x8x32xbf16>, vector<4x8x32xbf16>, vector<4x8x8xf32> -> vector<4x8x8xf32>
    "tpu.trace_stop"() : () -> ()
    %cst_235 = arith.constant 0.176776692 : f32
    %631 = vector.broadcast %cst_235 : f32 to vector<4x8x8xf32>
    %632 = arith.mulf %630, %631 : vector<4x8x8xf32>
    %633 = vector.shape_cast %333 : vector<8x8xf32> to vector<1x8x8xf32>
    %634 = vector.broadcast %633 : vector<1x8x8xf32> to vector<4x8x8xf32>
    %635 = arith.addf %632, %634 : vector<4x8x8xf32>
    %cst_236 = arith.constant dense<0xFF800000> : vector<4x8xf32>
    %636 = vector.multi_reduction <maximumf>, %635, %cst_236 [2] : vector<4x8x8xf32> to vector<4x8xf32>
    %637 = vector.shape_cast %636 : vector<4x8xf32> to vector<4x8x1xf32>
    %638 = vector.broadcast %637 : vector<4x8x1xf32> to vector<4x8x8xf32>
    %639 = arith.subf %635, %638 : vector<4x8x8xf32>
    %640 = math.exp %639 : vector<4x8x8xf32>
    %cst_237 = arith.constant dense<0.000000e+00> : vector<4x8xf32>
    %641 = vector.multi_reduction <add>, %640, %cst_237 [2] : vector<4x8x8xf32> to vector<4x8xf32>
    %642 = vector.shape_cast %641 : vector<4x8xf32> to vector<4x8x1xf32>
    %643 = tpu.reciprocal %642 {approx = true} : vector<4x8x1xf32> -> vector<4x8x1xf32>
    %644 = vector.broadcast %643 : vector<4x8x1xf32> to vector<4x8x8xf32>
    %645 = arith.mulf %640, %644 : vector<4x8x8xf32>
    %646 = arith.truncf %645 : vector<4x8x8xf32> to vector<4x8x8xbf16>
    "tpu.trace_start"() <{level = 10 : i32, message = "hqk,hkd->hqd"}> : () -> ()
    %cst_238 = arith.constant dense<0.000000e+00> : vector<4x8x32xf32>
    %647 = tpu.matmul %646, %629, %cst_238 {dimension_numbers = #tpu.dot_dimension_numbers<[2], [1], [1], [2], [0, 0, 0, 1, 1, 2], [0], [0]>} : vector<4x8x8xbf16>, vector<4x8x32xbf16>, vector<4x8x32xf32> -> vector<4x8x32xf32>
    "tpu.trace_stop"() : () -> ()
    %648 = vector.extract_strided_slice %647 {offsets = [0, 0, 0], sizes = [1, 8, 32], strides = [1, 1, 1]} : vector<4x8x32xf32> to vector<1x8x32xf32>
    %649 = vector.shape_cast %648 : vector<1x8x32xf32> to vector<8x32xf32>
    %650 = vector.extract_strided_slice %647 {offsets = [1, 0, 0], sizes = [1, 8, 32], strides = [1, 1, 1]} : vector<4x8x32xf32> to vector<1x8x32xf32>
    %651 = vector.shape_cast %650 : vector<1x8x32xf32> to vector<8x32xf32>
    %652 = vector.extract_strided_slice %647 {offsets = [2, 0, 0], sizes = [1, 8, 32], strides = [1, 1, 1]} : vector<4x8x32xf32> to vector<1x8x32xf32>
    %653 = vector.shape_cast %652 : vector<1x8x32xf32> to vector<8x32xf32>
    %654 = vector.extract_strided_slice %647 {offsets = [3, 0, 0], sizes = [1, 8, 32], strides = [1, 1, 1]} : vector<4x8x32xf32> to vector<1x8x32xf32>
    %655 = vector.shape_cast %654 : vector<1x8x32xf32> to vector<8x32xf32>
    %656 = tpu.concatenate %649, %651, %653, %655 in 1 : vector<8x32xf32>, vector<8x32xf32>, vector<8x32xf32>, vector<8x32xf32> -> vector<8x128xf32>
    %c1_239 = arith.constant 1 : index
    %c0_240 = arith.constant 0 : index
    %c0_241 = arith.constant 0 : index
    %657 = vector.load %arg23[%c1_239, %c0_240, %c0_241] : memref<3x128x128xbf16, #tpu.memory_space<vmem>>, vector<1x128x128xbf16>
    %658 = vector.shape_cast %657 : vector<1x128x128xbf16> to vector<128x128xbf16>
    %c1_242 = arith.constant 1 : index
    %c0_243 = arith.constant 0 : index
    %c0_244 = arith.constant 0 : index
    %659 = vector.load %arg24[%c1_242, %c0_243, %c0_244] : memref<3x1x128xf32, #tpu.memory_space<vmem>>, vector<1x1x128xf32>
    %660 = vector.shape_cast %659 : vector<1x1x128xf32> to vector<1x128xf32>
    %661 = arith.truncf %656 : vector<8x128xf32> to vector<8x128xbf16>
    %cst_245 = arith.constant dense<0.000000e+00> : vector<8x128xf32>
    %662 = tpu.matmul %661, %658, %cst_245 {dimension_numbers = #tpu.dot_dimension_numbers<[1], [0], [0], [1], [0, 0, 1, 1], [], []>} : vector<8x128xbf16>, vector<128x128xbf16>, vector<8x128xf32> -> vector<8x128xf32>
    %663 = vector.broadcast %660 : vector<1x128xf32> to vector<8x128xf32>
    %664 = arith.addf %662, %663 : vector<8x128xf32>
    %665 = arith.addf %588, %664 : vector<8x128xf32>
    %c1_246 = arith.constant 1 : index
    %c0_247 = arith.constant 0 : index
    %c0_248 = arith.constant 0 : index
    %666 = vector.load %arg25[%c1_246, %c0_247, %c0_248] : memref<3x1x128xf32, #tpu.memory_space<vmem>>, vector<1x1x128xf32>
    %667 = vector.shape_cast %666 : vector<1x1x128xf32> to vector<1x128xf32>
    %c1_249 = arith.constant 1 : index
    %c0_250 = arith.constant 0 : index
    %c0_251 = arith.constant 0 : index
    %668 = vector.load %arg26[%c1_249, %c0_250, %c0_251] : memref<3x1x128xf32, #tpu.memory_space<vmem>>, vector<1x1x128xf32>
    %669 = vector.shape_cast %668 : vector<1x1x128xf32> to vector<1x128xf32>
    %cst_252 = arith.constant dense<0.000000e+00> : vector<8xf32>
    %670 = vector.multi_reduction <add>, %665, %cst_252 [1] : vector<8x128xf32> to vector<8xf32>
    %671 = vector.shape_cast %670 : vector<8xf32> to vector<8x1xf32>
    %cst_253 = arith.constant 1.280000e+02 : f32
    %672 = vector.broadcast %cst_253 : f32 to vector<8x1xf32>
    %673 = arith.divf %671, %672 : vector<8x1xf32>
    %674 = vector.broadcast %673 : vector<8x1xf32> to vector<8x128xf32>
    %675 = arith.subf %665, %674 : vector<8x128xf32>
    %676 = arith.mulf %675, %675 : vector<8x128xf32>
    %cst_254 = arith.constant dense<0.000000e+00> : vector<8xf32>
    %677 = vector.multi_reduction <add>, %676, %cst_254 [1] : vector<8x128xf32> to vector<8xf32>
    %678 = vector.shape_cast %677 : vector<8xf32> to vector<8x1xf32>
    %cst_255 = arith.constant 1.280000e+02 : f32
    %679 = vector.broadcast %cst_255 : f32 to vector<8x1xf32>
    %680 = arith.divf %678, %679 : vector<8x1xf32>
    %681 = vector.broadcast %673 : vector<8x1xf32> to vector<8x128xf32>
    %682 = arith.subf %665, %681 : vector<8x128xf32>
    %cst_256 = arith.constant 9.99999974E-6 : f32
    %683 = vector.broadcast %cst_256 : f32 to vector<8x1xf32>
    %684 = arith.addf %680, %683 : vector<8x1xf32>
    %685 = math.rsqrt %684 : vector<8x1xf32>
    %686 = vector.broadcast %685 : vector<8x1xf32> to vector<8x128xf32>
    %687 = arith.mulf %682, %686 : vector<8x128xf32>
    %688 = vector.broadcast %667 : vector<1x128xf32> to vector<8x128xf32>
    %689 = arith.mulf %687, %688 : vector<8x128xf32>
    %690 = vector.broadcast %669 : vector<1x128xf32> to vector<8x128xf32>
    %691 = arith.addf %689, %690 : vector<8x128xf32>
    %c1_257 = arith.constant 1 : index
    %c0_258 = arith.constant 0 : index
    %c0_259 = arith.constant 0 : index
    %692 = vector.load %arg27[%c1_257, %c0_258, %c0_259] : memref<3x128x128xbf16, #tpu.memory_space<vmem>>, vector<1x128x128xbf16>
    %693 = vector.shape_cast %692 : vector<1x128x128xbf16> to vector<128x128xbf16>
    %c1_260 = arith.constant 1 : index
    %c0_261 = arith.constant 0 : index
    %c0_262 = arith.constant 0 : index
    %694 = vector.load %arg28[%c1_260, %c0_261, %c0_262] : memref<3x1x128xf32, #tpu.memory_space<vmem>>, vector<1x1x128xf32>
    %695 = vector.shape_cast %694 : vector<1x1x128xf32> to vector<1x128xf32>
    %696 = arith.truncf %691 : vector<8x128xf32> to vector<8x128xbf16>
    %cst_263 = arith.constant dense<0.000000e+00> : vector<8x128xf32>
    %697 = tpu.matmul %696, %693, %cst_263 {dimension_numbers = #tpu.dot_dimension_numbers<[1], [0], [0], [1], [0, 0, 1, 1], [], []>} : vector<8x128xbf16>, vector<128x128xbf16>, vector<8x128xf32> -> vector<8x128xf32>
    %698 = vector.broadcast %695 : vector<1x128xf32> to vector<8x128xf32>
    %699 = arith.addf %697, %698 : vector<8x128xf32>
    %c1_264 = arith.constant 1 : index
    %c0_265 = arith.constant 0 : index
    %c0_266 = arith.constant 0 : index
    %700 = vector.load %arg29[%c1_264, %c0_265, %c0_266] : memref<3x128x256xbf16, #tpu.memory_space<vmem>>, vector<1x128x256xbf16>
    %701 = vector.shape_cast %700 : vector<1x128x256xbf16> to vector<128x256xbf16>
    %c1_267 = arith.constant 1 : index
    %c0_268 = arith.constant 0 : index
    %c0_269 = arith.constant 0 : index
    %702 = vector.load %arg30[%c1_267, %c0_268, %c0_269] : memref<3x1x256xf32, #tpu.memory_space<vmem>>, vector<1x1x256xf32>
    %703 = vector.shape_cast %702 : vector<1x1x256xf32> to vector<1x256xf32>
    %704 = arith.truncf %323 : vector<8x128xf32> to vector<8x128xbf16>
    %cst_270 = arith.constant dense<0.000000e+00> : vector<8x256xf32>
    %705 = tpu.matmul %704, %701, %cst_270 {dimension_numbers = #tpu.dot_dimension_numbers<[1], [0], [0], [1], [0, 0, 1, 1], [], []>} : vector<8x128xbf16>, vector<128x256xbf16>, vector<8x256xf32> -> vector<8x256xf32>
    %706 = vector.broadcast %703 : vector<1x256xf32> to vector<8x256xf32>
    %707 = arith.addf %705, %706 : vector<8x256xf32>
    %708 = vector.extract_strided_slice %707 {offsets = [0, 0], sizes = [8, 128], strides = [1, 1]} : vector<8x256xf32> to vector<8x128xf32>
    %709 = vector.extract_strided_slice %707 {offsets = [0, 128], sizes = [8, 128], strides = [1, 1]} : vector<8x256xf32> to vector<8x128xf32>
    %710 = arith.truncf %699 : vector<8x128xf32> to vector<8x128xbf16>
    %711 = vector.extract_strided_slice %710 {offsets = [0, 0], sizes = [8, 32], strides = [1, 1]} : vector<8x128xbf16> to vector<8x32xbf16>
    %712 = vector.extract_strided_slice %710 {offsets = [0, 32], sizes = [8, 32], strides = [1, 1]} : vector<8x128xbf16> to vector<8x32xbf16>
    %713 = vector.extract_strided_slice %710 {offsets = [0, 64], sizes = [8, 32], strides = [1, 1]} : vector<8x128xbf16> to vector<8x32xbf16>
    %714 = vector.extract_strided_slice %710 {offsets = [0, 96], sizes = [8, 32], strides = [1, 1]} : vector<8x128xbf16> to vector<8x32xbf16>
    %715 = vector.shape_cast %711 : vector<8x32xbf16> to vector<1x8x32xbf16>
    %716 = vector.shape_cast %712 : vector<8x32xbf16> to vector<1x8x32xbf16>
    %717 = vector.shape_cast %713 : vector<8x32xbf16> to vector<1x8x32xbf16>
    %718 = vector.shape_cast %714 : vector<8x32xbf16> to vector<1x8x32xbf16>
    %719 = tpu.concatenate %715, %716, %717, %718 in 0 : vector<1x8x32xbf16>, vector<1x8x32xbf16>, vector<1x8x32xbf16>, vector<1x8x32xbf16> -> vector<4x8x32xbf16>
    %720 = arith.truncf %708 : vector<8x128xf32> to vector<8x128xbf16>
    %721 = vector.extract_strided_slice %720 {offsets = [0, 0], sizes = [8, 32], strides = [1, 1]} : vector<8x128xbf16> to vector<8x32xbf16>
    %722 = vector.extract_strided_slice %720 {offsets = [0, 32], sizes = [8, 32], strides = [1, 1]} : vector<8x128xbf16> to vector<8x32xbf16>
    %723 = vector.extract_strided_slice %720 {offsets = [0, 64], sizes = [8, 32], strides = [1, 1]} : vector<8x128xbf16> to vector<8x32xbf16>
    %724 = vector.extract_strided_slice %720 {offsets = [0, 96], sizes = [8, 32], strides = [1, 1]} : vector<8x128xbf16> to vector<8x32xbf16>
    %725 = vector.shape_cast %721 : vector<8x32xbf16> to vector<1x8x32xbf16>
    %726 = vector.shape_cast %722 : vector<8x32xbf16> to vector<1x8x32xbf16>
    %727 = vector.shape_cast %723 : vector<8x32xbf16> to vector<1x8x32xbf16>
    %728 = vector.shape_cast %724 : vector<8x32xbf16> to vector<1x8x32xbf16>
    %729 = tpu.concatenate %725, %726, %727, %728 in 0 : vector<1x8x32xbf16>, vector<1x8x32xbf16>, vector<1x8x32xbf16>, vector<1x8x32xbf16> -> vector<4x8x32xbf16>
    %730 = arith.truncf %709 : vector<8x128xf32> to vector<8x128xbf16>
    %731 = vector.extract_strided_slice %730 {offsets = [0, 0], sizes = [8, 32], strides = [1, 1]} : vector<8x128xbf16> to vector<8x32xbf16>
    %732 = vector.extract_strided_slice %730 {offsets = [0, 32], sizes = [8, 32], strides = [1, 1]} : vector<8x128xbf16> to vector<8x32xbf16>
    %733 = vector.extract_strided_slice %730 {offsets = [0, 64], sizes = [8, 32], strides = [1, 1]} : vector<8x128xbf16> to vector<8x32xbf16>
    %734 = vector.extract_strided_slice %730 {offsets = [0, 96], sizes = [8, 32], strides = [1, 1]} : vector<8x128xbf16> to vector<8x32xbf16>
    %735 = vector.shape_cast %731 : vector<8x32xbf16> to vector<1x8x32xbf16>
    %736 = vector.shape_cast %732 : vector<8x32xbf16> to vector<1x8x32xbf16>
    %737 = vector.shape_cast %733 : vector<8x32xbf16> to vector<1x8x32xbf16>
    %738 = vector.shape_cast %734 : vector<8x32xbf16> to vector<1x8x32xbf16>
    %739 = tpu.concatenate %735, %736, %737, %738 in 0 : vector<1x8x32xbf16>, vector<1x8x32xbf16>, vector<1x8x32xbf16>, vector<1x8x32xbf16> -> vector<4x8x32xbf16>
    "tpu.trace_start"() <{level = 10 : i32, message = "hqd,hkd->hqk"}> : () -> ()
    %cst_271 = arith.constant dense<0.000000e+00> : vector<4x8x8xf32>
    %740 = tpu.matmul %719, %729, %cst_271 {dimension_numbers = #tpu.dot_dimension_numbers<[2], [2], [1], [1], [0, 0, 0, 1, 1, 1], [0], [0]>} : vector<4x8x32xbf16>, vector<4x8x32xbf16>, vector<4x8x8xf32> -> vector<4x8x8xf32>
    "tpu.trace_stop"() : () -> ()
    %cst_272 = arith.constant 0.176776692 : f32
    %741 = vector.broadcast %cst_272 : f32 to vector<4x8x8xf32>
    %742 = arith.mulf %740, %741 : vector<4x8x8xf32>
    %cst_273 = arith.constant dense<0xFF800000> : vector<4x8xf32>
    %743 = vector.multi_reduction <maximumf>, %742, %cst_273 [2] : vector<4x8x8xf32> to vector<4x8xf32>
    %744 = vector.shape_cast %743 : vector<4x8xf32> to vector<4x8x1xf32>
    %745 = vector.broadcast %744 : vector<4x8x1xf32> to vector<4x8x8xf32>
    %746 = arith.subf %742, %745 : vector<4x8x8xf32>
    %747 = math.exp %746 : vector<4x8x8xf32>
    %cst_274 = arith.constant dense<0.000000e+00> : vector<4x8xf32>
    %748 = vector.multi_reduction <add>, %747, %cst_274 [2] : vector<4x8x8xf32> to vector<4x8xf32>
    %749 = vector.shape_cast %748 : vector<4x8xf32> to vector<4x8x1xf32>
    %750 = tpu.reciprocal %749 {approx = true} : vector<4x8x1xf32> -> vector<4x8x1xf32>
    %751 = vector.broadcast %750 : vector<4x8x1xf32> to vector<4x8x8xf32>
    %752 = arith.mulf %747, %751 : vector<4x8x8xf32>
    %753 = arith.truncf %752 : vector<4x8x8xf32> to vector<4x8x8xbf16>
    "tpu.trace_start"() <{level = 10 : i32, message = "hqk,hkd->hqd"}> : () -> ()
    %cst_275 = arith.constant dense<0.000000e+00> : vector<4x8x32xf32>
    %754 = tpu.matmul %753, %739, %cst_275 {dimension_numbers = #tpu.dot_dimension_numbers<[2], [1], [1], [2], [0, 0, 0, 1, 1, 2], [0], [0]>} : vector<4x8x8xbf16>, vector<4x8x32xbf16>, vector<4x8x32xf32> -> vector<4x8x32xf32>
    "tpu.trace_stop"() : () -> ()
    %755 = vector.extract_strided_slice %754 {offsets = [0, 0, 0], sizes = [1, 8, 32], strides = [1, 1, 1]} : vector<4x8x32xf32> to vector<1x8x32xf32>
    %756 = vector.shape_cast %755 : vector<1x8x32xf32> to vector<8x32xf32>
    %757 = vector.extract_strided_slice %754 {offsets = [1, 0, 0], sizes = [1, 8, 32], strides = [1, 1, 1]} : vector<4x8x32xf32> to vector<1x8x32xf32>
    %758 = vector.shape_cast %757 : vector<1x8x32xf32> to vector<8x32xf32>
    %759 = vector.extract_strided_slice %754 {offsets = [2, 0, 0], sizes = [1, 8, 32], strides = [1, 1, 1]} : vector<4x8x32xf32> to vector<1x8x32xf32>
    %760 = vector.shape_cast %759 : vector<1x8x32xf32> to vector<8x32xf32>
    %761 = vector.extract_strided_slice %754 {offsets = [3, 0, 0], sizes = [1, 8, 32], strides = [1, 1, 1]} : vector<4x8x32xf32> to vector<1x8x32xf32>
    %762 = vector.shape_cast %761 : vector<1x8x32xf32> to vector<8x32xf32>
    %763 = tpu.concatenate %756, %758, %760, %762 in 1 : vector<8x32xf32>, vector<8x32xf32>, vector<8x32xf32>, vector<8x32xf32> -> vector<8x128xf32>
    %c1_276 = arith.constant 1 : index
    %c0_277 = arith.constant 0 : index
    %c0_278 = arith.constant 0 : index
    %764 = vector.load %arg31[%c1_276, %c0_277, %c0_278] : memref<3x128x128xbf16, #tpu.memory_space<vmem>>, vector<1x128x128xbf16>
    %765 = vector.shape_cast %764 : vector<1x128x128xbf16> to vector<128x128xbf16>
    %c1_279 = arith.constant 1 : index
    %c0_280 = arith.constant 0 : index
    %c0_281 = arith.constant 0 : index
    %766 = vector.load %arg32[%c1_279, %c0_280, %c0_281] : memref<3x1x128xf32, #tpu.memory_space<vmem>>, vector<1x1x128xf32>
    %767 = vector.shape_cast %766 : vector<1x1x128xf32> to vector<1x128xf32>
    %768 = arith.truncf %763 : vector<8x128xf32> to vector<8x128xbf16>
    %cst_282 = arith.constant dense<0.000000e+00> : vector<8x128xf32>
    %769 = tpu.matmul %768, %765, %cst_282 {dimension_numbers = #tpu.dot_dimension_numbers<[1], [0], [0], [1], [0, 0, 1, 1], [], []>} : vector<8x128xbf16>, vector<128x128xbf16>, vector<8x128xf32> -> vector<8x128xf32>
    %770 = vector.broadcast %767 : vector<1x128xf32> to vector<8x128xf32>
    %771 = arith.addf %769, %770 : vector<8x128xf32>
    %772 = arith.addf %691, %771 : vector<8x128xf32>
    %c1_283 = arith.constant 1 : index
    %c0_284 = arith.constant 0 : index
    %c0_285 = arith.constant 0 : index
    %773 = vector.load %arg33[%c1_283, %c0_284, %c0_285] : memref<3x1x128xf32, #tpu.memory_space<vmem>>, vector<1x1x128xf32>
    %774 = vector.shape_cast %773 : vector<1x1x128xf32> to vector<1x128xf32>
    %c1_286 = arith.constant 1 : index
    %c0_287 = arith.constant 0 : index
    %c0_288 = arith.constant 0 : index
    %775 = vector.load %arg34[%c1_286, %c0_287, %c0_288] : memref<3x1x128xf32, #tpu.memory_space<vmem>>, vector<1x1x128xf32>
    %776 = vector.shape_cast %775 : vector<1x1x128xf32> to vector<1x128xf32>
    %cst_289 = arith.constant dense<0.000000e+00> : vector<8xf32>
    %777 = vector.multi_reduction <add>, %772, %cst_289 [1] : vector<8x128xf32> to vector<8xf32>
    %778 = vector.shape_cast %777 : vector<8xf32> to vector<8x1xf32>
    %cst_290 = arith.constant 1.280000e+02 : f32
    %779 = vector.broadcast %cst_290 : f32 to vector<8x1xf32>
    %780 = arith.divf %778, %779 : vector<8x1xf32>
    %781 = vector.broadcast %780 : vector<8x1xf32> to vector<8x128xf32>
    %782 = arith.subf %772, %781 : vector<8x128xf32>
    %783 = arith.mulf %782, %782 : vector<8x128xf32>
    %cst_291 = arith.constant dense<0.000000e+00> : vector<8xf32>
    %784 = vector.multi_reduction <add>, %783, %cst_291 [1] : vector<8x128xf32> to vector<8xf32>
    %785 = vector.shape_cast %784 : vector<8xf32> to vector<8x1xf32>
    %cst_292 = arith.constant 1.280000e+02 : f32
    %786 = vector.broadcast %cst_292 : f32 to vector<8x1xf32>
    %787 = arith.divf %785, %786 : vector<8x1xf32>
    %788 = vector.broadcast %780 : vector<8x1xf32> to vector<8x128xf32>
    %789 = arith.subf %772, %788 : vector<8x128xf32>
    %cst_293 = arith.constant 9.99999974E-6 : f32
    %790 = vector.broadcast %cst_293 : f32 to vector<8x1xf32>
    %791 = arith.addf %787, %790 : vector<8x1xf32>
    %792 = math.rsqrt %791 : vector<8x1xf32>
    %793 = vector.broadcast %792 : vector<8x1xf32> to vector<8x128xf32>
    %794 = arith.mulf %789, %793 : vector<8x128xf32>
    %795 = vector.broadcast %774 : vector<1x128xf32> to vector<8x128xf32>
    %796 = arith.mulf %794, %795 : vector<8x128xf32>
    %797 = vector.broadcast %776 : vector<1x128xf32> to vector<8x128xf32>
    %798 = arith.addf %796, %797 : vector<8x128xf32>
    %c1_294 = arith.constant 1 : index
    %c0_295 = arith.constant 0 : index
    %c0_296 = arith.constant 0 : index
    %799 = vector.load %arg35[%c1_294, %c0_295, %c0_296] : memref<3x128x512xbf16, #tpu.memory_space<vmem>>, vector<1x128x512xbf16>
    %800 = vector.shape_cast %799 : vector<1x128x512xbf16> to vector<128x512xbf16>
    %c1_297 = arith.constant 1 : index
    %c0_298 = arith.constant 0 : index
    %c0_299 = arith.constant 0 : index
    %801 = vector.load %arg36[%c1_297, %c0_298, %c0_299] : memref<3x1x512xf32, #tpu.memory_space<vmem>>, vector<1x1x512xf32>
    %802 = vector.shape_cast %801 : vector<1x1x512xf32> to vector<1x512xf32>
    %803 = arith.truncf %798 : vector<8x128xf32> to vector<8x128xbf16>
    %cst_300 = arith.constant dense<0.000000e+00> : vector<8x512xf32>
    %804 = tpu.matmul %803, %800, %cst_300 {dimension_numbers = #tpu.dot_dimension_numbers<[1], [0], [0], [1], [0, 0, 1, 1], [], []>} : vector<8x128xbf16>, vector<128x512xbf16>, vector<8x512xf32> -> vector<8x512xf32>
    %805 = vector.broadcast %802 : vector<1x512xf32> to vector<8x512xf32>
    %806 = arith.addf %804, %805 : vector<8x512xf32>
    %cst_301 = arith.constant 0.000000e+00 : f32
    %807 = vector.broadcast %cst_301 : f32 to vector<8x512xf32>
    %808 = arith.maximumf %806, %807 : vector<8x512xf32>
    %c1_302 = arith.constant 1 : index
    %c0_303 = arith.constant 0 : index
    %c0_304 = arith.constant 0 : index
    %809 = vector.load %arg37[%c1_302, %c0_303, %c0_304] : memref<3x512x128xbf16, #tpu.memory_space<vmem>>, vector<1x512x128xbf16>
    %810 = vector.shape_cast %809 : vector<1x512x128xbf16> to vector<512x128xbf16>
    %c1_305 = arith.constant 1 : index
    %c0_306 = arith.constant 0 : index
    %c0_307 = arith.constant 0 : index
    %811 = vector.load %arg38[%c1_305, %c0_306, %c0_307] : memref<3x1x128xf32, #tpu.memory_space<vmem>>, vector<1x1x128xf32>
    %812 = vector.shape_cast %811 : vector<1x1x128xf32> to vector<1x128xf32>
    %813 = arith.truncf %808 : vector<8x512xf32> to vector<8x512xbf16>
    %cst_308 = arith.constant dense<0.000000e+00> : vector<8x128xf32>
    %814 = tpu.matmul %813, %810, %cst_308 {dimension_numbers = #tpu.dot_dimension_numbers<[1], [0], [0], [1], [0, 0, 1, 1], [], []>} : vector<8x512xbf16>, vector<512x128xbf16>, vector<8x128xf32> -> vector<8x128xf32>
    %815 = vector.broadcast %812 : vector<1x128xf32> to vector<8x128xf32>
    %816 = arith.addf %814, %815 : vector<8x128xf32>
    %817 = arith.addf %798, %816 : vector<8x128xf32>
    %c1_309 = arith.constant 1 : index
    %c0_310 = arith.constant 0 : index
    %c0_311 = arith.constant 0 : index
    %818 = vector.load %arg39[%c1_309, %c0_310, %c0_311] : memref<3x1x128xf32, #tpu.memory_space<vmem>>, vector<1x1x128xf32>
    %819 = vector.shape_cast %818 : vector<1x1x128xf32> to vector<1x128xf32>
    %c1_312 = arith.constant 1 : index
    %c0_313 = arith.constant 0 : index
    %c0_314 = arith.constant 0 : index
    %820 = vector.load %arg40[%c1_312, %c0_313, %c0_314] : memref<3x1x128xf32, #tpu.memory_space<vmem>>, vector<1x1x128xf32>
    %821 = vector.shape_cast %820 : vector<1x1x128xf32> to vector<1x128xf32>
    %cst_315 = arith.constant dense<0.000000e+00> : vector<8xf32>
    %822 = vector.multi_reduction <add>, %817, %cst_315 [1] : vector<8x128xf32> to vector<8xf32>
    %823 = vector.shape_cast %822 : vector<8xf32> to vector<8x1xf32>
    %cst_316 = arith.constant 1.280000e+02 : f32
    %824 = vector.broadcast %cst_316 : f32 to vector<8x1xf32>
    %825 = arith.divf %823, %824 : vector<8x1xf32>
    %826 = vector.broadcast %825 : vector<8x1xf32> to vector<8x128xf32>
    %827 = arith.subf %817, %826 : vector<8x128xf32>
    %828 = arith.mulf %827, %827 : vector<8x128xf32>
    %cst_317 = arith.constant dense<0.000000e+00> : vector<8xf32>
    %829 = vector.multi_reduction <add>, %828, %cst_317 [1] : vector<8x128xf32> to vector<8xf32>
    %830 = vector.shape_cast %829 : vector<8xf32> to vector<8x1xf32>
    %cst_318 = arith.constant 1.280000e+02 : f32
    %831 = vector.broadcast %cst_318 : f32 to vector<8x1xf32>
    %832 = arith.divf %830, %831 : vector<8x1xf32>
    %833 = vector.broadcast %825 : vector<8x1xf32> to vector<8x128xf32>
    %834 = arith.subf %817, %833 : vector<8x128xf32>
    %cst_319 = arith.constant 9.99999974E-6 : f32
    %835 = vector.broadcast %cst_319 : f32 to vector<8x1xf32>
    %836 = arith.addf %832, %835 : vector<8x1xf32>
    %837 = math.rsqrt %836 : vector<8x1xf32>
    %838 = vector.broadcast %837 : vector<8x1xf32> to vector<8x128xf32>
    %839 = arith.mulf %834, %838 : vector<8x128xf32>
    %840 = vector.broadcast %819 : vector<1x128xf32> to vector<8x128xf32>
    %841 = arith.mulf %839, %840 : vector<8x128xf32>
    %842 = vector.broadcast %821 : vector<1x128xf32> to vector<8x128xf32>
    %843 = arith.addf %841, %842 : vector<8x128xf32>
    %c2 = arith.constant 2 : index
    %c0_320 = arith.constant 0 : index
    %c0_321 = arith.constant 0 : index
    %844 = vector.load %arg21[%c2, %c0_320, %c0_321] : memref<3x128x384xbf16, #tpu.memory_space<vmem>>, vector<1x128x384xbf16>
    %845 = vector.shape_cast %844 : vector<1x128x384xbf16> to vector<128x384xbf16>
    %c2_322 = arith.constant 2 : index
    %c0_323 = arith.constant 0 : index
    %c0_324 = arith.constant 0 : index
    %846 = vector.load %arg22[%c2_322, %c0_323, %c0_324] : memref<3x1x384xf32, #tpu.memory_space<vmem>>, vector<1x1x384xf32>
    %847 = vector.shape_cast %846 : vector<1x1x384xf32> to vector<1x384xf32>
    %848 = arith.truncf %843 : vector<8x128xf32> to vector<8x128xbf16>
    %cst_325 = arith.constant dense<0.000000e+00> : vector<8x384xf32>
    %849 = tpu.matmul %848, %845, %cst_325 {dimension_numbers = #tpu.dot_dimension_numbers<[1], [0], [0], [1], [0, 0, 1, 1], [], []>} : vector<8x128xbf16>, vector<128x384xbf16>, vector<8x384xf32> -> vector<8x384xf32>
    %850 = vector.broadcast %847 : vector<1x384xf32> to vector<8x384xf32>
    %851 = arith.addf %849, %850 : vector<8x384xf32>
    %852 = vector.extract_strided_slice %851 {offsets = [0, 0], sizes = [8, 128], strides = [1, 1]} : vector<8x384xf32> to vector<8x128xf32>
    %853 = vector.extract_strided_slice %851 {offsets = [0, 128], sizes = [8, 128], strides = [1, 1]} : vector<8x384xf32> to vector<8x128xf32>
    %854 = vector.extract_strided_slice %851 {offsets = [0, 256], sizes = [8, 128], strides = [1, 1]} : vector<8x384xf32> to vector<8x128xf32>
    %855 = arith.truncf %852 : vector<8x128xf32> to vector<8x128xbf16>
    %856 = vector.extract_strided_slice %855 {offsets = [0, 0], sizes = [8, 32], strides = [1, 1]} : vector<8x128xbf16> to vector<8x32xbf16>
    %857 = vector.extract_strided_slice %855 {offsets = [0, 32], sizes = [8, 32], strides = [1, 1]} : vector<8x128xbf16> to vector<8x32xbf16>
    %858 = vector.extract_strided_slice %855 {offsets = [0, 64], sizes = [8, 32], strides = [1, 1]} : vector<8x128xbf16> to vector<8x32xbf16>
    %859 = vector.extract_strided_slice %855 {offsets = [0, 96], sizes = [8, 32], strides = [1, 1]} : vector<8x128xbf16> to vector<8x32xbf16>
    %860 = vector.shape_cast %856 : vector<8x32xbf16> to vector<1x8x32xbf16>
    %861 = vector.shape_cast %857 : vector<8x32xbf16> to vector<1x8x32xbf16>
    %862 = vector.shape_cast %858 : vector<8x32xbf16> to vector<1x8x32xbf16>
    %863 = vector.shape_cast %859 : vector<8x32xbf16> to vector<1x8x32xbf16>
    %864 = tpu.concatenate %860, %861, %862, %863 in 0 : vector<1x8x32xbf16>, vector<1x8x32xbf16>, vector<1x8x32xbf16>, vector<1x8x32xbf16> -> vector<4x8x32xbf16>
    %865 = arith.truncf %853 : vector<8x128xf32> to vector<8x128xbf16>
    %866 = vector.extract_strided_slice %865 {offsets = [0, 0], sizes = [8, 32], strides = [1, 1]} : vector<8x128xbf16> to vector<8x32xbf16>
    %867 = vector.extract_strided_slice %865 {offsets = [0, 32], sizes = [8, 32], strides = [1, 1]} : vector<8x128xbf16> to vector<8x32xbf16>
    %868 = vector.extract_strided_slice %865 {offsets = [0, 64], sizes = [8, 32], strides = [1, 1]} : vector<8x128xbf16> to vector<8x32xbf16>
    %869 = vector.extract_strided_slice %865 {offsets = [0, 96], sizes = [8, 32], strides = [1, 1]} : vector<8x128xbf16> to vector<8x32xbf16>
    %870 = vector.shape_cast %866 : vector<8x32xbf16> to vector<1x8x32xbf16>
    %871 = vector.shape_cast %867 : vector<8x32xbf16> to vector<1x8x32xbf16>
    %872 = vector.shape_cast %868 : vector<8x32xbf16> to vector<1x8x32xbf16>
    %873 = vector.shape_cast %869 : vector<8x32xbf16> to vector<1x8x32xbf16>
    %874 = tpu.concatenate %870, %871, %872, %873 in 0 : vector<1x8x32xbf16>, vector<1x8x32xbf16>, vector<1x8x32xbf16>, vector<1x8x32xbf16> -> vector<4x8x32xbf16>
    %875 = arith.truncf %854 : vector<8x128xf32> to vector<8x128xbf16>
    %876 = vector.extract_strided_slice %875 {offsets = [0, 0], sizes = [8, 32], strides = [1, 1]} : vector<8x128xbf16> to vector<8x32xbf16>
    %877 = vector.extract_strided_slice %875 {offsets = [0, 32], sizes = [8, 32], strides = [1, 1]} : vector<8x128xbf16> to vector<8x32xbf16>
    %878 = vector.extract_strided_slice %875 {offsets = [0, 64], sizes = [8, 32], strides = [1, 1]} : vector<8x128xbf16> to vector<8x32xbf16>
    %879 = vector.extract_strided_slice %875 {offsets = [0, 96], sizes = [8, 32], strides = [1, 1]} : vector<8x128xbf16> to vector<8x32xbf16>
    %880 = vector.shape_cast %876 : vector<8x32xbf16> to vector<1x8x32xbf16>
    %881 = vector.shape_cast %877 : vector<8x32xbf16> to vector<1x8x32xbf16>
    %882 = vector.shape_cast %878 : vector<8x32xbf16> to vector<1x8x32xbf16>
    %883 = vector.shape_cast %879 : vector<8x32xbf16> to vector<1x8x32xbf16>
    %884 = tpu.concatenate %880, %881, %882, %883 in 0 : vector<1x8x32xbf16>, vector<1x8x32xbf16>, vector<1x8x32xbf16>, vector<1x8x32xbf16> -> vector<4x8x32xbf16>
    "tpu.trace_start"() <{level = 10 : i32, message = "hqd,hkd->hqk"}> : () -> ()
    %cst_326 = arith.constant dense<0.000000e+00> : vector<4x8x8xf32>
    %885 = tpu.matmul %864, %874, %cst_326 {dimension_numbers = #tpu.dot_dimension_numbers<[2], [2], [1], [1], [0, 0, 0, 1, 1, 1], [0], [0]>} : vector<4x8x32xbf16>, vector<4x8x32xbf16>, vector<4x8x8xf32> -> vector<4x8x8xf32>
    "tpu.trace_stop"() : () -> ()
    %cst_327 = arith.constant 0.176776692 : f32
    %886 = vector.broadcast %cst_327 : f32 to vector<4x8x8xf32>
    %887 = arith.mulf %885, %886 : vector<4x8x8xf32>
    %888 = vector.shape_cast %333 : vector<8x8xf32> to vector<1x8x8xf32>
    %889 = vector.broadcast %888 : vector<1x8x8xf32> to vector<4x8x8xf32>
    %890 = arith.addf %887, %889 : vector<4x8x8xf32>
    %cst_328 = arith.constant dense<0xFF800000> : vector<4x8xf32>
    %891 = vector.multi_reduction <maximumf>, %890, %cst_328 [2] : vector<4x8x8xf32> to vector<4x8xf32>
    %892 = vector.shape_cast %891 : vector<4x8xf32> to vector<4x8x1xf32>
    %893 = vector.broadcast %892 : vector<4x8x1xf32> to vector<4x8x8xf32>
    %894 = arith.subf %890, %893 : vector<4x8x8xf32>
    %895 = math.exp %894 : vector<4x8x8xf32>
    %cst_329 = arith.constant dense<0.000000e+00> : vector<4x8xf32>
    %896 = vector.multi_reduction <add>, %895, %cst_329 [2] : vector<4x8x8xf32> to vector<4x8xf32>
    %897 = vector.shape_cast %896 : vector<4x8xf32> to vector<4x8x1xf32>
    %898 = tpu.reciprocal %897 {approx = true} : vector<4x8x1xf32> -> vector<4x8x1xf32>
    %899 = vector.broadcast %898 : vector<4x8x1xf32> to vector<4x8x8xf32>
    %900 = arith.mulf %895, %899 : vector<4x8x8xf32>
    %901 = arith.truncf %900 : vector<4x8x8xf32> to vector<4x8x8xbf16>
    "tpu.trace_start"() <{level = 10 : i32, message = "hqk,hkd->hqd"}> : () -> ()
    %cst_330 = arith.constant dense<0.000000e+00> : vector<4x8x32xf32>
    %902 = tpu.matmul %901, %884, %cst_330 {dimension_numbers = #tpu.dot_dimension_numbers<[2], [1], [1], [2], [0, 0, 0, 1, 1, 2], [0], [0]>} : vector<4x8x8xbf16>, vector<4x8x32xbf16>, vector<4x8x32xf32> -> vector<4x8x32xf32>
    "tpu.trace_stop"() : () -> ()
    %903 = vector.extract_strided_slice %902 {offsets = [0, 0, 0], sizes = [1, 8, 32], strides = [1, 1, 1]} : vector<4x8x32xf32> to vector<1x8x32xf32>
    %904 = vector.shape_cast %903 : vector<1x8x32xf32> to vector<8x32xf32>
    %905 = vector.extract_strided_slice %902 {offsets = [1, 0, 0], sizes = [1, 8, 32], strides = [1, 1, 1]} : vector<4x8x32xf32> to vector<1x8x32xf32>
    %906 = vector.shape_cast %905 : vector<1x8x32xf32> to vector<8x32xf32>
    %907 = vector.extract_strided_slice %902 {offsets = [2, 0, 0], sizes = [1, 8, 32], strides = [1, 1, 1]} : vector<4x8x32xf32> to vector<1x8x32xf32>
    %908 = vector.shape_cast %907 : vector<1x8x32xf32> to vector<8x32xf32>
    %909 = vector.extract_strided_slice %902 {offsets = [3, 0, 0], sizes = [1, 8, 32], strides = [1, 1, 1]} : vector<4x8x32xf32> to vector<1x8x32xf32>
    %910 = vector.shape_cast %909 : vector<1x8x32xf32> to vector<8x32xf32>
    %911 = tpu.concatenate %904, %906, %908, %910 in 1 : vector<8x32xf32>, vector<8x32xf32>, vector<8x32xf32>, vector<8x32xf32> -> vector<8x128xf32>
    %c2_331 = arith.constant 2 : index
    %c0_332 = arith.constant 0 : index
    %c0_333 = arith.constant 0 : index
    %912 = vector.load %arg23[%c2_331, %c0_332, %c0_333] : memref<3x128x128xbf16, #tpu.memory_space<vmem>>, vector<1x128x128xbf16>
    %913 = vector.shape_cast %912 : vector<1x128x128xbf16> to vector<128x128xbf16>
    %c2_334 = arith.constant 2 : index
    %c0_335 = arith.constant 0 : index
    %c0_336 = arith.constant 0 : index
    %914 = vector.load %arg24[%c2_334, %c0_335, %c0_336] : memref<3x1x128xf32, #tpu.memory_space<vmem>>, vector<1x1x128xf32>
    %915 = vector.shape_cast %914 : vector<1x1x128xf32> to vector<1x128xf32>
    %916 = arith.truncf %911 : vector<8x128xf32> to vector<8x128xbf16>
    %cst_337 = arith.constant dense<0.000000e+00> : vector<8x128xf32>
    %917 = tpu.matmul %916, %913, %cst_337 {dimension_numbers = #tpu.dot_dimension_numbers<[1], [0], [0], [1], [0, 0, 1, 1], [], []>} : vector<8x128xbf16>, vector<128x128xbf16>, vector<8x128xf32> -> vector<8x128xf32>
    %918 = vector.broadcast %915 : vector<1x128xf32> to vector<8x128xf32>
    %919 = arith.addf %917, %918 : vector<8x128xf32>
    %920 = arith.addf %843, %919 : vector<8x128xf32>
    %c2_338 = arith.constant 2 : index
    %c0_339 = arith.constant 0 : index
    %c0_340 = arith.constant 0 : index
    %921 = vector.load %arg25[%c2_338, %c0_339, %c0_340] : memref<3x1x128xf32, #tpu.memory_space<vmem>>, vector<1x1x128xf32>
    %922 = vector.shape_cast %921 : vector<1x1x128xf32> to vector<1x128xf32>
    %c2_341 = arith.constant 2 : index
    %c0_342 = arith.constant 0 : index
    %c0_343 = arith.constant 0 : index
    %923 = vector.load %arg26[%c2_341, %c0_342, %c0_343] : memref<3x1x128xf32, #tpu.memory_space<vmem>>, vector<1x1x128xf32>
    %924 = vector.shape_cast %923 : vector<1x1x128xf32> to vector<1x128xf32>
    %cst_344 = arith.constant dense<0.000000e+00> : vector<8xf32>
    %925 = vector.multi_reduction <add>, %920, %cst_344 [1] : vector<8x128xf32> to vector<8xf32>
    %926 = vector.shape_cast %925 : vector<8xf32> to vector<8x1xf32>
    %cst_345 = arith.constant 1.280000e+02 : f32
    %927 = vector.broadcast %cst_345 : f32 to vector<8x1xf32>
    %928 = arith.divf %926, %927 : vector<8x1xf32>
    %929 = vector.broadcast %928 : vector<8x1xf32> to vector<8x128xf32>
    %930 = arith.subf %920, %929 : vector<8x128xf32>
    %931 = arith.mulf %930, %930 : vector<8x128xf32>
    %cst_346 = arith.constant dense<0.000000e+00> : vector<8xf32>
    %932 = vector.multi_reduction <add>, %931, %cst_346 [1] : vector<8x128xf32> to vector<8xf32>
    %933 = vector.shape_cast %932 : vector<8xf32> to vector<8x1xf32>
    %cst_347 = arith.constant 1.280000e+02 : f32
    %934 = vector.broadcast %cst_347 : f32 to vector<8x1xf32>
    %935 = arith.divf %933, %934 : vector<8x1xf32>
    %936 = vector.broadcast %928 : vector<8x1xf32> to vector<8x128xf32>
    %937 = arith.subf %920, %936 : vector<8x128xf32>
    %cst_348 = arith.constant 9.99999974E-6 : f32
    %938 = vector.broadcast %cst_348 : f32 to vector<8x1xf32>
    %939 = arith.addf %935, %938 : vector<8x1xf32>
    %940 = math.rsqrt %939 : vector<8x1xf32>
    %941 = vector.broadcast %940 : vector<8x1xf32> to vector<8x128xf32>
    %942 = arith.mulf %937, %941 : vector<8x128xf32>
    %943 = vector.broadcast %922 : vector<1x128xf32> to vector<8x128xf32>
    %944 = arith.mulf %942, %943 : vector<8x128xf32>
    %945 = vector.broadcast %924 : vector<1x128xf32> to vector<8x128xf32>
    %946 = arith.addf %944, %945 : vector<8x128xf32>
    %c2_349 = arith.constant 2 : index
    %c0_350 = arith.constant 0 : index
    %c0_351 = arith.constant 0 : index
    %947 = vector.load %arg27[%c2_349, %c0_350, %c0_351] : memref<3x128x128xbf16, #tpu.memory_space<vmem>>, vector<1x128x128xbf16>
    %948 = vector.shape_cast %947 : vector<1x128x128xbf16> to vector<128x128xbf16>
    %c2_352 = arith.constant 2 : index
    %c0_353 = arith.constant 0 : index
    %c0_354 = arith.constant 0 : index
    %949 = vector.load %arg28[%c2_352, %c0_353, %c0_354] : memref<3x1x128xf32, #tpu.memory_space<vmem>>, vector<1x1x128xf32>
    %950 = vector.shape_cast %949 : vector<1x1x128xf32> to vector<1x128xf32>
    %951 = arith.truncf %946 : vector<8x128xf32> to vector<8x128xbf16>
    %cst_355 = arith.constant dense<0.000000e+00> : vector<8x128xf32>
    %952 = tpu.matmul %951, %948, %cst_355 {dimension_numbers = #tpu.dot_dimension_numbers<[1], [0], [0], [1], [0, 0, 1, 1], [], []>} : vector<8x128xbf16>, vector<128x128xbf16>, vector<8x128xf32> -> vector<8x128xf32>
    %953 = vector.broadcast %950 : vector<1x128xf32> to vector<8x128xf32>
    %954 = arith.addf %952, %953 : vector<8x128xf32>
    %c2_356 = arith.constant 2 : index
    %c0_357 = arith.constant 0 : index
    %c0_358 = arith.constant 0 : index
    %955 = vector.load %arg29[%c2_356, %c0_357, %c0_358] : memref<3x128x256xbf16, #tpu.memory_space<vmem>>, vector<1x128x256xbf16>
    %956 = vector.shape_cast %955 : vector<1x128x256xbf16> to vector<128x256xbf16>
    %c2_359 = arith.constant 2 : index
    %c0_360 = arith.constant 0 : index
    %c0_361 = arith.constant 0 : index
    %957 = vector.load %arg30[%c2_359, %c0_360, %c0_361] : memref<3x1x256xf32, #tpu.memory_space<vmem>>, vector<1x1x256xf32>
    %958 = vector.shape_cast %957 : vector<1x1x256xf32> to vector<1x256xf32>
    %959 = arith.truncf %323 : vector<8x128xf32> to vector<8x128xbf16>
    %cst_362 = arith.constant dense<0.000000e+00> : vector<8x256xf32>
    %960 = tpu.matmul %959, %956, %cst_362 {dimension_numbers = #tpu.dot_dimension_numbers<[1], [0], [0], [1], [0, 0, 1, 1], [], []>} : vector<8x128xbf16>, vector<128x256xbf16>, vector<8x256xf32> -> vector<8x256xf32>
    %961 = vector.broadcast %958 : vector<1x256xf32> to vector<8x256xf32>
    %962 = arith.addf %960, %961 : vector<8x256xf32>
    %963 = vector.extract_strided_slice %962 {offsets = [0, 0], sizes = [8, 128], strides = [1, 1]} : vector<8x256xf32> to vector<8x128xf32>
    %964 = vector.extract_strided_slice %962 {offsets = [0, 128], sizes = [8, 128], strides = [1, 1]} : vector<8x256xf32> to vector<8x128xf32>
    %965 = arith.truncf %954 : vector<8x128xf32> to vector<8x128xbf16>
    %966 = vector.extract_strided_slice %965 {offsets = [0, 0], sizes = [8, 32], strides = [1, 1]} : vector<8x128xbf16> to vector<8x32xbf16>
    %967 = vector.extract_strided_slice %965 {offsets = [0, 32], sizes = [8, 32], strides = [1, 1]} : vector<8x128xbf16> to vector<8x32xbf16>
    %968 = vector.extract_strided_slice %965 {offsets = [0, 64], sizes = [8, 32], strides = [1, 1]} : vector<8x128xbf16> to vector<8x32xbf16>
    %969 = vector.extract_strided_slice %965 {offsets = [0, 96], sizes = [8, 32], strides = [1, 1]} : vector<8x128xbf16> to vector<8x32xbf16>
    %970 = vector.shape_cast %966 : vector<8x32xbf16> to vector<1x8x32xbf16>
    %971 = vector.shape_cast %967 : vector<8x32xbf16> to vector<1x8x32xbf16>
    %972 = vector.shape_cast %968 : vector<8x32xbf16> to vector<1x8x32xbf16>
    %973 = vector.shape_cast %969 : vector<8x32xbf16> to vector<1x8x32xbf16>
    %974 = tpu.concatenate %970, %971, %972, %973 in 0 : vector<1x8x32xbf16>, vector<1x8x32xbf16>, vector<1x8x32xbf16>, vector<1x8x32xbf16> -> vector<4x8x32xbf16>
    %975 = arith.truncf %963 : vector<8x128xf32> to vector<8x128xbf16>
    %976 = vector.extract_strided_slice %975 {offsets = [0, 0], sizes = [8, 32], strides = [1, 1]} : vector<8x128xbf16> to vector<8x32xbf16>
    %977 = vector.extract_strided_slice %975 {offsets = [0, 32], sizes = [8, 32], strides = [1, 1]} : vector<8x128xbf16> to vector<8x32xbf16>
    %978 = vector.extract_strided_slice %975 {offsets = [0, 64], sizes = [8, 32], strides = [1, 1]} : vector<8x128xbf16> to vector<8x32xbf16>
    %979 = vector.extract_strided_slice %975 {offsets = [0, 96], sizes = [8, 32], strides = [1, 1]} : vector<8x128xbf16> to vector<8x32xbf16>
    %980 = vector.shape_cast %976 : vector<8x32xbf16> to vector<1x8x32xbf16>
    %981 = vector.shape_cast %977 : vector<8x32xbf16> to vector<1x8x32xbf16>
    %982 = vector.shape_cast %978 : vector<8x32xbf16> to vector<1x8x32xbf16>
    %983 = vector.shape_cast %979 : vector<8x32xbf16> to vector<1x8x32xbf16>
    %984 = tpu.concatenate %980, %981, %982, %983 in 0 : vector<1x8x32xbf16>, vector<1x8x32xbf16>, vector<1x8x32xbf16>, vector<1x8x32xbf16> -> vector<4x8x32xbf16>
    %985 = arith.truncf %964 : vector<8x128xf32> to vector<8x128xbf16>
    %986 = vector.extract_strided_slice %985 {offsets = [0, 0], sizes = [8, 32], strides = [1, 1]} : vector<8x128xbf16> to vector<8x32xbf16>
    %987 = vector.extract_strided_slice %985 {offsets = [0, 32], sizes = [8, 32], strides = [1, 1]} : vector<8x128xbf16> to vector<8x32xbf16>
    %988 = vector.extract_strided_slice %985 {offsets = [0, 64], sizes = [8, 32], strides = [1, 1]} : vector<8x128xbf16> to vector<8x32xbf16>
    %989 = vector.extract_strided_slice %985 {offsets = [0, 96], sizes = [8, 32], strides = [1, 1]} : vector<8x128xbf16> to vector<8x32xbf16>
    %990 = vector.shape_cast %986 : vector<8x32xbf16> to vector<1x8x32xbf16>
    %991 = vector.shape_cast %987 : vector<8x32xbf16> to vector<1x8x32xbf16>
    %992 = vector.shape_cast %988 : vector<8x32xbf16> to vector<1x8x32xbf16>
    %993 = vector.shape_cast %989 : vector<8x32xbf16> to vector<1x8x32xbf16>
    %994 = tpu.concatenate %990, %991, %992, %993 in 0 : vector<1x8x32xbf16>, vector<1x8x32xbf16>, vector<1x8x32xbf16>, vector<1x8x32xbf16> -> vector<4x8x32xbf16>
    "tpu.trace_start"() <{level = 10 : i32, message = "hqd,hkd->hqk"}> : () -> ()
    %cst_363 = arith.constant dense<0.000000e+00> : vector<4x8x8xf32>
    %995 = tpu.matmul %974, %984, %cst_363 {dimension_numbers = #tpu.dot_dimension_numbers<[2], [2], [1], [1], [0, 0, 0, 1, 1, 1], [0], [0]>} : vector<4x8x32xbf16>, vector<4x8x32xbf16>, vector<4x8x8xf32> -> vector<4x8x8xf32>
    "tpu.trace_stop"() : () -> ()
    %cst_364 = arith.constant 0.176776692 : f32
    %996 = vector.broadcast %cst_364 : f32 to vector<4x8x8xf32>
    %997 = arith.mulf %995, %996 : vector<4x8x8xf32>
    %cst_365 = arith.constant dense<0xFF800000> : vector<4x8xf32>
    %998 = vector.multi_reduction <maximumf>, %997, %cst_365 [2] : vector<4x8x8xf32> to vector<4x8xf32>
    %999 = vector.shape_cast %998 : vector<4x8xf32> to vector<4x8x1xf32>
    %1000 = vector.broadcast %999 : vector<4x8x1xf32> to vector<4x8x8xf32>
    %1001 = arith.subf %997, %1000 : vector<4x8x8xf32>
    %1002 = math.exp %1001 : vector<4x8x8xf32>
    %cst_366 = arith.constant dense<0.000000e+00> : vector<4x8xf32>
    %1003 = vector.multi_reduction <add>, %1002, %cst_366 [2] : vector<4x8x8xf32> to vector<4x8xf32>
    %1004 = vector.shape_cast %1003 : vector<4x8xf32> to vector<4x8x1xf32>
    %1005 = tpu.reciprocal %1004 {approx = true} : vector<4x8x1xf32> -> vector<4x8x1xf32>
    %1006 = vector.broadcast %1005 : vector<4x8x1xf32> to vector<4x8x8xf32>
    %1007 = arith.mulf %1002, %1006 : vector<4x8x8xf32>
    %1008 = arith.truncf %1007 : vector<4x8x8xf32> to vector<4x8x8xbf16>
    "tpu.trace_start"() <{level = 10 : i32, message = "hqk,hkd->hqd"}> : () -> ()
    %cst_367 = arith.constant dense<0.000000e+00> : vector<4x8x32xf32>
    %1009 = tpu.matmul %1008, %994, %cst_367 {dimension_numbers = #tpu.dot_dimension_numbers<[2], [1], [1], [2], [0, 0, 0, 1, 1, 2], [0], [0]>} : vector<4x8x8xbf16>, vector<4x8x32xbf16>, vector<4x8x32xf32> -> vector<4x8x32xf32>
    "tpu.trace_stop"() : () -> ()
    %1010 = vector.extract_strided_slice %1009 {offsets = [0, 0, 0], sizes = [1, 8, 32], strides = [1, 1, 1]} : vector<4x8x32xf32> to vector<1x8x32xf32>
    %1011 = vector.shape_cast %1010 : vector<1x8x32xf32> to vector<8x32xf32>
    %1012 = vector.extract_strided_slice %1009 {offsets = [1, 0, 0], sizes = [1, 8, 32], strides = [1, 1, 1]} : vector<4x8x32xf32> to vector<1x8x32xf32>
    %1013 = vector.shape_cast %1012 : vector<1x8x32xf32> to vector<8x32xf32>
    %1014 = vector.extract_strided_slice %1009 {offsets = [2, 0, 0], sizes = [1, 8, 32], strides = [1, 1, 1]} : vector<4x8x32xf32> to vector<1x8x32xf32>
    %1015 = vector.shape_cast %1014 : vector<1x8x32xf32> to vector<8x32xf32>
    %1016 = vector.extract_strided_slice %1009 {offsets = [3, 0, 0], sizes = [1, 8, 32], strides = [1, 1, 1]} : vector<4x8x32xf32> to vector<1x8x32xf32>
    %1017 = vector.shape_cast %1016 : vector<1x8x32xf32> to vector<8x32xf32>
    %1018 = tpu.concatenate %1011, %1013, %1015, %1017 in 1 : vector<8x32xf32>, vector<8x32xf32>, vector<8x32xf32>, vector<8x32xf32> -> vector<8x128xf32>
    %c2_368 = arith.constant 2 : index
    %c0_369 = arith.constant 0 : index
    %c0_370 = arith.constant 0 : index
    %1019 = vector.load %arg31[%c2_368, %c0_369, %c0_370] : memref<3x128x128xbf16, #tpu.memory_space<vmem>>, vector<1x128x128xbf16>
    %1020 = vector.shape_cast %1019 : vector<1x128x128xbf16> to vector<128x128xbf16>
    %c2_371 = arith.constant 2 : index
    %c0_372 = arith.constant 0 : index
    %c0_373 = arith.constant 0 : index
    %1021 = vector.load %arg32[%c2_371, %c0_372, %c0_373] : memref<3x1x128xf32, #tpu.memory_space<vmem>>, vector<1x1x128xf32>
    %1022 = vector.shape_cast %1021 : vector<1x1x128xf32> to vector<1x128xf32>
    %1023 = arith.truncf %1018 : vector<8x128xf32> to vector<8x128xbf16>
    %cst_374 = arith.constant dense<0.000000e+00> : vector<8x128xf32>
    %1024 = tpu.matmul %1023, %1020, %cst_374 {dimension_numbers = #tpu.dot_dimension_numbers<[1], [0], [0], [1], [0, 0, 1, 1], [], []>} : vector<8x128xbf16>, vector<128x128xbf16>, vector<8x128xf32> -> vector<8x128xf32>
    %1025 = vector.broadcast %1022 : vector<1x128xf32> to vector<8x128xf32>
    %1026 = arith.addf %1024, %1025 : vector<8x128xf32>
    %1027 = arith.addf %946, %1026 : vector<8x128xf32>
    %c2_375 = arith.constant 2 : index
    %c0_376 = arith.constant 0 : index
    %c0_377 = arith.constant 0 : index
    %1028 = vector.load %arg33[%c2_375, %c0_376, %c0_377] : memref<3x1x128xf32, #tpu.memory_space<vmem>>, vector<1x1x128xf32>
    %1029 = vector.shape_cast %1028 : vector<1x1x128xf32> to vector<1x128xf32>
    %c2_378 = arith.constant 2 : index
    %c0_379 = arith.constant 0 : index
    %c0_380 = arith.constant 0 : index
    %1030 = vector.load %arg34[%c2_378, %c0_379, %c0_380] : memref<3x1x128xf32, #tpu.memory_space<vmem>>, vector<1x1x128xf32>
    %1031 = vector.shape_cast %1030 : vector<1x1x128xf32> to vector<1x128xf32>
    %cst_381 = arith.constant dense<0.000000e+00> : vector<8xf32>
    %1032 = vector.multi_reduction <add>, %1027, %cst_381 [1] : vector<8x128xf32> to vector<8xf32>
    %1033 = vector.shape_cast %1032 : vector<8xf32> to vector<8x1xf32>
    %cst_382 = arith.constant 1.280000e+02 : f32
    %1034 = vector.broadcast %cst_382 : f32 to vector<8x1xf32>
    %1035 = arith.divf %1033, %1034 : vector<8x1xf32>
    %1036 = vector.broadcast %1035 : vector<8x1xf32> to vector<8x128xf32>
    %1037 = arith.subf %1027, %1036 : vector<8x128xf32>
    %1038 = arith.mulf %1037, %1037 : vector<8x128xf32>
    %cst_383 = arith.constant dense<0.000000e+00> : vector<8xf32>
    %1039 = vector.multi_reduction <add>, %1038, %cst_383 [1] : vector<8x128xf32> to vector<8xf32>
    %1040 = vector.shape_cast %1039 : vector<8xf32> to vector<8x1xf32>
    %cst_384 = arith.constant 1.280000e+02 : f32
    %1041 = vector.broadcast %cst_384 : f32 to vector<8x1xf32>
    %1042 = arith.divf %1040, %1041 : vector<8x1xf32>
    %1043 = vector.broadcast %1035 : vector<8x1xf32> to vector<8x128xf32>
    %1044 = arith.subf %1027, %1043 : vector<8x128xf32>
    %cst_385 = arith.constant 9.99999974E-6 : f32
    %1045 = vector.broadcast %cst_385 : f32 to vector<8x1xf32>
    %1046 = arith.addf %1042, %1045 : vector<8x1xf32>
    %1047 = math.rsqrt %1046 : vector<8x1xf32>
    %1048 = vector.broadcast %1047 : vector<8x1xf32> to vector<8x128xf32>
    %1049 = arith.mulf %1044, %1048 : vector<8x128xf32>
    %1050 = vector.broadcast %1029 : vector<1x128xf32> to vector<8x128xf32>
    %1051 = arith.mulf %1049, %1050 : vector<8x128xf32>
    %1052 = vector.broadcast %1031 : vector<1x128xf32> to vector<8x128xf32>
    %1053 = arith.addf %1051, %1052 : vector<8x128xf32>
    %c2_386 = arith.constant 2 : index
    %c0_387 = arith.constant 0 : index
    %c0_388 = arith.constant 0 : index
    %1054 = vector.load %arg35[%c2_386, %c0_387, %c0_388] : memref<3x128x512xbf16, #tpu.memory_space<vmem>>, vector<1x128x512xbf16>
    %1055 = vector.shape_cast %1054 : vector<1x128x512xbf16> to vector<128x512xbf16>
    %c2_389 = arith.constant 2 : index
    %c0_390 = arith.constant 0 : index
    %c0_391 = arith.constant 0 : index
    %1056 = vector.load %arg36[%c2_389, %c0_390, %c0_391] : memref<3x1x512xf32, #tpu.memory_space<vmem>>, vector<1x1x512xf32>
    %1057 = vector.shape_cast %1056 : vector<1x1x512xf32> to vector<1x512xf32>
    %1058 = arith.truncf %1053 : vector<8x128xf32> to vector<8x128xbf16>
    %cst_392 = arith.constant dense<0.000000e+00> : vector<8x512xf32>
    %1059 = tpu.matmul %1058, %1055, %cst_392 {dimension_numbers = #tpu.dot_dimension_numbers<[1], [0], [0], [1], [0, 0, 1, 1], [], []>} : vector<8x128xbf16>, vector<128x512xbf16>, vector<8x512xf32> -> vector<8x512xf32>
    %1060 = vector.broadcast %1057 : vector<1x512xf32> to vector<8x512xf32>
    %1061 = arith.addf %1059, %1060 : vector<8x512xf32>
    %cst_393 = arith.constant 0.000000e+00 : f32
    %1062 = vector.broadcast %cst_393 : f32 to vector<8x512xf32>
    %1063 = arith.maximumf %1061, %1062 : vector<8x512xf32>
    %c2_394 = arith.constant 2 : index
    %c0_395 = arith.constant 0 : index
    %c0_396 = arith.constant 0 : index
    %1064 = vector.load %arg37[%c2_394, %c0_395, %c0_396] : memref<3x512x128xbf16, #tpu.memory_space<vmem>>, vector<1x512x128xbf16>
    %1065 = vector.shape_cast %1064 : vector<1x512x128xbf16> to vector<512x128xbf16>
    %c2_397 = arith.constant 2 : index
    %c0_398 = arith.constant 0 : index
    %c0_399 = arith.constant 0 : index
    %1066 = vector.load %arg38[%c2_397, %c0_398, %c0_399] : memref<3x1x128xf32, #tpu.memory_space<vmem>>, vector<1x1x128xf32>
    %1067 = vector.shape_cast %1066 : vector<1x1x128xf32> to vector<1x128xf32>
    %1068 = arith.truncf %1063 : vector<8x512xf32> to vector<8x512xbf16>
    %cst_400 = arith.constant dense<0.000000e+00> : vector<8x128xf32>
    %1069 = tpu.matmul %1068, %1065, %cst_400 {dimension_numbers = #tpu.dot_dimension_numbers<[1], [0], [0], [1], [0, 0, 1, 1], [], []>} : vector<8x512xbf16>, vector<512x128xbf16>, vector<8x128xf32> -> vector<8x128xf32>
    %1070 = vector.broadcast %1067 : vector<1x128xf32> to vector<8x128xf32>
    %1071 = arith.addf %1069, %1070 : vector<8x128xf32>
    %1072 = arith.addf %1053, %1071 : vector<8x128xf32>
    %c2_401 = arith.constant 2 : index
    %c0_402 = arith.constant 0 : index
    %c0_403 = arith.constant 0 : index
    %1073 = vector.load %arg39[%c2_401, %c0_402, %c0_403] : memref<3x1x128xf32, #tpu.memory_space<vmem>>, vector<1x1x128xf32>
    %1074 = vector.shape_cast %1073 : vector<1x1x128xf32> to vector<1x128xf32>
    %c2_404 = arith.constant 2 : index
    %c0_405 = arith.constant 0 : index
    %c0_406 = arith.constant 0 : index
    %1075 = vector.load %arg40[%c2_404, %c0_405, %c0_406] : memref<3x1x128xf32, #tpu.memory_space<vmem>>, vector<1x1x128xf32>
    %1076 = vector.shape_cast %1075 : vector<1x1x128xf32> to vector<1x128xf32>
    %cst_407 = arith.constant dense<0.000000e+00> : vector<8xf32>
    %1077 = vector.multi_reduction <add>, %1072, %cst_407 [1] : vector<8x128xf32> to vector<8xf32>
    %1078 = vector.shape_cast %1077 : vector<8xf32> to vector<8x1xf32>
    %cst_408 = arith.constant 1.280000e+02 : f32
    %1079 = vector.broadcast %cst_408 : f32 to vector<8x1xf32>
    %1080 = arith.divf %1078, %1079 : vector<8x1xf32>
    %1081 = vector.broadcast %1080 : vector<8x1xf32> to vector<8x128xf32>
    %1082 = arith.subf %1072, %1081 : vector<8x128xf32>
    %1083 = arith.mulf %1082, %1082 : vector<8x128xf32>
    %cst_409 = arith.constant dense<0.000000e+00> : vector<8xf32>
    %1084 = vector.multi_reduction <add>, %1083, %cst_409 [1] : vector<8x128xf32> to vector<8xf32>
    %1085 = vector.shape_cast %1084 : vector<8xf32> to vector<8x1xf32>
    %cst_410 = arith.constant 1.280000e+02 : f32
    %1086 = vector.broadcast %cst_410 : f32 to vector<8x1xf32>
    %1087 = arith.divf %1085, %1086 : vector<8x1xf32>
    %1088 = vector.broadcast %1080 : vector<8x1xf32> to vector<8x128xf32>
    %1089 = arith.subf %1072, %1088 : vector<8x128xf32>
    %cst_411 = arith.constant 9.99999974E-6 : f32
    %1090 = vector.broadcast %cst_411 : f32 to vector<8x1xf32>
    %1091 = arith.addf %1087, %1090 : vector<8x1xf32>
    %1092 = math.rsqrt %1091 : vector<8x1xf32>
    %1093 = vector.broadcast %1092 : vector<8x1xf32> to vector<8x128xf32>
    %1094 = arith.mulf %1089, %1093 : vector<8x128xf32>
    %1095 = vector.broadcast %1074 : vector<1x128xf32> to vector<8x128xf32>
    %1096 = arith.mulf %1094, %1095 : vector<8x128xf32>
    %1097 = vector.broadcast %1076 : vector<1x128xf32> to vector<8x128xf32>
    %1098 = arith.addf %1096, %1097 : vector<8x128xf32>
    %c0_412 = arith.constant 0 : index
    %c0_413 = arith.constant 0 : index
    %1099 = vector.load %arg41[%c0_412, %c0_413] : memref<1x128xf32, #tpu.memory_space<vmem>>, vector<1x128xf32>
    %c0_414 = arith.constant 0 : index
    %c0_415 = arith.constant 0 : index
    %1100 = vector.load %arg42[%c0_414, %c0_415] : memref<1x128xf32, #tpu.memory_space<vmem>>, vector<1x128xf32>
    %cst_416 = arith.constant dense<0.000000e+00> : vector<8xf32>
    %1101 = vector.multi_reduction <add>, %1098, %cst_416 [1] : vector<8x128xf32> to vector<8xf32>
    %1102 = vector.shape_cast %1101 : vector<8xf32> to vector<8x1xf32>
    %cst_417 = arith.constant 1.280000e+02 : f32
    %1103 = vector.broadcast %cst_417 : f32 to vector<8x1xf32>
    %1104 = arith.divf %1102, %1103 : vector<8x1xf32>
    %1105 = vector.broadcast %1104 : vector<8x1xf32> to vector<8x128xf32>
    %1106 = arith.subf %1098, %1105 : vector<8x128xf32>
    %1107 = arith.mulf %1106, %1106 : vector<8x128xf32>
    %cst_418 = arith.constant dense<0.000000e+00> : vector<8xf32>
    %1108 = vector.multi_reduction <add>, %1107, %cst_418 [1] : vector<8x128xf32> to vector<8xf32>
    %1109 = vector.shape_cast %1108 : vector<8xf32> to vector<8x1xf32>
    %cst_419 = arith.constant 1.280000e+02 : f32
    %1110 = vector.broadcast %cst_419 : f32 to vector<8x1xf32>
    %1111 = arith.divf %1109, %1110 : vector<8x1xf32>
    %1112 = vector.broadcast %1104 : vector<8x1xf32> to vector<8x128xf32>
    %1113 = arith.subf %1098, %1112 : vector<8x128xf32>
    %cst_420 = arith.constant 9.99999974E-6 : f32
    %1114 = vector.broadcast %cst_420 : f32 to vector<8x1xf32>
    %1115 = arith.addf %1111, %1114 : vector<8x1xf32>
    %1116 = math.rsqrt %1115 : vector<8x1xf32>
    %1117 = vector.broadcast %1116 : vector<8x1xf32> to vector<8x128xf32>
    %1118 = arith.mulf %1113, %1117 : vector<8x128xf32>
    %1119 = vector.broadcast %1099 : vector<1x128xf32> to vector<8x128xf32>
    %1120 = arith.mulf %1118, %1119 : vector<8x128xf32>
    %1121 = vector.broadcast %1100 : vector<1x128xf32> to vector<8x128xf32>
    %1122 = arith.addf %1120, %1121 : vector<8x128xf32>
    %c0_421 = arith.constant 0 : index
    %c0_422 = arith.constant 0 : index
    %1123 = vector.load %arg43[%c0_421, %c0_422] : memref<128x128xbf16, #tpu.memory_space<vmem>>, vector<128x128xbf16>
    %c0_423 = arith.constant 0 : index
    %c0_424 = arith.constant 0 : index
    %1124 = vector.load %arg44[%c0_423, %c0_424] : memref<1x128xf32, #tpu.memory_space<vmem>>, vector<1x128xf32>
    %1125 = arith.truncf %1122 : vector<8x128xf32> to vector<8x128xbf16>
    %cst_425 = arith.constant dense<0.000000e+00> : vector<8x128xf32>
    %1126 = tpu.matmul %1125, %1123, %cst_425 {dimension_numbers = #tpu.dot_dimension_numbers<[1], [0], [0], [1], [0, 0, 1, 1], [], []>} : vector<8x128xbf16>, vector<128x128xbf16>, vector<8x128xf32> -> vector<8x128xf32>
    %1127 = vector.broadcast %1124 : vector<1x128xf32> to vector<8x128xf32>
    %1128 = arith.addf %1126, %1127 : vector<8x128xf32>
    %1129 = vector.shape_cast %1128 : vector<8x128xf32> to vector<1x8x128xf32>
    %c0_426 = arith.constant 0 : index
    %c0_427 = arith.constant 0 : index
    %c0_428 = arith.constant 0 : index
    %1130 = vector.load %arg45[%c0_426, %c0_427, %c0_428] : memref<1x8x128xf32, #tpu.memory_space<vmem>>, vector<1x8x128xf32>
    tpu.vector_store %arg45[%c0_426, %c0_427, %c0_428], %1129 {strides = array<i32>} : memref<1x8x128xf32, #tpu.memory_space<vmem>>, vector<1x8x128xf32>,
    return
  }
  func.func @transform_0(%arg0: i32) -> (i32, i32, i32) {
    %c0_i32 = arith.constant 0 : i32
    %c0_i32_0 = arith.constant 0 : i32
    %c0_i32_1 = arith.constant 0 : i32
    return %arg0, %c0_i32, %c0_i32_0 : i32, i32, i32
  }
  func.func @transform_1(%arg0: i32) -> (i32, i32) {
    %c0_i32 = arith.constant 0 : i32
    %c0_i32_0 = arith.constant 0 : i32
    %c0_i32_1 = arith.constant 0 : i32
    return %c0_i32, %c0_i32_0 : i32, i32
  }
  func.func @transform_2(%arg0: i32) -> (i32, i32) {
    %c0_i32 = arith.constant 0 : i32
    %c0_i32_0 = arith.constant 0 : i32
    %c0_i32_1 = arith.constant 0 : i32
    return %c0_i32, %c0_i32_0 : i32, i32
  }
  func.func @transform_3(%arg0: i32) -> (i32, i32) {
    %c0_i32 = arith.constant 0 : i32
    %c0_i32_0 = arith.constant 0 : i32
    %c0_i32_1 = arith.constant 0 : i32
    return %c0_i32, %c0_i32_0 : i32, i32
  }
  func.func @transform_4(%arg0: i32) -> (i32, i32) {
    %c0_i32 = arith.constant 0 : i32
    %c0_i32_0 = arith.constant 0 : i32
    %c0_i32_1 = arith.constant 0 : i32
    return %c0_i32, %c0_i32_0 : i32, i32
  }
  func.func @transform_5(%arg0: i32) -> (i32, i32, i32) {
    %c0_i32 = arith.constant 0 : i32
    %c0_i32_0 = arith.constant 0 : i32
    %c0_i32_1 = arith.constant 0 : i32
    %c0_i32_2 = arith.constant 0 : i32
    return %c0_i32, %c0_i32_0, %c0_i32_1 : i32, i32, i32
  }
  func.func @transform_6(%arg0: i32) -> (i32, i32, i32) {
    %c0_i32 = arith.constant 0 : i32
    %c0_i32_0 = arith.constant 0 : i32
    %c0_i32_1 = arith.constant 0 : i32
    %c0_i32_2 = arith.constant 0 : i32
    return %c0_i32, %c0_i32_0, %c0_i32_1 : i32, i32, i32
  }
  func.func @transform_7(%arg0: i32) -> (i32, i32, i32) {
    %c0_i32 = arith.constant 0 : i32
    %c0_i32_0 = arith.constant 0 : i32
    %c0_i32_1 = arith.constant 0 : i32
    %c0_i32_2 = arith.constant 0 : i32
    return %c0_i32, %c0_i32_0, %c0_i32_1 : i32, i32, i32
  }
  func.func @transform_8(%arg0: i32) -> (i32, i32, i32) {
    %c0_i32 = arith.constant 0 : i32
    %c0_i32_0 = arith.constant 0 : i32
    %c0_i32_1 = arith.constant 0 : i32
    %c0_i32_2 = arith.constant 0 : i32
    return %c0_i32, %c0_i32_0, %c0_i32_1 : i32, i32, i32
  }
  func.func @transform_9(%arg0: i32) -> (i32, i32, i32) {
    %c0_i32 = arith.constant 0 : i32
    %c0_i32_0 = arith.constant 0 : i32
    %c0_i32_1 = arith.constant 0 : i32
    %c0_i32_2 = arith.constant 0 : i32
    return %c0_i32, %c0_i32_0, %c0_i32_1 : i32, i32, i32
  }
  func.func @transform_10(%arg0: i32) -> (i32, i32, i32) {
    %c0_i32 = arith.constant 0 : i32
    %c0_i32_0 = arith.constant 0 : i32
    %c0_i32_1 = arith.constant 0 : i32
    %c0_i32_2 = arith.constant 0 : i32
    return %c0_i32, %c0_i32_0, %c0_i32_1 : i32, i32, i32
  }
  func.func @transform_11(%arg0: i32) -> (i32, i32, i32) {
    %c0_i32 = arith.constant 0 : i32
    %c0_i32_0 = arith.constant 0 : i32
    %c0_i32_1 = arith.constant 0 : i32
    %c0_i32_2 = arith.constant 0 : i32
    return %c0_i32, %c0_i32_0, %c0_i32_1 : i32, i32, i32
  }
  func.func @transform_12(%arg0: i32) -> (i32, i32, i32) {
    %c0_i32 = arith.constant 0 : i32
    %c0_i32_0 = arith.constant 0 : i32
    %c0_i32_1 = arith.constant 0 : i32
    %c0_i32_2 = arith.constant 0 : i32
    return %c0_i32, %c0_i32_0, %c0_i32_1 : i32, i32, i32
  }
  func.func @transform_13(%arg0: i32) -> (i32, i32, i32) {
    %c0_i32 = arith.constant 0 : i32
    %c0_i32_0 = arith.constant 0 : i32
    %c0_i32_1 = arith.constant 0 : i32
    %c0_i32_2 = arith.constant 0 : i32
    return %c0_i32, %c0_i32_0, %c0_i32_1 : i32, i32, i32
  }
  func.func @transform_14(%arg0: i32) -> (i32, i32, i32) {
    %c0_i32 = arith.constant 0 : i32
    %c0_i32_0 = arith.constant 0 : i32
    %c0_i32_1 = arith.constant 0 : i32
    %c0_i32_2 = arith.constant 0 : i32
    return %c0_i32, %c0_i32_0, %c0_i32_1 : i32, i32, i32
  }
  func.func @transform_15(%arg0: i32) -> (i32, i32, i32) {
    %c0_i32 = arith.constant 0 : i32
    %c0_i32_0 = arith.constant 0 : i32
    %c0_i32_1 = arith.constant 0 : i32
    %c0_i32_2 = arith.constant 0 : i32
    return %c0_i32, %c0_i32_0, %c0_i32_1 : i32, i32, i32
  }
  func.func @transform_16(%arg0: i32) -> (i32, i32, i32) {
    %c0_i32 = arith.constant 0 : i32
    %c0_i32_0 = arith.constant 0 : i32
    %c0_i32_1 = arith.constant 0 : i32
    %c0_i32_2 = arith.constant 0 : i32
    return %c0_i32, %c0_i32_0, %c0_i32_1 : i32, i32, i32
  }
  func.func @transform_17(%arg0: i32) -> (i32, i32) {
    %c0_i32 = arith.constant 0 : i32
    %c0_i32_0 = arith.constant 0 : i32
    %c0_i32_1 = arith.constant 0 : i32
    return %c0_i32, %c0_i32_0 : i32, i32
  }
  func.func @transform_18(%arg0: i32) -> (i32, i32) {
    %c0_i32 = arith.constant 0 : i32
    %c0_i32_0 = arith.constant 0 : i32
    %c0_i32_1 = arith.constant 0 : i32
    return %c0_i32, %c0_i32_0 : i32, i32
  }
  func.func @transform_19(%arg0: i32) -> (i32, i32) {
    %c0_i32 = arith.constant 0 : i32
    %c0_i32_0 = arith.constant 0 : i32
    %c0_i32_1 = arith.constant 0 : i32
    return %c0_i32, %c0_i32_0 : i32, i32
  }
  func.func @transform_20(%arg0: i32) -> (i32, i32, i32) {
    %c0_i32 = arith.constant 0 : i32
    %c0_i32_0 = arith.constant 0 : i32
    %c0_i32_1 = arith.constant 0 : i32
    %c0_i32_2 = arith.constant 0 : i32
    return %c0_i32, %c0_i32_0, %c0_i32_1 : i32, i32, i32
  }
  func.func @transform_21(%arg0: i32) -> (i32, i32, i32) {
    %c0_i32 = arith.constant 0 : i32
    %c0_i32_0 = arith.constant 0 : i32
    %c0_i32_1 = arith.constant 0 : i32
    %c0_i32_2 = arith.constant 0 : i32
    return %c0_i32, %c0_i32_0, %c0_i32_1 : i32, i32, i32
  }
  func.func @transform_22(%arg0: i32) -> (i32, i32, i32) {
    %c0_i32 = arith.constant 0 : i32
    %c0_i32_0 = arith.constant 0 : i32
    %c0_i32_1 = arith.constant 0 : i32
    %c0_i32_2 = arith.constant 0 : i32
    return %c0_i32, %c0_i32_0, %c0_i32_1 : i32, i32, i32
  }
  func.func @transform_23(%arg0: i32) -> (i32, i32, i32) {
    %c0_i32 = arith.constant 0 : i32
    %c0_i32_0 = arith.constant 0 : i32
    %c0_i32_1 = arith.constant 0 : i32
    %c0_i32_2 = arith.constant 0 : i32
    return %c0_i32, %c0_i32_0, %c0_i32_1 : i32, i32, i32
  }
  func.func @transform_24(%arg0: i32) -> (i32, i32, i32) {
    %c0_i32 = arith.constant 0 : i32
    %c0_i32_0 = arith.constant 0 : i32
    %c0_i32_1 = arith.constant 0 : i32
    %c0_i32_2 = arith.constant 0 : i32
    return %c0_i32, %c0_i32_0, %c0_i32_1 : i32, i32, i32
  }
  func.func @transform_25(%arg0: i32) -> (i32, i32, i32) {
    %c0_i32 = arith.constant 0 : i32
    %c0_i32_0 = arith.constant 0 : i32
    %c0_i32_1 = arith.constant 0 : i32
    %c0_i32_2 = arith.constant 0 : i32
    return %c0_i32, %c0_i32_0, %c0_i32_1 : i32, i32, i32
  }
  func.func @transform_26(%arg0: i32) -> (i32, i32, i32) {
    %c0_i32 = arith.constant 0 : i32
    %c0_i32_0 = arith.constant 0 : i32
    %c0_i32_1 = arith.constant 0 : i32
    %c0_i32_2 = arith.constant 0 : i32
    return %c0_i32, %c0_i32_0, %c0_i32_1 : i32, i32, i32
  }
  func.func @transform_27(%arg0: i32) -> (i32, i32, i32) {
    %c0_i32 = arith.constant 0 : i32
    %c0_i32_0 = arith.constant 0 : i32
    %c0_i32_1 = arith.constant 0 : i32
    %c0_i32_2 = arith.constant 0 : i32
    return %c0_i32, %c0_i32_0, %c0_i32_1 : i32, i32, i32
  }
  func.func @transform_28(%arg0: i32) -> (i32, i32, i32) {
    %c0_i32 = arith.constant 0 : i32
    %c0_i32_0 = arith.constant 0 : i32
    %c0_i32_1 = arith.constant 0 : i32
    %c0_i32_2 = arith.constant 0 : i32
    return %c0_i32, %c0_i32_0, %c0_i32_1 : i32, i32, i32
  }
  func.func @transform_29(%arg0: i32) -> (i32, i32, i32) {
    %c0_i32 = arith.constant 0 : i32
    %c0_i32_0 = arith.constant 0 : i32
    %c0_i32_1 = arith.constant 0 : i32
    %c0_i32_2 = arith.constant 0 : i32
    return %c0_i32, %c0_i32_0, %c0_i32_1 : i32, i32, i32
  }
  func.func @transform_30(%arg0: i32) -> (i32, i32, i32) {
    %c0_i32 = arith.constant 0 : i32
    %c0_i32_0 = arith.constant 0 : i32
    %c0_i32_1 = arith.constant 0 : i32
    %c0_i32_2 = arith.constant 0 : i32
    return %c0_i32, %c0_i32_0, %c0_i32_1 : i32, i32, i32
  }
  func.func @transform_31(%arg0: i32) -> (i32, i32, i32) {
    %c0_i32 = arith.constant 0 : i32
    %c0_i32_0 = arith.constant 0 : i32
    %c0_i32_1 = arith.constant 0 : i32
    %c0_i32_2 = arith.constant 0 : i32
    return %c0_i32, %c0_i32_0, %c0_i32_1 : i32, i32, i32
  }
  func.func @transform_32(%arg0: i32) -> (i32, i32, i32) {
    %c0_i32 = arith.constant 0 : i32
    %c0_i32_0 = arith.constant 0 : i32
    %c0_i32_1 = arith.constant 0 : i32
    %c0_i32_2 = arith.constant 0 : i32
    return %c0_i32, %c0_i32_0, %c0_i32_1 : i32, i32, i32
  }
  func.func @transform_33(%arg0: i32) -> (i32, i32, i32) {
    %c0_i32 = arith.constant 0 : i32
    %c0_i32_0 = arith.constant 0 : i32
    %c0_i32_1 = arith.constant 0 : i32
    %c0_i32_2 = arith.constant 0 : i32
    return %c0_i32, %c0_i32_0, %c0_i32_1 : i32, i32, i32
  }
  func.func @transform_34(%arg0: i32) -> (i32, i32, i32) {
    %c0_i32 = arith.constant 0 : i32
    %c0_i32_0 = arith.constant 0 : i32
    %c0_i32_1 = arith.constant 0 : i32
    %c0_i32_2 = arith.constant 0 : i32
    return %c0_i32, %c0_i32_0, %c0_i32_1 : i32, i32, i32
  }
  func.func @transform_35(%arg0: i32) -> (i32, i32, i32) {
    %c0_i32 = arith.constant 0 : i32
    %c0_i32_0 = arith.constant 0 : i32
    %c0_i32_1 = arith.constant 0 : i32
    %c0_i32_2 = arith.constant 0 : i32
    return %c0_i32, %c0_i32_0, %c0_i32_1 : i32, i32, i32
  }
  func.func @transform_36(%arg0: i32) -> (i32, i32, i32) {
    %c0_i32 = arith.constant 0 : i32
    %c0_i32_0 = arith.constant 0 : i32
    %c0_i32_1 = arith.constant 0 : i32
    %c0_i32_2 = arith.constant 0 : i32
    return %c0_i32, %c0_i32_0, %c0_i32_1 : i32, i32, i32
  }
  func.func @transform_37(%arg0: i32) -> (i32, i32, i32) {
    %c0_i32 = arith.constant 0 : i32
    %c0_i32_0 = arith.constant 0 : i32
    %c0_i32_1 = arith.constant 0 : i32
    %c0_i32_2 = arith.constant 0 : i32
    return %c0_i32, %c0_i32_0, %c0_i32_1 : i32, i32, i32
  }
  func.func @transform_38(%arg0: i32) -> (i32, i32, i32) {
    %c0_i32 = arith.constant 0 : i32
    %c0_i32_0 = arith.constant 0 : i32
    %c0_i32_1 = arith.constant 0 : i32
    %c0_i32_2 = arith.constant 0 : i32
    return %c0_i32, %c0_i32_0, %c0_i32_1 : i32, i32, i32
  }
  func.func @transform_39(%arg0: i32) -> (i32, i32, i32) {
    %c0_i32 = arith.constant 0 : i32
    %c0_i32_0 = arith.constant 0 : i32
    %c0_i32_1 = arith.constant 0 : i32
    %c0_i32_2 = arith.constant 0 : i32
    return %c0_i32, %c0_i32_0, %c0_i32_1 : i32, i32, i32
  }
  func.func @transform_40(%arg0: i32) -> (i32, i32) {
    %c0_i32 = arith.constant 0 : i32
    %c0_i32_0 = arith.constant 0 : i32
    %c0_i32_1 = arith.constant 0 : i32
    return %c0_i32, %c0_i32_0 : i32, i32
  }
  func.func @transform_41(%arg0: i32) -> (i32, i32) {
    %c0_i32 = arith.constant 0 : i32
    %c0_i32_0 = arith.constant 0 : i32
    %c0_i32_1 = arith.constant 0 : i32
    return %c0_i32, %c0_i32_0 : i32, i32
  }
  func.func @transform_42(%arg0: i32) -> (i32, i32) {
    %c0_i32 = arith.constant 0 : i32
    %c0_i32_0 = arith.constant 0 : i32
    %c0_i32_1 = arith.constant 0 : i32
    return %c0_i32, %c0_i32_0 : i32, i32
  }
  func.func @transform_43(%arg0: i32) -> (i32, i32) {
    %c0_i32 = arith.constant 0 : i32
    %c0_i32_0 = arith.constant 0 : i32
    %c0_i32_1 = arith.constant 0 : i32
    return %c0_i32, %c0_i32_0 : i32, i32
  }
  func.func @transform_44(%arg0: i32) -> (i32, i32, i32) {
    %c0_i32 = arith.constant 0 : i32
    %c0_i32_0 = arith.constant 0 : i32
    %c0_i32_1 = arith.constant 0 : i32
    return %arg0, %c0_i32, %c0_i32_0 : i32, i32, i32
  }
}

</mosaic_0001>

<bundles_post_ra>
// kernel: transformer_forward.1
= control target key start
LH: loop header
LB: loop body
LE: loop exit
PB: predicated region body
PF: predicated region fallthrough
CT: control target
= control target key end

     0   :  { %s17290_s6 = smov 1   ;;  %s17291_s10 = smov 2   ;;  %s18952_s0 = inlined_call_operand.smem [shape: u32[45], index: -1, kind: input, shape index: {}] }
   0x1   :  { %s17402_s5 = sld [smem:[%s18952_s0]]   ;;  %s17292_s14 = smov 3  }
   0x2   :  { %s17407_s9 = sld [smem:[%s18952_s0 + %s17290_s6]]   ;;  %s17293_s18 = smov 4  }
   0x3   :  { %s17412_s13 = sld [smem:[%s18952_s0 + %s17291_s10]]   ;;  %s17294_s22 = smov 5  }
   0x4   :  { %s17417_s17 = sld [smem:[%s18952_s0 + %s17292_s14]]   ;;  %s17295_s26 = smov 6  }
   0x5   :  { %s17422_s21 = sld [smem:[%s18952_s0 + %s17293_s18]]   ;;  %s17296_s30 = smov 7  }
   0x6   :  { %s17427_s25 = sld [smem:[%s18952_s0 + %s17294_s22]]   ;;  %s17297_s4 = smov 8  }
   0x7   :  { %18966 = sst [smem:[#allocation85_spill]] %s17402_s5  ;;  %s17298_s10 = smov 9  }
   0x8   :  { %18967 = sst [smem:[#allocation86_spill]] %s17407_s9  ;;  %s17299_s15 = smov 10  }
   0x9   :  { %s17432_s29 = sld [smem:[%s18952_s0 + %s17295_s26]]   ;;  %s17300_s20 = smov 11  }
   0xa   :  { %18968 = sst [smem:[#allocation87_spill]] %s17417_s17  ;;  %s17301_s26 = smov 12  }
   0xb   :  { %18969 = sst [smem:[#allocation88_spill]] %s17422_s21  ;;  %s17302_s1 = smov 13  }
   0xc   :  { %18970 = sst [smem:[#allocation89_spill]] %s17427_s25  ;;  %s17303_s7 = smov 14  }
   0xd   :  { %s17437_s3 = sld [smem:[%s18952_s0 + %s17296_s30]]   ;;  %s17305_s22 = smov 16  }
   0xe   :  { %s17442_s8 = sld [smem:[%s18952_s0 + %s17297_s4]]   ;;  %s17306_s28 = smov 17  }
   0xf   :  { %s17447_s14 = sld [smem:[%s18952_s0 + %s17298_s10]]  }
  0x10   :  { %s17452_s19 = sld [smem:[%s18952_s0 + %s17299_s15]]   ;;  %s17304_s15 = smov 15  }
  0x11   :  { %s17457_s24 = sld [smem:[%s18952_s0 + %s17300_s20]]  }
  0x12   :  { %s17462_s30 = sld [smem:[%s18952_s0 + %s17301_s26]]  }
  0x13   :  { %18971 = sst [smem:[#allocation90_spill]] %s17437_s3 }
  0x14   :  { %18972 = sst [smem:[#allocation91_spill]] %s17442_s8 }
  0x15   :  { %18973 = sst [smem:[#allocation92_spill]] %s17447_s14 }
  0x16   :  { %s17467_s6 = sld [smem:[%s18952_s0 + %s17302_s1]]  }
  0x17   :  { %18974 = sst [smem:[#allocation93_spill]] %s17457_s24 }
  0x18   :  { %s17472_s12 = sld [smem:[%s18952_s0 + %s17303_s7]]   ;;  %s17307_s7 = smov 18  }
  0x19   :  { %s17477_s20 = sld [smem:[%s18952_s0 + %s17304_s15]]   ;;  %s17308_s15 = smov 19  }
  0x1a   :  { %s17482_s27 = sld [smem:[%s18952_s0 + %s17305_s22]]   ;;  %s17309_s22 = smov 20  }
  0x1b   :  { %s17487_s4 = sld [smem:[%s18952_s0 + %s17306_s28]]   ;;  %s17310_s28 = smov 21  }
  0x1c   :  { %18975 = sst [smem:[#allocation94_spill]] %s17467_s6 }
  0x1d   :  { %s17492_s21 = sld [smem:[%s18952_s0 + %s17307_s7]]   ;;  %s17311_s7 = smov 22  }
  0x1e   :  { %s17497_s17 = sld [smem:[%s18952_s0 + %s17308_s15]]   ;;  %s17312_s15 = smov 23  }
  0x1f   :  { %18976 = sst [smem:[#allocation95_spill]] %s17477_s20 }
  0x20   :  { %s17502_s5 = sld [smem:[%s18952_s0 + %s17309_s22]]   ;;  %s17313_s22 = smov 24  }
  0x21   :  { %18977 = sst [smem:[#allocation96_spill]] %s17487_s4 }
  0x22   :  { %s17507_s4 = sld [smem:[%s18952_s0 + %s17310_s28]]   ;;  %s17314_s28 = smov 25  }
  0x23   :  { %s17512_s20 = sld [smem:[%s18952_s0 + %s17311_s7]]   ;;  %s17315_s7 = smov 26  }
  0x24   :  { %18978 = sst [smem:[#allocation97_spill]] %s17497_s17 }
  0x25   :  { %s17517_s17 = sld [smem:[%s18952_s0 + %s17312_s15]]   ;;  %s17316_s15 = smov 27  }
  0x26   :  { %18979 = sst [smem:[#allocation98_spill]] %s17502_s5 }
  0x27   :  { %s17522_s6 = sld [smem:[%s18952_s0 + %s17313_s22]]   ;;  %s17317_s22 = smov 28  }
  0x28   :  { %18980 = sst [smem:[#allocation99_spill]] %s17507_s4 }
  0x29   :  { %s17527_s4 = sld [smem:[%s18952_s0 + %s17314_s28]]   ;;  %s17318_s28 = smov 29  }
  0x2a   :  { %s17532_s24 = sld [smem:[%s18952_s0 + %s17315_s7]]   ;;  %s17319_s7 = smov 30  }
  0x2b   :  { %18981 = sst [smem:[#allocation100_spill]] %s17517_s17 }
  0x2c   :  { %s17537_s17 = sld [smem:[%s18952_s0 + %s17316_s15]]   ;;  %s17320_s15 = smov 31  }
  0x2d   :  { %18982 = sst [smem:[#allocation101_spill]] %s17522_s6 }
  0x2e   :  { %s17542_s14 = sld [smem:[%s18952_s0 + %s17317_s22]]   ;;  %s17321_s22 = smov 32  }
  0x2f   :  { %18983 = sst [smem:[#allocation102_spill]] %s17527_s4 }
  0x30   :  { %s17547_s4 = sld [smem:[%s18952_s0 + %s17318_s28]]   ;;  %s17322_s28 = smov 33  }
  0x31   :  { %s17552_s3 = sld [smem:[%s18952_s0 + %s17319_s7]]   ;;  %s17323_s7 = smov 34  }
  0x32   :  { %18984 = sst [smem:[#allocation103_spill]] %s17537_s17 }
  0x33   :  { %s17557_s17 = sld [smem:[%s18952_s0 + %s17320_s15]]   ;;  %s17324_s15 = smov 35  }
  0x34   :  { %s17562_s25 = sld [smem:[%s18952_s0 + %s17321_s22]]   ;;  %s17325_s22 = smov 36  }
  0x35   :  { %s17572_s9 = sld [smem:[%s18952_s0 + %s17323_s7]]   ;;  %s17327_s7 = smov 38  }
  0x36   :  { %18985 = sst [smem:[#allocation104_spill]] %s17547_s4 }
  0x37   :  { %18986 = sst [smem:[#allocation105_spill]] %s17552_s3 }
  0x38   :  { %s17567_s4 = sld [smem:[%s18952_s0 + %s17322_s28]]   ;;  %s17326_s28 = smov 37  }
  0x39   :  { %18987 = sst [smem:[#allocation106_spill]] %s17557_s17 }
  0x3a   :  { %18988 = sst [smem:[#allocation107_spill]] %s17562_s25 }
  0x3b   :  { %18990 = sst [smem:[#allocation109_spill]] %s17572_s9 }
  0x3c   :  { %s17577_s17 = sld [smem:[%s18952_s0 + %s17324_s15]]   ;;  %s17328_s15 = smov 39  }
  0x3d   :  { %s17582_s25 = sld [smem:[%s18952_s0 + %s17325_s22]]   ;;  %s17329_s22 = smov 40  }
  0x3e   :  { %18989 = sst [smem:[#allocation108_spill]] %s17567_s4 }
  0x3f   :  { %s17587_s4 = sld [smem:[%s18952_s0 + %s17326_s28]]   ;;  %s17330_s28 = smov 41  }
  0x40   :  { %s17592_s9 = sld [smem:[%s18952_s0 + %s17327_s7]]   ;;  %s17331_s7 = smov 42  }
  0x42   :  { %18991 = sst [smem:[#allocation110_spill]] %s17577_s17 }
  0x43   :  { %18992 = sst [smem:[#allocation111_spill]] %s17582_s25 }
  0x44   :  { %s17597_s17 = sld [smem:[%s18952_s0 + %s17328_s15]]   ;;  %s17332_s15 = smov 43  }
  0x45   :  { %18993 = sst [smem:[#allocation112_spill]] %s17587_s4 }
  0x46   :  { %18994 = sst [smem:[#allocation113_spill]] %s17592_s9 }
  0x47   :  { %s17602_s25 = sld [smem:[%s18952_s0 + %s17329_s22]]   ;;  %s17333_s22 = smov 44  }
  0x48   :  { %s17607_s4 = sld [smem:[%s18952_s0 + %s17330_s28]]  }
  0x49   :  { %s17612_s9 = sld [smem:[%s18952_s0 + %s17331_s7]]  }
  0x4a   :  { %18995 = sst [smem:[#allocation114_spill]] %s17597_s17 }
  0x4b   :  { %s17617_s17 = sld [smem:[%s18952_s0 + %s17332_s15]]  }
  0x4d   :  { %18996 = sst [smem:[#allocation115_spill]] %s17602_s25 }
  0x4e   :  { %s17622_s25 = sld [smem:[%s18952_s0 + %s17333_s22]]  }
  0x4f   :  { %18997 = sst [smem:[#allocation116_spill]] %s17612_s9 }
  0x50   :  { %94 = vsyncpa [#allocation3], 0 }
  0x51   :  { %95 = vsyncpa [#allocation5], 0 }
  0x52   :  { %96 = vsyncpa [#allocation8], 0 }
  0x53   :  { %97 = vsyncpa [#allocation11], 0 }
  0x54   :  { %98 = vsyncpa [#allocation14], 0 }
  0x55   :  { %99 = vsyncpa [#allocation17], 0 }
  0x56   :  { %100 = vsyncpa [#allocation20], 0 }
  0x57   :  { %101 = vsyncpa [#allocation23], 0 }
  0x58   :  { %102 = vsyncpa [#allocation26], 0 }
  0x59   :  { %103 = vsyncpa [#allocation29], 0 }
  0x5a   :  { %104 = vsyncpa [#allocation32], 0 }
  0x5b   :  { %105 = vsyncpa [#allocation35], 0 }
  0x5c   :  { %106 = vsyncpa [#allocation38], 0 }
  0x5d   :  { %107 = vsyncpa [#allocation41], 0 }
  0x5e   :  { %108 = vsyncpa [#allocation44], 0 }
  0x5f   :  { %109 = vsyncpa [#allocation47], 0 }
  0x60   :  { %110 = vsyncpa [#allocation50], 0 }
  0x61   :  { %111 = vsyncpa [#allocation53], 0 }
  0x62   :  { %112 = vsyncpa [#allocation56], 0 }
  0x63   :  { %113 = vsyncpa [#allocation59], 0 }
  0x64   :  { %114 = vsyncpa [#allocation62], 0  ;;  %s17624_s0 = smov 0  }
  0x65 LB: > { %s17630_s28 = sadd.s32 4294967295, %s17288_s0   ;;  %p12950_p0 = scmp.ge.s32.totalorder %s17288_s0, 1  ;;  %s17288_s0 = sphi %s17624_s0, %s120_s0  }
  0x66   : > { %p1080_p1 = scmp.lt.s32.totalorder %s17288_s0, 3 }
  0x68   : > { %p17634_p2 = pnand %p12950_p0, %p1080_p1 }
  0x69   : > { %p15134_p3 = scmp.eq.s32.totalorder (!%p17634_p2), %s17630_s28, 0  ;;  %s17334_s2 = smov (!%p17634_p2), [#allocation4]  }
  0x6a   : > { %1084 = sbr.rel (%p17634_p2) target bundleno = 594 (0x252), region = 12  ;;  %s1104_s7 = sshll.u32 (!%p17634_p2), %s17334_s2, 4  ;;  %s1105_s7 = int_to_ptr.vmem [resolvable:$true] %s1104_s7 }
  0x6b   : > { %s17335_s10 = smov (!%p17634_p2), [#allocation7]   ;;  %s16224_s15 = scalar_lea.vmem (!%p17634_p2), %s1105_s7, 16 }
  0x6c   : > { %s1133_s11 = sshll.u32 (!%p17634_p2), %s17335_s10, 4  ;;  %p16225_p4 = scmp.ne.s32.totalorder (!%p17634_p2), %s1105_s7, %s16224_s15  ;;  %s1134_s11 = int_to_ptr.vmem [resolvable:$true] %s1133_s11 }
  0x6d   : > { %s16230_s16 = scalar_lea.vmem (!%p17634_p2), %s1105_s7, 32  ;;  %p16231_p7 = scmp.lt.s32.totalorder (!%p17634_p2), %s1105_s7, %s1105_s7 }
  0x6e   : > { %p16226_p5 = pnand (!%p17634_p2), %p16225_p4, %p15134_p3  ;;  %p16232_p8 = scmp.lt.s32.totalorder (!%p17634_p2), %s16230_s16, %s16224_s15 }
  0x70   : > { %p16227_p6 = pneg %p16226_p5  ;;  %p16233_p9 = por %p16232_p8, %p16231_p7 }
  0x72   : > { %p16234_p10 = pnand %p16233_p9, %p16227_p6 }
  0x74   : > { %16237 = shalt.err (!%p16234_p10)
}
  0x75   : > { %14973 = dma.hbm_to_vmem [thread:$0]  (%p15134_p3), %s17412_s13, 16, %s1105_s7, [#allocation5]  }
  0x76   : > { %s16248_s18 = scalar_lea.vmem %s1134_s11, 96  ;;  %p16255_p0 = scmp.lt.s32.totalorder %s1134_s11, %s1134_s11 }
  0x77   : > { %p16249_p11 = scmp.ne.s32.totalorder %s1134_s11, %s16248_s18  ;;  %p16256_p1 = scmp.lt.s32.totalorder %s16248_s18, %s16248_s18 }
  0x79   : > { %p16250_p12 = pnand %p16249_p11, %p15134_p3  ;;  %p16257_p4 = por %p16256_p1, %p16255_p0 }
  0x7b   : > { %p16251_p13 = pneg %p16250_p12 }
  0x7d   : > { %p16258_p5 = pnand %p16257_p4, %p16251_p13 }
  0x7f   : > { %16261 = shalt.err (!%p16258_p5)
}
  0x80   : > { %s18953_s22 = smov 48   ;;  %s18954_s23 = smov 3  }
  0x81   : > { %14977 = dma.hbm_to_vmem [thread:$0]  (%p15134_p3), %s17432_s29, 96, %s1134_s11, [#allocation8], %s18953_s22, %s18953_s22, %s18954_s23  }
  0x82   : > { %s17338_s26 = smov [#allocation10]  }
  0x83   : > { %s1159_s2 = sshll.u32 %s17338_s26, 4  ;;  %s1160_s2 = int_to_ptr.vmem [resolvable:$true] %s1159_s2 }
  0x84   : > { %s16272_s7 = scalar_lea.vmem %s1160_s2, 32  ;;  %p16279_p9 = scmp.lt.s32.totalorder %s1160_s2, %s1160_s2 }
  0x85   : > { %p16273_p6 = scmp.ne.s32.totalorder %s1160_s2, %s16272_s7  ;;  %p16280_p10 = scmp.lt.s32.totalorder %s16272_s7, %s16272_s7 }
  0x87   : > { %p16274_p7 = pnand %p16273_p6, %p15134_p3  ;;  %p16281_p11 = por %p16280_p10, %p16279_p9 }
  0x89   : > { %p16275_p8 = pneg %p16274_p7 }
  0x8b   : > { %p16282_p12 = pnand %p16281_p11, %p16275_p8 }
  0x8d   : > { %16285 = shalt.err (!%p16282_p12)
}
  0x8e   : > { %s18957_s10 = smov 16   ;;  %s18999_s8 = sld [smem:[#allocation91_spill]] }
  0x8f   : > { %s18961_s15 = smov 1   ;;  %s17341_s11 = smov [#allocation13]  }
  0x90   : > { %s1185_s16 = sshll.u32 %s17341_s11, 4  ;;  %s1186_s16 = int_to_ptr.vmem [resolvable:$true] %s1185_s16 }
  0x91   : > { %s16296_s18 = scalar_lea.vmem %s1186_s16, 32  ;;  %p16303_p4 = scmp.lt.s32.totalorder %s1186_s16, %s1186_s16 }
  0x92   : > { %p16297_p13 = scmp.ne.s32.totalorder %s1186_s16, %s16296_s18  ;;  %p16304_p5 = scmp.lt.s32.totalorder %s16296_s18, %s16296_s18 }
  0x94   : > { %14981 = dma.hbm_to_vmem [thread:$0]  (%p15134_p3), %s18999_s8, 32, %s1160_s2, [#allocation11], %s18957_s10, %s18957_s10, %s18961_s15  }
  0x95   : > { %p16298_p0 = pnand %p16297_p13, %p15134_p3  ;;  %p16305_p6 = por %p16304_p5, %p16303_p4 }
  0x97   : > { %p16299_p1 = pneg %p16298_p0 }
  0x99   : > { %p16306_p7 = pnand %p16305_p6, %p16299_p1 }
  0x9b   : > { %16309 = shalt.err (!%p16306_p7)
}
  0x9c   : > { %14985 = dma.hbm_to_vmem [thread:$0]  (%p15134_p3), %s17452_s19, 32, %s1186_s16, [#allocation14], %s18957_s10, %s18957_s10, %s18961_s15  }
  0x9d   : > { %s17342_s26 = smov [#allocation16]   ;;  %s17343_s7 = smov [#allocation19]  }
  0x9e   : > { %s1211_s2 = sshll.u32 %s17342_s26, 4  ;;  %s1237_s11 = sshll.u32 %s17343_s7, 4  ;;  %s1212_s2 = int_to_ptr.vmem [resolvable:$true] %s1211_s2  ;;  %s1238_s11 = int_to_ptr.vmem [resolvable:$true] %s1237_s11 }
  0x9f   : > { %s16320_s22 = scalar_lea.vmem %s1212_s2, 128  ;;  %p16327_p11 = scmp.lt.s32.totalorder %s1212_s2, %s1212_s2 }
  0xa0   : > { %p16321_p8 = scmp.ne.s32.totalorder %s1212_s2, %s16320_s22  ;;  %p16328_p12 = scmp.lt.s32.totalorder %s16320_s22, %s16320_s22 }
  0xa2   : > { %p16322_p9 = pnand %p16321_p8, %p15134_p3  ;;  %p16329_p13 = por %p16328_p12, %p16327_p11 }
  0xa4   : > { %p16323_p10 = pneg %p16322_p9 }
  0xa6   : > { %p16330_p0 = pnand %p16329_p13, %p16323_p10 }
  0xa8   : > { %16333 = shalt.err (!%p16330_p0)
}
  0xa9   : > { %s18955_s18 = smov 64   ;;  %s18963_s16 = smov 4  }
  0xaa   : > { %14989 = dma.hbm_to_vmem [thread:$0]  (%p15134_p3), %s17462_s30, 128, %s1212_s2, [#allocation17], %s18955_s18, %s18955_s18, %s18963_s16  }
  0xab   : > { %s16344_s26 = scalar_lea.vmem %s1238_s11, 32  ;;  %p16351_p6 = scmp.lt.s32.totalorder %s1238_s11, %s1238_s11 }
  0xac   : > { %p16345_p1 = scmp.ne.s32.totalorder %s1238_s11, %s16344_s26  ;;  %p16352_p7 = scmp.lt.s32.totalorder %s16344_s26, %s16344_s26 }
  0xae   : > { %p16346_p4 = pnand %p16345_p1, %p15134_p3  ;;  %p16353_p8 = por %p16352_p7, %p16351_p6 }
  0xb0   : > { %p16347_p5 = pneg %p16346_p4 }
  0xb2   : > { %p16354_p9 = pnand %p16353_p8, %p16347_p5 }
  0xb4   : > { %16357 = shalt.err (!%p16354_p9)
}
  0xb5   : > { %14993 = dma.hbm_to_vmem [thread:$0]  (%p15134_p3), %s17472_s12, 32, %s1238_s11, [#allocation20], %s18957_s10, %s18957_s10, %s18961_s15  }
  0xb6   : > { %s17346_s22 = smov [#allocation22]   ;;  %s17347_s7 = smov [#allocation25]  }
  0xb7   : > { %s1263_s2 = sshll.u32 %s17346_s22, 4  ;;  %s1288_s23 = sshll.u32 %s17347_s7, 4  ;;  %s1264_s2 = int_to_ptr.vmem [resolvable:$true] %s1263_s2  ;;  %s1289_s23 = int_to_ptr.vmem [resolvable:$true] %s1288_s23 }
  0xb8   : > { %s16368_s18 = scalar_lea.vmem %s1264_s2, 32  ;;  %p16375_p13 = scmp.lt.s32.totalorder %s1264_s2, %s1264_s2 }
  0xb9   : > { %p16369_p10 = scmp.ne.s32.totalorder %s1264_s2, %s16368_s18  ;;  %p16376_p0 = scmp.lt.s32.totalorder %s16368_s18, %s16368_s18 }
  0xbb   : > { %p16370_p11 = pnand %p16369_p10, %p15134_p3  ;;  %p16377_p1 = por %p16376_p0, %p16375_p13 }
  0xbd   : > { %p16371_p12 = pneg %p16370_p11 }
  0xbf   : > { %p16378_p4 = pnand %p16377_p1, %p16371_p12 }
  0xc1   : > { %16381 = shalt.err (!%p16378_p4)
}
  0xc2   : > { %14997 = dma.hbm_to_vmem [thread:$0]  (%p15134_p3), %s17482_s27, 32, %s1264_s2, [#allocation23], %s18957_s10, %s18957_s10, %s18961_s15  }
  0xc3   : > { %s16392_s11 = scalar_lea.vmem %s1289_s23, 16  ;;  %s16398_s26 = scalar_lea.vmem %s1289_s23, 32 }
  0xc4   : > { %p16393_p5 = scmp.ne.s32.totalorder %s1289_s23, %s16392_s11  ;;  %p16399_p8 = scmp.lt.s32.totalorder %s1289_s23, %s1289_s23 }
  0xc5   : > { %p16400_p9 = scmp.lt.s32.totalorder %s16398_s26, %s16392_s11 }
  0xc6   : > { %p16394_p6 = pnand %p16393_p5, %p15134_p3 }
  0xc7   : > { %p16401_p10 = por %p16400_p9, %p16399_p8 }
  0xc8   : > { %p16395_p7 = pneg %p16394_p6 }
  0xca   : > { %p16402_p11 = pnand %p16401_p10, %p16395_p7 }
  0xcc   : > { %16405 = shalt.err (!%p16402_p11)
}
  0xcd   : > { %15001 = dma.hbm_to_vmem [thread:$0]  (%p15134_p3), %s17492_s21, 16, %s1289_s23, [#allocation26]  }
  0xce   : > { %s17348_s18 = smov [#allocation28]   ;;  %s17349_s2 = smov [#allocation31]  }
  0xcf   : > { %s1309_s22 = sshll.u32 %s17348_s18, 4  ;;  %s1335_s7 = sshll.u32 %s17349_s2, 4  ;;  %s1310_s22 = int_to_ptr.vmem [resolvable:$true] %s1309_s22  ;;  %s1336_s7 = int_to_ptr.vmem [resolvable:$true] %s1335_s7 }
  0xd0   : > { %s16416_s10 = scalar_lea.vmem %s1310_s22, 9216  ;;  %p16423_p1 = scmp.lt.s32.totalorder %s1310_s22, %s1310_s22 }
  0xd1   : > { %p16417_p12 = scmp.ne.s32.totalorder %s1310_s22, %s16416_s10  ;;  %p16424_p4 = scmp.lt.s32.totalorder %s16416_s10, %s16416_s10 }
  0xd3   : > { %p16418_p13 = pnand %p16417_p12, %p15134_p3  ;;  %p16425_p5 = por %p16424_p4, %p16423_p1 }
  0xd5   : > { %p16419_p0 = pneg %p16418_p13 }
  0xd7   : > { %p16426_p6 = pnand %p16425_p5, %p16419_p0 }
  0xd9   : > { %16429 = shalt.err (!%p16426_p6)
}
  0xda   : > { %s18959_s11 = smov 192   ;;  %s19000_s5 = sld [smem:[#allocation98_spill]] }
  0xdb   : > { %s18960_s23 = smov 12   ;;  %s16440_s26 = scalar_lea.vmem %s1336_s7, 3072 }
  0xdc   : > { %p16441_p7 = scmp.ne.s32.totalorder %s1336_s7, %s16440_s26  ;;  %p16447_p10 = scmp.lt.s32.totalorder %s1336_s7, %s1336_s7 }
  0xdd   : > { %p16448_p11 = scmp.lt.s32.totalorder %s16440_s26, %s16440_s26 }
  0xde   : > { %p16442_p8 = pnand %p16441_p7, %p15134_p3 }
  0xdf   : > { %p16449_p12 = por %p16448_p11, %p16447_p10 }
  0xe0   : > { %15005 = dma.hbm_to_vmem [thread:$0]  (%p15134_p3), %s19000_s5, 9216, %s1310_s22, [#allocation29], %s18959_s11, %s18959_s11, %s18960_s23  }
  0xe1   : > { %p16443_p9 = pneg %p16442_p8 }
  0xe3   : > { %p16450_p13 = pnand %p16449_p12, %p16443_p9 }
  0xe5   : > { %16453 = shalt.err (!%p16450_p13)
}
  0xe6   : > { %s19001_s10 = smov 64   ;;  %s17352_s18 = smov [#allocation34]  }
  0xe7   : > { %15009 = dma.hbm_to_vmem [thread:$0]  (%p15134_p3), %s17512_s20, 3072, %s1336_s7, [#allocation32], %s19001_s10, %s19001_s10, %s18963_s16  }
  0xe8   : > { %s1361_s22 = sshll.u32 %s17352_s18, 4  ;;  %s17353_s2 = smov [#allocation37]   ;;  %s1362_s22 = int_to_ptr.vmem [resolvable:$true] %s1361_s22 }
  0xe9   : > { %s1387_s11 = sshll.u32 %s17353_s2, 4  ;;  %s16464_s23 = scalar_lea.vmem %s1362_s22, 48  ;;  %s1388_s11 = int_to_ptr.vmem [resolvable:$true] %s1387_s11 }
  0xea   : > { %p16465_p0 = scmp.ne.s32.totalorder %s1362_s22, %s16464_s23  ;;  %s16470_s26 = scalar_lea.vmem %s1362_s22, 64 }
  0xeb   : > { %p16471_p5 = scmp.lt.s32.totalorder %s1362_s22, %s1362_s22  ;;  %p16472_p6 = scmp.lt.s32.totalorder %s16470_s26, %s16464_s23 }
  0xec   : > { %p16466_p1 = pnand %p16465_p0, %p15134_p3 }
  0xed   : > { %p16473_p7 = por %p16472_p6, %p16471_p5 }
  0xee   : > { %p16467_p4 = pneg %p16466_p1 }
  0xf0   : > { %p16474_p8 = pnand %p16473_p7, %p16467_p4 }
  0xf2   : > { %16477 = shalt.err (!%p16474_p8)
}
  0xf3   : > { %s19002_s7 = smov 16   ;;  %s19003_s6 = sld [smem:[#allocation101_spill]] }
  0xf4   : > { %s16488_s18 = scalar_lea.vmem %s1388_s11, 3072  ;;  %p16495_p12 = scmp.lt.s32.totalorder %s1388_s11, %s1388_s11 }
  0xf5   : > { %p16489_p9 = scmp.ne.s32.totalorder %s1388_s11, %s16488_s18  ;;  %p16496_p13 = scmp.lt.s32.totalorder %s16488_s18, %s16488_s18 }
  0xf7   : > { %p16490_p10 = pnand %p16489_p9, %p15134_p3  ;;  %p16497_p0 = por %p16496_p13, %p16495_p12 }
  0xf9   : > { %15013 = dma.hbm_to_vmem [thread:$0]  (%p15134_p3), %s19003_s6, 48, %s1362_s22, [#allocation35], %s19002_s7, %s19002_s7, %s18961_s15  }
  0xfa   : > { %p16491_p11 = pneg %p16490_p10 }
  0xfc   : > { %p16498_p1 = pnand %p16497_p0, %p16491_p11 }
  0xfe   : > { %16501 = shalt.err (!%p16498_p1)
}
  0xff   : > { %15017 = dma.hbm_to_vmem [thread:$0]  (%p15134_p3), %s17532_s24, 3072, %s1388_s11, [#allocation38], %s19001_s10, %s19001_s10, %s18963_s16  }
 0x100   : > { %s17354_s23 = smov [#allocation40]  }
 0x101   : > { %s1413_s22 = sshll.u32 %s17354_s23, 4  ;;  %s1414_s22 = int_to_ptr.vmem [resolvable:$true] %s1413_s22 }
 0x102   : > { %s16512_s2 = scalar_lea.vmem %s1414_s22, 6144  ;;  %p16519_p7 = scmp.lt.s32.totalorder %s1414_s22, %s1414_s22 }
 0x103   : > { %p16513_p4 = scmp.ne.s32.totalorder %s1414_s22, %s16512_s2  ;;  %p16520_p8 = scmp.lt.s32.totalorder %s16512_s2, %s16512_s2 }
 0x105   : > { %p16514_p5 = pnand %p16513_p4, %p15134_p3  ;;  %p16521_p9 = por %p16520_p8, %p16519_p7 }
 0x107   : > { %p16515_p6 = pneg %p16514_p5 }
 0x109   : > { %p16522_p10 = pnand %p16521_p9, %p16515_p6 }
 0x10b   : > { %16525 = shalt.err (!%p16522_p10)
}
 0x10c   : > { %s17355_s26 = smov 128   ;;  %s17356_s18 = smov 8  }
 0x10d   : > { %15021 = dma.hbm_to_vmem [thread:$0]  (%p15134_p3), %s17542_s14, 6144, %s1414_s22, [#allocation41], %s17355_s26, %s17355_s26, %s17356_s18  }
 0x10e   : > { %s17357_s11 = smov [#allocation43]   ;;  %s17358_s15 = smov [#allocation46]  }
 0x10f   : > { %s1439_s23 = sshll.u32 %s17357_s11, 4  ;;  %s1465_s16 = sshll.u32 %s17358_s15, 4  ;;  %s1440_s23 = int_to_ptr.vmem [resolvable:$true] %s1439_s23  ;;  %s1466_s16 = int_to_ptr.vmem [resolvable:$true] %s1465_s16 }
 0x110   : > { %s16536_s5 = scalar_lea.vmem %s1440_s23, 3072  ;;  %p16543_p0 = scmp.lt.s32.totalorder %s1440_s23, %s1440_s23 }
 0x111   : > { %p16537_p11 = scmp.ne.s32.totalorder %s1440_s23, %s16536_s5  ;;  %p16544_p1 = scmp.lt.s32.totalorder %s16536_s5, %s16536_s5 }
 0x113   : > { %p16538_p12 = pnand %p16537_p11, %p15134_p3  ;;  %p16545_p4 = por %p16544_p1, %p16543_p0 }
 0x115   : > { %p16539_p13 = pneg %p16538_p12 }
 0x117   : > { %p16546_p5 = pnand %p16545_p4, %p16539_p13 }
 0x119   : > { %16549 = shalt.err (!%p16546_p5)
}
 0x11a   : > { %s19004_s2 = smov 4   ;;  %s19005_s3 = sld [smem:[#allocation105_spill]] }
 0x11b   : > { %s16560_s15 = scalar_lea.vmem %s1466_s16, 48  ;;  %s16566_s22 = scalar_lea.vmem %s1466_s16, 64 }
 0x11c   : > { %p16561_p6 = scmp.ne.s32.totalorder %s1466_s16, %s16560_s15  ;;  %p16567_p9 = scmp.lt.s32.totalorder %s1466_s16, %s1466_s16 }
 0x11d   : > { %p16568_p10 = scmp.lt.s32.totalorder %s16566_s22, %s16560_s15 }
 0x11e   : > { %p16562_p7 = pnand %p16561_p6, %p15134_p3 }
 0x11f   : > { %p16569_p11 = por %p16568_p10, %p16567_p9 }
 0x120   : > { %15025 = dma.hbm_to_vmem [thread:$0]  (%p15134_p3), %s19005_s3, 3072, %s1440_s23, [#allocation44], %s19001_s10, %s19001_s10, %s19004_s2  }
 0x121   : > { %p16563_p8 = pneg %p16562_p7 }
 0x123   : > { %p16570_p12 = pnand %p16569_p11, %p16563_p8 }
 0x125   : > { %16573 = shalt.err (!%p16570_p12)
}
 0x126   : > { %s19006_s5 = smov 1   ;;  %s19007_s26 = sld [smem:[#allocation107_spill]] }
 0x127   : > { %s17359_s18 = smov [#allocation49]   ;;  %s17360_s23 = smov [#allocation52]  }
 0x128   : > { %s1491_s11 = sshll.u32 %s17359_s18, 4  ;;  %s1517_s3 = sshll.u32 %s17360_s23, 4  ;;  %s1492_s11 = int_to_ptr.vmem [resolvable:$true] %s1491_s11  ;;  %s1518_s3 = int_to_ptr.vmem [resolvable:$true] %s1517_s3 }
 0x129   : > { %s16584_s6 = scalar_lea.vmem %s1492_s11, 12288  ;;  %p16591_p4 = scmp.lt.s32.totalorder %s1492_s11, %s1492_s11 }
 0x12a   : > { %p16585_p13 = scmp.ne.s32.totalorder %s1492_s11, %s16584_s6  ;;  %p16592_p5 = scmp.lt.s32.totalorder %s16584_s6, %s16584_s6 }
 0x12c   : > { %15029 = dma.hbm_to_vmem [thread:$0]  (%p15134_p3), %s19007_s26, 48, %s1466_s16, [#allocation47], %s19002_s7, %s19002_s7, %s19006_s5  }
 0x12d   : > { %p16586_p0 = pnand %p16585_p13, %p15134_p3  ;;  %p16593_p6 = por %p16592_p5, %p16591_p4 }
 0x12f   : > { %p16587_p1 = pneg %p16586_p0 }
 0x131   : > { %p16594_p7 = pnand %p16593_p6, %p16587_p1 }
 0x133   : > { %16597 = shalt.err (!%p16594_p7)
}
 0x134   : > { %s18965_s15 = smov 256   ;;  %s19008_s16 = sld [smem:[#allocation109_spill]] }
 0x135   : > { %s16608_s22 = scalar_lea.vmem %s1518_s3, 12288  ;;  %p16615_p11 = scmp.lt.s32.totalorder %s1518_s3, %s1518_s3 }
 0x136   : > { %p16609_p8 = scmp.ne.s32.totalorder %s1518_s3, %s16608_s22  ;;  %p16616_p12 = scmp.lt.s32.totalorder %s16608_s22, %s16608_s22 }
 0x138   : > { %p16610_p9 = pnand %p16609_p8, %p15134_p3  ;;  %p16617_p13 = por %p16616_p12, %p16615_p11 }
 0x13a   : > { %15033 = dma.hbm_to_vmem [thread:$0]  (%p15134_p3), %s19008_s16, 12288, %s1492_s11, [#allocation50], %s18965_s15, %s18965_s15, %s19002_s7  }
 0x13b   : > { %p16611_p10 = pneg %p16610_p9 }
 0x13d   : > { %p16618_p0 = pnand %p16617_p13, %p16611_p10 }
 0x13f   : > { %16621 = shalt.err (!%p16618_p0)
}
 0x140   : > { %s19009_s6 = sld [smem:[#allocation111_spill]]  ;;  %s17362_s26 = smov [#allocation55]  }
 0x141   : > { %s1543_s18 = sshll.u32 %s17362_s26, 4  ;;  %s17363_s11 = smov [#allocation58]   ;;  %s1544_s18 = int_to_ptr.vmem [resolvable:$true] %s1543_s18 }
 0x142   : > { %s1570_s23 = sshll.u32 %s17363_s11, 4  ;;  %s16632_s16 = scalar_lea.vmem %s1544_s18, 48  ;;  %s1571_s23 = int_to_ptr.vmem [resolvable:$true] %s1570_s23 }
 0x143   : > { %p16633_p1 = scmp.ne.s32.totalorder %s1544_s18, %s16632_s16  ;;  %s16638_s22 = scalar_lea.vmem %s1544_s18, 64 }
 0x144   : > { %p16639_p6 = scmp.lt.s32.totalorder %s1544_s18, %s1544_s18  ;;  %p16640_p7 = scmp.lt.s32.totalorder %s16638_s22, %s16632_s16 }
 0x145   : > { %p16634_p4 = pnand %p16633_p1, %p15134_p3 }
 0x146   : > { %15037 = dma.hbm_to_vmem [thread:$0]  (%p15134_p3), %s19009_s6, 12288, %s1518_s3, [#allocation53], %s19001_s10, %s19001_s10, %s19004_s2  }
 0x147   : > { %p16635_p5 = pneg %p16634_p4  ;;  %p16641_p8 = por %p16640_p7, %p16639_p6 }
 0x149   : > { %p16642_p9 = pnand %p16641_p8, %p16635_p5 }
 0x14b   : > { %16645 = shalt.err (!%p16642_p9)
}
 0x14c   : > { %s19010_s3 = sld [smem:[#allocation113_spill]]  ;;  %s16656_s6 = scalar_lea.vmem %s1571_s23, 16 }
 0x14d   : > { %p16657_p10 = scmp.ne.s32.totalorder %s1571_s23, %s16656_s6  ;;  %s16662_s26 = scalar_lea.vmem %s1571_s23, 32 }
 0x14e   : > { %p16663_p13 = scmp.lt.s32.totalorder %s1571_s23, %s1571_s23  ;;  %p16664_p0 = scmp.lt.s32.totalorder %s16662_s26, %s16656_s6 }
 0x14f   : > { %p16658_p11 = pnand %p16657_p10, %p15134_p3 }
 0x150   : > { %p16665_p1 = por %p16664_p0, %p16663_p13 }
 0x151   : > { %p16659_p12 = pneg %p16658_p11 }
 0x152   : > { %15041 = dma.hbm_to_vmem [thread:$0]  (%p15134_p3), %s19010_s3, 48, %s1544_s18, [#allocation56], %s19002_s7, %s19002_s7, %s19006_s5  }
 0x153   : > { %p16666_p4 = pnand %p16665_p1, %p16659_p12 }
 0x155   : > { %16669 = shalt.err (!%p16666_p4)
}
 0x156   : > { %s19011_s11 = sld [smem:[#allocation115_spill]]  ;;  %s17364_s16 = smov [#allocation61]  }
 0x157   : > { %s1591_s22 = sshll.u32 %s17364_s16, 4  ;;  %s1592_s22 = int_to_ptr.vmem [resolvable:$true] %s1591_s22 }
 0x158   : > { %s16680_s18 = scalar_lea.vmem %s1592_s22, 1024  ;;  %p16687_p8 = scmp.lt.s32.totalorder %s1592_s22, %s1592_s22 }
 0x159   : > { %p16681_p5 = scmp.ne.s32.totalorder %s1592_s22, %s16680_s18  ;;  %p16688_p9 = scmp.lt.s32.totalorder %s16680_s18, %s16680_s18 }
 0x15b   : > { %p16682_p6 = pnand %p16681_p5, %p15134_p3  ;;  %p16689_p10 = por %p16688_p9, %p16687_p8 }
 0x15c   : > { %15045 = dma.hbm_to_vmem [thread:$0]  (%p15134_p3), %s19011_s11, 16, %s1571_s23, [#allocation59]  }
 0x15d   : > { %p16683_p7 = pneg %p16682_p6 }
 0x15f   : > { %p16690_p11 = pnand %p16689_p10, %p16683_p7 }
 0x161   : > { %16693 = shalt.err (!%p16690_p11)
}
 0x162   : > { %s19012_s9 = sld [smem:[#allocation116_spill]]  ;;  %s17365_s23 = smov [#allocation2]  }
 0x163   : > { %s1093_s3 = sshll.u32 %s17365_s23, 4  ;;  %s17366_s6 = smov [#allocation6]   ;;  %s1094_s3 = int_to_ptr.vmem [resolvable:$true] %s1093_s3 }
 0x164   : > { %s1120_s26 = sshll.u32 %s17366_s6, 4  ;;  %s16704_s11 = scalar_lea.vmem %s1094_s3, 64  ;;  %s1121_s26 = int_to_ptr.vmem [resolvable:$true] %s1120_s26 }
 0x165   : > { %p16705_p12 = scmp.ne.s32.totalorder %s1094_s3, %s16704_s11  ;;  %p16711_p1 = scmp.lt.s32.totalorder %s1094_s3, %s1094_s3 }
 0x166   : > { %p16712_p4 = scmp.lt.s32.totalorder %s16704_s11, %s16704_s11 }
 0x167   : > { %p16706_p13 = pnand %p16705_p12, %p15134_p3 }
 0x168   : > { %15049 = dma.hbm_to_vmem [thread:$0]  (%p15134_p3), %s19012_s9, 1024, %s1592_s22, [#allocation62], %s19001_s10, %s19001_s10, %s19004_s2  }
 0x169   : > { %p16707_p0 = pneg %p16706_p13  ;;  %p16713_p5 = por %p16712_p4, %p16711_p1 }
 0x16b   : > { %p16714_p6 = pnand %p16713_p5, %p16707_p0 }
 0x16d   : > { %16717 = shalt.err (!%p16714_p6)
}
 0x16e   : > { %s19013_s16 = sld [smem:[#allocation86_spill]]  ;;  %s16728_s22 = scalar_lea.vmem %s1121_s26, 6144 }
 0x16f   : > { %p16729_p7 = scmp.ne.s32.totalorder %s1121_s26, %s16728_s22  ;;  %p16735_p10 = scmp.lt.s32.totalorder %s1121_s26, %s1121_s26 }
 0x170   : > { %p16736_p11 = scmp.lt.s32.totalorder %s16728_s22, %s16728_s22 }
 0x171   : > { %p16730_p8 = pnand %p16729_p7, %p15134_p3 }
 0x172   : > { %p16737_p12 = por %p16736_p11, %p16735_p10 }
 0x173   : > { %p16731_p9 = pneg %p16730_p8 }
 0x174   : > { %14971 = dma.hbm_to_vmem [thread:$0]  (%p15134_p3), %s19013_s16, 64, %s1094_s3, [#allocation3]  }
 0x175   : > { %p16738_p13 = pnand %p16737_p12, %p16731_p9 }
 0x177   : > { %16741 = shalt.err (!%p16738_p13)
}
 0x178   : > { %s19014_s18 = smov 12   ;;  %s19015_s23 = smov 192  }
 0x179   : > { %s19016_s6 = sld [smem:[#allocation89_spill]]  ;;  %s17367_s3 = smov [#allocation9]  }
 0x17a   : > { %s1146_s11 = sshll.u32 %s17367_s3, 4  ;;  %s17368_s16 = smov [#allocation12]   ;;  %s1147_s11 = int_to_ptr.vmem [resolvable:$true] %s1146_s11 }
 0x17b   : > { %s1172_s15 = sshll.u32 %s17368_s16, 4  ;;  %s16752_s8 = scalar_lea.vmem %s1147_s11, 2048  ;;  %s1173_s15 = int_to_ptr.vmem [resolvable:$true] %s1172_s15 }
 0x17c   : > { %p16753_p0 = scmp.ne.s32.totalorder %s1147_s11, %s16752_s8  ;;  %p16759_p5 = scmp.lt.s32.totalorder %s1147_s11, %s1147_s11 }
 0x17d   : > { %p16760_p6 = scmp.lt.s32.totalorder %s16752_s8, %s16752_s8 }
 0x17e   : > { %p16754_p1 = pnand %p16753_p0, %p15134_p3 }
 0x17f   : > { %14975 = dma.hbm_to_vmem [thread:$0]  (%p15134_p3), %s19016_s6, 6144, %s1121_s26, [#allocation5], %s19015_s23, %s19015_s23, %s19014_s18  }
 0x180   : > { %p16755_p4 = pneg %p16754_p1  ;;  %p16761_p7 = por %p16760_p6, %p16759_p5 }
 0x182   : > { %p16762_p8 = pnand %p16761_p7, %p16755_p4 }
 0x184   : > { %16765 = shalt.err (!%p16762_p8)
}
 0x185   : > { %s19017_s26 = sld [smem:[#allocation90_spill]]  ;;  %s16776_s22 = scalar_lea.vmem %s1173_s15, 32 }
 0x186   : > { %p16777_p9 = scmp.ne.s32.totalorder %s1173_s15, %s16776_s22  ;;  %p16783_p12 = scmp.lt.s32.totalorder %s1173_s15, %s1173_s15 }
 0x187   : > { %p16784_p13 = scmp.lt.s32.totalorder %s16776_s22, %s16776_s22 }
 0x188   : > { %p16778_p10 = pnand %p16777_p9, %p15134_p3 }
 0x189   : > { %p16785_p0 = por %p16784_p13, %p16783_p12 }
 0x18a   : > { %p16779_p11 = pneg %p16778_p10 }
 0x18b   : > { %14979 = dma.hbm_to_vmem [thread:$0]  (%p15134_p3), %s19017_s26, 2048, %s1147_s11, [#allocation8], %s19001_s10, %s19001_s10, %s19004_s2  }
 0x18c   : > { %p16786_p1 = pnand %p16785_p0, %p16779_p11 }
 0x18e   : > { %16789 = shalt.err (!%p16786_p1)
}
 0x18f   : > { %s19018_s8 = sld [smem:[#allocation92_spill]]  ;;  %s17369_s18 = smov [#allocation15]  }
 0x190   : > { %s1198_s23 = sshll.u32 %s17369_s18, 4  ;;  %s17370_s6 = smov [#allocation18]   ;;  %s1199_s23 = int_to_ptr.vmem [resolvable:$true] %s1198_s23 }
 0x191   : > { %s1224_s3 = sshll.u32 %s17370_s6, 4  ;;  %s16800_s11 = scalar_lea.vmem %s1199_s23, 8192  ;;  %s1225_s3 = int_to_ptr.vmem [resolvable:$true] %s1224_s3 }
 0x192   : > { %p16801_p4 = scmp.ne.s32.totalorder %s1199_s23, %s16800_s11  ;;  %p16807_p7 = scmp.lt.s32.totalorder %s1199_s23, %s1199_s23 }
 0x193   : > { %p16808_p8 = scmp.lt.s32.totalorder %s16800_s11, %s16800_s11 }
 0x194   : > { %p16802_p5 = pnand %p16801_p4, %p15134_p3 }
 0x195   : > { %14983 = dma.hbm_to_vmem [thread:$0]  (%p15134_p3), %s19018_s8, 32, %s1173_s15, [#allocation11], %s19002_s7, %s19002_s7, %s19006_s5  }
 0x196   : > { %p16803_p6 = pneg %p16802_p5  ;;  %p16809_p9 = por %p16808_p8, %p16807_p7 }
 0x198   : > { %p16810_p10 = pnand %p16809_p9, %p16803_p6 }
 0x19a   : > { %16813 = shalt.err (!%p16810_p10)
}
 0x19b   : > { %s19019_s16 = smov 256   ;;  %s19020_s15 = sld [smem:[#allocation93_spill]] }
 0x19c   : > { %s16824_s26 = scalar_lea.vmem %s1225_s3, 8192  ;;  %p16831_p0 = scmp.lt.s32.totalorder %s1225_s3, %s1225_s3 }
 0x19d   : > { %p16825_p11 = scmp.ne.s32.totalorder %s1225_s3, %s16824_s26  ;;  %p16832_p1 = scmp.lt.s32.totalorder %s16824_s26, %s16824_s26 }
 0x19f   : > { %p16826_p12 = pnand %p16825_p11, %p15134_p3  ;;  %p16833_p4 = por %p16832_p1, %p16831_p0 }
 0x1a1   : > { %14987 = dma.hbm_to_vmem [thread:$0]  (%p15134_p3), %s19020_s15, 8192, %s1199_s23, [#allocation14], %s19019_s16, %s19019_s16, %s19002_s7  }
 0x1a2   : > { %p16827_p13 = pneg %p16826_p12 }
 0x1a4   : > { %p16834_p5 = pnand %p16833_p4, %p16827_p13 }
 0x1a6   : > { %16837 = shalt.err (!%p16834_p5)
}
 0x1a7   : > { %s19021_s22 = sld [smem:[#allocation94_spill]]  ;;  %s17371_s8 = smov [#allocation21]  }
 0x1a8   : > { %s1250_s18 = sshll.u32 %s17371_s8, 4  ;;  %s17372_s23 = smov [#allocation24]   ;;  %s1251_s18 = int_to_ptr.vmem [resolvable:$true] %s1250_s18 }
 0x1a9   : > { %s1277_s6 = sshll.u32 %s17372_s23, 4  ;;  %s16848_s11 = scalar_lea.vmem %s1251_s18, 32  ;;  %s1278_s6 = int_to_ptr.vmem [resolvable:$true] %s1277_s6 }
 0x1aa   : > { %p16849_p6 = scmp.ne.s32.totalorder %s1251_s18, %s16848_s11  ;;  %p16855_p9 = scmp.lt.s32.totalorder %s1251_s18, %s1251_s18 }
 0x1ab   : > { %p16856_p10 = scmp.lt.s32.totalorder %s16848_s11, %s16848_s11 }
 0x1ac   : > { %p16850_p7 = pnand %p16849_p6, %p15134_p3 }
 0x1ad   : > { %14991 = dma.hbm_to_vmem [thread:$0]  (%p15134_p3), %s19021_s22, 8192, %s1225_s3, [#allocation17], %s19001_s10, %s19001_s10, %s19004_s2  }
 0x1ae   : > { %p16851_p8 = pneg %p16850_p7  ;;  %p16857_p11 = por %p16856_p10, %p16855_p9 }
 0x1b0   : > { %p16858_p12 = pnand %p16857_p11, %p16851_p8 }
 0x1b2   : > { %16861 = shalt.err (!%p16858_p12)
}
 0x1b3   : > { %s19022_s3 = sld [smem:[#allocation95_spill]]  ;;  %s16872_s16 = scalar_lea.vmem %s1278_s6, 16 }
 0x1b4   : > { %p16873_p13 = scmp.ne.s32.totalorder %s1278_s6, %s16872_s16  ;;  %s16878_s15 = scalar_lea.vmem %s1278_s6, 32 }
 0x1b5   : > { %p16879_p4 = scmp.lt.s32.totalorder %s1278_s6, %s1278_s6  ;;  %p16880_p5 = scmp.lt.s32.totalorder %s16878_s15, %s16872_s16 }
 0x1b6   : > { %p16874_p0 = pnand %p16873_p13, %p15134_p3 }
 0x1b7   : > { %p16881_p6 = por %p16880_p5, %p16879_p4 }
 0x1b8   : > { %p16875_p1 = pneg %p16874_p0 }
 0x1b9   : > { %14995 = dma.hbm_to_vmem [thread:$0]  (%p15134_p3), %s19022_s3, 32, %s1251_s18, [#allocation20], %s19002_s7, %s19002_s7, %s19006_s5  }
 0x1ba   : > { %p16882_p7 = pnand %p16881_p6, %p16875_p1 }
 0x1bc   : > { %16885 = shalt.err (!%p16882_p7)
}
 0x1bd   : > { %s19023_s26 = sld [smem:[#allocation96_spill]]  ;;  %s17373_s22 = smov [#allocation27]  }
 0x1be   : > { %s1299_s8 = sshll.u32 %s17373_s22, 4  ;;  %s17374_s18 = smov [#allocation30]   ;;  %s1300_s8 = int_to_ptr.vmem [resolvable:$true] %s1299_s8 }
 0x1bf   : > { %s1322_s23 = sshll.u32 %s17374_s18, 4  ;;  %s16896_s11 = scalar_lea.vmem %s1300_s8, 16  ;;  %s1323_s23 = int_to_ptr.vmem [resolvable:$true] %s1322_s23 }
 0x1c0   : > { %p16897_p8 = scmp.ne.s32.totalorder %s1300_s8, %s16896_s11  ;;  %s16902_s3 = scalar_lea.vmem %s1300_s8, 32 }
 0x1c1   : > { %p16903_p11 = scmp.lt.s32.totalorder %s1300_s8, %s1300_s8  ;;  %p16904_p12 = scmp.lt.s32.totalorder %s16902_s3, %s16896_s11 }
 0x1c2   : > { %p16898_p9 = pnand %p16897_p8, %p15134_p3 }
 0x1c3   : > { %14999 = dma.hbm_to_vmem [thread:$0]  (%p15134_p3), %s19023_s26, 16, %s1278_s6, [#allocation23]  }
 0x1c4   : > { %p16899_p10 = pneg %p16898_p9  ;;  %p16905_p13 = por %p16904_p12, %p16903_p11 }
 0x1c6   : > { %p16906_p0 = pnand %p16905_p13, %p16899_p10 }
 0x1c8   : > { %16909 = shalt.err (!%p16906_p0)
}
 0x1c9   : > { %s19024_s16 = sld [smem:[#allocation97_spill]]  ;;  %s16920_s6 = scalar_lea.vmem %s1323_s23, 144 }
 0x1ca   : > { %p16921_p1 = scmp.ne.s32.totalorder %s1323_s23, %s16920_s6  ;;  %s16926_s15 = scalar_lea.vmem %s1323_s23, 160 }
 0x1cb   : > { %p16927_p6 = scmp.lt.s32.totalorder %s1323_s23, %s1323_s23  ;;  %p16928_p7 = scmp.lt.s32.totalorder %s16926_s15, %s16920_s6 }
 0x1cc   : > { %p16922_p4 = pnand %p16921_p1, %p15134_p3 }
 0x1cd   : > { %p16929_p8 = por %p16928_p7, %p16927_p6 }
 0x1ce   : > { %p16923_p5 = pneg %p16922_p4 }
 0x1cf   : > { %15003 = dma.hbm_to_vmem [thread:$0]  (%p15134_p3), %s19024_s16, 16, %s1300_s8, [#allocation26]  }
 0x1d0   : > { %p16930_p9 = pnand %p16929_p8, %p16923_p5 }
 0x1d2   : > { %16933 = shalt.err (!%p16930_p9)
}
 0x1d3   : > { %s19025_s26 = smov 3   ;;  %s19026_s22 = smov 48  }
 0x1d4   : > { %s19027_s18 = sld [smem:[#allocation99_spill]]  ;;  %s17375_s8 = smov [#allocation33]  }
 0x1d5   : > { %s1348_s11 = sshll.u32 %s17375_s8, 4  ;;  %s17376_s3 = smov [#allocation36]   ;;  %s1349_s11 = int_to_ptr.vmem [resolvable:$true] %s1348_s11 }
 0x1d6   : > { %s1374_s16 = sshll.u32 %s17376_s3, 4  ;;  %s16944_s9 = scalar_lea.vmem %s1349_s11, 48  ;;  %s1375_s16 = int_to_ptr.vmem [resolvable:$true] %s1374_s16 }
 0x1d7   : > { %p16945_p10 = scmp.ne.s32.totalorder %s1349_s11, %s16944_s9  ;;  %s16950_s6 = scalar_lea.vmem %s1349_s11, 64 }
 0x1d8   : > { %p16951_p13 = scmp.lt.s32.totalorder %s1349_s11, %s1349_s11  ;;  %p16952_p0 = scmp.lt.s32.totalorder %s16950_s6, %s16944_s9 }
 0x1d9   : > { %p16946_p11 = pnand %p16945_p10, %p15134_p3 }
 0x1da   : > { %15007 = dma.hbm_to_vmem [thread:$0]  (%p15134_p3), %s19027_s18, 144, %s1323_s23, [#allocation29], %s19026_s22, %s19026_s22, %s19025_s26  }
 0x1db   : > { %p16947_p12 = pneg %p16946_p11  ;;  %p16953_p1 = por %p16952_p0, %p16951_p13 }
 0x1dd   : > { %p16954_p4 = pnand %p16953_p1, %p16947_p12 }
 0x1df   : > { %16957 = shalt.err (!%p16954_p4)
}
 0x1e0   : > { %s19028_s23 = sld [smem:[#allocation100_spill]]  ;;  %s16968_s15 = scalar_lea.vmem %s1375_s16, 48 }
 0x1e1   : > { %p16969_p5 = scmp.ne.s32.totalorder %s1375_s16, %s16968_s15  ;;  %s16974_s26 = scalar_lea.vmem %s1375_s16, 64 }
 0x1e2   : > { %p16975_p8 = scmp.lt.s32.totalorder %s1375_s16, %s1375_s16  ;;  %p16976_p9 = scmp.lt.s32.totalorder %s16974_s26, %s16968_s15 }
 0x1e3   : > { %p16970_p6 = pnand %p16969_p5, %p15134_p3 }
 0x1e4   : > { %p16977_p10 = por %p16976_p9, %p16975_p8 }
 0x1e5   : > { %p16971_p7 = pneg %p16970_p6 }
 0x1e6   : > { %15011 = dma.hbm_to_vmem [thread:$0]  (%p15134_p3), %s19028_s23, 48, %s1349_s11, [#allocation32], %s19002_s7, %s19002_s7, %s19006_s5  }
 0x1e7   : > { %p16978_p11 = pnand %p16977_p10, %p16971_p7 }
 0x1e9   : > { %16981 = shalt.err (!%p16978_p11)
}
 0x1ea   : > { %s19029_s9 = sld [smem:[#allocation102_spill]]  ;;  %s17377_s22 = smov [#allocation39]  }
 0x1eb   : > { %s1400_s18 = sshll.u32 %s17377_s22, 4  ;;  %s17378_s8 = smov [#allocation42]   ;;  %s1401_s18 = int_to_ptr.vmem [resolvable:$true] %s1400_s18 }
 0x1ec   : > { %s1426_s11 = sshll.u32 %s17378_s8, 4  ;;  %s16992_s3 = scalar_lea.vmem %s1401_s18, 48  ;;  %s1427_s11 = int_to_ptr.vmem [resolvable:$true] %s1426_s11 }
 0x1ed   : > { %p16993_p12 = scmp.ne.s32.totalorder %s1401_s18, %s16992_s3  ;;  %s16998_s6 = scalar_lea.vmem %s1401_s18, 64 }
 0x1ee   : > { %p16999_p1 = scmp.lt.s32.totalorder %s1401_s18, %s1401_s18  ;;  %p17000_p4 = scmp.lt.s32.totalorder %s16998_s6, %s16992_s3 }
 0x1ef   : > { %p16994_p13 = pnand %p16993_p12, %p15134_p3 }
 0x1f0   : > { %15015 = dma.hbm_to_vmem [thread:$0]  (%p15134_p3), %s19029_s9, 48, %s1375_s16, [#allocation35], %s19002_s7, %s19002_s7, %s19006_s5  }
 0x1f1   : > { %p16995_p0 = pneg %p16994_p13  ;;  %p17001_p5 = por %p17000_p4, %p16999_p1 }
 0x1f3   : > { %p17002_p6 = pnand %p17001_p5, %p16995_p0 }
 0x1f5   : > { %17005 = shalt.err (!%p17002_p6)
}
 0x1f6   : > { %s19030_s16 = sld [smem:[#allocation103_spill]]  ;;  %s17016_s23 = scalar_lea.vmem %s1427_s11, 96 }
 0x1f7   : > { %p17017_p7 = scmp.ne.s32.totalorder %s1427_s11, %s17016_s23  ;;  %p17023_p10 = scmp.lt.s32.totalorder %s1427_s11, %s1427_s11 }
 0x1f8   : > { %p17024_p11 = scmp.lt.s32.totalorder %s17016_s23, %s17016_s23 }
 0x1f9   : > { %p17018_p8 = pnand %p17017_p7, %p15134_p3 }
 0x1fa   : > { %p17025_p12 = por %p17024_p11, %p17023_p10 }
 0x1fb   : > { %p17019_p9 = pneg %p17018_p8 }
 0x1fc   : > { %15019 = dma.hbm_to_vmem [thread:$0]  (%p15134_p3), %s19030_s16, 48, %s1401_s18, [#allocation38], %s19002_s7, %s19002_s7, %s19006_s5  }
 0x1fd   : > { %p17026_p13 = pnand %p17025_p12, %p17019_p9 }
 0x1ff   : > { %17029 = shalt.err (!%p17026_p13)
}
 0x200   : > { %s17379_s15 = smov 32   ;;  %s19031_s26 = sld [smem:[#allocation104_spill]] }
 0x201   : > { %s17380_s9 = smov 2   ;;  %s17381_s22 = smov [#allocation45]  }
 0x202   : > { %s1452_s18 = sshll.u32 %s17381_s22, 4  ;;  %s17382_s8 = smov [#allocation48]   ;;  %s1453_s18 = int_to_ptr.vmem [resolvable:$true] %s1452_s18 }
 0x203   : > { %s1478_s3 = sshll.u32 %s17382_s8, 4  ;;  %s17040_s6 = scalar_lea.vmem %s1453_s18, 48  ;;  %s1479_s3 = int_to_ptr.vmem [resolvable:$true] %s1478_s3 }
 0x204   : > { %p17041_p0 = scmp.ne.s32.totalorder %s1453_s18, %s17040_s6  ;;  %s17046_s16 = scalar_lea.vmem %s1453_s18, 64 }
 0x205   : > { %p17047_p5 = scmp.lt.s32.totalorder %s1453_s18, %s1453_s18  ;;  %p17048_p6 = scmp.lt.s32.totalorder %s17046_s16, %s17040_s6 }
 0x206   : > { %15023 = dma.hbm_to_vmem [thread:$0]  (%p15134_p3), %s19031_s26, 96, %s1427_s11, [#allocation41], %s17379_s15, %s17379_s15, %s17380_s9  }
 0x207   : > { %p17042_p1 = pnand %p17041_p0, %p15134_p3  ;;  %p17049_p7 = por %p17048_p6, %p17047_p5 }
 0x209   : > { %p17043_p4 = pneg %p17042_p1 }
 0x20b   : > { %p17050_p8 = pnand %p17049_p7, %p17043_p4 }
 0x20d   : > { %17053 = shalt.err (!%p17050_p8)
}
 0x20e   : > { %s19032_s11 = sld [smem:[#allocation106_spill]]  ;;  %s17064_s23 = scalar_lea.vmem %s1479_s3, 48 }
 0x20f   : > { %p17065_p9 = scmp.ne.s32.totalorder %s1479_s3, %s17064_s23  ;;  %s17070_s15 = scalar_lea.vmem %s1479_s3, 64 }
 0x210   : > { %p17071_p12 = scmp.lt.s32.totalorder %s1479_s3, %s1479_s3  ;;  %p17072_p13 = scmp.lt.s32.totalorder %s17070_s15, %s17064_s23 }
 0x211   : > { %p17066_p10 = pnand %p17065_p9, %p15134_p3 }
 0x212   : > { %p17073_p0 = por %p17072_p13, %p17071_p12 }
 0x213   : > { %p17067_p11 = pneg %p17066_p10 }
 0x214   : > { %15027 = dma.hbm_to_vmem [thread:$0]  (%p15134_p3), %s19032_s11, 48, %s1453_s18, [#allocation44], %s19002_s7, %s19002_s7, %s19006_s5  }
 0x215   : > { %p17074_p1 = pnand %p17073_p0, %p17067_p11 }
 0x217   : > { %17077 = shalt.err (!%p17074_p1)
}
 0x218   : > { %s19033_s26 = sld [smem:[#allocation108_spill]]  ;;  %s17383_s9 = smov [#allocation51]  }
 0x219   : > { %s1504_s22 = sshll.u32 %s17383_s9, 4  ;;  %s17384_s18 = smov [#allocation54]   ;;  %s1505_s22 = int_to_ptr.vmem [resolvable:$true] %s1504_s22 }
 0x21a   : > { %s1530_s8 = sshll.u32 %s17384_s18, 4  ;;  %s17088_s6 = scalar_lea.vmem %s1505_s22, 192  ;;  %s1531_s8 = int_to_ptr.vmem [resolvable:$true] %s1530_s8 }
 0x21b   : > { %p17089_p4 = scmp.ne.s32.totalorder %s1505_s22, %s17088_s6  ;;  %p17095_p7 = scmp.lt.s32.totalorder %s1505_s22, %s1505_s22 }
 0x21c   : > { %p17096_p8 = scmp.lt.s32.totalorder %s17088_s6, %s17088_s6 }
 0x21d   : > { %p17090_p5 = pnand %p17089_p4, %p15134_p3 }
 0x21e   : > { %15031 = dma.hbm_to_vmem [thread:$0]  (%p15134_p3), %s19033_s26, 48, %s1479_s3, [#allocation47], %s19002_s7, %s19002_s7, %s19006_s5  }
 0x21f   : > { %p17091_p6 = pneg %p17090_p5  ;;  %p17097_p9 = por %p17096_p8, %p17095_p7 }
 0x221   : > { %p17098_p10 = pnand %p17097_p9, %p17091_p6 }
 0x223   : > { %17101 = shalt.err (!%p17098_p10)
}
 0x224   : > { %s19034_s3 = sld [smem:[#allocation110_spill]]  ;;  %s17112_s16 = scalar_lea.vmem %s1531_s8, 48 }
 0x225   : > { %p17113_p11 = scmp.ne.s32.totalorder %s1531_s8, %s17112_s16  ;;  %s17118_s11 = scalar_lea.vmem %s1531_s8, 64 }
 0x226   : > { %p17119_p0 = scmp.lt.s32.totalorder %s1531_s8, %s1531_s8  ;;  %p17120_p1 = scmp.lt.s32.totalorder %s17118_s11, %s17112_s16 }
 0x227   : > { %p17114_p12 = pnand %p17113_p11, %p15134_p3 }
 0x228   : > { %p17121_p4 = por %p17120_p1, %p17119_p0 }
 0x229   : > { %p17115_p13 = pneg %p17114_p12 }
 0x22a   : > { %15035 = dma.hbm_to_vmem [thread:$0]  (%p15134_p3), %s19034_s3, 192, %s1505_s22, [#allocation50], %s19001_s10, %s19001_s10, %s19004_s2  }
 0x22b   : > { %p17122_p5 = pnand %p17121_p4, %p17115_p13 }
 0x22d   : > { %17125 = shalt.err (!%p17122_p5)
}
 0x22e   : > { %s19035_s23 = sld [smem:[#allocation112_spill]]  ;;  %s17385_s10 = smov [#allocation57]  }
 0x22f   : > { %s1556_s2 = sshll.u32 %s17385_s10, 4  ;;  %s17386_s15 = smov [#allocation60]   ;;  %s1557_s2 = int_to_ptr.vmem [resolvable:$true] %s1556_s2 }
 0x230   : > { %s1581_s26 = sshll.u32 %s17386_s15, 4  ;;  %s17136_s9 = scalar_lea.vmem %s1557_s2, 48  ;;  %s1582_s26 = int_to_ptr.vmem [resolvable:$true] %s1581_s26 }
 0x231   : > { %p17137_p6 = scmp.ne.s32.totalorder %s1557_s2, %s17136_s9  ;;  %s17142_s22 = scalar_lea.vmem %s1557_s2, 64 }
 0x232   : > { %p17143_p9 = scmp.lt.s32.totalorder %s1557_s2, %s1557_s2  ;;  %p17144_p10 = scmp.lt.s32.totalorder %s17142_s22, %s17136_s9 }
 0x233   : > { %p17138_p7 = pnand %p17137_p6, %p15134_p3 }
 0x234   : > { %15039 = dma.hbm_to_vmem [thread:$0]  (%p15134_p3), %s19035_s23, 48, %s1531_s8, [#allocation53], %s19002_s7, %s19002_s7, %s19006_s5  }
 0x235   : > { %p17139_p8 = pneg %p17138_p7  ;;  %p17145_p11 = por %p17144_p10, %p17143_p9 }
 0x237   : > { %p17146_p12 = pnand %p17145_p11, %p17139_p8 }
 0x239   : > { %17149 = shalt.err (!%p17146_p12)
}
 0x23a   : > { %s19036_s18 = sld [smem:[#allocation114_spill]]  ;;  %s17160_s8 = scalar_lea.vmem %s1582_s26, 16 }
 0x23b   : > { %p17161_p13 = scmp.ne.s32.totalorder %s1582_s26, %s17160_s8  ;;  %s17166_s6 = scalar_lea.vmem %s1582_s26, 32 }
 0x23c   : > { %p17167_p4 = scmp.lt.s32.totalorder %s1582_s26, %s1582_s26  ;;  %p17168_p5 = scmp.lt.s32.totalorder %s17166_s6, %s17160_s8 }
 0x23d   : > { %p17162_p0 = pnand %p17161_p13, %p15134_p3 }
 0x23e   : > { %p17169_p6 = por %p17168_p5, %p17167_p4 }
 0x23f   : > { %p17163_p1 = pneg %p17162_p0 }
 0x240   : > { %15043 = dma.hbm_to_vmem [thread:$0]  (%p15134_p3), %s19036_s18, 48, %s1557_s2, [#allocation56], %s19002_s7, %s19002_s7, %s19006_s5  }
 0x241   : > { %p17170_p7 = pnand %p17169_p6, %p17163_p1 }
 0x243   : > { %17173 = shalt.err (!%p17170_p7)
}
 0x244   : > { %15047 = dma.hbm_to_vmem [thread:$0]  (%p15134_p3), %s17607_s4, 16, %s1582_s26, [#allocation59]  }
 0x245   : > { %s17387_s3 = smov [#allocation63]  }
 0x246   : > { %s1605_s16 = sshll.u32 %s17387_s3, 4  ;;  %s1606_s16 = int_to_ptr.vmem [resolvable:$true] %s1605_s16 }
 0x247   : > { %s17184_s7 = scalar_lea.vmem %s1606_s16, 16  ;;  %s17190_s5 = scalar_lea.vmem %s1606_s16, 32 }
 0x248   : > { %p17185_p8 = scmp.ne.s32.totalorder %s1606_s16, %s17184_s7  ;;  %p17191_p11 = scmp.lt.s32.totalorder %s1606_s16, %s1606_s16 }
 0x249   : > { %p17192_p12 = scmp.lt.s32.totalorder %s17190_s5, %s17184_s7 }
 0x24a   : > { %p17186_p9 = pnand %p17185_p8, %p15134_p3 }
 0x24b   : > { %p17193_p13 = por %p17192_p12, %p17191_p11 }
 0x24c   : > { %p17187_p10 = pneg %p17186_p9 }
 0x24e   : > { %p17194_p0 = pnand %p17193_p13, %p17187_p10 }
 0x250   : > { %17197 = shalt.err (!%p17194_p0)
}
 0x251   : > { %15051 = dma.hbm_to_vmem [thread:$0]  (%p15134_p3), %s17617_s17, 16, %s1606_s16, [#allocation62]  }
 0x252 PF: > { %1625 = sbr.rel (%p17634_p2) target bundleno = 17734 (0x4546), region = 196  ;;  %p15175_p1 = scmp.eq.s32.totalorder (!%p17634_p2), %s17630_s28, 0 }
 0x257   : > { %17203 = dma.done.wait (%p15175_p1), [#allocation3], 64  }
 0x258   : > { %17205 = vsyncadd (%p15175_p1), [#allocation3], 4294967232 }
 0x259   : > { %17207 = dma.done.wait (%p15175_p1), [#allocation5], 6160  }
 0x25a   : > { %17209 = vsyncadd (%p15175_p1), [#allocation5], 4294961136 }
 0x25b   : > { %17211 = dma.done.wait (%p15175_p1), [#allocation8], 2144  }
 0x25c   : > { %17213 = vsyncadd (%p15175_p1), [#allocation8], 4294965152 }
 0x25d   : > { %17215 = dma.done.wait (%p15175_p1), [#allocation11], 64  }
 0x25e   : > { %17217 = vsyncadd (%p15175_p1), [#allocation11], 4294967232 }
 0x25f   : > { %17219 = dma.done.wait (%p15175_p1), [#allocation14], 8224  }
 0x260   : > { %17221 = vsyncadd (%p15175_p1), [#allocation14], 4294959072 }
 0x261   : > { %17223 = dma.done.wait (%p15175_p1), [#allocation17], 8320  }
 0x262   : > { %17225 = vsyncadd (%p15175_p1), [#allocation17], 4294958976 }
 0x263   : > { %17227 = dma.done.wait (%p15175_p1), [#allocation20], 64  }
 0x264   : > { %17229 = vsyncadd (%p15175_p1), [#allocation20], 4294967232 }
 0x265   : > { %17231 = dma.done.wait (%p15175_p1), [#allocation23], 48  }
 0x266   : > { %17233 = vsyncadd (%p15175_p1), [#allocation23], 4294967248 }
 0x267   : > { %17235 = dma.done.wait (%p15175_p1), [#allocation26], 32  }
 0x268   : > { %17237 = vsyncadd (%p15175_p1), [#allocation26], 4294967264 }
 0x269   : > { %17239 = dma.done.wait (%p15175_p1), [#allocation29], 9360  }
 0x26a   : > { %17241 = vsyncadd (%p15175_p1), [#allocation29], 4294957936 }
 0x26b   : > { %17243 = dma.done.wait (%p15175_p1), [#allocation32], 3120  }
 0x26c   : > { %17245 = vsyncadd (%p15175_p1), [#allocation32], 4294964176 }
 0x26d   : > { %17247 = dma.done.wait (%p15175_p1), [#allocation35], 96  }
 0x26e   : > { %17249 = vsyncadd (%p15175_p1), [#allocation35], 4294967200 }
 0x26f   : > { %17251 = dma.done.wait (%p15175_p1), [#allocation38], 3120  }
 0x270   : > { %17253 = vsyncadd (%p15175_p1), [#allocation38], 4294964176 }
 0x271   : > { %17255 = dma.done.wait (%p15175_p1), [#allocation41], 6240  }
 0x272   : > { %17257 = vsyncadd (%p15175_p1), [#allocation41], 4294961056 }
 0x273   : > { %17259 = dma.done.wait (%p15175_p1), [#allocation44], 3120  }
 0x274   : > { %17261 = vsyncadd (%p15175_p1), [#allocation44], 4294964176 }
 0x275   : > { %17263 = dma.done.wait (%p15175_p1), [#allocation47], 96  }
 0x276   : > { %17265 = vsyncadd (%p15175_p1), [#allocation47], 4294967200 }
 0x277   : > { %17267 = dma.done.wait (%p15175_p1), [#allocation50], 12480  }
 0x278   : > { %17269 = vsyncadd (%p15175_p1), [#allocation50], 4294954816 }
 0x279   : > { %17271 = dma.done.wait (%p15175_p1), [#allocation53], 12336  }
 0x27a   : > { %17273 = vsyncadd (%p15175_p1), [#allocation53], 4294954960 }
 0x27b   : > { %17275 = dma.done.wait (%p15175_p1), [#allocation56], 96  }
 0x27c   : > { %17277 = vsyncadd (%p15175_p1), [#allocation56], 4294967200 }
 0x27d   : > { %17279 = dma.done.wait (%p15175_p1), [#allocation59], 32  }
 0x27e   : > { %17281 = vsyncadd (%p15175_p1), [#allocation59], 4294967264 }
 0x27f   : > { %17283 = dma.done.wait (%p15175_p1), [#allocation62], 1040  }
 0x280   : > { %17285 = vsyncadd (%p15175_p1), [#allocation62], 4294966256  ;;  %s19037_s1 = sld [smem:[#allocation85_spill]]  ;;  %p1889_p2 = scmp.lt.s32.totalorder %s17630_s28, 1  ;;  %v17388_v0 = vmov 0.0   ;;  %vm17389_vm0 = vmmov 0   ;;  %v1993_v39 = vlaneseq }
 0x281   : > { %14240 = vmatprep.subr.bf16.mxu0 %v17388_v0  ;;  %14242 = vmatprep.mubr.msk.bf16.mxu0 %vm17389_vm0, %v17388_v0  ;;  %vm1912_vm1 = vcmask 1043456   ;;  %v1899_v1 = vld [vmem:[#allocation2] sm:$0xf]  ;;  %vm1908_vm2 = vcmask 64512   ;;  %v15330_v6 = vld [vmem:[#allocation6 + $0xa8] ss:$12 sps:$4 sm:$0xff]  }
 0x282   : > { %s19041_s28 = smov (!%p1889_p2, %s17630_s28), 1  ;;  %v1914_v3 = vsel %vm1912_vm1, %v1899_v1, 0  ;;  %v15328_v5 = vld [vmem:[#allocation6 + $0xac] ss:$12 sps:$4 sm:$0xff]   ;;  %v15331_v7 = vld [vmem:[#allocation6 + $0xb0] ss:$12 sps:$4 sm:$0xff]  }
 0x283   : > { %s13035_s11 = sshll.u32 %s19041_s28, 3  ;;  %14241 = vmatpush3.bf16.msra.mxu0 %v1914_v3  ;;  %2136 = vmatprep.subr.bf16.mxu1 %v15328_v5  ;;  %v15332_v8 = vld [vmem:[#allocation6 + $0x94] ss:$12 sps:$4 sm:$0xff]   ;;  %v15334_v9 = vld [vmem:[#allocation6 + $0x90] ss:$12 sps:$4 sm:$0xff]   ;;  %s19038_s10 = sld [smem:[#allocation87_spill]] }
 0x284   : > { %14246 = vmatprep.subr.bf16.mxu0 %v17388_v0  ;;  %2137 = vmatpush1.bf16.msra.mxu1 %v15330_v6  ;;  %v15335_v10 = vld [vmem:[#allocation6 + $0x98] ss:$12 sps:$4 sm:$0xff]   ;;  %v15336_v11 = vld [vmem:[#allocation6 + $0x7c] ss:$12 sps:$4 sm:$0xff]   ;;  %v15339_v14 = vld [vmem:[#allocation6 + $0x80] ss:$12 sps:$4 sm:$0xff]   ;;  %s1896_s22 = scalar_lea.vmem %s17622_s25, %s13035_s11 }
 0x285   : > { %2138 = vmatprep.subr.bf16.mxu1 %v15332_v8  ;;  %v15338_v12 = vld [vmem:[#allocation6 + $0x78] ss:$12 sps:$4 sm:$0xff]   ;;  %v15342_v15 = vld [vmem:[#allocation6 + $0x60] ss:$12 sps:$4 sm:$0xff]   ;;  %v15343_v17 = vld [vmem:[#allocation6 + $0x68] ss:$12 sps:$4 sm:$0xff]  }
 0x286   : > { %s1892_s23 = scalar_lea.vmem %s19037_s1, %s13035_s11  ;;  %v15340_v13 = vld [vmem:[#allocation6 + $0x64] ss:$12 sps:$4 sm:$0xff]   ;;  %v15344_v16 = vld [vmem:[#allocation6 + $0x4c] ss:$12 sps:$4 sm:$0xff]   ;;  %v15346_v18 = vld [vmem:[#allocation6 + $0x48] ss:$12 sps:$4 sm:$0xff]  }
 0x287   : > { %v1898_v2 = vld [vmem:[%s1892_s23] sm:$0xff]  ;;  %v15356_v26 = vld [vmem:[#allocation6 + $0x4] ss:$12 sps:$4 sm:$0xff]   ;;  %v15359_v28 = vld [vmem:[#allocation6 + $0x8] ss:$12 sps:$4 sm:$0xff]   ;;  %v17390_v29 = vmov 0  }
 0x288   : > { %v1901_v4 = vpack.c.bf16 %v1898_v2, %v1898_v2  ;;  %2139 = vmatpush1.bf16.msra.mxu1 %v15334_v9  ;;  %v15348_v19 = vld [vmem:[#allocation6 + $0x34] ss:$12 sps:$4 sm:$0xff]   ;;  %v15347_v20 = vld [vmem:[#allocation6 + $0x50] ss:$12 sps:$4 sm:$0xff]   ;;  %v15351_v23 = vld [vmem:[#allocation6 + $0x38] ss:$12 sps:$4 sm:$0xff]   ;;  %2168 = vmatprep.mubr.bf16.mxu1 %v17390_v29 }
 0x289   : > { %2140 = vmatprep.subr.bf16.mxu1 %v15336_v11  ;;  %v15350_v21 = vld [vmem:[#allocation6 + $0x30] ss:$12 sps:$4 sm:$0xff]   ;;  %v15354_v24 = vld [vmem:[#allocation6 + $0x18] ss:$12 sps:$4 sm:$0xff]   ;;  %v15355_v25 = vld [vmem:[#allocation6 + $0x20] ss:$12 sps:$4 sm:$0xff]  }
 0x28a   : > { %14243 = vmatmul.mubr.msk.bf16.vlgmr.msra.gmra.mxu0 %vm1908_vm2, %v1901_v4  ;;  %v15352_v22 = vld [vmem:[#allocation6 + $0x1c] ss:$12 sps:$4 sm:$0xff]   ;;  %v15358_v27 = vld [vmem:[#allocation6] ss:$12 sps:$4 sm:$0xff]   ;;  %v18062_v40 = vshrl.u32 %v1993_v39, 7  ;;  %vm2241_vm3 = vcmask 261120  }
 0x28b   : > { %14247 = vmatpush3.bf16.msra.mxu0 %v15331_v7  ;;  %14262 = vmatprep.mubr.msk.bf16.mxu0 %vm17389_vm0, %v17388_v0  ;;  %v13037_v30 = vld [vmem:[#allocation4] ss:$0 sm:$0xff]  ;;  %v1990_v42 = vld [vmem:[#allocation7] sm:$0x7]  ;;  %s17391_s2 = smov 96   ;;  %s17392_s15 = smov 32  }
 0x28c   : > { %14248 = vmatprep.subr.bf16.mxu0 %v17388_v0  ;;  %2141 = vmatpush1.bf16.msra.mxu1 %v15338_v12  ;;  %v1956_v31 = vld [vmem:[%s19038_s10] sm:$0xff]  ;;  %v18065_v41 = vsub.s32 0, %v18062_v40  ;;  %v18068_v43 = vsub.s32 1, %v18062_v40  ;;  %s17393_s26 = smov 64   ;;  %v18084_v59 = vsub.s32 2, %v18062_v40  ;;  %vm2675_vm4 = vcmask 523264  }
 0x28d   : > { %2142 = vmatprep.subr.bf16.mxu1 %v15340_v13  ;;  %vm2677_vm5 = vcmask 785408   ;;  %s19039_s9 = sld [smem:[#allocation88_spill]] }
 0x28e   : > { %v1996_v44 = vrot.slane %v1990_v42, %v18065_v41  ;;  %v2000_v45 = vrot.slane %v1990_v42, %v18068_v43  ;;  %v2004_v62 = vrot.slane %v1990_v42, %v18084_v59 }
 0x28f   : > { %14249 = vmatpush3.bf16.msra.mxu0 %v15335_v10 }
 0x290   : > { %14250 = vmatprep.subr.bf16.mxu0 %v17388_v0  ;;  %2143 = vmatpush1.bf16.msra.mxu1 %v15342_v15 }
 0x291   : > { %2144 = vmatprep.subr.bf16.mxu1 %v15344_v16 }
 0x293   : > { %14251 = vmatpush3.bf16.msra.mxu0 %v15339_v14 }
 0x294   : > { %14252 = vmatprep.subr.bf16.mxu0 %v17388_v0  ;;  %2145 = vmatpush1.bf16.msra.mxu1 %v15346_v18 }
 0x295   : > { %2146 = vmatprep.subr.bf16.mxu1 %v15348_v19 }
 0x297   : > { %14253 = vmatpush3.bf16.msra.mxu0 %v15343_v17 }
 0x298   : > { %14254 = vmatprep.subr.bf16.mxu0 %v17388_v0  ;;  %2147 = vmatpush1.bf16.msra.mxu1 %v15350_v21 }
 0x299   : > { %2148 = vmatprep.subr.bf16.mxu1 %v15352_v22 }
 0x29b   : > { %14255 = vmatpush3.bf16.msra.mxu0 %v15347_v20 }
 0x29c   : > { %14256 = vmatprep.subr.bf16.mxu0 %v17388_v0  ;;  %2149 = vmatpush1.bf16.msra.mxu1 %v15354_v24 }
 0x29d   : > { %2150 = vmatprep.subr.bf16.mxu1 %v15356_v26 }
 0x29f   : > { %14257 = vmatpush3.bf16.msra.mxu0 %v15351_v23 }
 0x2a0   : > { %14258 = vmatprep.subr.bf16.mxu0 %v17388_v0  ;;  %2151 = vmatpush1.bf16.msra.mxu1 %v15358_v27 }
 0x2a1   : > { %14266 = vmatprep.subr.bf16.mxu1 %v17388_v0 }
 0x2a3   : > { %14259 = vmatpush3.bf16.msra.mxu0 %v15355_v25 }
 0x2a4   : > { %14260 = vmatprep.subr.bf16.mxu0 %v17388_v0 }
 0x2a7   : > { %14261 = vmatpush3.bf16.msra.mxu0 %v15359_v28 }
 0x2a8   : > { %14272 = vmatprep.subr.bf16.mxu0 %v17388_v0 }
 0x34a   : > { %v1950_v32 = vpop.f32.mrf.mxu0 }
 0x34b   : > { %v1951_v33 = vadd.f32 %v13037_v30, %v1950_v32 }
 0x34c   : > { %v14244_v34 = vpop.f32.mrf.mxu0 }
 0x34d   : > { %v18053_v35 = vadd.f32 %v1956_v31, %v1951_v33 }
 0x34e   : > { %v1953_v36 = vpop.f32.mrf.mxu0 }
 0x34f   : > { %v1991_v37 = vpack.c.bf16 %v18053_v35, %v18053_v35 }
 0x350   : > { %v14245_v38 = vpop.f32.mrf.mxu0 }
 0x351   : > { %2169 = vmatmul.mubr.bf16.vlgmr.msra.gmra.mxu1 %v1991_v37  ;;  %14263 = vmatmul.mubr.bf16.vlgmr.msra.gmra.mxu0 %v1991_v37 }
 0x352   : > { %14268 = vmatprep.mubr.msk.bf16.mxu1 %vm17389_vm0, %v17388_v0  ;;  %14274 = vmatprep.mubr.msk.bf16.mxu0 %vm17389_vm0, %v17388_v0 }
 0x411   : > { %v2170_v46 = vpop.f32.mrf.mxu1  ;;  %v2211_v47 = vpop.f32.mrf.mxu0 }
 0x412   : > { %v2171_v48 = vadd.f32 %v2170_v46, %v1996_v44  ;;  %v2212_v2 = vadd.f32 %v2211_v47, %v2004_v62 }
 0x413   : > { %v2172_v49 = vpop.f32.mrf.mxu1  ;;  %v14264_v50 = vpop.f32.mrf.mxu0 }
 0x414   : > { %v2217_v51 = vpack.c.bf16 %v2171_v48, %v2171_v48  ;;  %v2173_v52 = vadd.f32 %v2172_v49, %v2000_v45  ;;  %v18091_v5 = vpack.c.bf16 %v2212_v2, %v2212_v2 }
 0x415   : > { %v2174_v53 = vpop.f32.mrf.mxu1  ;;  %v2214_v54 = vpop.f32.mrf.mxu0 }
 0x416   : > { %v2225_v55 = vpack.c.bf16 %v2173_v52, %v2173_v52  ;;  %2219 = vrot.lane.b32.xlu1 %v2217_v51, %s17391_s2  ;;  %v2482_v8 = vsel %vm1912_vm1, %v18091_v5, 0 }
 0x417   : > { %v2175_v56 = vpop.f32.mrf.mxu1  ;;  %v14265_v57 = vpop.f32.mrf.mxu0 }
 0x418   : > { %2227 = vrot.lane.b32.xlu0 %v2225_v55, %s17391_s2  ;;  %v2246_v58 = vsel %vm2241_vm3, %v2225_v55, 0 }
 0x419   : > { %14267 = vmatpush3.bf16.xpose.msra.mxu1 %v2246_v58 }
 0x41a   : > { %2231 = vrot.lane.b32.xlu1 %v2225_v55, %s17392_s15  ;;  %14278 = vmatprep.subr.bf16.mxu1 %v17388_v0 }
 0x41c   : > { %2229 = vrot.lane.b32.xlu0 %v2225_v55, %s17393_s26 }
 0x41e   : > { %2223 = vrot.lane.b32.xlu1 %v2217_v51, %s17392_s15 }
 0x420   : > { %2221 = vrot.lane.b32.xlu0 %v2217_v51, %s17393_s26  ;;  %14269 = vmatmul.mubr.msk.bf16.vlgmr.msra.gmra.mxu1 %vm2241_vm3, %v2217_v51 }
 0x421   : > { %14280 = vmatprep.mubr.msk.bf16.mxu1 %vm17389_vm0, %v17388_v0 }
 0x488   : > { %v2220_v60 = vpop.permute.xlu1 %2219 }
 0x48a   : > { %v2228_v61 = vpop.permute.xlu0 %2227 }
 0x48b   : > { %v2292_v63 = vsel %vm2241_vm3, %v2228_v61, 0 }
 0x48c   : > { %14273 = vmatpush3.bf16.xpose.msra.mxu0 %v2292_v63  ;;  %v2232_v4 = vpop.permute.xlu1 %2231 }
 0x48d   : > { %14284 = vmatprep.subr.bf16.mxu0 %v17388_v0  ;;  %v2384_v6 = vsel %vm2241_vm3, %v2232_v4, 0 }
 0x48e   : > { %v2230_v1 = vpop.permute.xlu0 %2229 }
 0x48f   : > { %v2338_v3 = vsel %vm2241_vm3, %v2230_v1, 0 }
 0x490   : > { %14279 = vmatpush3.bf16.xpose.msra.mxu1 %v2338_v3  ;;  %v2224_v9 = vpop.permute.xlu1 %2223 }
 0x491   : > { %14290 = vmatprep.subr.bf16.mxu1 %v17388_v0 }
 0x492   : > { %v2222_v7 = vpop.permute.xlu0 %2221 }
 0x493   : > { %14275 = vmatmul.mubr.msk.bf16.vlgmr.msra.gmra.mxu0 %vm2241_vm3, %v2220_v60 }
 0x494   : > { %14285 = vmatpush3.bf16.xpose.msra.mxu0 %v2384_v6  ;;  %14286 = vmatprep.mubr.msk.bf16.mxu0 %vm17389_vm0, %v17388_v0 }
 0x495   : > { %14296 = vmatprep.subr.bf16.mxu0 %v17388_v0 }
 0x497   : > { %14281 = vmatmul.mubr.msk.bf16.vlgmr.msra.gmra.mxu1 %vm2241_vm3, %v2222_v7 }
 0x498   : > { %14291 = vmatpush3.bf16.msra.mxu1 %v2482_v8  ;;  %14292 = vmatprep.mubr.msk.bf16.mxu1 %vm17389_vm0, %v17388_v0 }
 0x499   : > { %14302 = vmatprep.subr.bf16.mxu1 %v17388_v0 }
 0x49b   : > { %14287 = vmatmul.mubr.msk.bf16.vlgmr.msra.gmra.mxu0 %vm2241_vm3, %v2224_v9 }
 0x49c   : > { %14298 = vmatprep.mubr.msk.bf16.mxu0 %vm17389_vm0, %v17388_v0 }
 0x4e0   : > { %v2282_v10 = vpop.f32.mrf.mxu1 }
 0x4e1   : > { %v2426_v11 = vmul.f32 0.17677669, %v2282_v10 }
 0x4e2   : > { %v14270_v12 = vpop.f32.mrf.mxu1 }
 0x4e3   : > { %v2430_v13 = vsel %vm1908_vm2, %v2426_v11, -inf }
 0x4e4   : > { %2431 = vmax.xlane.f32.xlu0 %v2430_v13  ;;  %v2285_v14 = vpop.f32.mrf.mxu1 }
 0x4e6   : > { %v14271_v15 = vpop.f32.mrf.mxu1 }
 0x553   : > { %v2328_v16 = vpop.f32.mrf.mxu0 }
 0x554   : > { %v2427_v17 = vmul.f32 0.17677669, %v2328_v16 }
 0x555   : > { %v14276_v18 = vpop.f32.mrf.mxu0 }
 0x556   : > { %v2433_v19 = vsel %vm1908_vm2, %v2427_v17, -inf }
 0x557   : > { %v2374_v20 = vpop.f32.mrf.mxu1  ;;  %2434 = vmax.xlane.f32.xlu1 %v2433_v19  ;;  %v2331_v21 = vpop.f32.mrf.mxu0 }
 0x558   : > { %v2428_v22 = vmul.f32 0.17677669, %v2374_v20  ;;  %v15360_v20 = vld [vmem:[#allocation9 + $0x38] sm:$0xff]   ;;  %v15361_v21 = vld [vmem:[#allocation9 + $0x30] sm:$0xff]  }
 0x559   : > { %v14277_v23 = vpop.f32.mrf.mxu0  ;;  %v14282_v24 = vpop.f32.mrf.mxu1 }
 0x55a   : > { %v2436_v25 = vsel %vm1908_vm2, %v2428_v22, -inf  ;;  %v15363_v24 = vld [vmem:[#allocation9 + $0x20] sm:$0xff]  }
 0x55b   : > { %2437 = vmax.xlane.f32.xlu0 %v2436_v25  ;;  %v2377_v26 = vpop.f32.mrf.mxu1  ;;  %v2420_v27 = vpop.f32.mrf.mxu0 }
 0x55c   : > { %v2429_v28 = vmul.f32 0.17677669, %v2420_v27  ;;  %v15364_v27 = vld [vmem:[#allocation9 + $0x18] sm:$0xff]  }
 0x55d   : > { %v14283_v30 = vpop.f32.mrf.mxu1  ;;  %v14288_v31 = vpop.f32.mrf.mxu0 }
 0x55e   : > { %v2439_v32 = vsel %vm1908_vm2, %v2429_v28, -inf  ;;  %v15365_v30 = vld [vmem:[#allocation9 + $0x10] sm:$0xff]   ;;  %v15366_v31 = vld [vmem:[#allocation9 + $0x8] sm:$0xff]  }
 0x55f   : > { %2440 = vmax.xlane.f32.xlu0 %v2439_v32  ;;  %v2423_v33 = vpop.f32.mrf.mxu0  ;;  %v15367_v32 = vld [vmem:[#allocation9] sm:$0xff]  }
 0x561   : > { %v14289_v34 = vpop.f32.mrf.mxu0 }
 0x568   : > { %2235 = vrot.lane.b32.xlu1 %v18091_v5, %s17391_s2 }
 0x56d   : > { %v2432_v36 = vpop.xlane.xlu0 %2431 }
 0x56e   : > { %v2442_v37 = vsub.f32 %v2426_v11, %v2432_v36 }
 0x570   : > { %v2446_v38 = vmul.f32 1.442695, %v2442_v37 }
 0x572   : > { %16056 = vpow2.f32 %v2446_v38 }
 0x57f   : > { %v16057_v42 = vpop.eup %16056 }
 0x580   : > { %v2454_v44 = vsel %vm1908_vm2, %v16057_v42, 0.0 }
 0x58c   : > { %2455 = vadd.xlane.f32.xlu1 %v2454_v44 }
 0x5e0   : > { %v2435_v45 = vpop.xlane.xlu1 %2434 }
 0x5e1   : > { %v2443_v46 = vsub.f32 %v2427_v17, %v2435_v45 }
 0x5e3   : > { %v2448_v47 = vmul.f32 1.442695, %v2443_v46 }
 0x5e4   : > { %v2438_v48 = vpop.xlane.xlu0 %2437  ;;  %v2236_v49 = vpop.permute.xlu1 %2235 }
 0x5e5   : > { %16058 = vpow2.f32 %v2448_v47  ;;  %v2444_v50 = vsub.f32 %v2428_v22, %v2438_v48  ;;  %v2528_v51 = vsel %vm1912_vm1, %v2236_v49, 0  ;;  %v15362_v22 = vld [vmem:[#allocation9 + $0x28] sm:$0xff]  }
 0x5e6   : > { %14297 = vmatpush3.bf16.msra.mxu0 %v2528_v51 }
 0x5e7   : > { %v2450_v52 = vmul.f32 1.442695, %v2444_v50  ;;  %14308 = vmatprep.subr.bf16.mxu0 %v17388_v0 }
 0x5e8   : > { %v2441_v53 = vpop.xlane.xlu0 %2440 }
 0x5e9   : > { %16060 = vpow2.f32 %v2450_v52  ;;  %v2445_v54 = vsub.f32 %v2429_v28, %v2441_v53 }
 0x5eb   : > { %v2452_v55 = vmul.f32 1.442695, %v2445_v54 }
 0x5ed   : > { %16062 = vpow2.f32 %v2452_v55 }
 0x5f2   : > { %v16059_v56 = vpop.eup %16058 }
 0x5f3   : > { %v2457_v57 = vsel %vm1908_vm2, %v16059_v56, 0.0 }
 0x5f4   : > { %2458 = vadd.xlane.f32.xlu0 %v2457_v57  ;;  %v13071_v57 = vld [vmem:[#allocation10] ss:$0 sm:$0xff] }
 0x5f6   : > { %v16061_v58 = vpop.eup %16060 }
 0x5f7   : > { %v2460_v60 = vsel %vm1908_vm2, %v16061_v58, 0.0 }
 0x5f8   : > { %2461 = vadd.xlane.f32.xlu1 %v2460_v60 }
 0x5fa   : > { %v16063_v61 = vpop.eup %16062 }
 0x5fb   : > { %v2463_v62 = vsel %vm1908_vm2, %v16063_v61, 0.0 }
 0x5fc   : > { %2464 = vadd.xlane.f32.xlu0 %v2463_v62 }
 0x609   : > { %2239 = vrot.lane.b32.xlu1 %v18091_v5, %s17392_s15 }
 0x612   : > { %2237 = vrot.lane.b32.xlu0 %v18091_v5, %s17393_s26 }
 0x615   : > { %v2456_v63 = vpop.xlane.xlu1 %2455 }
 0x616   : > { %16064 = vrcp.f32 %v2456_v63 }
 0x623   : > { %v16065_v1 = vpop.eup %16064 }
 0x624   : > { %v2470_v2 = vmul.f32 %v16065_v1, %v16057_v42 }
 0x626   : > { %v2474_v3 = vpack.c.bf16 %v2470_v2, %v2470_v2  ;;  %v15368_v2 = vld [vmem:[#allocation15 + $0xe0] ss:$16 sps:$4 sm:$0xff]  }
 0x628   : > { %14293 = vmatmul.mubr.msk.bf16.vlgmr.msra.gmra.mxu1 %vm1908_vm2, %v2474_v3  ;;  %v15370_v3 = vld [vmem:[#allocation15 + $0xe4] ss:$16 sps:$4 sm:$0xff]  }
 0x629   : > { %14304 = vmatprep.mubr.msk.bf16.mxu1 %vm17389_vm0, %v17388_v0 }
 0x67d   : > { %v2459_v4 = vpop.xlane.xlu0 %2458 }
 0x67e   : > { %16066 = vrcp.f32 %v2459_v4  ;;  %v15371_v4 = vld [vmem:[#allocation15 + $0xe8] ss:$16 sps:$4 sm:$0xff]  }
 0x681   : > { %v2462_v6 = vpop.xlane.xlu1 %2461 }
 0x682   : > { %16068 = vrcp.f32 %v2462_v6  ;;  %v15373_v6 = vld [vmem:[#allocation15 + $0xec] ss:$16 sps:$4 sm:$0xff]  }
 0x685   : > { %v2465_v7 = vpop.xlane.xlu0 %2464  ;;  %v2240_v11 = vpop.permute.xlu1 %2239 }
 0x686   : > { %16070 = vrcp.f32 %v2465_v7  ;;  %v2620_v14 = vsel %vm1912_vm1, %v2240_v11, 0  ;;  %v15376_v7 = vld [vmem:[#allocation15 + $0xc4] ss:$16 sps:$4 sm:$0xff]  }
 0x689   : > { %v2238_v8 = vpop.permute.xlu0 %2237 }
 0x68a   : > { %v2574_v9 = vsel %vm1912_vm1, %v2238_v8, 0  ;;  %v15379_v8 = vld [vmem:[#allocation15 + $0xcc] ss:$16 sps:$4 sm:$0xff]  }
 0x68b   : > { %v16067_v5 = vpop.eup %16066  ;;  %14303 = vmatpush3.bf16.msra.mxu1 %v2574_v9  ;;  %v15374_v9 = vld [vmem:[#allocation15 + $0xc0] ss:$16 sps:$4 sm:$0xff]  }
 0x68c   : > { %v2471_v10 = vmul.f32 %v16067_v5, %v16059_v56  ;;  %14314 = vmatprep.subr.bf16.mxu1 %v17388_v0  ;;  %v15377_v5 = vld [vmem:[#allocation15 + $0xc8] ss:$16 sps:$4 sm:$0xff]  }
 0x68e   : > { %v2475_v12 = vpack.c.bf16 %v2471_v10, %v2471_v10 }
 0x68f   : > { %v16069_v13 = vpop.eup %16068 }
 0x690   : > { %14299 = vmatmul.mubr.msk.bf16.vlgmr.msra.gmra.mxu0 %vm1908_vm2, %v2475_v12  ;;  %v2472_v15 = vmul.f32 %v16069_v13, %v16061_v58  ;;  %v15382_v13 = vld [vmem:[#allocation15 + $0xa4] ss:$16 sps:$4 sm:$0xff]  }
 0x691   : > { %14309 = vmatpush3.bf16.msra.mxu0 %v2620_v14  ;;  %14310 = vmatprep.mubr.msk.bf16.mxu0 %vm17389_vm0, %v17388_v0  ;;  %v15385_v14 = vld [vmem:[#allocation15 + $0xac] ss:$16 sps:$4 sm:$0xff]  }
 0x692   : > { %v2476_v16 = vpack.c.bf16 %v2472_v15, %v2472_v15  ;;  %3035 = vmatprep.subr.bf16.mxu0 %v15370_v3  ;;  %v15380_v15 = vld [vmem:[#allocation15 + $0xa0] ss:$16 sps:$4 sm:$0xff]   ;;  %v15428_v3 = vld [vmem:[#allocation18 + $0x60] sm:$0xff]  }
 0x693   : > { %v16071_v17 = vpop.eup %16070 }
 0x694   : > { %14305 = vmatmul.mubr.msk.bf16.vlgmr.msra.gmra.mxu1 %vm1908_vm2, %v2476_v16  ;;  %v2473_v18 = vmul.f32 %v16071_v17, %v16063_v61  ;;  %v15383_v16 = vld [vmem:[#allocation15 + $0xa8] ss:$16 sps:$4 sm:$0xff]   ;;  %v15386_v17 = vld [vmem:[#allocation15 + $0x80] ss:$16 sps:$4 sm:$0xff]  }
 0x695   : > { %14330 = vmatprep.mubr.msk.bf16.mxu1 %vm17389_vm0, %v17388_v0  ;;  %14315 = vmatpush3.bf16.msra.mxu1 %v15360_v20  ;;  %v15391_v20 = vld [vmem:[#allocation15 + $0x8c] ss:$16 sps:$4 sm:$0xff]  }
 0x696   : > { %v2477_v19 = vpack.c.bf16 %v2473_v18, %v2473_v18  ;;  %14316 = vmatprep.subr.bf16.mxu1 %v17388_v0  ;;  %v15388_v18 = vld [vmem:[#allocation15 + $0x84] ss:$16 sps:$4 sm:$0xff]  }
 0x698   : > { %14311 = vmatmul.mubr.msk.bf16.vlgmr.msra.gmra.mxu0 %vm1908_vm2, %v2477_v19  ;;  %v15389_v19 = vld [vmem:[#allocation15 + $0x88] ss:$16 sps:$4 sm:$0xff]  }
 0x699   : > { %3067 = vmatprep.mubr.bf16.mxu0 %v17390_v29  ;;  %14317 = vmatpush3.bf16.msra.mxu1 %v15361_v21  ;;  %v15394_v21 = vld [vmem:[#allocation15 + $0x64] ss:$16 sps:$4 sm:$0xff]  }
 0x69a   : > { %14318 = vmatprep.subr.bf16.mxu1 %v17388_v0  ;;  %3036 = vmatpush1.bf16.msra.mxu0 %v15368_v2  ;;  %v15427_v2 = vld [vmem:[#allocation18 + $0xa8] sm:$0xff]  }
 0x69b   : > { %3037 = vmatprep.subr.bf16.mxu0 %v15376_v7  ;;  %v15431_v7 = vld [vmem:[#allocation18 + $0xa0] sm:$0xff]  }
 0x69d   : > { %14319 = vmatpush3.bf16.msra.mxu1 %v15362_v22  ;;  %v15397_v22 = vld [vmem:[#allocation15 + $0x6c] ss:$16 sps:$4 sm:$0xff]  }
 0x69e   : > { %14320 = vmatprep.subr.bf16.mxu1 %v17388_v0  ;;  %3038 = vmatpush1.bf16.msra.mxu0 %v15374_v9  ;;  %v15433_v9 = vld [vmem:[#allocation18 + $0xd8] sm:$0xff]  }
 0x69f   : > { %3039 = vmatprep.subr.bf16.mxu0 %v15382_v13  ;;  %v15439_v13 = vld [vmem:[#allocation18 + $0x90] sm:$0xff]  }
 0x6a1   : > { %14321 = vmatpush3.bf16.msra.mxu1 %v15363_v24  ;;  %v15395_v24 = vld [vmem:[#allocation15 + $0x68] ss:$16 sps:$4 sm:$0xff]  }
 0x6a2   : > { %14322 = vmatprep.subr.bf16.mxu1 %v17388_v0  ;;  %3040 = vmatpush1.bf16.msra.mxu0 %v15380_v15  ;;  %v15441_v15 = vld [vmem:[#allocation18 + $0xc8] sm:$0xff]  }
 0x6a3   : > { %3041 = vmatprep.subr.bf16.mxu0 %v15388_v18  ;;  %v15444_v18 = vld [vmem:[#allocation18 + $0x40] sm:$0xff]  }
 0x6a5   : > { %14323 = vmatpush3.bf16.msra.mxu1 %v15364_v27  ;;  %v15398_v27 = vld [vmem:[#allocation15 + $0x40] ss:$16 sps:$4 sm:$0xff]  }
 0x6a6   : > { %14324 = vmatprep.subr.bf16.mxu1 %v17388_v0  ;;  %3042 = vmatpush1.bf16.msra.mxu0 %v15386_v17  ;;  %v15443_v17 = vld [vmem:[#allocation18 + $0x88] sm:$0xff]  }
 0x6a7   : > { %3043 = vmatprep.subr.bf16.mxu0 %v15394_v21  ;;  %v15447_v21 = vld [vmem:[#allocation18 + $0x80] sm:$0xff]  }
 0x6a9   : > { %14325 = vmatpush3.bf16.msra.mxu1 %v15365_v30  ;;  %v15406_v30 = vld [vmem:[#allocation15 + $0x24] ss:$16 sps:$4 sm:$0xff]  }
 0x6aa   : > { %14326 = vmatprep.subr.bf16.mxu1 %v17388_v0 }
 0x6ad   : > { %14327 = vmatpush3.bf16.msra.mxu1 %v15366_v31  ;;  %v15409_v31 = vld [vmem:[#allocation15 + $0x2c] ss:$16 sps:$4 sm:$0xff]  }
 0x6ae   : > { %14328 = vmatprep.subr.bf16.mxu1 %v17388_v0 }
 0x6b1   : > { %14329 = vmatpush3.bf16.msra.mxu1 %v15367_v32  ;;  %v15404_v32 = vld [vmem:[#allocation15 + $0x20] ss:$16 sps:$4 sm:$0xff]  }
 0x6b2   : > { %3076 = vmatprep.subr.bf16.mxu1 %v15373_v6  ;;  %v15430_v6 = vld [vmem:[#allocation18 + $0x20] sm:$0xff]  }
 0x6e8   : > { %v2518_v23 = vpop.f32.mrf.mxu1 }
 0x6ea   : > { %v14294_v25 = vpop.f32.mrf.mxu1 }
 0x6eb   : > { %v15400_v25 = vld [vmem:[#allocation15 + $0x44] ss:$16 sps:$4 sm:$0xff]  }
 0x6ec   : > { %v2521_v26 = vpop.f32.mrf.mxu1 }
 0x6ed   : > { %v15403_v26 = vld [vmem:[#allocation15 + $0x4c] ss:$16 sps:$4 sm:$0xff]  }
 0x6ee   : > { %v14295_v28 = vpop.f32.mrf.mxu1 }
 0x6ef   : > { %v15401_v28 = vld [vmem:[#allocation15 + $0x48] ss:$16 sps:$4 sm:$0xff]  }
 0x750   : > { %v2564_v33 = vpop.f32.mrf.mxu0 }
 0x751   : > { %2663 = vrot.lane.b32.xlu1 %v2564_v33, %s17392_s15  ;;  %v15407_v33 = vld [vmem:[#allocation15 + $0x28] ss:$16 sps:$4 sm:$0xff]  }
 0x752   : > { %v14300_v34 = vpop.f32.mrf.mxu0 }
 0x753   : > { %v15412_v34 = vld [vmem:[#allocation15 + $0x4] ss:$16 sps:$4 sm:$0xff]  }
 0x754   : > { %v2567_v36 = vpop.f32.mrf.mxu0  ;;  %v2610_v37 = vpop.f32.mrf.mxu1 }
 0x755   : > { %2667 = vrot.lane.b32.xlu0 %v2610_v37, %s17393_s26  ;;  %v15415_v36 = vld [vmem:[#allocation15 + $0xc] ss:$16 sps:$4 sm:$0xff]   ;;  %v15410_v37 = vld [vmem:[#allocation15] ss:$16 sps:$4 sm:$0xff]  }
 0x756   : > { %v14301_v38 = vpop.f32.mrf.mxu0  ;;  %v14306_v42 = vpop.f32.mrf.mxu1 }
 0x757   : > { %v15413_v38 = vld [vmem:[#allocation15 + $0x8] ss:$16 sps:$4 sm:$0xff]   ;;  %v15416_v42 = vld [vmem:[#allocation18 + $0x78] sm:$0xff]  }
 0x758   : > { %v2613_v44 = vpop.f32.mrf.mxu1  ;;  %v2656_v45 = vpop.f32.mrf.mxu0 }
 0x759   : > { %2671 = vrot.lane.b32.xlu1 %v2656_v45, %s17391_s2  ;;  %v15417_v44 = vld [vmem:[#allocation18 + $0xf8] sm:$0xff]  }
 0x75a   : > { %v14307_v46 = vpop.f32.mrf.mxu1  ;;  %v14312_v47 = vpop.f32.mrf.mxu0 }
 0x75c   : > { %v2659_v48 = vpop.f32.mrf.mxu0 }
 0x75e   : > { %v14313_v49 = vpop.f32.mrf.mxu0 }
 0x75f   : > { %v13080_v49 = vld [vmem:[#allocation12] ss:$0 sm:$0xff] }
 0x7c3   : > { %v2664_v50 = vpop.permute.xlu1 %2663 }
 0x7c4   : > { %v2674_v52 = vsel %vm2241_vm3, %v2518_v23, %v2664_v50  ;;  %v15392_v23 = vld [vmem:[#allocation15 + $0x60] ss:$16 sps:$4 sm:$0xff]  }
 0x7c5   : > { %3044 = vmatpush1.bf16.msra.mxu0 %v15392_v23  ;;  %v18158_v23 = vsub.s32 3, %v18062_v40 }
 0x7c6   : > { %3045 = vmatprep.subr.bf16.mxu0 %v15400_v25 }
 0x7c7   : > { %v2668_v51 = vpop.permute.xlu0 %2667 }
 0x7c8   : > { %v2676_v53 = vsel %vm2675_vm4, %v2674_v52, %v2668_v51  ;;  %v13081_v51 = vld [vmem:[#allocation13] ss:$0 sm:$0xff] }
 0x7c9   : > { %3046 = vmatpush1.bf16.msra.mxu0 %v15398_v27 }
 0x7ca   : > { %3047 = vmatprep.subr.bf16.mxu0 %v15406_v30 }
 0x7cb   : > { %v2672_v54 = vpop.permute.xlu1 %2671 }
 0x7cc   : > { %v2678_v55 = vsel %vm2677_vm5, %v2676_v53, %v2672_v54  ;;  %v15418_v54 = vld [vmem:[#allocation18 + $0x38] sm:$0xff]  }
 0x7cd   : > { %v2696_v56 = vpack.c.bf16 %v2678_v55, %v2678_v55  ;;  %3048 = vmatpush1.bf16.msra.mxu0 %v15404_v32  ;;  %v15419_v55 = vld [vmem:[#allocation18 + $0xb8] sm:$0xff]  }
 0x7ce   : > { %3049 = vmatprep.subr.bf16.mxu0 %v15412_v34 }
 0x7cf   : > { %14331 = vmatmul.mubr.bf16.vlgmr.msra.gmra.mxu1 %v2696_v56 }
 0x7d0   : > { %3108 = vmatprep.mubr.bf16.mxu1 %v17390_v29  ;;  %3077 = vmatpush1.bf16.msra.mxu1 %v15371_v4  ;;  %v15429_v4 = vld [vmem:[#allocation18 + $0xe0] sm:$0xff]  }
 0x7d1   : > { %3078 = vmatprep.subr.bf16.mxu1 %v15379_v8  ;;  %3050 = vmatpush1.bf16.msra.mxu0 %v15410_v37  ;;  %v15432_v8 = vld [vmem:[#allocation18 + $0x58] sm:$0xff]  }
 0x7d2   : > { %13773 = vmatprep.subr.bf16.mxu0 %v15416_v42 }
 0x7d4   : > { %3079 = vmatpush1.bf16.msra.mxu1 %v15377_v5  ;;  %v15434_v5 = vld [vmem:[#allocation18 + $0x18] sm:$0xff]  }
 0x7d5   : > { %3080 = vmatprep.subr.bf16.mxu1 %v15385_v14  ;;  %v15440_v14 = vld [vmem:[#allocation18 + $0x48] sm:$0xff]  }
 0x7d8   : > { %3081 = vmatpush1.bf16.msra.mxu1 %v15383_v16  ;;  %v15442_v16 = vld [vmem:[#allocation18 + $0x8] sm:$0xff]  }
 0x7d9   : > { %3082 = vmatprep.subr.bf16.mxu1 %v15391_v20  ;;  %v15446_v20 = vld [vmem:[#allocation18] sm:$0xff]  }
 0x7dc   : > { %3083 = vmatpush1.bf16.msra.mxu1 %v15389_v19  ;;  %v15445_v19 = vld [vmem:[#allocation18 + $0xc0] sm:$0xff]  }
 0x7dd   : > { %3084 = vmatprep.subr.bf16.mxu1 %v15397_v22  ;;  %v2852_v22 = vld [vmem:[#allocation16] sm:$0xf] }
 0x7de   : > { %v2866_v25 = vrot.slane %v2852_v22, %v18084_v59  ;;  %v2870_v27 = vrot.slane %v2852_v22, %v18158_v23 }
 0x7e0   : > { %3085 = vmatpush1.bf16.msra.mxu1 %v15395_v24  ;;  %v2858_v24 = vrot.slane %v2852_v22, %v18065_v41 }
 0x7e1   : > { %3086 = vmatprep.subr.bf16.mxu1 %v15403_v26  ;;  %v2862_v26 = vrot.slane %v2852_v22, %v18068_v43  ;;  %v15464_v22 = vld [vmem:[#allocation6 + $0x108] ss:$12 sps:$4 sm:$0xff]  }
 0x7e4   : > { %3087 = vmatpush1.bf16.msra.mxu1 %v15401_v28 }
 0x7e5   : > { %3088 = vmatprep.subr.bf16.mxu1 %v15409_v31 }
 0x7e8   : > { %3089 = vmatpush1.bf16.msra.mxu1 %v15407_v33 }
 0x7e9   : > { %3090 = vmatprep.subr.bf16.mxu1 %v15415_v36 }
 0x7ec   : > { %3091 = vmatpush1.bf16.msra.mxu1 %v15413_v38 }
 0x7ed   : > { %13795 = vmatprep.subr.bf16.mxu1 %v15417_v44 }
 0x88f   : > { %v2785_v58 = vpop.f32.mrf.mxu1 }
 0x890   : > { %v2786_v60 = vadd.f32 %v13071_v57, %v2785_v58  ;;  %v15420_v57 = vld [vmem:[#allocation18 + $0x70] sm:$0xff]  }
 0x891   : > { %v14332_v61 = vpop.f32.mrf.mxu1  ;;  %v15421_v58 = vld [vmem:[#allocation18 + $0xf0] sm:$0xff]  }
 0x892   : > { %v2791_v62 = vadd.f32 %v2786_v60, %v18053_v35  ;;  %v15422_v60 = vld [vmem:[#allocation18 + $0x30] sm:$0xff]  }
 0x893   : > { %v2788_v63 = vpop.f32.mrf.mxu1  ;;  %v15423_v61 = vld [vmem:[#allocation18 + $0xb0] sm:$0xff]  }
 0x894   : > { %2794 = vadd.xlane.f32.xlu0 %v2791_v62  ;;  %v15425_v63 = vld [vmem:[#allocation18 + $0xe8] sm:$0xff]  }
 0x895   : > { %v14333_v1 = vpop.f32.mrf.mxu1 }
 0x896   : > { %v15426_v1 = vld [vmem:[#allocation18 + $0x28] sm:$0xff]  }
 0x91d   : > { %v2795_v35 = vpop.xlane.xlu0 %2794 }
 0x91e   : > { %v2797_v10 = vmul.f32 0.0078125, %v2795_v35  ;;  %v15435_v35 = vld [vmem:[#allocation18 + $0x98] sm:$0xff]  }
 0x920   : > { %v2798_v11 = vsub.f32 %v2791_v62, %v2797_v10  ;;  %v15424_v62 = vld [vmem:[#allocation18 + $0x68] sm:$0xff]   ;;  %v15436_v10 = vld [vmem:[#allocation18 + $0x50] sm:$0xff]  }
 0x922   : > { %v2799_v12 = vmul.f32 %v2798_v11, %v2798_v11 }
 0x924   : > { %2800 = vadd.xlane.f32.xlu1 %v2799_v12  ;;  %v15438_v12 = vld [vmem:[#allocation18 + $0x10] sm:$0xff]  }
 0x9ad   : > { %v2801_v45 = vpop.xlane.xlu1 %2800 }
 0x9ae   : > { %v2802_v46 = vmul.f32 0.0078125, %v2801_v45 }
 0x9b0   : > { %v2803_v47 = vadd.f32 1e-05, %v2802_v46 }
 0x9b2   : > { %16072 = vrsqrt.f32 %v2803_v47 }
 0x9bf   : > { %v16073_v48 = vpop.eup %16072 }
 0x9c0   : > { %v2805_v50 = vmul.f32 %v16073_v48, %v2798_v11  ;;  %v15437_v11 = vld [vmem:[#allocation18 + $0xd0] sm:$0xff]  }
 0x9c2   : > { %v2812_v52 = vmul.f32 %v13080_v49, %v2805_v50 }
 0x9c4   : > { %v18152_v53 = vadd.f32 %v13081_v51, %v2812_v52 }
 0x9c6   : > { %v2853_v56 = vpack.c.bf16 %v18152_v53, %v18152_v53 }
 0x9c8   : > { %3068 = vmatmul.mubr.bf16.vlgmr.msra.gmra.mxu0 %v2853_v56  ;;  %3109 = vmatmul.mubr.bf16.vlgmr.msra.gmra.mxu1 %v2853_v56 }
 0x9c9   : > { %13774 = vmatpush3.bf16.msra.mxu0 %v15418_v54  ;;  %13796 = vmatpush3.bf16.msra.mxu1 %v15419_v55 }
 0x9ca   : > { %13775 = vmatprep.subr.bf16.mxu0 %v15420_v57  ;;  %13797 = vmatprep.subr.bf16.mxu1 %v15421_v58  ;;  %v13114_v57 = vld [vmem:[#allocation19] ss:$0 sm:$0xff] }
 0x9cd   : > { %13776 = vmatpush3.bf16.msra.mxu0 %v15422_v60  ;;  %13798 = vmatpush3.bf16.msra.mxu1 %v15423_v61 }
 0x9ce   : > { %13777 = vmatprep.subr.bf16.mxu0 %v15424_v62  ;;  %13799 = vmatprep.subr.bf16.mxu1 %v15425_v63 }
 0x9d1   : > { %13778 = vmatpush3.bf16.msra.mxu0 %v15426_v1  ;;  %13800 = vmatpush3.bf16.msra.mxu1 %v15427_v2 }
 0x9d2   : > { %13779 = vmatprep.subr.bf16.mxu0 %v15428_v3  ;;  %13801 = vmatprep.subr.bf16.mxu1 %v15429_v4 }
 0x9d5   : > { %13780 = vmatpush3.bf16.msra.mxu0 %v15430_v6  ;;  %13802 = vmatpush3.bf16.msra.mxu1 %v15431_v7 }
 0x9d6   : > { %13781 = vmatprep.subr.bf16.mxu0 %v15432_v8  ;;  %13803 = vmatprep.subr.bf16.mxu1 %v15433_v9  ;;  %v15448_v8 = vld [vmem:[#allocation6 + $0x168] ss:$12 sps:$4 sm:$0xff]   ;;  %v15450_v9 = vld [vmem:[#allocation6 + $0x16c] ss:$12 sps:$4 sm:$0xff]  }
 0x9d9   : > { %13782 = vmatpush3.bf16.msra.mxu0 %v15434_v5  ;;  %13804 = vmatpush3.bf16.msra.mxu1 %v15435_v35  ;;  %v15451_v5 = vld [vmem:[#allocation6 + $0x170] ss:$12 sps:$4 sm:$0xff]   ;;  %v15454_v35 = vld [vmem:[#allocation6 + $0x154] ss:$12 sps:$4 sm:$0xff]  }
 0x9da   : > { %13783 = vmatprep.subr.bf16.mxu0 %v15436_v10  ;;  %13805 = vmatprep.subr.bf16.mxu1 %v15437_v11  ;;  %v15455_v10 = vld [vmem:[#allocation6 + $0x158] ss:$12 sps:$4 sm:$0xff]   ;;  %v15452_v11 = vld [vmem:[#allocation6 + $0x150] ss:$12 sps:$4 sm:$0xff]  }
 0x9dd   : > { %13784 = vmatpush3.bf16.msra.mxu0 %v15438_v12  ;;  %13806 = vmatpush3.bf16.msra.mxu1 %v15439_v13 }
 0x9de   : > { %13785 = vmatprep.subr.bf16.mxu0 %v15440_v14  ;;  %13807 = vmatprep.subr.bf16.mxu1 %v15441_v15  ;;  %v15458_v15 = vld [vmem:[#allocation6 + $0x13c] ss:$12 sps:$4 sm:$0xff]  }
 0x9e1   : > { %13786 = vmatpush3.bf16.msra.mxu0 %v15442_v16  ;;  %13808 = vmatpush3.bf16.msra.mxu1 %v15443_v17  ;;  %v15456_v16 = vld [vmem:[#allocation6 + $0x138] ss:$12 sps:$4 sm:$0xff]   ;;  %v15459_v17 = vld [vmem:[#allocation6 + $0x140] ss:$12 sps:$4 sm:$0xff]  }
 0x9e2   : > { %13787 = vmatprep.subr.bf16.mxu0 %v15444_v18  ;;  %13809 = vmatprep.subr.bf16.mxu1 %v15445_v19  ;;  %v15460_v18 = vld [vmem:[#allocation6 + $0x120] ss:$12 sps:$4 sm:$0xff]   ;;  %v15462_v19 = vld [vmem:[#allocation6 + $0x124] ss:$12 sps:$4 sm:$0xff]  }
 0x9e5   : > { %13788 = vmatpush3.bf16.msra.mxu0 %v15446_v20  ;;  %13810 = vmatpush3.bf16.msra.mxu1 %v15447_v21  ;;  %v15463_v20 = vld [vmem:[#allocation6 + $0x128] ss:$12 sps:$4 sm:$0xff]   ;;  %v15466_v21 = vld [vmem:[#allocation6 + $0x10c] ss:$12 sps:$4 sm:$0xff]  }
 0x9e6   : > { %14334 = vmatprep.subr.bf16.mxu1 %v17388_v0  ;;  %3676 = vmatprep.subr.bf16.mxu0 %v15450_v9 }
 0xa88   : > { %v3069_v28 = vpop.f32.mrf.mxu0  ;;  %v3110_v30 = vpop.f32.mrf.mxu1 }
 0xa89   : > { %v3070_v31 = vadd.f32 %v3069_v28, %v2858_v24  ;;  %v3111_v32 = vadd.f32 %v3110_v30, %v2866_v25  ;;  %v15467_v24 = vld [vmem:[#allocation6 + $0x110] ss:$12 sps:$4 sm:$0xff]   ;;  %v15470_v25 = vld [vmem:[#allocation6 + $0xf4] ss:$12 sps:$4 sm:$0xff]   ;;  %v15472_v30 = vld [vmem:[#allocation6 + $0xd8] ss:$12 sps:$4 sm:$0xff]  }
 0xa8a   : > { %v3071_v33 = vpop.f32.mrf.mxu0  ;;  %v3112_v34 = vpop.f32.mrf.mxu1  ;;  %v15474_v28 = vld [vmem:[#allocation6 + $0xdc] ss:$12 sps:$4 sm:$0xff]  }
 0xa8b   : > { %v3072_v36 = vadd.f32 %v3071_v33, %v2862_v26  ;;  %v3113_v37 = vadd.f32 %v3112_v34, %v2870_v27  ;;  %v3117_v38 = vmax.f32 %v3070_v31, 0.0  ;;  %v3119_v42 = vmax.f32 %v3111_v32, 0.0  ;;  %v15468_v26 = vld [vmem:[#allocation6 + $0xf0] ss:$12 sps:$4 sm:$0xff]   ;;  %v15471_v27 = vld [vmem:[#allocation6 + $0xf8] ss:$12 sps:$4 sm:$0xff]  }
 0xa8c   : > { %v3073_v44 = vpop.f32.mrf.mxu0  ;;  %v3114_v45 = vpop.f32.mrf.mxu1  ;;  %v15475_v31 = vld [vmem:[#allocation6 + $0xe0] ss:$12 sps:$4 sm:$0xff]   ;;  %v15478_v32 = vld [vmem:[#allocation6 + $0xc4] ss:$12 sps:$4 sm:$0xff]   ;;  %v15479_v34 = vld [vmem:[#allocation6 + $0xc8] ss:$12 sps:$4 sm:$0xff]  }
 0xa8d   : > { %v3118_v46 = vmax.f32 %v3072_v36, 0.0  ;;  %v3120_v47 = vmax.f32 %v3113_v37, 0.0  ;;  %v3186_v52 = vpack.c.bf16 %v3117_v38, %v3117_v38  ;;  %v3188_v54 = vpack.c.bf16 %v3119_v42, %v3119_v42  ;;  %v15476_v33 = vld [vmem:[#allocation6 + $0xc0] ss:$12 sps:$4 sm:$0xff]   ;;  %v13147_v44 = vld [vmem:[#allocation21] ss:$0 sm:$0xff] }
 0xa8e   : > { %v3074_v48 = vpop.f32.mrf.mxu0  ;;  %v3115_v49 = vpop.f32.mrf.mxu1 }
 0xa8f   : > { %v3187_v50 = vpack.c.bf16 %v3118_v46, %v3118_v46  ;;  %v3189_v51 = vpack.c.bf16 %v3120_v47, %v3120_v47  ;;  %v13148_v46 = vld [vmem:[#allocation22] ss:$0 sm:$0xff] }
 0xa91   : > { %3420 = vmatprep.mubr.bf16.mxu0 %v3187_v50  ;;  %3460 = vmatprep.mubr.bf16.mxu1 %v3189_v51  ;;  %v3530_v50 = vld [vmem:[#allocation7 + $0x3] sm:$0x7] }
 0xa92   : > { %3421 = vmatmul.mubr.bf16.vlgmr.msra.gmra.mxu0 %v3186_v52  ;;  %3461 = vmatmul.mubr.bf16.vlgmr.msra.gmra.mxu1 %v3188_v54  ;;  %v3536_v51 = vrot.slane %v3530_v50, %v18065_v41  ;;  %v3544_v52 = vrot.slane %v3530_v50, %v18084_v59  ;;  %v3540_v54 = vrot.slane %v3530_v50, %v18068_v43 }
 0xa93   : > { %3708 = vmatprep.mubr.bf16.mxu0 %v17390_v29  ;;  %14350 = vmatprep.mubr.msk.bf16.mxu1 %vm17389_vm0, %v17388_v0 }
 0xa94   : > { %14335 = vmatpush3.bf16.msra.mxu1 %v15451_v5  ;;  %3677 = vmatpush1.bf16.msra.mxu0 %v15448_v8 }
 0xa95   : > { %14336 = vmatprep.subr.bf16.mxu1 %v17388_v0  ;;  %3678 = vmatprep.subr.bf16.mxu0 %v15454_v35 }
 0xa98   : > { %14337 = vmatpush3.bf16.msra.mxu1 %v15455_v10  ;;  %3679 = vmatpush1.bf16.msra.mxu0 %v15452_v11 }
 0xa99   : > { %14338 = vmatprep.subr.bf16.mxu1 %v17388_v0  ;;  %3680 = vmatprep.subr.bf16.mxu0 %v15458_v15 }
 0xa9c   : > { %3681 = vmatpush1.bf16.msra.mxu0 %v15456_v16  ;;  %14339 = vmatpush3.bf16.msra.mxu1 %v15459_v17 }
 0xa9d   : > { %14340 = vmatprep.subr.bf16.mxu1 %v17388_v0  ;;  %3682 = vmatprep.subr.bf16.mxu0 %v15462_v19 }
 0xaa0   : > { %3683 = vmatpush1.bf16.msra.mxu0 %v15460_v18  ;;  %14341 = vmatpush3.bf16.msra.mxu1 %v15463_v20 }
 0xaa1   : > { %3684 = vmatprep.subr.bf16.mxu0 %v15466_v21  ;;  %14342 = vmatprep.subr.bf16.mxu1 %v17388_v0 }
 0xaa4   : > { %3685 = vmatpush1.bf16.msra.mxu0 %v15464_v22  ;;  %14343 = vmatpush3.bf16.msra.mxu1 %v15467_v24 }
 0xaa5   : > { %3686 = vmatprep.subr.bf16.mxu0 %v15470_v25  ;;  %14344 = vmatprep.subr.bf16.mxu1 %v17388_v0 }
 0xaa8   : > { %3687 = vmatpush1.bf16.msra.mxu0 %v15468_v26  ;;  %14345 = vmatpush3.bf16.msra.mxu1 %v15471_v27 }
 0xaa9   : > { %3688 = vmatprep.subr.bf16.mxu0 %v15474_v28  ;;  %14346 = vmatprep.subr.bf16.mxu1 %v17388_v0 }
 0xaac   : > { %3689 = vmatpush1.bf16.msra.mxu0 %v15472_v30  ;;  %14347 = vmatpush3.bf16.msra.mxu1 %v15475_v31 }
 0xaad   : > { %3690 = vmatprep.subr.bf16.mxu0 %v15478_v32  ;;  %14348 = vmatprep.subr.bf16.mxu1 %v17388_v0 }
 0xab0   : > { %3691 = vmatpush1.bf16.msra.mxu0 %v15476_v33  ;;  %14349 = vmatpush3.bf16.msra.mxu1 %v15479_v34 }
 0xab1   : > { %14378 = vmatprep.subr.bf16.mxu1 %v17388_v0  ;;  %14354 = vmatprep.subr.bf16.mxu0 %v17388_v0 }
 0xb52   : > { %v13789_v55 = vpop.f32.mrf.mxu0  ;;  %v13811_v56 = vpop.f32.mrf.mxu1 }
 0xb54   : > { %v13790_v58 = vpop.f32.mrf.mxu0  ;;  %v13812_v60 = vpop.f32.mrf.mxu1 }
 0xb55   : > { %v13791_v61 = vadd.f32 %v13790_v58, %v13789_v55  ;;  %v13813_v2 = vadd.f32 %v13812_v60, %v13811_v56 }
 0xb56   : > { %v13792_v62 = vpop.f32.mrf.mxu0  ;;  %v13814_v63 = vpop.f32.mrf.mxu1 }
 0xb57   : > { %v3423_v1 = vadd.f32 %v13791_v61, %v13114_v57 }
 0xb58   : > { %v13793_v3 = vpop.f32.mrf.mxu0  ;;  %v13815_v4 = vpop.f32.mrf.mxu1 }
 0xb59   : > { %v3463_v6 = vadd.f32 %v13813_v2, %v3423_v1 }
 0xb5b   : > { %v3468_v7 = vadd.f32 %v3463_v6, %v18152_v53 }
 0xb5d   : > { %3471 = vadd.xlane.f32.xlu0 %v3468_v7 }
 0xbe6   : > { %v3472_v12 = vpop.xlane.xlu0 %3471 }
 0xbe7   : > { %v3473_v13 = vmul.f32 0.0078125, %v3472_v12 }
 0xbe9   : > { %v3474_v53 = vsub.f32 %v3468_v7, %v3473_v13 }
 0xbeb   : > { %v3475_v14 = vmul.f32 %v3474_v53, %v3474_v53 }
 0xbed   : > { %3476 = vadd.xlane.f32.xlu0 %v3475_v14 }
 0xc76   : > { %v3477_v36 = vpop.xlane.xlu0 %3476 }
 0xc77   : > { %v3478_v37 = vmul.f32 0.0078125, %v3477_v36 }
 0xc79   : > { %v3479_v38 = vadd.f32 1e-05, %v3478_v37 }
 0xc7b   : > { %16074 = vrsqrt.f32 %v3479_v38 }
 0xc88   : > { %v16075_v42 = vpop.eup %16074 }
 0xc89   : > { %v3481_v45 = vmul.f32 %v16075_v42, %v3474_v53 }
 0xc8b   : > { %v3488_v47 = vmul.f32 %v13147_v44, %v3481_v45 }
 0xc8d   : > { %v18177_v48 = vadd.f32 %v13148_v46, %v3488_v47 }
 0xc8f   : > { %v3531_v49 = vpack.c.bf16 %v18177_v48, %v18177_v48 }
 0xc91   : > { %3709 = vmatmul.mubr.bf16.vlgmr.msra.gmra.mxu0 %v3531_v49  ;;  %14351 = vmatmul.mubr.bf16.vlgmr.msra.gmra.mxu1 %v3531_v49 }
 0xc92   : > { %14356 = vmatprep.mubr.msk.bf16.mxu0 %vm17389_vm0, %v17388_v0  ;;  %14380 = vmatprep.mubr.msk.bf16.mxu1 %vm17389_vm0, %v17388_v0 }
 0xd51   : > { %v3710_v55 = vpop.f32.mrf.mxu0  ;;  %v3751_v56 = vpop.f32.mrf.mxu1 }
 0xd52   : > { %v3711_v57 = vadd.f32 %v3710_v55, %v3536_v51  ;;  %v3752_v58 = vadd.f32 %v3751_v56, %v3544_v52 }
 0xd53   : > { %v3712_v60 = vpop.f32.mrf.mxu0  ;;  %v14352_v61 = vpop.f32.mrf.mxu1 }
 0xd54   : > { %v3757_v62 = vpack.c.bf16 %v3711_v57, %v3711_v57  ;;  %v18188_v63 = vpack.c.bf16 %v3752_v58, %v3752_v58  ;;  %v3713_v1 = vadd.f32 %v3712_v60, %v3540_v54 }
 0xd55   : > { %v3714_v2 = vpop.f32.mrf.mxu0  ;;  %v3754_v3 = vpop.f32.mrf.mxu1 }
 0xd56   : > { %v3765_v4 = vpack.c.bf16 %v3713_v1, %v3713_v1  ;;  %3759 = vrot.lane.b32.xlu0 %v3757_v62, %s17391_s2  ;;  %v4021_v6 = vsel %vm1912_vm1, %v18188_v63, 0 }
 0xd57   : > { %v3715_v7 = vpop.f32.mrf.mxu0  ;;  %v14353_v8 = vpop.f32.mrf.mxu1  ;;  %14379 = vmatpush3.bf16.msra.mxu1 %v4021_v6 }
 0xd58   : > { %3767 = vrot.lane.b32.xlu1 %v3765_v4, %s17391_s2  ;;  %v3785_v9 = vsel %vm2241_vm3, %v3765_v4, 0  ;;  %14390 = vmatprep.subr.bf16.mxu1 %v17388_v0 }
 0xd59   : > { %14355 = vmatpush3.bf16.xpose.msra.mxu0 %v3785_v9 }
 0xd5a   : > { %3771 = vrot.lane.b32.xlu0 %v3765_v4, %s17392_s15  ;;  %14360 = vmatprep.subr.bf16.mxu0 %v17388_v0 }
 0xd5c   : > { %3769 = vrot.lane.b32.xlu1 %v3765_v4, %s17393_s26 }
 0xd60   : > { %3761 = vrot.lane.b32.xlu1 %v3757_v62, %s17393_s26  ;;  %14357 = vmatmul.mubr.msk.bf16.vlgmr.msra.gmra.mxu0 %vm2241_vm3, %v3757_v62 }
 0xd61   : > { %14362 = vmatprep.mubr.msk.bf16.mxu0 %vm17389_vm0, %v17388_v0 }
 0xd64   : > { %3763 = vrot.lane.b32.xlu1 %v3757_v62, %s17392_s15 }
 0xdc8   : > { %v3760_v11 = vpop.permute.xlu0 %3759 }
 0xdca   : > { %v3768_v5 = vpop.permute.xlu1 %3767 }
 0xdcb   : > { %v3831_v35 = vsel %vm2241_vm3, %v3768_v5, 0 }
 0xdcc   : > { %14361 = vmatpush3.bf16.xpose.msra.mxu0 %v3831_v35  ;;  %v3772_v13 = vpop.permute.xlu0 %3771 }
 0xdcd   : > { %14366 = vmatprep.subr.bf16.mxu0 %v17388_v0  ;;  %v3923_v14 = vsel %vm2241_vm3, %v3772_v13, 0 }
 0xdce   : > { %v3770_v10 = vpop.permute.xlu1 %3769 }
 0xdcf   : > { %v3877_v12 = vsel %vm2241_vm3, %v3770_v10, 0 }
 0xdd2   : > { %v3762_v53 = vpop.permute.xlu1 %3761 }
 0xdd3   : > { %14363 = vmatmul.mubr.msk.bf16.vlgmr.msra.gmra.mxu0 %vm2241_vm3, %v3760_v11 }
 0xdd4   : > { %14367 = vmatpush3.bf16.xpose.msra.mxu0 %v3877_v12  ;;  %14368 = vmatprep.mubr.msk.bf16.mxu0 %vm17389_vm0, %v17388_v0 }
 0xdd5   : > { %14372 = vmatprep.subr.bf16.mxu0 %v17388_v0 }
 0xdd6   : > { %v3764_v15 = vpop.permute.xlu1 %3763 }
 0xddb   : > { %14369 = vmatmul.mubr.msk.bf16.vlgmr.msra.gmra.mxu0 %vm2241_vm3, %v3762_v53 }
 0xddc   : > { %14373 = vmatpush3.bf16.xpose.msra.mxu0 %v3923_v14  ;;  %14374 = vmatprep.mubr.msk.bf16.mxu0 %vm17389_vm0, %v17388_v0 }
 0xddd   : > { %14384 = vmatprep.subr.bf16.mxu0 %v17388_v0 }
 0xde3   : > { %14375 = vmatmul.mubr.msk.bf16.vlgmr.msra.gmra.mxu0 %vm2241_vm3, %v3764_v15 }
 0xde4   : > { %14386 = vmatprep.mubr.msk.bf16.mxu0 %vm17389_vm0, %v17388_v0 }
 0xe20   : > { %v3821_v16 = vpop.f32.mrf.mxu0 }
 0xe21   : > { %v3965_v17 = vmul.f32 0.17677669, %v3821_v16 }
 0xe22   : > { %v14358_v18 = vpop.f32.mrf.mxu0 }
 0xe23   : > { %v3969_v19 = vsel %vm1908_vm2, %v3965_v17, -inf }
 0xe24   : > { %3970 = vmax.xlane.f32.xlu0 %v3969_v19  ;;  %v3824_v20 = vpop.f32.mrf.mxu0 }
 0xe26   : > { %v14359_v21 = vpop.f32.mrf.mxu0 }
 0xe93   : > { %v3867_v22 = vpop.f32.mrf.mxu0 }
 0xe94   : > { %v3966_v24 = vmul.f32 0.17677669, %v3867_v22 }
 0xe95   : > { %v14364_v25 = vpop.f32.mrf.mxu0 }
 0xe96   : > { %v3972_v26 = vsel %vm1908_vm2, %v3966_v24, -inf }
 0xe97   : > { %3973 = vmax.xlane.f32.xlu1 %v3972_v26  ;;  %v3870_v27 = vpop.f32.mrf.mxu0 }
 0xe99   : > { %v14365_v28 = vpop.f32.mrf.mxu0 }
 0xe9a   : > { %v15480_v28 = vld [vmem:[#allocation9 + $0x78] sm:$0xff]  }
 0xe9b   : > { %v3913_v30 = vpop.f32.mrf.mxu0 }
 0xe9c   : > { %v3967_v31 = vmul.f32 0.17677669, %v3913_v30 }
 0xe9d   : > { %v14370_v32 = vpop.f32.mrf.mxu0 }
 0xe9e   : > { %v3975_v33 = vsel %vm1908_vm2, %v3967_v31, -inf }
 0xe9f   : > { %3976 = vmax.xlane.f32.xlu0 %v3975_v33  ;;  %v3916_v34 = vpop.f32.mrf.mxu0 }
 0xea0   : > { %v15482_v34 = vld [vmem:[#allocation9 + $0x68] sm:$0xff]  }
 0xea1   : > { %v14371_v36 = vpop.f32.mrf.mxu0 }
 0xea3   : > { %v3959_v37 = vpop.f32.mrf.mxu0 }
 0xea4   : > { %v3968_v38 = vmul.f32 0.17677669, %v3959_v37  ;;  %v15483_v37 = vld [vmem:[#allocation9 + $0x60] sm:$0xff]  }
 0xea5   : > { %v14376_v42 = vpop.f32.mrf.mxu0 }
 0xea6   : > { %v3978_v44 = vsel %vm1908_vm2, %v3968_v38, -inf  ;;  %v15485_v42 = vld [vmem:[#allocation9 + $0x50] sm:$0xff]  }
 0xea7   : > { %3979 = vmax.xlane.f32.xlu0 %v3978_v44  ;;  %v3962_v45 = vpop.f32.mrf.mxu0  ;;  %v15486_v44 = vld [vmem:[#allocation9 + $0x48] sm:$0xff]  }
 0xea8   : > { %3775 = vrot.lane.b32.xlu1 %v18188_v63, %s17391_s2 }
 0xea9   : > { %v14377_v46 = vpop.f32.mrf.mxu0 }
 0xead   : > { %v3971_v47 = vpop.xlane.xlu0 %3970 }
 0xeae   : > { %v3981_v49 = vsub.f32 %v3965_v17, %v3971_v47  ;;  %v15487_v47 = vld [vmem:[#allocation9 + $0x40] sm:$0xff]  }
 0xeb0   : > { %v3985_v50 = vmul.f32 1.442695, %v3981_v49 }
 0xeb2   : > { %16076 = vpow2.f32 %v3985_v50 }
 0xebf   : > { %v16077_v51 = vpop.eup %16076 }
 0xec0   : > { %v3993_v52 = vsel %vm1908_vm2, %v16077_v51, 0.0 }
 0xecc   : > { %3994 = vadd.xlane.f32.xlu1 %v3993_v52 }
 0xf20   : > { %v3974_v54 = vpop.xlane.xlu1 %3973 }
 0xf21   : > { %v3982_v55 = vsub.f32 %v3966_v24, %v3974_v54 }
 0xf23   : > { %v3987_v56 = vmul.f32 1.442695, %v3982_v55 }
 0xf24   : > { %v3776_v57 = vpop.permute.xlu1 %3775 }
 0xf25   : > { %16078 = vpow2.f32 %v3987_v56  ;;  %v4067_v58 = vsel %vm1912_vm1, %v3776_v57, 0 }
 0xf26   : > { %14385 = vmatpush3.bf16.msra.mxu0 %v4067_v58 }
 0xf27   : > { %14396 = vmatprep.subr.bf16.mxu0 %v17388_v0 }
 0xf28   : > { %v3977_v60 = vpop.xlane.xlu0 %3976 }
 0xf29   : > { %v3983_v61 = vsub.f32 %v3967_v31, %v3977_v60  ;;  %v15481_v31 = vld [vmem:[#allocation9 + $0x70] sm:$0xff]  }
 0xf2b   : > { %v3989_v62 = vmul.f32 1.442695, %v3983_v61 }
 0xf2d   : > { %16080 = vpow2.f32 %v3989_v62 }
 0xf30   : > { %v3980_v1 = vpop.xlane.xlu0 %3979 }
 0xf31   : > { %v3984_v2 = vsub.f32 %v3968_v38, %v3980_v1  ;;  %v15484_v38 = vld [vmem:[#allocation9 + $0x58] sm:$0xff]  }
 0xf32   : > { %v16079_v3 = vpop.eup %16078 }
 0xf33   : > { %v3991_v4 = vmul.f32 1.442695, %v3984_v2  ;;  %v3996_v6 = vsel %vm1908_vm2, %v16079_v3, 0.0 }
 0xf34   : > { %3997 = vadd.xlane.f32.xlu0 %v3996_v6 }
 0xf35   : > { %16082 = vpow2.f32 %v3991_v4 }
 0xf3a   : > { %v16081_v7 = vpop.eup %16080 }
 0xf3b   : > { %v3999_v8 = vsel %vm1908_vm2, %v16081_v7, 0.0 }
 0xf3c   : > { %4000 = vadd.xlane.f32.xlu1 %v3999_v8 }
 0xf42   : > { %v16083_v9 = vpop.eup %16082 }
 0xf43   : > { %v4002_v5 = vsel %vm1908_vm2, %v16083_v9, 0.0 }
 0xf44   : > { %4003 = vadd.xlane.f32.xlu0 %v4002_v5 }
 0xf4d   : > { %3779 = vrot.lane.b32.xlu1 %v18188_v63, %s17392_s15 }
 0xf55   : > { %v3995_v35 = vpop.xlane.xlu1 %3994 }
 0xf56   : > { %16084 = vrcp.f32 %v3995_v35 }
 0xf5a   : > { %3777 = vrot.lane.b32.xlu0 %v18188_v63, %s17393_s26 }
 0xf63   : > { %v16085_v10 = vpop.eup %16084 }
 0xf64   : > { %v4009_v11 = vmul.f32 %v16085_v10, %v16077_v51 }
 0xf66   : > { %v4013_v12 = vpack.c.bf16 %v4009_v11, %v4009_v11 }
 0xf68   : > { %14381 = vmatmul.mubr.msk.bf16.vlgmr.msra.gmra.mxu1 %vm1908_vm2, %v4013_v12  ;;  %v15488_v12 = vld [vmem:[#allocation15 + $0x1e0] ss:$16 sps:$4 sm:$0xff]  }
 0xf69   : > { %14392 = vmatprep.mubr.msk.bf16.mxu1 %vm17389_vm0, %v17388_v0 }
 0xfbd   : > { %v3998_v13 = vpop.xlane.xlu0 %3997 }
 0xfbe   : > { %16086 = vrcp.f32 %v3998_v13  ;;  %v15490_v13 = vld [vmem:[#allocation15 + $0x1e4] ss:$16 sps:$4 sm:$0xff]  }
 0xfc5   : > { %v4001_v53 = vpop.xlane.xlu1 %4000 }
 0xfc6   : > { %16088 = vrcp.f32 %v4001_v53  ;;  %v15491_v53 = vld [vmem:[#allocation15 + $0x1e8] ss:$16 sps:$4 sm:$0xff]  }
 0xfc9   : > { %v3780_v16 = vpop.permute.xlu1 %3779 }
 0xfca   : > { %v4159_v63 = vsel %vm1912_vm1, %v3780_v16, 0  ;;  %v15499_v16 = vld [vmem:[#allocation15 + $0x1cc] ss:$16 sps:$4 sm:$0xff]  }
 0xfcb   : > { %v16087_v14 = vpop.eup %16086 }
 0xfcc   : > { %v4010_v15 = vmul.f32 %v16087_v14, %v16079_v3  ;;  %v15493_v14 = vld [vmem:[#allocation15 + $0x1ec] ss:$16 sps:$4 sm:$0xff]  }
 0xfcd   : > { %v4004_v17 = vpop.xlane.xlu0 %4003 }
 0xfce   : > { %16090 = vrcp.f32 %v4004_v17  ;;  %v4014_v18 = vpack.c.bf16 %v4010_v15, %v4010_v15  ;;  %v15496_v15 = vld [vmem:[#allocation15 + $0x1c4] ss:$16 sps:$4 sm:$0xff]   ;;  %v15494_v17 = vld [vmem:[#allocation15 + $0x1c0] ss:$16 sps:$4 sm:$0xff]  }
 0xfd0   : > { %14387 = vmatmul.mubr.msk.bf16.vlgmr.msra.gmra.mxu0 %vm1908_vm2, %v4014_v18  ;;  %v15497_v18 = vld [vmem:[#allocation15 + $0x1c8] ss:$16 sps:$4 sm:$0xff]  }
 0xfd1   : > { %14397 = vmatpush3.bf16.msra.mxu0 %v4159_v63  ;;  %v3778_v19 = vpop.permute.xlu0 %3777  ;;  %14398 = vmatprep.mubr.msk.bf16.mxu0 %vm17389_vm0, %v17388_v0 }
 0xfd2   : > { %v4113_v20 = vsel %vm1912_vm1, %v3778_v19, 0  ;;  %4577 = vmatprep.subr.bf16.mxu0 %v15490_v13  ;;  %v15547_v13 = vld [vmem:[#allocation18 + $0x1a8] sm:$0xff]  }
 0xfd3   : > { %v16089_v21 = vpop.eup %16088  ;;  %14391 = vmatpush3.bf16.msra.mxu1 %v4113_v20 }
 0xfd4   : > { %v4011_v22 = vmul.f32 %v16089_v21, %v16081_v7  ;;  %14402 = vmatprep.subr.bf16.mxu1 %v17388_v0  ;;  %v13181_v7 = vld [vmem:[#allocation10 + $0x1] ss:$0 sm:$0xff]  ;;  %v15502_v21 = vld [vmem:[#allocation15 + $0x1a4] ss:$16 sps:$4 sm:$0xff]  }
 0xfd6   : > { %v4015_v24 = vpack.c.bf16 %v4011_v22, %v4011_v22  ;;  %v15505_v22 = vld [vmem:[#allocation15 + $0x1ac] ss:$16 sps:$4 sm:$0xff]  }
 0xfd8   : > { %14393 = vmatmul.mubr.msk.bf16.vlgmr.msra.gmra.mxu1 %vm1908_vm2, %v4015_v24  ;;  %v15500_v24 = vld [vmem:[#allocation15 + $0x1a0] ss:$16 sps:$4 sm:$0xff]  }
 0xfd9   : > { %14418 = vmatprep.mubr.msk.bf16.mxu1 %vm17389_vm0, %v17388_v0  ;;  %14403 = vmatpush3.bf16.msra.mxu1 %v15480_v28  ;;  %v15509_v28 = vld [vmem:[#allocation15 + $0x188] ss:$16 sps:$4 sm:$0xff]  }
 0xfda   : > { %14404 = vmatprep.subr.bf16.mxu1 %v17388_v0 }
 0xfdb   : > { %v16091_v25 = vpop.eup %16090 }
 0xfdc   : > { %v4012_v26 = vmul.f32 %v16091_v25, %v16083_v9  ;;  %v15503_v25 = vld [vmem:[#allocation15 + $0x1a8] ss:$16 sps:$4 sm:$0xff]  }
 0xfdd   : > { %14405 = vmatpush3.bf16.msra.mxu1 %v15481_v31  ;;  %v15514_v31 = vld [vmem:[#allocation15 + $0x164] ss:$16 sps:$4 sm:$0xff]  }
 0xfde   : > { %v4016_v27 = vpack.c.bf16 %v4012_v26, %v4012_v26  ;;  %14406 = vmatprep.subr.bf16.mxu1 %v17388_v0  ;;  %v15506_v26 = vld [vmem:[#allocation15 + $0x180] ss:$16 sps:$4 sm:$0xff]  }
 0xfe0   : > { %14399 = vmatmul.mubr.msk.bf16.vlgmr.msra.gmra.mxu0 %vm1908_vm2, %v4016_v27  ;;  %v15508_v27 = vld [vmem:[#allocation15 + $0x184] ss:$16 sps:$4 sm:$0xff]  }
 0xfe1   : > { %4609 = vmatprep.mubr.bf16.mxu0 %v17390_v29  ;;  %14407 = vmatpush3.bf16.msra.mxu1 %v15482_v34  ;;  %v15515_v34 = vld [vmem:[#allocation15 + $0x168] ss:$16 sps:$4 sm:$0xff]  }
 0xfe2   : > { %14408 = vmatprep.subr.bf16.mxu1 %v17388_v0  ;;  %4578 = vmatpush1.bf16.msra.mxu0 %v15488_v12  ;;  %v15545_v12 = vld [vmem:[#allocation18 + $0x128] sm:$0xff]  }
 0xfe3   : > { %4579 = vmatprep.subr.bf16.mxu0 %v15496_v15  ;;  %v15549_v15 = vld [vmem:[#allocation18 + $0x120] sm:$0xff]  }
 0xfe5   : > { %14409 = vmatpush3.bf16.msra.mxu1 %v15483_v37  ;;  %v15523_v37 = vld [vmem:[#allocation15 + $0x14c] ss:$16 sps:$4 sm:$0xff]  }
 0xfe6   : > { %14410 = vmatprep.subr.bf16.mxu1 %v17388_v0  ;;  %4580 = vmatpush1.bf16.msra.mxu0 %v15494_v17  ;;  %v15552_v17 = vld [vmem:[#allocation18 + $0x158] sm:$0xff]  }
 0xfe7   : > { %4581 = vmatprep.subr.bf16.mxu0 %v15502_v21  ;;  %v15557_v21 = vld [vmem:[#allocation18 + $0x110] sm:$0xff]  }
 0xfe9   : > { %14411 = vmatpush3.bf16.msra.mxu1 %v15484_v38  ;;  %v15518_v38 = vld [vmem:[#allocation15 + $0x140] ss:$16 sps:$4 sm:$0xff]  }
 0xfea   : > { %14412 = vmatprep.subr.bf16.mxu1 %v17388_v0  ;;  %4582 = vmatpush1.bf16.msra.mxu0 %v15500_v24  ;;  %v15560_v24 = vld [vmem:[#allocation18 + $0x148] sm:$0xff]  }
 0xfeb   : > { %4583 = vmatprep.subr.bf16.mxu0 %v15508_v27  ;;  %v15563_v27 = vld [vmem:[#allocation18 + $0x188] sm:$0xff]  }
 0xfed   : > { %14413 = vmatpush3.bf16.msra.mxu1 %v15485_v42  ;;  %v15521_v42 = vld [vmem:[#allocation15 + $0x148] ss:$16 sps:$4 sm:$0xff]  }
 0xfee   : > { %14414 = vmatprep.subr.bf16.mxu1 %v17388_v0  ;;  %4584 = vmatpush1.bf16.msra.mxu0 %v15506_v26  ;;  %v15562_v26 = vld [vmem:[#allocation18 + $0x1c8] sm:$0xff]  }
 0xfef   : > { %4585 = vmatprep.subr.bf16.mxu0 %v15514_v31  ;;  %v15566_v31 = vld [vmem:[#allocation18 + $0x1c0] sm:$0xff]  }
 0xff1   : > { %14415 = vmatpush3.bf16.msra.mxu1 %v15486_v44  ;;  %v15526_v44 = vld [vmem:[#allocation15 + $0x124] ss:$16 sps:$4 sm:$0xff]  }
 0xff2   : > { %14416 = vmatprep.subr.bf16.mxu1 %v17388_v0 }
 0xff5   : > { %14417 = vmatpush3.bf16.msra.mxu1 %v15487_v47  ;;  %v15527_v47 = vld [vmem:[#allocation15 + $0x128] ss:$16 sps:$4 sm:$0xff]  }
 0xff6   : > { %4618 = vmatprep.subr.bf16.mxu1 %v15493_v14  ;;  %v15550_v14 = vld [vmem:[#allocation18 + $0x1e0] sm:$0xff]  }
0x1028   : > { %v4057_v30 = vpop.f32.mrf.mxu1 }
0x102a   : > { %v14382_v32 = vpop.f32.mrf.mxu1 }
0x102b   : > { %v15517_v32 = vld [vmem:[#allocation15 + $0x16c] ss:$16 sps:$4 sm:$0xff]  }
0x102c   : > { %v4060_v33 = vpop.f32.mrf.mxu1 }
0x102d   : > { %v15512_v33 = vld [vmem:[#allocation15 + $0x160] ss:$16 sps:$4 sm:$0xff]  }
0x102e   : > { %v14383_v36 = vpop.f32.mrf.mxu1  ;;  %4586 = vmatpush1.bf16.msra.mxu0 %v15512_v33  ;;  %v15570_v33 = vld [vmem:[#allocation28 + $0xac] ss:$12 sps:$4 sm:$0xff]  }
0x102f   : > { %v15520_v36 = vld [vmem:[#allocation15 + $0x144] ss:$16 sps:$4 sm:$0xff]  }
0x1030   : > { %4587 = vmatprep.subr.bf16.mxu0 %v15520_v36 }
0x1032   : > { %4588 = vmatpush1.bf16.msra.mxu0 %v15518_v38 }
0x1033   : > { %4589 = vmatprep.subr.bf16.mxu0 %v15526_v44 }
0x1090   : > { %v4103_v45 = vpop.f32.mrf.mxu0 }
0x1091   : > { %4202 = vrot.lane.b32.xlu1 %v4103_v45, %s17392_s15  ;;  %v15529_v45 = vld [vmem:[#allocation15 + $0x12c] ss:$16 sps:$4 sm:$0xff]  }
0x1092   : > { %v14388_v46 = vpop.f32.mrf.mxu0 }
0x1093   : > { %v15524_v46 = vld [vmem:[#allocation15 + $0x120] ss:$16 sps:$4 sm:$0xff]  }
0x1094   : > { %v4106_v49 = vpop.f32.mrf.mxu0  ;;  %4590 = vmatpush1.bf16.msra.mxu0 %v15524_v46 }
0x1095   : > { %v15532_v49 = vld [vmem:[#allocation15 + $0x104] ss:$16 sps:$4 sm:$0xff]  }
0x1096   : > { %v14389_v50 = vpop.f32.mrf.mxu0  ;;  %4591 = vmatprep.subr.bf16.mxu0 %v15532_v49 }
0x1097   : > { %v15535_v50 = vld [vmem:[#allocation15 + $0x10c] ss:$16 sps:$4 sm:$0xff]  }
0x1098   : > { %v4149_v51 = vpop.f32.mrf.mxu1 }
0x1099   : > { %4206 = vrot.lane.b32.xlu0 %v4149_v51, %s17393_s26  ;;  %v15530_v51 = vld [vmem:[#allocation15 + $0x100] ss:$16 sps:$4 sm:$0xff]  }
0x109a   : > { %v14394_v52 = vpop.f32.mrf.mxu1  ;;  %4592 = vmatpush1.bf16.msra.mxu0 %v15530_v51 }
0x109b   : > { %v15533_v52 = vld [vmem:[#allocation15 + $0x108] ss:$16 sps:$4 sm:$0xff]  }
0x109c   : > { %v4152_v54 = vpop.f32.mrf.mxu1 }
0x109d   : > { %v15536_v54 = vld [vmem:[#allocation18 + $0x178] sm:$0xff]  }
0x109e   : > { %v14395_v55 = vpop.f32.mrf.mxu1  ;;  %13851 = vmatprep.subr.bf16.mxu0 %v15536_v54 }
0x109f   : > { %v15538_v55 = vld [vmem:[#allocation18 + $0x1f8] sm:$0xff]  }
0x10a0   : > { %v4195_v56 = vpop.f32.mrf.mxu0 }
0x10a1   : > { %4210 = vrot.lane.b32.xlu1 %v4195_v56, %s17391_s2 }
0x10a2   : > { %v14400_v57 = vpop.f32.mrf.mxu0 }
0x10a4   : > { %v4198_v58 = vpop.f32.mrf.mxu0 }
0x10a6   : > { %v14401_v60 = vpop.f32.mrf.mxu0 }
0x1103   : > { %v4203_v61 = vpop.permute.xlu1 %4202 }
0x1104   : > { %v4213_v1 = vsel %vm2241_vm3, %v4057_v30, %v4203_v61  ;;  %v15511_v30 = vld [vmem:[#allocation15 + $0x18c] ss:$16 sps:$4 sm:$0xff]  }
0x1105   : > { %v13190_v61 = vld [vmem:[#allocation12 + $0x1] ss:$0 sm:$0xff] }
0x110b   : > { %v4207_v62 = vpop.permute.xlu0 %4206 }
0x110c   : > { %v4214_v2 = vsel %vm2675_vm4, %v4213_v1, %v4207_v62  ;;  %v13191_v1 = vld [vmem:[#allocation13 + $0x1] ss:$0 sm:$0xff] }
0x1113   : > { %v4211_v3 = vpop.permute.xlu1 %4210 }
0x1114   : > { %v4215_v4 = vsel %vm2677_vm5, %v4214_v2, %v4211_v3 }
0x1115   : > { %v4235_v6 = vpack.c.bf16 %v4215_v4, %v4215_v4  ;;  %v15537_v4 = vld [vmem:[#allocation18 + $0x138] sm:$0xff]  }
0x1117   : > { %14419 = vmatmul.mubr.bf16.vlgmr.msra.gmra.mxu1 %v4235_v6  ;;  %v15539_v6 = vld [vmem:[#allocation18 + $0x1b8] sm:$0xff]  }
0x1118   : > { %4650 = vmatprep.mubr.bf16.mxu1 %v17390_v29  ;;  %4619 = vmatpush1.bf16.msra.mxu1 %v15491_v53  ;;  %v15548_v53 = vld [vmem:[#allocation18 + $0x160] sm:$0xff]  }
0x1119   : > { %4620 = vmatprep.subr.bf16.mxu1 %v15499_v16  ;;  %v15551_v16 = vld [vmem:[#allocation18 + $0x1a0] sm:$0xff]  }
0x111c   : > { %4621 = vmatpush1.bf16.msra.mxu1 %v15497_v18  ;;  %v15554_v18 = vld [vmem:[#allocation18 + $0x1d8] sm:$0xff]  }
0x111d   : > { %4622 = vmatprep.subr.bf16.mxu1 %v15505_v22  ;;  %v15559_v22 = vld [vmem:[#allocation18 + $0x190] sm:$0xff]  }
0x1120   : > { %4623 = vmatpush1.bf16.msra.mxu1 %v15503_v25  ;;  %v15561_v25 = vld [vmem:[#allocation18 + $0x108] sm:$0xff]  }
0x1121   : > { %4624 = vmatprep.subr.bf16.mxu1 %v15511_v30  ;;  %v15565_v30 = vld [vmem:[#allocation18 + $0x100] sm:$0xff]  }
0x1124   : > { %4625 = vmatpush1.bf16.msra.mxu1 %v15509_v28  ;;  %v15564_v28 = vld [vmem:[#allocation18 + $0x140] sm:$0xff]  }
0x1125   : > { %4626 = vmatprep.subr.bf16.mxu1 %v15517_v32  ;;  %v15567_v32 = vld [vmem:[#allocation18 + $0x180] sm:$0xff]  }
0x1128   : > { %4627 = vmatpush1.bf16.msra.mxu1 %v15515_v34  ;;  %v4394_v34 = vld [vmem:[#allocation16 + $0x4] sm:$0xf] }
0x1129   : > { %4628 = vmatprep.subr.bf16.mxu1 %v15523_v37  ;;  %v4400_v36 = vrot.slane %v4394_v34, %v18065_v41  ;;  %v4408_v37 = vrot.slane %v4394_v34, %v18084_v59  ;;  %v4404_v38 = vrot.slane %v4394_v34, %v18068_v43 }
0x112c   : > { %4629 = vmatpush1.bf16.msra.mxu1 %v15521_v42  ;;  %v4412_v42 = vrot.slane %v4394_v34, %v18158_v23 }
0x112d   : > { %4630 = vmatprep.subr.bf16.mxu1 %v15529_v45 }
0x1130   : > { %4631 = vmatpush1.bf16.msra.mxu1 %v15527_v47 }
0x1131   : > { %4632 = vmatprep.subr.bf16.mxu1 %v15535_v50 }
0x1134   : > { %4633 = vmatpush1.bf16.msra.mxu1 %v15533_v52 }
0x1135   : > { %13873 = vmatprep.subr.bf16.mxu1 %v15538_v55 }
0x11d7   : > { %v4324_v8 = vpop.f32.mrf.mxu1 }
0x11d8   : > { %v4325_v9 = vadd.f32 %v13181_v7, %v4324_v8  ;;  %v15540_v8 = vld [vmem:[#allocation18 + $0x170] sm:$0xff]  }
0x11d9   : > { %v14420_v5 = vpop.f32.mrf.mxu1 }
0x11da   : > { %v4330_v35 = vadd.f32 %v4325_v9, %v18177_v48  ;;  %v15542_v9 = vld [vmem:[#allocation18 + $0x1f0] sm:$0xff]  }
0x11db   : > { %v4327_v10 = vpop.f32.mrf.mxu1  ;;  %v15541_v5 = vld [vmem:[#allocation18 + $0x130] sm:$0xff]  }
0x11dc   : > { %4335 = vadd.xlane.f32.xlu0 %v4330_v35  ;;  %v15544_v10 = vld [vmem:[#allocation18 + $0x168] sm:$0xff]  }
0x11dd   : > { %v14421_v11 = vpop.f32.mrf.mxu1 }
0x11de   : > { %v15546_v11 = vld [vmem:[#allocation18 + $0x1e8] sm:$0xff]  }
0x1265   : > { %v4336_v48 = vpop.xlane.xlu0 %4335 }
0x1266   : > { %v4337_v63 = vmul.f32 0.0078125, %v4336_v48  ;;  %v15553_v48 = vld [vmem:[#allocation18 + $0x118] sm:$0xff]  }
0x1268   : > { %v4338_v19 = vsub.f32 %v4330_v35, %v4337_v63  ;;  %v15543_v35 = vld [vmem:[#allocation18 + $0x1b0] sm:$0xff]   ;;  %v15555_v63 = vld [vmem:[#allocation18 + $0x198] sm:$0xff]  }
0x126a   : > { %v4339_v20 = vmul.f32 %v4338_v19, %v4338_v19 }
0x126c   : > { %4340 = vadd.xlane.f32.xlu1 %v4339_v20  ;;  %v15558_v20 = vld [vmem:[#allocation18 + $0x1d0] sm:$0xff]  }
0x12f5   : > { %v4341_v56 = vpop.xlane.xlu1 %4340 }
0x12f6   : > { %v4342_v57 = vmul.f32 0.0078125, %v4341_v56 }
0x12f8   : > { %v4343_v58 = vadd.f32 1e-05, %v4342_v57 }
0x12fa   : > { %16092 = vrsqrt.f32 %v4343_v58 }
0x1307   : > { %v16093_v60 = vpop.eup %16092 }
0x1308   : > { %v4345_v62 = vmul.f32 %v16093_v60, %v4338_v19  ;;  %v15556_v19 = vld [vmem:[#allocation18 + $0x150] sm:$0xff]  }
0x130a   : > { %v4352_v2 = vmul.f32 %v13190_v61, %v4345_v62 }
0x130c   : > { %v18264_v3 = vadd.f32 %v13191_v1, %v4352_v2 }
0x130e   : > { %v4395_v7 = vpack.c.bf16 %v18264_v3, %v18264_v3 }
0x1310   : > { %4610 = vmatmul.mubr.bf16.vlgmr.msra.gmra.mxu0 %v4395_v7  ;;  %4651 = vmatmul.mubr.bf16.vlgmr.msra.gmra.mxu1 %v4395_v7 }
0x1311   : > { %13852 = vmatpush3.bf16.msra.mxu0 %v15537_v4  ;;  %13874 = vmatpush3.bf16.msra.mxu1 %v15539_v6  ;;  %v15568_v4 = vld [vmem:[#allocation28 + $0xa8] ss:$12 sps:$4 sm:$0xff]  }
0x1312   : > { %13853 = vmatprep.subr.bf16.mxu0 %v15540_v8  ;;  %13875 = vmatprep.subr.bf16.mxu1 %v15542_v9  ;;  %v15573_v8 = vld [vmem:[#allocation28 + $0x94] ss:$12 sps:$4 sm:$0xff]   ;;  %v15571_v9 = vld [vmem:[#allocation28 + $0x90] ss:$12 sps:$4 sm:$0xff]  }
0x1315   : > { %13854 = vmatpush3.bf16.msra.mxu0 %v15541_v5  ;;  %13876 = vmatpush3.bf16.msra.mxu1 %v15543_v35  ;;  %v15576_v5 = vld [vmem:[#allocation28 + $0x7c] ss:$12 sps:$4 sm:$0xff]   ;;  %v15574_v35 = vld [vmem:[#allocation28 + $0x78] ss:$12 sps:$4 sm:$0xff]  }
0x1316   : > { %13855 = vmatprep.subr.bf16.mxu0 %v15544_v10  ;;  %13877 = vmatprep.subr.bf16.mxu1 %v15546_v11  ;;  %v15579_v10 = vld [vmem:[#allocation28 + $0x64] ss:$12 sps:$4 sm:$0xff]   ;;  %v15577_v11 = vld [vmem:[#allocation28 + $0x60] ss:$12 sps:$4 sm:$0xff]  }
0x1319   : > { %13856 = vmatpush3.bf16.msra.mxu0 %v15545_v12  ;;  %13878 = vmatpush3.bf16.msra.mxu1 %v15547_v13  ;;  %v15582_v12 = vld [vmem:[#allocation28 + $0x4c] ss:$12 sps:$4 sm:$0xff]   ;;  %v15580_v13 = vld [vmem:[#allocation28 + $0x48] ss:$12 sps:$4 sm:$0xff]  }
0x131a   : > { %13857 = vmatprep.subr.bf16.mxu0 %v15548_v53  ;;  %13879 = vmatprep.subr.bf16.mxu1 %v15550_v14  ;;  %v15585_v53 = vld [vmem:[#allocation28 + $0x34] ss:$12 sps:$4 sm:$0xff]   ;;  %v15583_v14 = vld [vmem:[#allocation28 + $0x30] ss:$12 sps:$4 sm:$0xff]  }
0x131d   : > { %13858 = vmatpush3.bf16.msra.mxu0 %v15549_v15  ;;  %13880 = vmatpush3.bf16.msra.mxu1 %v15551_v16  ;;  %v15588_v15 = vld [vmem:[#allocation28 + $0x1c] ss:$12 sps:$4 sm:$0xff]   ;;  %v15586_v16 = vld [vmem:[#allocation28 + $0x18] ss:$12 sps:$4 sm:$0xff]  }
0x131e   : > { %13859 = vmatprep.subr.bf16.mxu0 %v15552_v17  ;;  %13881 = vmatprep.subr.bf16.mxu1 %v15554_v18  ;;  %v13261_v17 = vld [vmem:[#allocation27] ss:$0 sm:$0xff] }
0x131f   : > { %v5070_v18 = vld [vmem:[%s19039_s9] sm:$0xff] }
0x1321   : > { %13860 = vmatpush3.bf16.msra.mxu0 %v15553_v48  ;;  %13882 = vmatpush3.bf16.msra.mxu1 %v15555_v63  ;;  %v15591_v48 = vld [vmem:[#allocation28 + $0x4] ss:$12 sps:$4 sm:$0xff]   ;;  %v18277_v63 = vadd.f32 %v13261_v17, %v5070_v18 }
0x1322   : > { %13861 = vmatprep.subr.bf16.mxu0 %v15556_v19  ;;  %13883 = vmatprep.subr.bf16.mxu1 %v15558_v20  ;;  %v15589_v19 = vld [vmem:[#allocation28] ss:$12 sps:$4 sm:$0xff]  }
0x1323   : > { %v18281_v20 = vpack.c.bf16 %v18277_v63, %v18277_v63 }
0x1325   : > { %13862 = vmatpush3.bf16.msra.mxu0 %v15557_v21  ;;  %13884 = vmatpush3.bf16.msra.mxu1 %v15559_v22  ;;  %v15592_v21 = vld [vmem:[#allocation28 + $0xb0] ss:$12 sps:$4 sm:$0xff]  }
0x1326   : > { %13863 = vmatprep.subr.bf16.mxu0 %v15560_v24  ;;  %13885 = vmatprep.subr.bf16.mxu1 %v15562_v26 }
0x1329   : > { %13864 = vmatpush3.bf16.msra.mxu0 %v15561_v25  ;;  %13886 = vmatpush3.bf16.msra.mxu1 %v15563_v27  ;;  %v13224_v25 = vld [vmem:[#allocation19 + $0x1] ss:$0 sm:$0xff] }
0x132a   : > { %13865 = vmatprep.subr.bf16.mxu0 %v15564_v28  ;;  %13887 = vmatprep.subr.bf16.mxu1 %v15566_v31 }
0x132d   : > { %13866 = vmatpush3.bf16.msra.mxu0 %v15565_v30  ;;  %13888 = vmatpush3.bf16.msra.mxu1 %v15567_v32 }
0x132e   : > { %14422 = vmatprep.subr.bf16.mxu1 %v17388_v0  ;;  %5262 = vmatprep.subr.bf16.mxu0 %v15570_v33 }
0x13d0   : > { %v4611_v44 = vpop.f32.mrf.mxu0  ;;  %v4652_v45 = vpop.f32.mrf.mxu1 }
0x13d1   : > { %v4612_v46 = vadd.f32 %v4611_v44, %v4400_v36  ;;  %v4653_v47 = vadd.f32 %v4652_v45, %v4408_v37  ;;  %v15594_v44 = vld [vmem:[#allocation28 + $0x80] ss:$12 sps:$4 sm:$0xff]  }
0x13d2   : > { %v4613_v49 = vpop.f32.mrf.mxu0  ;;  %v4654_v50 = vpop.f32.mrf.mxu1 }
0x13d3   : > { %v4614_v51 = vadd.f32 %v4613_v49, %v4404_v38  ;;  %v4655_v52 = vadd.f32 %v4654_v50, %v4412_v42  ;;  %v4659_v54 = vmax.f32 %v4612_v46, 0.0  ;;  %v4661_v55 = vmax.f32 %v4653_v47, 0.0  ;;  %v15593_v38 = vld [vmem:[#allocation28 + $0x98] ss:$12 sps:$4 sm:$0xff]   ;;  %v18290_v42 = vld [vmem:[#allocation30] sm:$0x7] }
0x13d4   : > { %v4615_v56 = vpop.f32.mrf.mxu0  ;;  %v4656_v57 = vpop.f32.mrf.mxu1  ;;  %v5122_v45 = vrot.slane %v18290_v42, %v18065_v41  ;;  %v5126_v46 = vrot.slane %v18290_v42, %v18068_v43  ;;  %v15595_v47 = vld [vmem:[#allocation28 + $0x68] ss:$12 sps:$4 sm:$0xff]  }
0x13d5   : > { %v4660_v58 = vmax.f32 %v4614_v51, 0.0  ;;  %v4662_v60 = vmax.f32 %v4655_v52, 0.0  ;;  %v4730_v6 = vpack.c.bf16 %v4659_v54, %v4659_v54  ;;  %v4732_v7 = vpack.c.bf16 %v4661_v55, %v4661_v55  ;;  %v15596_v55 = vld [vmem:[#allocation28 + $0x50] ss:$12 sps:$4 sm:$0xff]  }
0x13d6   : > { %v4616_v61 = vpop.f32.mrf.mxu0  ;;  %v4657_v62 = vpop.f32.mrf.mxu1 }
0x13d7   : > { %v4731_v1 = vpack.c.bf16 %v4660_v58, %v4660_v58  ;;  %v4733_v2 = vpack.c.bf16 %v4662_v60, %v4662_v60  ;;  %v15597_v60 = vld [vmem:[#allocation28 + $0x38] ss:$12 sps:$4 sm:$0xff]   ;;  %v15598_v62 = vld [vmem:[#allocation28 + $0x20] ss:$12 sps:$4 sm:$0xff]  }
0x13d9   : > { %4964 = vmatprep.mubr.bf16.mxu0 %v4731_v1  ;;  %5004 = vmatprep.mubr.bf16.mxu1 %v4733_v2  ;;  %v15599_v1 = vld [vmem:[#allocation28 + $0x8] ss:$12 sps:$4 sm:$0xff]  }
0x13da   : > { %4965 = vmatmul.mubr.bf16.vlgmr.msra.gmra.mxu0 %v4730_v6  ;;  %5005 = vmatmul.mubr.bf16.vlgmr.msra.gmra.mxu1 %v4732_v7 }
0x13db   : > { %5263 = vmatpush1.bf16.msra.mxu0 %v15568_v4  ;;  %5294 = vmatprep.mubr.bf16.mxu0 %v17390_v29 }
0x13dc   : > { %5264 = vmatprep.subr.bf16.mxu0 %v15573_v8  ;;  %14438 = vmatprep.mubr.msk.bf16.mxu1 %vm17389_vm0, %v17388_v0 }
0x13dd   : > { %14423 = vmatpush3.bf16.msra.mxu1 %v15592_v21 }
0x13de   : > { %14424 = vmatprep.subr.bf16.mxu1 %v17388_v0 }
0x13df   : > { %5265 = vmatpush1.bf16.msra.mxu0 %v15571_v9 }
0x13e0   : > { %5266 = vmatprep.subr.bf16.mxu0 %v15576_v5 }
0x13e1   : > { %14425 = vmatpush3.bf16.msra.mxu1 %v15593_v38 }
0x13e2   : > { %14426 = vmatprep.subr.bf16.mxu1 %v17388_v0 }
0x13e3   : > { %5267 = vmatpush1.bf16.msra.mxu0 %v15574_v35 }
0x13e4   : > { %5268 = vmatprep.subr.bf16.mxu0 %v15579_v10 }
0x13e5   : > { %14427 = vmatpush3.bf16.msra.mxu1 %v15594_v44 }
0x13e6   : > { %14428 = vmatprep.subr.bf16.mxu1 %v17388_v0 }
0x13e7   : > { %5269 = vmatpush1.bf16.msra.mxu0 %v15577_v11  ;;  %v5081_v11 = vand.u32 127, %v1993_v39  ;;  %v5130_v39 = vrot.slane %v18290_v42, %v18084_v59 }
0x13e8   : > { %5270 = vmatprep.subr.bf16.mxu0 %v15582_v12 }
0x13e9   : > { %14429 = vmatpush3.bf16.msra.mxu1 %v15595_v47  ;;  %vm5082_vm6 = vcmp.gt.s32.totalorder %v5081_v11, %v18062_v40 }
0x13ea   : > { %14430 = vmatprep.subr.bf16.mxu1 %v17388_v0 }
0x13eb   : > { %5271 = vmatpush1.bf16.msra.mxu0 %v15580_v13  ;;  %v18335_v13 = vsel %vm5082_vm6, -1e+30, %v17388_v0 }
0x13ec   : > { %5272 = vmatprep.subr.bf16.mxu0 %v15585_v53 }
0x13ed   : > { %14431 = vmatpush3.bf16.msra.mxu1 %v15596_v55 }
0x13ee   : > { %14432 = vmatprep.subr.bf16.mxu1 %v17388_v0 }
0x13ef   : > { %5273 = vmatpush1.bf16.msra.mxu0 %v15583_v14 }
0x13f0   : > { %5274 = vmatprep.subr.bf16.mxu0 %v15588_v15 }
0x13f1   : > { %14433 = vmatpush3.bf16.msra.mxu1 %v15597_v60 }
0x13f2   : > { %14434 = vmatprep.subr.bf16.mxu1 %v17388_v0 }
0x13f3   : > { %5275 = vmatpush1.bf16.msra.mxu0 %v15586_v16 }
0x13f4   : > { %5276 = vmatprep.subr.bf16.mxu0 %v15591_v48 }
0x13f5   : > { %14435 = vmatpush3.bf16.msra.mxu1 %v15598_v62 }
0x13f6   : > { %14436 = vmatprep.subr.bf16.mxu1 %v17388_v0 }
0x13f7   : > { %5277 = vmatpush1.bf16.msra.mxu0 %v15589_v19 }
0x13f8   : > { %14442 = vmatprep.subr.bf16.mxu0 %v17388_v0 }
0x13f9   : > { %14437 = vmatpush3.bf16.msra.mxu1 %v15599_v1 }
0x13fa   : > { %5295 = vmatmul.mubr.bf16.vlgmr.msra.gmra.mxu0 %v18281_v20  ;;  %14466 = vmatprep.subr.bf16.mxu1 %v17388_v0 }
0x13fb   : > { %14444 = vmatprep.mubr.msk.bf16.mxu0 %vm17389_vm0, %v17388_v0 }
0x13fc   : > { %14439 = vmatmul.mubr.bf16.vlgmr.msra.gmra.mxu1 %v18281_v20 }
0x13fd   : > { %14468 = vmatprep.mubr.msk.bf16.mxu1 %vm17389_vm0, %v17388_v0 }
0x149a   : > { %v13867_v22 = vpop.f32.mrf.mxu0  ;;  %v13889_v24 = vpop.f32.mrf.mxu1 }
0x149c   : > { %v13868_v26 = vpop.f32.mrf.mxu0  ;;  %v13890_v27 = vpop.f32.mrf.mxu1 }
0x149d   : > { %v13869_v28 = vadd.f32 %v13868_v26, %v13867_v22  ;;  %v13891_v30 = vadd.f32 %v13890_v27, %v13889_v24 }
0x149e   : > { %v13870_v31 = vpop.f32.mrf.mxu0  ;;  %v13892_v32 = vpop.f32.mrf.mxu1 }
0x149f   : > { %v4967_v33 = vadd.f32 %v13869_v28, %v13224_v25 }
0x14a0   : > { %v13871_v34 = vpop.f32.mrf.mxu0  ;;  %v13893_v36 = vpop.f32.mrf.mxu1 }
0x14a1   : > { %v18288_v37 = vadd.f32 %v13891_v30, %v4967_v33 }
0x14ba   : > { %v5296_v49 = vpop.f32.mrf.mxu0 }
0x14bb   : > { %v5297_v50 = vadd.f32 %v5296_v49, %v5122_v45 }
0x14bc   : > { %v5298_v51 = vpop.f32.mrf.mxu0  ;;  %v5337_v48 = vpop.f32.mrf.mxu1 }
0x14bd   : > { %v5343_v52 = vpack.c.bf16 %v5297_v50, %v5297_v50  ;;  %v5299_v54 = vadd.f32 %v5298_v51, %v5126_v46  ;;  %v5338_v40 = vadd.f32 %v5337_v48, %v5130_v39 }
0x14be   : > { %v5300_v56 = vpop.f32.mrf.mxu0  ;;  %v14440_v19 = vpop.f32.mrf.mxu1 }
0x14bf   : > { %v5351_v57 = vpack.c.bf16 %v5299_v54, %v5299_v54  ;;  %5345 = vrot.lane.b32.xlu1 %v5343_v52, %s17391_s2  ;;  %v18341_v22 = vpack.c.bf16 %v5338_v40, %v5338_v40 }
0x14c0   : > { %v5301_v58 = vpop.f32.mrf.mxu0  ;;  %v5340_v20 = vpop.f32.mrf.mxu1 }
0x14c1   : > { %5353 = vrot.lane.b32.xlu0 %v5351_v57, %s17391_s2  ;;  %v5371_v61 = vsel %vm2241_vm3, %v5351_v57, 0  ;;  %v5611_v24 = vsel %vm1912_vm1, %v18341_v22, 0 }
0x14c2   : > { %14443 = vmatpush3.bf16.xpose.msra.mxu0 %v5371_v61  ;;  %v14441_v21 = vpop.f32.mrf.mxu1  ;;  %14467 = vmatpush3.bf16.msra.mxu1 %v5611_v24 }
0x14c3   : > { %5347 = vrot.lane.b32.xlu1 %v5343_v52, %s17393_s26  ;;  %14448 = vmatprep.subr.bf16.mxu0 %v17388_v0 }
0x14c4   : > { %14478 = vmatprep.subr.bf16.mxu1 %v17388_v0 }
0x14c5   : > { %5355 = vrot.lane.b32.xlu0 %v5351_v57, %s17393_s26 }
0x14c7   : > { %5349 = vrot.lane.b32.xlu1 %v5343_v52, %s17392_s15 }
0x14c9   : > { %5357 = vrot.lane.b32.xlu0 %v5351_v57, %s17392_s15  ;;  %14445 = vmatmul.mubr.msk.bf16.vlgmr.msra.gmra.mxu0 %vm2241_vm3, %v5343_v52 }
0x14ca   : > { %14450 = vmatprep.mubr.msk.bf16.mxu0 %vm17389_vm0, %v17388_v0 }
0x1531   : > { %v5346_v7 = vpop.permute.xlu1 %5345 }
0x1533   : > { %v5354_v2 = vpop.permute.xlu0 %5353 }
0x1534   : > { %v5417_v4 = vsel %vm2241_vm3, %v5354_v2, 0 }
0x1535   : > { %14449 = vmatpush3.bf16.xpose.msra.mxu0 %v5417_v4  ;;  %v5348_v5 = vpop.permute.xlu1 %5347 }
0x1536   : > { %14454 = vmatprep.subr.bf16.mxu0 %v17388_v0 }
0x1537   : > { %v5356_v6 = vpop.permute.xlu0 %5355 }
0x1538   : > { %v5463_v8 = vsel %vm2241_vm3, %v5356_v6, 0 }
0x1539   : > { %v5350_v10 = vpop.permute.xlu1 %5349 }
0x153b   : > { %v5358_v9 = vpop.permute.xlu0 %5357 }
0x153c   : > { %14451 = vmatmul.mubr.msk.bf16.vlgmr.msra.gmra.mxu0 %vm2241_vm3, %v5346_v7  ;;  %v5509_v35 = vsel %vm2241_vm3, %v5358_v9, 0 }
0x153d   : > { %14455 = vmatpush3.bf16.xpose.msra.mxu0 %v5463_v8  ;;  %14456 = vmatprep.mubr.msk.bf16.mxu0 %vm17389_vm0, %v17388_v0 }
0x153e   : > { %14460 = vmatprep.subr.bf16.mxu0 %v17388_v0 }
0x1544   : > { %14457 = vmatmul.mubr.msk.bf16.vlgmr.msra.gmra.mxu0 %vm2241_vm3, %v5348_v5 }
0x1545   : > { %14461 = vmatpush3.bf16.xpose.msra.mxu0 %v5509_v35  ;;  %14462 = vmatprep.mubr.msk.bf16.mxu0 %vm17389_vm0, %v17388_v0 }
0x1546   : > { %14472 = vmatprep.subr.bf16.mxu0 %v17388_v0 }
0x154c   : > { %14463 = vmatmul.mubr.msk.bf16.vlgmr.msra.gmra.mxu0 %vm2241_vm3, %v5350_v10 }
0x154d   : > { %14474 = vmatprep.mubr.msk.bf16.mxu0 %vm17389_vm0, %v17388_v0 }
0x1589   : > { %v5407_v12 = vpop.f32.mrf.mxu0 }
0x158a   : > { %v5551_v53 = vmul.f32 0.17677669, %v5407_v12 }
0x158b   : > { %v14446_v14 = vpop.f32.mrf.mxu0 }
0x158c   : > { %v5555_v15 = vadd.f32 %v5551_v53, %v18335_v13 }
0x158d   : > { %v5410_v16 = vpop.f32.mrf.mxu0 }
0x158e   : > { %v5559_v17 = vsel %vm1908_vm2, %v5555_v15, -inf }
0x158f   : > { %5560 = vmax.xlane.f32.xlu0 %v5559_v17  ;;  %v14447_v18 = vpop.f32.mrf.mxu0 }
0x15fc   : > { %v5453_v25 = vpop.f32.mrf.mxu0 }
0x15fd   : > { %v5552_v26 = vmul.f32 0.17677669, %v5453_v25 }
0x15fe   : > { %v14452_v27 = vpop.f32.mrf.mxu0 }
0x15ff   : > { %v5556_v28 = vadd.f32 %v5552_v26, %v18335_v13 }
0x1600   : > { %v5456_v30 = vpop.f32.mrf.mxu0 }
0x1601   : > { %v5562_v31 = vsel %vm1908_vm2, %v5556_v28, -inf }
0x1602   : > { %5563 = vmax.xlane.f32.xlu1 %v5562_v31  ;;  %v14453_v32 = vpop.f32.mrf.mxu0 }
0x1604   : > { %v5499_v33 = vpop.f32.mrf.mxu0 }
0x1605   : > { %v5553_v34 = vmul.f32 0.17677669, %v5499_v33 }
0x1606   : > { %v14458_v36 = vpop.f32.mrf.mxu0 }
0x1607   : > { %v5557_v38 = vadd.f32 %v5553_v34, %v18335_v13 }
0x1608   : > { %v5502_v42 = vpop.f32.mrf.mxu0 }
0x1609   : > { %v5565_v44 = vsel %vm1908_vm2, %v5557_v38, -inf }
0x160a   : > { %5566 = vmax.xlane.f32.xlu0 %v5565_v44  ;;  %v14459_v45 = vpop.f32.mrf.mxu0 }
0x160b   : > { %v15600_v45 = vld [vmem:[#allocation31 + $0x38] sm:$0xff]  }
0x160c   : > { %v5545_v46 = vpop.f32.mrf.mxu0 }
0x160d   : > { %v5554_v47 = vmul.f32 0.17677669, %v5545_v46  ;;  %v15601_v46 = vld [vmem:[#allocation31 + $0x30] sm:$0xff]  }
0x160e   : > { %v14464_v49 = vpop.f32.mrf.mxu0 }
0x160f   : > { %v5558_v50 = vadd.f32 %v5554_v47, %v18335_v13  ;;  %v15602_v47 = vld [vmem:[#allocation31 + $0x28] sm:$0xff]   ;;  %v15603_v49 = vld [vmem:[#allocation31 + $0x20] sm:$0xff]  }
0x1610   : > { %v5548_v51 = vpop.f32.mrf.mxu0 }
0x1611   : > { %v5568_v52 = vsel %vm1908_vm2, %v5558_v50, -inf  ;;  %v15605_v51 = vld [vmem:[#allocation31 + $0x10] sm:$0xff]  }
0x1612   : > { %5569 = vmax.xlane.f32.xlu0 %v5568_v52  ;;  %v14465_v54 = vpop.f32.mrf.mxu0  ;;  %v15606_v52 = vld [vmem:[#allocation31 + $0x8] sm:$0xff]  }
0x1613   : > { %5361 = vrot.lane.b32.xlu1 %v18341_v22, %s17391_s2 }
0x1618   : > { %v5561_v55 = vpop.xlane.xlu0 %5560 }
0x1619   : > { %v5571_v56 = vsub.f32 %v5555_v15, %v5561_v55 }
0x161b   : > { %v5575_v57 = vmul.f32 1.442695, %v5571_v56  ;;  %v15607_v56 = vld [vmem:[#allocation31] sm:$0xff]  }
0x161d   : > { %16094 = vpow2.f32 %v5575_v57 }
0x162a   : > { %v16095_v58 = vpop.eup %16094 }
0x162b   : > { %v5583_v60 = vsel %vm1908_vm2, %v16095_v58, 0.0 }
0x1637   : > { %5584 = vadd.xlane.f32.xlu1 %v5583_v60 }
0x168b   : > { %v5564_v61 = vpop.xlane.xlu1 %5563 }
0x168c   : > { %v5572_v62 = vsub.f32 %v5556_v28, %v5564_v61 }
0x168e   : > { %v5577_v1 = vmul.f32 1.442695, %v5572_v62 }
0x168f   : > { %v5362_v2 = vpop.permute.xlu1 %5361 }
0x1690   : > { %16096 = vpow2.f32 %v5577_v1  ;;  %v5657_v4 = vsel %vm1912_vm1, %v5362_v2, 0 }
0x1691   : > { %14473 = vmatpush3.bf16.msra.mxu0 %v5657_v4 }
0x1692   : > { %14484 = vmatprep.subr.bf16.mxu0 %v17388_v0 }
0x1693   : > { %v5567_v6 = vpop.xlane.xlu0 %5566 }
0x1694   : > { %v5573_v7 = vsub.f32 %v5557_v38, %v5567_v6 }
0x1696   : > { %v5579_v8 = vmul.f32 1.442695, %v5573_v7 }
0x1698   : > { %16098 = vpow2.f32 %v5579_v8  ;;  %v5012_v8 = vadd.f32 %v18288_v37, %v18264_v3 }
0x169b   : > { %v5570_v9 = vpop.xlane.xlu0 %5569 }
0x169c   : > { %v5574_v5 = vsub.f32 %v5558_v50, %v5570_v9  ;;  %v15604_v50 = vld [vmem:[#allocation31 + $0x18] sm:$0xff]  }
0x169d   : > { %v16097_v35 = vpop.eup %16096 }
0x169e   : > { %v5581_v10 = vmul.f32 1.442695, %v5574_v5  ;;  %v5586_v11 = vsel %vm1908_vm2, %v16097_v35, 0.0 }
0x169f   : > { %5587 = vadd.xlane.f32.xlu0 %v5586_v11 }
0x16a0   : > { %16100 = vpow2.f32 %v5581_v10 }
0x16a5   : > { %v16099_v12 = vpop.eup %16098 }
0x16a6   : > { %v5589_v53 = vsel %vm1908_vm2, %v16099_v12, 0.0 }
0x16a7   : > { %5590 = vadd.xlane.f32.xlu1 %v5589_v53 }
0x16ad   : > { %v16101_v14 = vpop.eup %16100 }
0x16ae   : > { %v5592_v15 = vsel %vm1908_vm2, %v16101_v14, 0.0 }
0x16af   : > { %5593 = vadd.xlane.f32.xlu0 %v5592_v15 }
0x16b8   : > { %5365 = vrot.lane.b32.xlu1 %v18341_v22, %s17392_s15 }
0x16c0   : > { %v5585_v16 = vpop.xlane.xlu1 %5584 }
0x16c1   : > { %16102 = vrcp.f32 %v5585_v16 }
0x16c5   : > { %5363 = vrot.lane.b32.xlu0 %v18341_v22, %s17393_s26 }
0x16ce   : > { %v16103_v17 = vpop.eup %16102 }
0x16cf   : > { %v5599_v18 = vmul.f32 %v16103_v17, %v16095_v58 }
0x16d1   : > { %v5603_v48 = vpack.c.bf16 %v5599_v18, %v5599_v18 }
0x16d3   : > { %14469 = vmatmul.mubr.msk.bf16.vlgmr.msra.gmra.mxu1 %vm1908_vm2, %v5603_v48 }
0x16d4   : > { %14480 = vmatprep.mubr.msk.bf16.mxu1 %vm17389_vm0, %v17388_v0 }
0x1728   : > { %v5588_v19 = vpop.xlane.xlu0 %5587 }
0x1729   : > { %16104 = vrcp.f32 %v5588_v19 }
0x1730   : > { %v5591_v20 = vpop.xlane.xlu1 %5590 }
0x1731   : > { %16106 = vrcp.f32 %v5591_v20 }
0x1734   : > { %v5366_v40 = vpop.permute.xlu1 %5365 }
0x1735   : > { %v5749_v22 = vsel %vm1912_vm1, %v5366_v40, 0  ;;  %v13257_v40 = vld [vmem:[#allocation21 + $0x1] ss:$0 sm:$0xff] }
0x1736   : > { %v16105_v21 = vpop.eup %16104 }
0x1737   : > { %v5600_v39 = vmul.f32 %v16105_v21, %v16097_v35 }
0x1738   : > { %v5594_v24 = vpop.xlane.xlu0 %5593 }
0x1739   : > { %16108 = vrcp.f32 %v5594_v24  ;;  %v5604_v25 = vpack.c.bf16 %v5600_v39, %v5600_v39 }
0x173b   : > { %14475 = vmatmul.mubr.msk.bf16.vlgmr.msra.gmra.mxu0 %vm1908_vm2, %v5604_v25  ;;  %v13294_v25 = vld [vmem:[#allocation33] ss:$0 sm:$0xff] }
0x173c   : > { %14485 = vmatpush3.bf16.msra.mxu0 %v5749_v22  ;;  %v5364_v26 = vpop.permute.xlu0 %5363  ;;  %14486 = vmatprep.mubr.msk.bf16.mxu0 %vm17389_vm0, %v17388_v0  ;;  %v13258_v22 = vld [vmem:[#allocation22 + $0x1] ss:$0 sm:$0xff] }
0x173d   : > { %v5703_v27 = vsel %vm1912_vm1, %v5364_v26, 0  ;;  %14510 = vmatprep.subr.bf16.mxu0 %v17388_v0 }
0x173e   : > { %v16107_v28 = vpop.eup %16106  ;;  %14479 = vmatpush3.bf16.msra.mxu1 %v5703_v27 }
0x173f   : > { %v5601_v30 = vmul.f32 %v16107_v28, %v16099_v12  ;;  %14490 = vmatprep.subr.bf16.mxu1 %v17388_v0 }
0x1741   : > { %v5605_v31 = vpack.c.bf16 %v5601_v30, %v5601_v30 }
0x1743   : > { %14481 = vmatmul.mubr.msk.bf16.vlgmr.msra.gmra.mxu1 %vm1908_vm2, %v5605_v31  ;;  %v15608_v31 = vld [vmem:[#allocation40 + $0x70] ss:$8 sps:$4 sm:$0xff]  }
0x1744   : > { %14506 = vmatprep.mubr.msk.bf16.mxu1 %vm17389_vm0, %v17388_v0  ;;  %14491 = vmatpush3.bf16.msra.mxu1 %v15600_v45 }
0x1745   : > { %14492 = vmatprep.subr.bf16.mxu1 %v17388_v0 }
0x1746   : > { %v16109_v32 = vpop.eup %16108 }
0x1747   : > { %v5602_v33 = vmul.f32 %v16109_v32, %v16101_v14  ;;  %v15610_v32 = vld [vmem:[#allocation40 + $0x74] ss:$8 sps:$4 sm:$0xff]  }
0x1748   : > { %14493 = vmatpush3.bf16.msra.mxu1 %v15601_v46 }
0x1749   : > { %v5606_v34 = vpack.c.bf16 %v5602_v33, %v5602_v33  ;;  %14494 = vmatprep.subr.bf16.mxu1 %v17388_v0  ;;  %v15613_v33 = vld [vmem:[#allocation40 + $0x64] ss:$8 sps:$4 sm:$0xff]  }
0x174b   : > { %14487 = vmatmul.mubr.msk.bf16.vlgmr.msra.gmra.mxu0 %vm1908_vm2, %v5606_v34  ;;  %v15614_v34 = vld [vmem:[#allocation37 + $0x38] sm:$0xff]  }
0x174c   : > { %14526 = vmatprep.mubr.msk.bf16.mxu0 %vm17389_vm0, %v17388_v0  ;;  %14495 = vmatpush3.bf16.msra.mxu1 %v15602_v47 }
0x174d   : > { %14496 = vmatprep.subr.bf16.mxu1 %v17388_v0  ;;  %14511 = vmatpush3.bf16.msra.mxu0 %v15614_v34 }
0x174e   : > { %14512 = vmatprep.subr.bf16.mxu0 %v17388_v0 }
0x1750   : > { %14497 = vmatpush3.bf16.msra.mxu1 %v15603_v49 }
0x1751   : > { %14498 = vmatprep.subr.bf16.mxu1 %v17388_v0 }
0x1754   : > { %14499 = vmatpush3.bf16.msra.mxu1 %v15604_v50  ;;  %v15617_v50 = vld [vmem:[#allocation40 + $0x54] ss:$8 sps:$4 sm:$0xff]  }
0x1755   : > { %14500 = vmatprep.subr.bf16.mxu1 %v17388_v0 }
0x1758   : > { %14501 = vmatpush3.bf16.msra.mxu1 %v15605_v51  ;;  %v15615_v51 = vld [vmem:[#allocation40 + $0x50] ss:$8 sps:$4 sm:$0xff]  }
0x1759   : > { %14502 = vmatprep.subr.bf16.mxu1 %v17388_v0 }
0x175c   : > { %14503 = vmatpush3.bf16.msra.mxu1 %v15606_v52  ;;  %v15618_v52 = vld [vmem:[#allocation37 + $0x30] sm:$0xff]  }
0x175d   : > { %14504 = vmatprep.subr.bf16.mxu1 %v17388_v0  ;;  %14513 = vmatpush3.bf16.msra.mxu0 %v15618_v52 }
0x175e   : > { %14514 = vmatprep.subr.bf16.mxu0 %v17388_v0 }
0x1760   : > { %14505 = vmatpush3.bf16.msra.mxu1 %v15607_v56  ;;  %v15622_v56 = vld [vmem:[#allocation37 + $0x28] sm:$0xff]  }
0x1761   : > { %6167 = vmatprep.subr.bf16.mxu1 %v15610_v32  ;;  %14515 = vmatpush3.bf16.msra.mxu0 %v15622_v56  ;;  %v13305_v32 = vld [vmem:[#allocation39] ss:$0 sm:$0xff] }
0x1762   : > { %14516 = vmatprep.subr.bf16.mxu0 %v17388_v0 }
0x1793   : > { %v5647_v36 = vpop.f32.mrf.mxu1 }
0x1795   : > { %v14470_v38 = vpop.f32.mrf.mxu1 }
0x1797   : > { %v5650_v42 = vpop.f32.mrf.mxu1 }
0x1799   : > { %v14471_v44 = vpop.f32.mrf.mxu1 }
0x17fb   : > { %v5693_v54 = vpop.f32.mrf.mxu0 }
0x17fc   : > { %5792 = vrot.lane.b32.xlu1 %v5693_v54, %s17392_s15  ;;  %v15621_v54 = vld [vmem:[#allocation40 + $0x44] ss:$8 sps:$4 sm:$0xff]  }
0x17fd   : > { %v14476_v55 = vpop.f32.mrf.mxu0 }
0x17fe   : > { %v15619_v55 = vld [vmem:[#allocation40 + $0x40] ss:$8 sps:$4 sm:$0xff]  }
0x17ff   : > { %v5696_v57 = vpop.f32.mrf.mxu0 }
0x1800   : > { %v15623_v57 = vld [vmem:[#allocation40 + $0x30] ss:$8 sps:$4 sm:$0xff]  }
0x1801   : > { %v14477_v58 = vpop.f32.mrf.mxu0 }
0x1802   : > { %v15625_v58 = vld [vmem:[#allocation40 + $0x34] ss:$8 sps:$4 sm:$0xff]  }
0x1803   : > { %v5739_v60 = vpop.f32.mrf.mxu1 }
0x1804   : > { %5796 = vrot.lane.b32.xlu0 %v5739_v60, %s17393_s26  ;;  %v15626_v60 = vld [vmem:[#allocation37 + $0x20] sm:$0xff]  }
0x1805   : > { %v14482_v61 = vpop.f32.mrf.mxu1  ;;  %14517 = vmatpush3.bf16.msra.mxu0 %v15626_v60 }
0x1806   : > { %v15629_v61 = vld [vmem:[#allocation40 + $0x24] ss:$8 sps:$4 sm:$0xff]   ;;  %14518 = vmatprep.subr.bf16.mxu0 %v17388_v0 }
0x1807   : > { %v5742_v62 = vpop.f32.mrf.mxu1 }
0x1808   : > { %v15627_v62 = vld [vmem:[#allocation40 + $0x20] ss:$8 sps:$4 sm:$0xff]  }
0x1809   : > { %v14483_v1 = vpop.f32.mrf.mxu1 }
0x180a   : > { %v15630_v1 = vld [vmem:[#allocation37 + $0x18] sm:$0xff]  }
0x180b   : > { %v5785_v2 = vpop.f32.mrf.mxu0  ;;  %14519 = vmatpush3.bf16.msra.mxu0 %v15630_v1 }
0x180c   : > { %5800 = vrot.lane.b32.xlu1 %v5785_v2, %s17391_s2  ;;  %v15633_v2 = vld [vmem:[#allocation40 + $0x14] ss:$8 sps:$4 sm:$0xff]   ;;  %14520 = vmatprep.subr.bf16.mxu0 %v17388_v0 }
0x180d   : > { %v14488_v4 = vpop.f32.mrf.mxu0 }
0x180e   : > { %v15631_v4 = vld [vmem:[#allocation40 + $0x10] ss:$8 sps:$4 sm:$0xff]  }
0x180f   : > { %v5788_v6 = vpop.f32.mrf.mxu0 }
0x1810   : > { %v15634_v6 = vld [vmem:[#allocation37 + $0x10] sm:$0xff]  }
0x1811   : > { %v14489_v7 = vpop.f32.mrf.mxu0  ;;  %14521 = vmatpush3.bf16.msra.mxu0 %v15634_v6 }
0x1812   : > { %v15637_v7 = vld [vmem:[#allocation40 + $0x4] ss:$8 sps:$4 sm:$0xff]   ;;  %14522 = vmatprep.subr.bf16.mxu0 %v17388_v0 }
0x1823   : > { %5017 = vadd.xlane.f32.xlu0 %v5012_v8 }
0x186e   : > { %v5793_v9 = vpop.permute.xlu1 %5792 }
0x186f   : > { %v5803_v35 = vsel %vm2241_vm3, %v5647_v36, %v5793_v9  ;;  %v15611_v36 = vld [vmem:[#allocation40 + $0x60] ss:$8 sps:$4 sm:$0xff]  }
0x1870   : > { %v15638_v9 = vld [vmem:[#allocation37 + $0x8] sm:$0xff]  }
0x1871   : > { %14523 = vmatpush3.bf16.msra.mxu0 %v15638_v9 }
0x1872   : > { %14524 = vmatprep.subr.bf16.mxu0 %v17388_v0 }
0x1876   : > { %v5797_v5 = vpop.permute.xlu0 %5796 }
0x1877   : > { %v5804_v10 = vsel %vm2675_vm4, %v5803_v35, %v5797_v5  ;;  %v15639_v5 = vld [vmem:[#allocation37] sm:$0xff]  }
0x1878   : > { %14525 = vmatpush3.bf16.msra.mxu0 %v15639_v5 }
0x1879   : > { %14530 = vmatprep.subr.bf16.mxu0 %v17388_v0 }
0x187e   : > { %v5801_v11 = vpop.permute.xlu1 %5800 }
0x187f   : > { %v5805_v12 = vsel %vm2677_vm5, %v5804_v10, %v5801_v11 }
0x1880   : > { %v5823_v53 = vpack.c.bf16 %v5805_v12, %v5805_v12 }
0x1882   : > { %14507 = vmatmul.mubr.bf16.vlgmr.msra.gmra.mxu1 %v5823_v53 }
0x1883   : > { %6199 = vmatprep.mubr.bf16.mxu1 %v17390_v29  ;;  %6168 = vmatpush1.bf16.msra.mxu1 %v15608_v31 }
0x1884   : > { %6169 = vmatprep.subr.bf16.mxu1 %v15613_v33 }
0x1887   : > { %6170 = vmatpush1.bf16.msra.mxu1 %v15611_v36 }
0x1888   : > { %6171 = vmatprep.subr.bf16.mxu1 %v15617_v50 }
0x188b   : > { %6172 = vmatpush1.bf16.msra.mxu1 %v15615_v51 }
0x188c   : > { %6173 = vmatprep.subr.bf16.mxu1 %v15621_v54 }
0x188f   : > { %6174 = vmatpush1.bf16.msra.mxu1 %v15619_v55 }
0x1890   : > { %6175 = vmatprep.subr.bf16.mxu1 %v15625_v58 }
0x1893   : > { %6176 = vmatpush1.bf16.msra.mxu1 %v15623_v57 }
0x1894   : > { %6177 = vmatprep.subr.bf16.mxu1 %v15629_v61 }
0x1897   : > { %6178 = vmatpush1.bf16.msra.mxu1 %v15627_v62 }
0x1898   : > { %6179 = vmatprep.subr.bf16.mxu1 %v15633_v2 }
0x189b   : > { %6180 = vmatpush1.bf16.msra.mxu1 %v15631_v4 }
0x189c   : > { %6181 = vmatprep.subr.bf16.mxu1 %v15637_v7 }
0x18ac   : > { %v5018_v14 = vpop.xlane.xlu0 %5017 }
0x18ad   : > { %v5019_v15 = vmul.f32 0.0078125, %v5018_v14 }
0x18af   : > { %v5020_v16 = vsub.f32 %v5012_v8, %v5019_v15  ;;  %v15635_v8 = vld [vmem:[#allocation40] ss:$8 sps:$4 sm:$0xff]  }
0x18b0   : > { %6182 = vmatpush1.bf16.msra.mxu1 %v15635_v8 }
0x18b1   : > { %v5021_v17 = vmul.f32 %v5020_v16, %v5020_v16  ;;  %14554 = vmatprep.subr.bf16.mxu1 %v17388_v0 }
0x18b3   : > { %5022 = vadd.xlane.f32.xlu1 %v5021_v17 }
0x193c   : > { %v5023_v3 = vpop.xlane.xlu1 %5022 }
0x193d   : > { %v5024_v37 = vmul.f32 0.0078125, %v5023_v3  ;;  %v13260_v3 = vld [vmem:[#allocation25] ss:$0 sm:$0xff] }
0x193f   : > { %v5025_v18 = vadd.f32 1e-05, %v5024_v37 }
0x1941   : > { %16110 = vrsqrt.f32 %v5025_v18 }
0x1942   : > { %v5912_v48 = vpop.f32.mrf.mxu1 }
0x1943   : > { %v5913_v27 = vadd.f32 %v13294_v25, %v5912_v48  ;;  %v13303_v48 = vld [vmem:[#allocation34] ss:$0 sm:$0xff] }
0x1944   : > { %v14508_v19 = vpop.f32.mrf.mxu1 }
0x1945   : > { %v5918_v30 = vadd.f32 %v5913_v27, %v18277_v63 }
0x1946   : > { %v5915_v20 = vpop.f32.mrf.mxu1 }
0x1948   : > { %v14509_v21 = vpop.f32.mrf.mxu1 }
0x1949   : > { %v13304_v21 = vld [vmem:[#allocation36] ss:$0 sm:$0xff] }
0x194e   : > { %v16111_v39 = vpop.eup %16110 }
0x194f   : > { %v5027_v24 = vmul.f32 %v16111_v39, %v5020_v16  ;;  %v13259_v16 = vld [vmem:[#allocation24] ss:$0 sm:$0xff] }
0x1951   : > { %v5034_v26 = vmul.f32 %v13257_v40, %v5027_v24 }
0x1953   : > { %v5041_v28 = vadd.f32 %v13258_v22, %v5034_v26  ;;  %v6074_v22 = vld [vmem:[#allocation42] sm:$0x3] }
0x1954   : > { %v6080_v26 = vrot.slane %v6074_v22, %v18065_v41  ;;  %v6084_v27 = vrot.slane %v6074_v22, %v18068_v43 }
0x1955   : > { %5044 = vadd.xlane.f32.xlu0 %v5041_v28 }
0x1959   : > { %5921 = vadd.xlane.f32.xlu0 %v5918_v30 }
0x19de   : > { %v5045_v38 = vpop.xlane.xlu0 %5044 }
0x19df   : > { %v5046_v42 = vmul.f32 0.0078125, %v5045_v38 }
0x19e1   : > { %v18398_v44 = vsub.f32 %v5041_v28, %v5046_v42 }
0x19e2   : > { %v5922_v45 = vpop.xlane.xlu0 %5921 }
0x19e3   : > { %v5923_v46 = vmul.f32 0.0078125, %v5922_v45  ;;  %v5048_v63 = vmul.f32 %v18398_v44, %v18398_v44 }
0x19e5   : > { %5049 = vadd.xlane.f32.xlu1 %v5048_v63  ;;  %v18402_v47 = vsub.f32 %v5918_v30, %v5923_v46 }
0x19e7   : > { %v5925_v49 = vmul.f32 %v18402_v47, %v18402_v47 }
0x19e9   : > { %5926 = vadd.xlane.f32.xlu0 %v5925_v49 }
0x1a6e   : > { %v5050_v35 = vpop.xlane.xlu1 %5049 }
0x1a6f   : > { %v5051_v10 = vmul.f32 0.0078125, %v5050_v35 }
0x1a71   : > { %v5052_v11 = vadd.f32 1e-05, %v5051_v10 }
0x1a72   : > { %v5927_v12 = vpop.xlane.xlu0 %5926 }
0x1a73   : > { %16112 = vrsqrt.f32 %v5052_v11  ;;  %v5928_v53 = vmul.f32 0.0078125, %v5927_v12 }
0x1a75   : > { %v5929_v14 = vadd.f32 1e-05, %v5928_v53 }
0x1a77   : > { %16114 = vrsqrt.f32 %v5929_v14 }
0x1a80   : > { %v16113_v15 = vpop.eup %16112 }
0x1a81   : > { %v5054_v17 = vmul.f32 %v16113_v15, %v18398_v44 }
0x1a83   : > { %v5061_v37 = vmul.f32 %v13259_v16, %v5054_v17 }
0x1a84   : > { %v16115_v18 = vpop.eup %16114 }
0x1a85   : > { %v5068_v19 = vadd.f32 %v13260_v3, %v5061_v37  ;;  %v5931_v20 = vmul.f32 %v16115_v18, %v18402_v47 }
0x1a87   : > { %v18416_v39 = vpack.c.bf16 %v5068_v19, %v5068_v19  ;;  %v5938_v40 = vmul.f32 %v13303_v48, %v5931_v20 }
0x1a89   : > { %6200 = vmatmul.mubr.bf16.vlgmr.msra.gmra.mxu1 %v18416_v39  ;;  %v18419_v24 = vadd.f32 %v13304_v21, %v5938_v40 }
0x1a8a   : > { %14556 = vmatprep.mubr.msk.bf16.mxu1 %vm17389_vm0, %v17388_v0 }
0x1a8b   : > { %v5963_v25 = vpack.c.bf16 %v18419_v24, %v18419_v24 }
0x1a8d   : > { %14527 = vmatmul.mubr.bf16.vlgmr.msra.gmra.mxu0 %v5963_v25 }
0x1a8e   : > { %14532 = vmatprep.mubr.msk.bf16.mxu0 %vm17389_vm0, %v17388_v0 }
0x1b49   : > { %v6201_v28 = vpop.f32.mrf.mxu1 }
0x1b4a   : > { %v6202_v30 = vadd.f32 %v6201_v28, %v6080_v26 }
0x1b4b   : > { %v6203_v31 = vpop.f32.mrf.mxu1 }
0x1b4c   : > { %v6216_v33 = vpack.c.bf16 %v6202_v30, %v6202_v30  ;;  %v6204_v34 = vadd.f32 %v6203_v31, %v6084_v27 }
0x1b4d   : > { %v6052_v36 = vpop.f32.mrf.mxu0  ;;  %v6205_v38 = vpop.f32.mrf.mxu1 }
0x1b4e   : > { %v18429_v42 = vpack.c.bf16 %v6204_v34, %v6204_v34  ;;  %v6053_v44 = vadd.f32 %v13305_v32, %v6052_v36  ;;  %6218 = vrot.lane.b32.xlu1 %v6216_v33, %s17391_s2  ;;  %v6236_v45 = vsel %vm2241_vm3, %v6216_v33, 0 }
0x1b4f   : > { %v14528_v46 = vpop.f32.mrf.mxu0  ;;  %v6206_v63 = vpop.f32.mrf.mxu1  ;;  %14531 = vmatpush3.bf16.xpose.msra.mxu0 %v6236_v45 }
0x1b50   : > { %v6208_v47 = vpack.c.bf16 %v6053_v44, %v6053_v44  ;;  %v6472_v49 = vsel %vm1912_vm1, %v18429_v42, 0  ;;  %14536 = vmatprep.subr.bf16.mxu0 %v17388_v0 }
0x1b51   : > { %v6055_v50 = vpop.f32.mrf.mxu0  ;;  %14555 = vmatpush3.bf16.msra.mxu1 %v6472_v49 }
0x1b52   : > { %6220 = vrot.lane.b32.xlu1 %v6216_v33, %s17393_s26  ;;  %6210 = vrot.lane.b32.xlu0 %v6208_v47, %s17391_s2 }
0x1b53   : > { %v14529_v51 = vpop.f32.mrf.mxu0  ;;  %14566 = vmatprep.subr.bf16.mxu1 %v17388_v0 }
0x1b56   : > { %6212 = vrot.lane.b32.xlu1 %v6208_v47, %s17393_s26  ;;  %6222 = vrot.lane.b32.xlu0 %v6216_v33, %s17392_s15 }
0x1b57   : > { %14533 = vmatmul.mubr.msk.bf16.vlgmr.msra.gmra.mxu0 %vm2241_vm3, %v6208_v47 }
0x1b58   : > { %14538 = vmatprep.mubr.msk.bf16.mxu0 %vm17389_vm0, %v17388_v0 }
0x1b5a   : > { %6214 = vrot.lane.b32.xlu1 %v6208_v47, %s17392_s15 }
0x1bc0   : > { %v6219_v52 = vpop.permute.xlu1 %6218 }
0x1bc1   : > { %v6282_v54 = vsel %vm2241_vm3, %v6219_v52, 0 }
0x1bc2   : > { %14537 = vmatpush3.bf16.xpose.msra.mxu0 %v6282_v54 }
0x1bc3   : > { %14542 = vmatprep.subr.bf16.mxu0 %v17388_v0 }
0x1bc4   : > { %v6221_v55 = vpop.permute.xlu1 %6220  ;;  %v6211_v56 = vpop.permute.xlu0 %6210 }
0x1bc5   : > { %v6328_v57 = vsel %vm2241_vm3, %v6221_v55, 0 }
0x1bc8   : > { %v6223_v58 = vpop.permute.xlu0 %6222  ;;  %v6213_v60 = vpop.permute.xlu1 %6212 }
0x1bc9   : > { %14539 = vmatmul.mubr.msk.bf16.vlgmr.msra.gmra.mxu0 %vm2241_vm3, %v6211_v56  ;;  %v6374_v61 = vsel %vm2241_vm3, %v6223_v58, 0 }
0x1bca   : > { %14543 = vmatpush3.bf16.xpose.msra.mxu0 %v6328_v57  ;;  %14544 = vmatprep.mubr.msk.bf16.mxu0 %vm17389_vm0, %v17388_v0 }
0x1bcb   : > { %14548 = vmatprep.subr.bf16.mxu0 %v17388_v0 }
0x1bcc   : > { %v6215_v62 = vpop.permute.xlu1 %6214 }
0x1bd1   : > { %14545 = vmatmul.mubr.msk.bf16.vlgmr.msra.gmra.mxu0 %vm2241_vm3, %v6213_v60 }
0x1bd2   : > { %14549 = vmatpush3.bf16.xpose.msra.mxu0 %v6374_v61  ;;  %14550 = vmatprep.mubr.msk.bf16.mxu0 %vm17389_vm0, %v17388_v0 }
0x1bd3   : > { %14560 = vmatprep.subr.bf16.mxu0 %v17388_v0 }
0x1bd9   : > { %14551 = vmatmul.mubr.msk.bf16.vlgmr.msra.gmra.mxu0 %vm2241_vm3, %v6215_v62 }
0x1bda   : > { %14562 = vmatprep.mubr.msk.bf16.mxu0 %vm17389_vm0, %v17388_v0 }
0x1c17   : > { %v6272_v1 = vpop.f32.mrf.mxu0 }
0x1c18   : > { %v6416_v2 = vmul.f32 0.17677669, %v6272_v1 }
0x1c19   : > { %v14534_v4 = vpop.f32.mrf.mxu0 }
0x1c1a   : > { %v6420_v6 = vsel %vm1908_vm2, %v6416_v2, -inf }
0x1c1b   : > { %6421 = vmax.xlane.f32.xlu0 %v6420_v6  ;;  %v6275_v7 = vpop.f32.mrf.mxu0 }
0x1c1d   : > { %v14535_v8 = vpop.f32.mrf.mxu0 }
0x1c89   : > { %v6318_v9 = vpop.f32.mrf.mxu0 }
0x1c8a   : > { %v6417_v5 = vmul.f32 0.17677669, %v6318_v9 }
0x1c8b   : > { %v14540_v35 = vpop.f32.mrf.mxu0 }
0x1c8c   : > { %v6423_v10 = vsel %vm1908_vm2, %v6417_v5, -inf }
0x1c8d   : > { %6424 = vmax.xlane.f32.xlu1 %v6423_v10  ;;  %v6321_v11 = vpop.f32.mrf.mxu0 }
0x1c8f   : > { %v14541_v12 = vpop.f32.mrf.mxu0 }
0x1c90   : > { %v15640_v12 = vld [vmem:[#allocation43 + $0x38] sm:$0xff]  }
0x1c91   : > { %v6364_v53 = vpop.f32.mrf.mxu0 }
0x1c92   : > { %v6418_v14 = vmul.f32 0.17677669, %v6364_v53 }
0x1c93   : > { %v14546_v15 = vpop.f32.mrf.mxu0 }
0x1c94   : > { %v6426_v16 = vsel %vm1908_vm2, %v6418_v14, -inf }
0x1c95   : > { %6427 = vmax.xlane.f32.xlu0 %v6426_v16  ;;  %v6367_v17 = vpop.f32.mrf.mxu0 }
0x1c96   : > { %v15642_v17 = vld [vmem:[#allocation43 + $0x28] sm:$0xff]  }
0x1c97   : > { %v14547_v3 = vpop.f32.mrf.mxu0 }
0x1c99   : > { %v6410_v37 = vpop.f32.mrf.mxu0 }
0x1c9a   : > { %v6419_v18 = vmul.f32 0.17677669, %v6410_v37  ;;  %v15643_v37 = vld [vmem:[#allocation43 + $0x20] sm:$0xff]  }
0x1c9b   : > { %v14552_v48 = vpop.f32.mrf.mxu0 }
0x1c9c   : > { %v6429_v19 = vsel %vm1908_vm2, %v6419_v18, -inf  ;;  %v15645_v48 = vld [vmem:[#allocation43 + $0x10] sm:$0xff]  }
0x1c9d   : > { %6430 = vmax.xlane.f32.xlu0 %v6429_v19  ;;  %v6413_v20 = vpop.f32.mrf.mxu0  ;;  %v15646_v19 = vld [vmem:[#allocation43 + $0x8] sm:$0xff]  }
0x1c9e   : > { %6226 = vrot.lane.b32.xlu1 %v18429_v42, %s17391_s2 }
0x1c9f   : > { %v14553_v21 = vpop.f32.mrf.mxu0 }
0x1ca4   : > { %v6422_v40 = vpop.xlane.xlu0 %6421 }
0x1ca5   : > { %v6432_v25 = vsub.f32 %v6416_v2, %v6422_v40  ;;  %v15647_v40 = vld [vmem:[#allocation43] sm:$0xff]  }
0x1ca7   : > { %v6436_v22 = vmul.f32 1.442695, %v6432_v25 }
0x1ca9   : > { %16116 = vpow2.f32 %v6436_v22 }
0x1cb6   : > { %v16117_v26 = vpop.eup %16116 }
0x1cb7   : > { %v6444_v27 = vsel %vm1908_vm2, %v16117_v26, 0.0 }
0x1cc2   : > { %6445 = vadd.xlane.f32.xlu1 %v6444_v27 }
0x1d16   : > { %v6425_v28 = vpop.xlane.xlu1 %6424 }
0x1d17   : > { %v6433_v30 = vsub.f32 %v6417_v5, %v6425_v28 }
0x1d19   : > { %v6438_v31 = vmul.f32 1.442695, %v6433_v30 }
0x1d1a   : > { %v6227_v32 = vpop.permute.xlu1 %6226 }
0x1d1b   : > { %16118 = vpow2.f32 %v6438_v31  ;;  %v6518_v33 = vsel %vm1912_vm1, %v6227_v32, 0 }
0x1d1c   : > { %14561 = vmatpush3.bf16.msra.mxu0 %v6518_v33 }
0x1d1d   : > { %14572 = vmatprep.subr.bf16.mxu0 %v17388_v0 }
0x1d1e   : > { %v6428_v34 = vpop.xlane.xlu0 %6427 }
0x1d1f   : > { %v6434_v36 = vsub.f32 %v6418_v14, %v6428_v34  ;;  %v15641_v14 = vld [vmem:[#allocation43 + $0x30] sm:$0xff]  }
0x1d21   : > { %v6440_v38 = vmul.f32 1.442695, %v6434_v36 }
0x1d23   : > { %16120 = vpow2.f32 %v6440_v38 }
0x1d26   : > { %v6431_v44 = vpop.xlane.xlu0 %6430 }
0x1d27   : > { %v6435_v45 = vsub.f32 %v6419_v18, %v6431_v44  ;;  %v15644_v18 = vld [vmem:[#allocation43 + $0x18] sm:$0xff]  }
0x1d28   : > { %v16119_v46 = vpop.eup %16118 }
0x1d29   : > { %v6442_v63 = vmul.f32 1.442695, %v6435_v45  ;;  %v6447_v47 = vsel %vm1908_vm2, %v16119_v46, 0.0 }
0x1d2a   : > { %6448 = vadd.xlane.f32.xlu0 %v6447_v47 }
0x1d2b   : > { %16122 = vpow2.f32 %v6442_v63 }
0x1d30   : > { %v16121_v49 = vpop.eup %16120 }
0x1d31   : > { %v6450_v50 = vsel %vm1908_vm2, %v16121_v49, 0.0 }
0x1d32   : > { %6451 = vadd.xlane.f32.xlu1 %v6450_v50 }
0x1d38   : > { %v16123_v51 = vpop.eup %16122 }
0x1d39   : > { %v6453_v52 = vsel %vm1908_vm2, %v16123_v51, 0.0 }
0x1d3a   : > { %6454 = vadd.xlane.f32.xlu0 %v6453_v52 }
0x1d43   : > { %6230 = vrot.lane.b32.xlu1 %v18429_v42, %s17392_s15 }
0x1d4b   : > { %v6446_v54 = vpop.xlane.xlu1 %6445 }
0x1d4c   : > { %16124 = vrcp.f32 %v6446_v54 }
0x1d50   : > { %6228 = vrot.lane.b32.xlu0 %v18429_v42, %s17393_s26 }
0x1d59   : > { %v16125_v55 = vpop.eup %16124 }
0x1d5a   : > { %v6460_v56 = vmul.f32 %v16125_v55, %v16117_v26 }
0x1d5c   : > { %v6464_v57 = vpack.c.bf16 %v6460_v56, %v6460_v56 }
0x1d5e   : > { %14557 = vmatmul.mubr.msk.bf16.vlgmr.msra.gmra.mxu1 %vm1908_vm2, %v6464_v57  ;;  %v15648_v57 = vld [vmem:[#allocation49 + $0xe0] ss:$16 sps:$4 sm:$0xff]  }
0x1d5f   : > { %14568 = vmatprep.mubr.msk.bf16.mxu1 %vm17389_vm0, %v17388_v0 }
0x1db3   : > { %v6449_v58 = vpop.xlane.xlu0 %6448 }
0x1db4   : > { %16126 = vrcp.f32 %v6449_v58  ;;  %v15650_v58 = vld [vmem:[#allocation49 + $0xe4] ss:$16 sps:$4 sm:$0xff]  }
0x1dbb   : > { %v6452_v60 = vpop.xlane.xlu1 %6451 }
0x1dbc   : > { %16128 = vrcp.f32 %v6452_v60  ;;  %v15651_v60 = vld [vmem:[#allocation49 + $0xe8] ss:$16 sps:$4 sm:$0xff]  }
0x1dbf   : > { %v6231_v1 = vpop.permute.xlu1 %6230 }
0x1dc0   : > { %v6610_v42 = vsel %vm1912_vm1, %v6231_v1, 0  ;;  %v15659_v1 = vld [vmem:[#allocation49 + $0xcc] ss:$16 sps:$4 sm:$0xff]  }
0x1dc1   : > { %v16127_v61 = vpop.eup %16126 }
0x1dc2   : > { %v6461_v62 = vmul.f32 %v16127_v61, %v16119_v46  ;;  %v15653_v61 = vld [vmem:[#allocation49 + $0xec] ss:$16 sps:$4 sm:$0xff]  }
0x1dc3   : > { %v6455_v2 = vpop.xlane.xlu0 %6454 }
0x1dc4   : > { %v6465_v4 = vpack.c.bf16 %v6461_v62, %v6461_v62  ;;  %16130 = vrcp.f32 %v6455_v2  ;;  %v15656_v62 = vld [vmem:[#allocation49 + $0xc4] ss:$16 sps:$4 sm:$0xff]   ;;  %v15654_v2 = vld [vmem:[#allocation49 + $0xc0] ss:$16 sps:$4 sm:$0xff]  }
0x1dc6   : > { %14563 = vmatmul.mubr.msk.bf16.vlgmr.msra.gmra.mxu0 %vm1908_vm2, %v6465_v4  ;;  %v15657_v4 = vld [vmem:[#allocation49 + $0xc8] ss:$16 sps:$4 sm:$0xff]  }
0x1dc7   : > { %14573 = vmatpush3.bf16.msra.mxu0 %v6610_v42  ;;  %v6229_v6 = vpop.permute.xlu0 %6228  ;;  %14574 = vmatprep.mubr.msk.bf16.mxu0 %vm17389_vm0, %v17388_v0 }
0x1dc8   : > { %v6564_v7 = vsel %vm1912_vm1, %v6229_v6, 0  ;;  %7022 = vmatprep.subr.bf16.mxu0 %v15650_v58  ;;  %v15707_v58 = vld [vmem:[#allocation52 + $0xa8] sm:$0xff]  }
0x1dc9   : > { %v16129_v8 = vpop.eup %16128  ;;  %14567 = vmatpush3.bf16.msra.mxu1 %v6564_v7 }
0x1dca   : > { %v6462_v9 = vmul.f32 %v16129_v8, %v16121_v49  ;;  %14578 = vmatprep.subr.bf16.mxu1 %v17388_v0  ;;  %v13338_v49 = vld [vmem:[#allocation45] ss:$0 sm:$0xff] }
0x1dcb   : > { %v15662_v8 = vld [vmem:[#allocation49 + $0xa4] ss:$16 sps:$4 sm:$0xff]  }
0x1dcc   : > { %v6466_v5 = vpack.c.bf16 %v6462_v9, %v6462_v9  ;;  %v15665_v9 = vld [vmem:[#allocation49 + $0xac] ss:$16 sps:$4 sm:$0xff]  }
0x1dce   : > { %14569 = vmatmul.mubr.msk.bf16.vlgmr.msra.gmra.mxu1 %vm1908_vm2, %v6466_v5  ;;  %v15660_v5 = vld [vmem:[#allocation49 + $0xa0] ss:$16 sps:$4 sm:$0xff]  }
0x1dcf   : > { %14594 = vmatprep.mubr.msk.bf16.mxu1 %vm17389_vm0, %v17388_v0  ;;  %14579 = vmatpush3.bf16.msra.mxu1 %v15640_v12  ;;  %v15666_v12 = vld [vmem:[#allocation49 + $0x80] ss:$16 sps:$4 sm:$0xff]  }
0x1dd0   : > { %14580 = vmatprep.subr.bf16.mxu1 %v17388_v0 }
0x1dd1   : > { %v16131_v35 = vpop.eup %16130 }
0x1dd2   : > { %v6463_v10 = vmul.f32 %v16131_v35, %v16123_v51  ;;  %v15663_v35 = vld [vmem:[#allocation49 + $0xa8] ss:$16 sps:$4 sm:$0xff]  }
0x1dd3   : > { %14581 = vmatpush3.bf16.msra.mxu1 %v15641_v14  ;;  %v15674_v14 = vld [vmem:[#allocation49 + $0x64] ss:$16 sps:$4 sm:$0xff]  }
0x1dd4   : > { %v6467_v11 = vpack.c.bf16 %v6463_v10, %v6463_v10  ;;  %14582 = vmatprep.subr.bf16.mxu1 %v17388_v0  ;;  %v15668_v10 = vld [vmem:[#allocation49 + $0x84] ss:$16 sps:$4 sm:$0xff]  }
0x1dd6   : > { %14575 = vmatmul.mubr.msk.bf16.vlgmr.msra.gmra.mxu0 %vm1908_vm2, %v6467_v11  ;;  %v15671_v11 = vld [vmem:[#allocation49 + $0x8c] ss:$16 sps:$4 sm:$0xff]  }
0x1dd7   : > { %7054 = vmatprep.mubr.bf16.mxu0 %v17390_v29  ;;  %14583 = vmatpush3.bf16.msra.mxu1 %v15642_v17  ;;  %v15675_v17 = vld [vmem:[#allocation49 + $0x68] ss:$16 sps:$4 sm:$0xff]  }
0x1dd8   : > { %14584 = vmatprep.subr.bf16.mxu1 %v17388_v0  ;;  %7023 = vmatpush1.bf16.msra.mxu0 %v15648_v57  ;;  %v15706_v57 = vld [vmem:[#allocation52 + $0x28] sm:$0xff]  }
0x1dd9   : > { %7024 = vmatprep.subr.bf16.mxu0 %v15656_v62  ;;  %v15710_v62 = vld [vmem:[#allocation52 + $0x20] sm:$0xff]  }
0x1ddb   : > { %14585 = vmatpush3.bf16.msra.mxu1 %v15643_v37  ;;  %v15683_v37 = vld [vmem:[#allocation49 + $0x4c] ss:$16 sps:$4 sm:$0xff]  }
0x1ddc   : > { %14586 = vmatprep.subr.bf16.mxu1 %v17388_v0  ;;  %7025 = vmatpush1.bf16.msra.mxu0 %v15654_v2  ;;  %v15712_v2 = vld [vmem:[#allocation52 + $0x58] sm:$0xff]  }
0x1ddd   : > { %7026 = vmatprep.subr.bf16.mxu0 %v15662_v8  ;;  %v15718_v8 = vld [vmem:[#allocation52 + $0x10] sm:$0xff]  }
0x1ddf   : > { %14587 = vmatpush3.bf16.msra.mxu1 %v15644_v18  ;;  %v15678_v18 = vld [vmem:[#allocation49 + $0x40] ss:$16 sps:$4 sm:$0xff]  }
0x1de0   : > { %14588 = vmatprep.subr.bf16.mxu1 %v17388_v0  ;;  %7027 = vmatpush1.bf16.msra.mxu0 %v15660_v5  ;;  %v15720_v5 = vld [vmem:[#allocation52 + $0x48] sm:$0xff]  }
0x1de1   : > { %7028 = vmatprep.subr.bf16.mxu0 %v15668_v10  ;;  %v15722_v10 = vld [vmem:[#allocation52 + $0x8] sm:$0xff]  }
0x1de3   : > { %14589 = vmatpush3.bf16.msra.mxu1 %v15645_v48  ;;  %v15681_v48 = vld [vmem:[#allocation49 + $0x48] ss:$16 sps:$4 sm:$0xff]  }
0x1de4   : > { %14590 = vmatprep.subr.bf16.mxu1 %v17388_v0  ;;  %7029 = vmatpush1.bf16.msra.mxu0 %v15666_v12  ;;  %v15724_v12 = vld [vmem:[#allocation52 + $0x40] sm:$0xff]  }
0x1de5   : > { %7030 = vmatprep.subr.bf16.mxu0 %v15674_v14  ;;  %v15726_v14 = vld [vmem:[#allocation52] sm:$0xff]  }
0x1de7   : > { %14591 = vmatpush3.bf16.msra.mxu1 %v15646_v19  ;;  %v15686_v19 = vld [vmem:[#allocation49 + $0x24] ss:$16 sps:$4 sm:$0xff]  }
0x1de8   : > { %14592 = vmatprep.subr.bf16.mxu1 %v17388_v0 }
0x1deb   : > { %14593 = vmatpush3.bf16.msra.mxu1 %v15647_v40  ;;  %v15687_v40 = vld [vmem:[#allocation49 + $0x28] ss:$16 sps:$4 sm:$0xff]  }
0x1dec   : > { %7063 = vmatprep.subr.bf16.mxu1 %v15653_v61  ;;  %v15709_v61 = vld [vmem:[#allocation52 + $0xe0] sm:$0xff]  }
0x1e1e   : > { %v6508_v53 = vpop.f32.mrf.mxu1 }
0x1e20   : > { %v14558_v15 = vpop.f32.mrf.mxu1 }
0x1e21   : > { %v15677_v15 = vld [vmem:[#allocation49 + $0x6c] ss:$16 sps:$4 sm:$0xff]  }
0x1e22   : > { %v6511_v16 = vpop.f32.mrf.mxu1 }
0x1e23   : > { %v15672_v16 = vld [vmem:[#allocation49 + $0x60] ss:$16 sps:$4 sm:$0xff]  }
0x1e24   : > { %v14559_v3 = vpop.f32.mrf.mxu1  ;;  %7031 = vmatpush1.bf16.msra.mxu0 %v15672_v16  ;;  %v6839_v16 = vld [vmem:[#allocation51] sm:$0xf] }
0x1e25   : > { %v15680_v3 = vld [vmem:[#allocation49 + $0x44] ss:$16 sps:$4 sm:$0xff]  }
0x1e26   : > { %7032 = vmatprep.subr.bf16.mxu0 %v15680_v3  ;;  %v6853_v3 = vrot.slane %v6839_v16, %v18084_v59 }
0x1e28   : > { %7033 = vmatpush1.bf16.msra.mxu0 %v15678_v18  ;;  %v6857_v18 = vrot.slane %v6839_v16, %v18158_v23 }
0x1e29   : > { %7034 = vmatprep.subr.bf16.mxu0 %v15686_v19 }
0x1e86   : > { %v6554_v20 = vpop.f32.mrf.mxu0 }
0x1e87   : > { %6653 = vrot.lane.b32.xlu1 %v6554_v20, %s17392_s15  ;;  %v15689_v20 = vld [vmem:[#allocation49 + $0x2c] ss:$16 sps:$4 sm:$0xff]  }
0x1e88   : > { %v14564_v21 = vpop.f32.mrf.mxu0 }
0x1e89   : > { %v15684_v21 = vld [vmem:[#allocation49 + $0x20] ss:$16 sps:$4 sm:$0xff]  }
0x1e8a   : > { %v6557_v25 = vpop.f32.mrf.mxu0  ;;  %7035 = vmatpush1.bf16.msra.mxu0 %v15684_v21 }
0x1e8b   : > { %v15692_v25 = vld [vmem:[#allocation49 + $0x4] ss:$16 sps:$4 sm:$0xff]  }
0x1e8c   : > { %v14565_v22 = vpop.f32.mrf.mxu0  ;;  %7036 = vmatprep.subr.bf16.mxu0 %v15692_v25 }
0x1e8d   : > { %v15695_v22 = vld [vmem:[#allocation49 + $0xc] ss:$16 sps:$4 sm:$0xff]  }
0x1e8e   : > { %v6600_v26 = vpop.f32.mrf.mxu1 }
0x1e8f   : > { %6657 = vrot.lane.b32.xlu0 %v6600_v26, %s17393_s26  ;;  %v15690_v26 = vld [vmem:[#allocation49] ss:$16 sps:$4 sm:$0xff]  }
0x1e90   : > { %v14570_v27 = vpop.f32.mrf.mxu1  ;;  %7037 = vmatpush1.bf16.msra.mxu0 %v15690_v26 }
0x1e91   : > { %v15693_v27 = vld [vmem:[#allocation49 + $0x8] ss:$16 sps:$4 sm:$0xff]  }
0x1e92   : > { %v6603_v28 = vpop.f32.mrf.mxu1 }
0x1e93   : > { %v15696_v28 = vld [vmem:[#allocation52 + $0x78] sm:$0xff]  }
0x1e94   : > { %v14571_v30 = vpop.f32.mrf.mxu1  ;;  %13963 = vmatprep.subr.bf16.mxu0 %v15696_v28 }
0x1e95   : > { %v15697_v30 = vld [vmem:[#allocation52 + $0xf8] sm:$0xff]  }
0x1e96   : > { %v6646_v31 = vpop.f32.mrf.mxu0 }
0x1e97   : > { %6661 = vrot.lane.b32.xlu1 %v6646_v31, %s17391_s2 }
0x1e98   : > { %v14576_v32 = vpop.f32.mrf.mxu0 }
0x1e9a   : > { %v6649_v33 = vpop.f32.mrf.mxu0 }
0x1e9c   : > { %v14577_v34 = vpop.f32.mrf.mxu0 }
0x1ef9   : > { %v6654_v36 = vpop.permute.xlu1 %6653 }
0x1efa   : > { %v6664_v44 = vsel %vm2241_vm3, %v6508_v53, %v6654_v36  ;;  %v15669_v53 = vld [vmem:[#allocation49 + $0x88] ss:$16 sps:$4 sm:$0xff]  }
0x1efb   : > { %v13347_v36 = vld [vmem:[#allocation46] ss:$0 sm:$0xff] }
0x1f01   : > { %v6658_v38 = vpop.permute.xlu0 %6657 }
0x1f02   : > { %v6665_v45 = vsel %vm2675_vm4, %v6664_v44, %v6658_v38  ;;  %v13348_v44 = vld [vmem:[#allocation48] ss:$0 sm:$0xff] }
0x1f09   : > { %v6662_v46 = vpop.permute.xlu1 %6661 }
0x1f0a   : > { %v6666_v63 = vsel %vm2677_vm5, %v6665_v45, %v6662_v46 }
0x1f0b   : > { %v6684_v47 = vpack.c.bf16 %v6666_v63, %v6666_v63  ;;  %v15698_v63 = vld [vmem:[#allocation52 + $0x38] sm:$0xff]  }
0x1f0d   : > { %14595 = vmatmul.mubr.bf16.vlgmr.msra.gmra.mxu1 %v6684_v47  ;;  %v15699_v47 = vld [vmem:[#allocation52 + $0xb8] sm:$0xff]  }
0x1f0e   : > { %7095 = vmatprep.mubr.bf16.mxu1 %v17390_v29  ;;  %7064 = vmatpush1.bf16.msra.mxu1 %v15651_v60  ;;  %v15708_v60 = vld [vmem:[#allocation52 + $0x60] sm:$0xff]  }
0x1f0f   : > { %7065 = vmatprep.subr.bf16.mxu1 %v15659_v1  ;;  %v15711_v1 = vld [vmem:[#allocation52 + $0xa0] sm:$0xff]  }
0x1f12   : > { %7066 = vmatpush1.bf16.msra.mxu1 %v15657_v4  ;;  %v15713_v4 = vld [vmem:[#allocation52 + $0xd8] sm:$0xff]  }
0x1f13   : > { %7067 = vmatprep.subr.bf16.mxu1 %v15665_v9  ;;  %v15719_v9 = vld [vmem:[#allocation52 + $0x90] sm:$0xff]  }
0x1f16   : > { %7068 = vmatpush1.bf16.msra.mxu1 %v15663_v35  ;;  %v15721_v35 = vld [vmem:[#allocation52 + $0xc8] sm:$0xff]  }
0x1f17   : > { %7069 = vmatprep.subr.bf16.mxu1 %v15671_v11  ;;  %v15723_v11 = vld [vmem:[#allocation52 + $0x88] sm:$0xff]  }
0x1f1a   : > { %7070 = vmatpush1.bf16.msra.mxu1 %v15669_v53  ;;  %v15725_v53 = vld [vmem:[#allocation52 + $0xc0] sm:$0xff]  }
0x1f1b   : > { %7071 = vmatprep.subr.bf16.mxu1 %v15677_v15  ;;  %v15727_v15 = vld [vmem:[#allocation52 + $0x80] sm:$0xff]  }
0x1f1e   : > { %7072 = vmatpush1.bf16.msra.mxu1 %v15675_v17  ;;  %v6845_v17 = vrot.slane %v6839_v16, %v18065_v41 }
0x1f1f   : > { %7073 = vmatprep.subr.bf16.mxu1 %v15683_v37  ;;  %v6849_v37 = vrot.slane %v6839_v16, %v18068_v43  ;;  %v15744_v16 = vld [vmem:[#allocation28 + $0x108] ss:$12 sps:$4 sm:$0xff]  }
0x1f22   : > { %7074 = vmatpush1.bf16.msra.mxu1 %v15681_v48 }
0x1f23   : > { %7075 = vmatprep.subr.bf16.mxu1 %v15689_v20 }
0x1f26   : > { %7076 = vmatpush1.bf16.msra.mxu1 %v15687_v40 }
0x1f27   : > { %7077 = vmatprep.subr.bf16.mxu1 %v15695_v22 }
0x1f2a   : > { %7078 = vmatpush1.bf16.msra.mxu1 %v15693_v27 }
0x1f2b   : > { %13985 = vmatprep.subr.bf16.mxu1 %v15697_v30 }
0x1fcd   : > { %v6773_v50 = vpop.f32.mrf.mxu1 }
0x1fce   : > { %v6774_v51 = vadd.f32 %v13338_v49, %v6773_v50  ;;  %v15700_v50 = vld [vmem:[#allocation52 + $0x70] sm:$0xff]  }
0x1fcf   : > { %v14596_v52 = vpop.f32.mrf.mxu1 }
0x1fd0   : > { %v6779_v54 = vadd.f32 %v6774_v51, %v18419_v24  ;;  %v15701_v51 = vld [vmem:[#allocation52 + $0xf0] sm:$0xff]  }
0x1fd1   : > { %v6776_v55 = vpop.f32.mrf.mxu1  ;;  %v15702_v52 = vld [vmem:[#allocation52 + $0x30] sm:$0xff]  }
0x1fd2   : > { %6782 = vadd.xlane.f32.xlu0 %v6779_v54  ;;  %v15704_v55 = vld [vmem:[#allocation52 + $0x68] sm:$0xff]  }
0x1fd3   : > { %v14597_v56 = vpop.f32.mrf.mxu1 }
0x1fd4   : > { %v15705_v56 = vld [vmem:[#allocation52 + $0xe8] sm:$0xff]  }
0x205b   : > { %v6783_v24 = vpop.xlane.xlu0 %6782 }
0x205c   : > { %v6784_v42 = vmul.f32 0.0078125, %v6783_v24  ;;  %v15714_v24 = vld [vmem:[#allocation52 + $0x18] sm:$0xff]  }
0x205e   : > { %v6785_v6 = vsub.f32 %v6779_v54, %v6784_v42  ;;  %v15703_v54 = vld [vmem:[#allocation52 + $0xb0] sm:$0xff]   ;;  %v15715_v42 = vld [vmem:[#allocation52 + $0x98] sm:$0xff]  }
0x2060   : > { %v6786_v7 = vmul.f32 %v6785_v6, %v6785_v6 }
0x2062   : > { %6787 = vadd.xlane.f32.xlu1 %v6786_v7  ;;  %v15717_v7 = vld [vmem:[#allocation52 + $0xd0] sm:$0xff]  }
0x20eb   : > { %v6788_v31 = vpop.xlane.xlu1 %6787 }
0x20ec   : > { %v6789_v32 = vmul.f32 0.0078125, %v6788_v31 }
0x20ee   : > { %v6790_v33 = vadd.f32 1e-05, %v6789_v32 }
0x20f0   : > { %16132 = vrsqrt.f32 %v6790_v33 }
0x20fd   : > { %v16133_v34 = vpop.eup %16132 }
0x20fe   : > { %v6792_v38 = vmul.f32 %v16133_v34, %v6785_v6  ;;  %v15716_v6 = vld [vmem:[#allocation52 + $0x50] sm:$0xff]  }
0x2100   : > { %v6799_v45 = vmul.f32 %v13347_v36, %v6792_v38 }
0x2102   : > { %v18505_v46 = vadd.f32 %v13348_v44, %v6799_v45 }
0x2104   : > { %v6840_v49 = vpack.c.bf16 %v18505_v46, %v18505_v46 }
0x2106   : > { %7055 = vmatmul.mubr.bf16.vlgmr.msra.gmra.mxu0 %v6840_v49  ;;  %7096 = vmatmul.mubr.bf16.vlgmr.msra.gmra.mxu1 %v6840_v49 }
0x2107   : > { %13964 = vmatpush3.bf16.msra.mxu0 %v15698_v63  ;;  %13986 = vmatpush3.bf16.msra.mxu1 %v15699_v47 }
0x2108   : > { %13965 = vmatprep.subr.bf16.mxu0 %v15700_v50  ;;  %13987 = vmatprep.subr.bf16.mxu1 %v15701_v51  ;;  %v13381_v50 = vld [vmem:[#allocation54] ss:$0 sm:$0xff] }
0x210b   : > { %13966 = vmatpush3.bf16.msra.mxu0 %v15702_v52  ;;  %13988 = vmatpush3.bf16.msra.mxu1 %v15703_v54 }
0x210c   : > { %13967 = vmatprep.subr.bf16.mxu0 %v15704_v55  ;;  %13989 = vmatprep.subr.bf16.mxu1 %v15705_v56 }
0x210f   : > { %13968 = vmatpush3.bf16.msra.mxu0 %v15706_v57  ;;  %13990 = vmatpush3.bf16.msra.mxu1 %v15707_v58 }
0x2110   : > { %13969 = vmatprep.subr.bf16.mxu0 %v15708_v60  ;;  %13991 = vmatprep.subr.bf16.mxu1 %v15709_v61 }
0x2113   : > { %13970 = vmatpush3.bf16.msra.mxu0 %v15710_v62  ;;  %13992 = vmatpush3.bf16.msra.mxu1 %v15711_v1 }
0x2114   : > { %13971 = vmatprep.subr.bf16.mxu0 %v15712_v2  ;;  %13993 = vmatprep.subr.bf16.mxu1 %v15713_v4  ;;  %v15728_v2 = vld [vmem:[#allocation28 + $0x168] ss:$12 sps:$4 sm:$0xff]   ;;  %v15730_v4 = vld [vmem:[#allocation28 + $0x16c] ss:$12 sps:$4 sm:$0xff]  }
0x2117   : > { %13972 = vmatpush3.bf16.msra.mxu0 %v15714_v24  ;;  %13994 = vmatpush3.bf16.msra.mxu1 %v15715_v42  ;;  %v15731_v24 = vld [vmem:[#allocation28 + $0x170] ss:$12 sps:$4 sm:$0xff]   ;;  %v15734_v42 = vld [vmem:[#allocation28 + $0x154] ss:$12 sps:$4 sm:$0xff]  }
0x2118   : > { %13973 = vmatprep.subr.bf16.mxu0 %v15716_v6  ;;  %13995 = vmatprep.subr.bf16.mxu1 %v15717_v7  ;;  %v15735_v6 = vld [vmem:[#allocation28 + $0x158] ss:$12 sps:$4 sm:$0xff]   ;;  %v15732_v7 = vld [vmem:[#allocation28 + $0x150] ss:$12 sps:$4 sm:$0xff]  }
0x211b   : > { %13974 = vmatpush3.bf16.msra.mxu0 %v15718_v8  ;;  %13996 = vmatpush3.bf16.msra.mxu1 %v15719_v9 }
0x211c   : > { %13975 = vmatprep.subr.bf16.mxu0 %v15720_v5  ;;  %13997 = vmatprep.subr.bf16.mxu1 %v15721_v35  ;;  %v15738_v35 = vld [vmem:[#allocation28 + $0x13c] ss:$12 sps:$4 sm:$0xff]  }
0x211f   : > { %13976 = vmatpush3.bf16.msra.mxu0 %v15722_v10  ;;  %13998 = vmatpush3.bf16.msra.mxu1 %v15723_v11  ;;  %v15736_v10 = vld [vmem:[#allocation28 + $0x138] ss:$12 sps:$4 sm:$0xff]   ;;  %v15739_v11 = vld [vmem:[#allocation28 + $0x140] ss:$12 sps:$4 sm:$0xff]  }
0x2120   : > { %13977 = vmatprep.subr.bf16.mxu0 %v15724_v12  ;;  %13999 = vmatprep.subr.bf16.mxu1 %v15725_v53  ;;  %v15742_v12 = vld [vmem:[#allocation28 + $0x124] ss:$12 sps:$4 sm:$0xff]   ;;  %v15740_v53 = vld [vmem:[#allocation28 + $0x120] ss:$12 sps:$4 sm:$0xff]  }
0x2123   : > { %13978 = vmatpush3.bf16.msra.mxu0 %v15726_v14  ;;  %14000 = vmatpush3.bf16.msra.mxu1 %v15727_v15  ;;  %v15743_v14 = vld [vmem:[#allocation28 + $0x128] ss:$12 sps:$4 sm:$0xff]   ;;  %v15746_v15 = vld [vmem:[#allocation28 + $0x10c] ss:$12 sps:$4 sm:$0xff]  }
0x2124   : > { %14598 = vmatprep.subr.bf16.mxu1 %v17388_v0  ;;  %7663 = vmatprep.subr.bf16.mxu0 %v15730_v4 }
0x21c6   : > { %v7056_v48 = vpop.f32.mrf.mxu0  ;;  %v7097_v19 = vpop.f32.mrf.mxu1 }
0x21c7   : > { %v7057_v20 = vadd.f32 %v7056_v48, %v6845_v17  ;;  %v7098_v21 = vadd.f32 %v7097_v19, %v6853_v3  ;;  %v15747_v17 = vld [vmem:[#allocation28 + $0x110] ss:$12 sps:$4 sm:$0xff]   ;;  %v15750_v3 = vld [vmem:[#allocation28 + $0xf4] ss:$12 sps:$4 sm:$0xff]   ;;  %v15752_v19 = vld [vmem:[#allocation28 + $0xd8] ss:$12 sps:$4 sm:$0xff]  }
0x21c8   : > { %v7058_v40 = vpop.f32.mrf.mxu0  ;;  %v7099_v25 = vpop.f32.mrf.mxu1  ;;  %v15754_v48 = vld [vmem:[#allocation28 + $0xdc] ss:$12 sps:$4 sm:$0xff]  }
0x21c9   : > { %v7059_v22 = vadd.f32 %v7058_v40, %v6849_v37  ;;  %v7100_v26 = vadd.f32 %v7099_v25, %v6857_v18  ;;  %v7104_v27 = vmax.f32 %v7057_v20, 0.0  ;;  %v7106_v28 = vmax.f32 %v7098_v21, 0.0  ;;  %v15748_v37 = vld [vmem:[#allocation28 + $0xf0] ss:$12 sps:$4 sm:$0xff]   ;;  %v15751_v18 = vld [vmem:[#allocation28 + $0xf8] ss:$12 sps:$4 sm:$0xff]  }
0x21ca   : > { %v7060_v30 = vpop.f32.mrf.mxu0  ;;  %v7101_v31 = vpop.f32.mrf.mxu1  ;;  %v15755_v20 = vld [vmem:[#allocation28 + $0xe0] ss:$12 sps:$4 sm:$0xff]   ;;  %v15758_v21 = vld [vmem:[#allocation28 + $0xc4] ss:$12 sps:$4 sm:$0xff]   ;;  %v15759_v25 = vld [vmem:[#allocation28 + $0xc8] ss:$12 sps:$4 sm:$0xff]  }
0x21cb   : > { %v7105_v32 = vmax.f32 %v7059_v22, 0.0  ;;  %v7107_v33 = vmax.f32 %v7100_v26, 0.0  ;;  %v7173_v45 = vpack.c.bf16 %v7104_v27, %v7104_v27  ;;  %v7175_v63 = vpack.c.bf16 %v7106_v28, %v7106_v28  ;;  %v15756_v40 = vld [vmem:[#allocation28 + $0xc0] ss:$12 sps:$4 sm:$0xff]   ;;  %v13414_v30 = vld [vmem:[#allocation55] ss:$0 sm:$0xff] }
0x21cc   : > { %v7061_v34 = vpop.f32.mrf.mxu0  ;;  %v7102_v36 = vpop.f32.mrf.mxu1 }
0x21cd   : > { %v7174_v38 = vpack.c.bf16 %v7105_v32, %v7105_v32  ;;  %v7176_v44 = vpack.c.bf16 %v7107_v33, %v7107_v33  ;;  %v13415_v32 = vld [vmem:[#allocation57] ss:$0 sm:$0xff] }
0x21cf   : > { %7407 = vmatprep.mubr.bf16.mxu0 %v7174_v38  ;;  %7447 = vmatprep.mubr.bf16.mxu1 %v7176_v44  ;;  %v7517_v38 = vld [vmem:[#allocation30 + $0x3] sm:$0x7] }
0x21d0   : > { %7408 = vmatmul.mubr.bf16.vlgmr.msra.gmra.mxu0 %v7173_v45  ;;  %7448 = vmatmul.mubr.bf16.vlgmr.msra.gmra.mxu1 %v7175_v63  ;;  %v7523_v44 = vrot.slane %v7517_v38, %v18065_v41  ;;  %v7531_v45 = vrot.slane %v7517_v38, %v18084_v59  ;;  %v7527_v63 = vrot.slane %v7517_v38, %v18068_v43 }
0x21d1   : > { %7695 = vmatprep.mubr.bf16.mxu0 %v17390_v29  ;;  %14614 = vmatprep.mubr.msk.bf16.mxu1 %vm17389_vm0, %v17388_v0 }
0x21d2   : > { %14599 = vmatpush3.bf16.msra.mxu1 %v15731_v24  ;;  %7664 = vmatpush1.bf16.msra.mxu0 %v15728_v2 }
0x21d3   : > { %14600 = vmatprep.subr.bf16.mxu1 %v17388_v0  ;;  %7665 = vmatprep.subr.bf16.mxu0 %v15734_v42 }
0x21d6   : > { %14601 = vmatpush3.bf16.msra.mxu1 %v15735_v6  ;;  %7666 = vmatpush1.bf16.msra.mxu0 %v15732_v7 }
0x21d7   : > { %14602 = vmatprep.subr.bf16.mxu1 %v17388_v0  ;;  %7667 = vmatprep.subr.bf16.mxu0 %v15738_v35 }
0x21da   : > { %7668 = vmatpush1.bf16.msra.mxu0 %v15736_v10  ;;  %14603 = vmatpush3.bf16.msra.mxu1 %v15739_v11 }
0x21db   : > { %14604 = vmatprep.subr.bf16.mxu1 %v17388_v0  ;;  %7669 = vmatprep.subr.bf16.mxu0 %v15742_v12 }
0x21de   : > { %7670 = vmatpush1.bf16.msra.mxu0 %v15740_v53  ;;  %14605 = vmatpush3.bf16.msra.mxu1 %v15743_v14 }
0x21df   : > { %14606 = vmatprep.subr.bf16.mxu1 %v17388_v0  ;;  %7671 = vmatprep.subr.bf16.mxu0 %v15746_v15 }
0x21e2   : > { %7672 = vmatpush1.bf16.msra.mxu0 %v15744_v16  ;;  %14607 = vmatpush3.bf16.msra.mxu1 %v15747_v17 }
0x21e3   : > { %14608 = vmatprep.subr.bf16.mxu1 %v17388_v0  ;;  %7673 = vmatprep.subr.bf16.mxu0 %v15750_v3 }
0x21e6   : > { %7674 = vmatpush1.bf16.msra.mxu0 %v15748_v37  ;;  %14609 = vmatpush3.bf16.msra.mxu1 %v15751_v18 }
0x21e7   : > { %14610 = vmatprep.subr.bf16.mxu1 %v17388_v0  ;;  %7675 = vmatprep.subr.bf16.mxu0 %v15754_v48 }
0x21ea   : > { %7676 = vmatpush1.bf16.msra.mxu0 %v15752_v19  ;;  %14611 = vmatpush3.bf16.msra.mxu1 %v15755_v20 }
0x21eb   : > { %7677 = vmatprep.subr.bf16.mxu0 %v15758_v21  ;;  %14612 = vmatprep.subr.bf16.mxu1 %v17388_v0 }
0x21ee   : > { %7678 = vmatpush1.bf16.msra.mxu0 %v15756_v40  ;;  %14613 = vmatpush3.bf16.msra.mxu1 %v15759_v25 }
0x21ef   : > { %14642 = vmatprep.subr.bf16.mxu1 %v17388_v0  ;;  %14618 = vmatprep.subr.bf16.mxu0 %v17388_v0 }
0x2290   : > { %v13979_v47 = vpop.f32.mrf.mxu0  ;;  %v14001_v49 = vpop.f32.mrf.mxu1 }
0x2292   : > { %v13980_v51 = vpop.f32.mrf.mxu0  ;;  %v14002_v52 = vpop.f32.mrf.mxu1 }
0x2293   : > { %v13981_v54 = vadd.f32 %v13980_v51, %v13979_v47  ;;  %v14003_v58 = vadd.f32 %v14002_v52, %v14001_v49 }
0x2294   : > { %v13982_v55 = vpop.f32.mrf.mxu0  ;;  %v14004_v56 = vpop.f32.mrf.mxu1 }
0x2295   : > { %v7410_v57 = vadd.f32 %v13981_v54, %v13381_v50 }
0x2296   : > { %v13983_v60 = vpop.f32.mrf.mxu0  ;;  %v14005_v61 = vpop.f32.mrf.mxu1 }
0x2297   : > { %v7450_v62 = vadd.f32 %v14003_v58, %v7410_v57 }
0x2299   : > { %v7455_v1 = vadd.f32 %v7450_v62, %v18505_v46 }
0x229b   : > { %7458 = vadd.xlane.f32.xlu0 %v7455_v1 }
0x2324   : > { %v7459_v8 = vpop.xlane.xlu0 %7458 }
0x2325   : > { %v7460_v9 = vmul.f32 0.0078125, %v7459_v8 }
0x2327   : > { %v7461_v46 = vsub.f32 %v7455_v1, %v7460_v9 }
0x2329   : > { %v7462_v5 = vmul.f32 %v7461_v46, %v7461_v46 }
0x232b   : > { %7463 = vadd.xlane.f32.xlu0 %v7462_v5 }
0x23b4   : > { %v7464_v22 = vpop.xlane.xlu0 %7463 }
0x23b5   : > { %v7465_v26 = vmul.f32 0.0078125, %v7464_v22 }
0x23b7   : > { %v7466_v27 = vadd.f32 1e-05, %v7465_v26 }
0x23b9   : > { %16134 = vrsqrt.f32 %v7466_v27 }
0x23c6   : > { %v16135_v28 = vpop.eup %16134 }
0x23c7   : > { %v7468_v31 = vmul.f32 %v16135_v28, %v7461_v46 }
0x23c9   : > { %v7475_v33 = vmul.f32 %v13414_v30, %v7468_v31 }
0x23cb   : > { %v18527_v34 = vadd.f32 %v13415_v32, %v7475_v33 }
0x23cd   : > { %v7518_v36 = vpack.c.bf16 %v18527_v34, %v18527_v34 }
0x23cf   : > { %7696 = vmatmul.mubr.bf16.vlgmr.msra.gmra.mxu0 %v7518_v36  ;;  %14615 = vmatmul.mubr.bf16.vlgmr.msra.gmra.mxu1 %v7518_v36 }
0x23d0   : > { %14620 = vmatprep.mubr.msk.bf16.mxu0 %vm17389_vm0, %v17388_v0  ;;  %14644 = vmatprep.mubr.msk.bf16.mxu1 %vm17389_vm0, %v17388_v0 }
0x248f   : > { %v7697_v47 = vpop.f32.mrf.mxu0  ;;  %v7738_v49 = vpop.f32.mrf.mxu1 }
0x2490   : > { %v7698_v50 = vadd.f32 %v7697_v47, %v7523_v44  ;;  %v7739_v51 = vadd.f32 %v7738_v49, %v7531_v45 }
0x2491   : > { %v7699_v52 = vpop.f32.mrf.mxu0  ;;  %v14616_v54 = vpop.f32.mrf.mxu1 }
0x2492   : > { %v7744_v55 = vpack.c.bf16 %v7698_v50, %v7698_v50  ;;  %v18538_v56 = vpack.c.bf16 %v7739_v51, %v7739_v51  ;;  %v7700_v57 = vadd.f32 %v7699_v52, %v7527_v63 }
0x2493   : > { %v7701_v58 = vpop.f32.mrf.mxu0  ;;  %v7741_v60 = vpop.f32.mrf.mxu1 }
0x2494   : > { %v7752_v61 = vpack.c.bf16 %v7700_v57, %v7700_v57  ;;  %7746 = vrot.lane.b32.xlu0 %v7744_v55, %s17391_s2  ;;  %v8012_v62 = vsel %vm1912_vm1, %v18538_v56, 0 }
0x2495   : > { %v7702_v1 = vpop.f32.mrf.mxu0  ;;  %v14617_v2 = vpop.f32.mrf.mxu1  ;;  %14643 = vmatpush3.bf16.msra.mxu1 %v8012_v62 }
0x2496   : > { %7754 = vrot.lane.b32.xlu1 %v7752_v61, %s17391_s2  ;;  %v7772_v4 = vsel %vm2241_vm3, %v7752_v61, 0  ;;  %14654 = vmatprep.subr.bf16.mxu1 %v17388_v0 }
0x2497   : > { %14619 = vmatpush3.bf16.xpose.msra.mxu0 %v7772_v4 }
0x2498   : > { %7758 = vrot.lane.b32.xlu0 %v7752_v61, %s17392_s15  ;;  %14624 = vmatprep.subr.bf16.mxu0 %v17388_v0 }
0x249a   : > { %7756 = vrot.lane.b32.xlu1 %v7752_v61, %s17393_s26 }
0x249e   : > { %7748 = vrot.lane.b32.xlu1 %v7744_v55, %s17393_s26  ;;  %14621 = vmatmul.mubr.msk.bf16.vlgmr.msra.gmra.mxu0 %vm2241_vm3, %v7744_v55 }
0x249f   : > { %14626 = vmatprep.mubr.msk.bf16.mxu0 %vm17389_vm0, %v17388_v0 }
0x24a2   : > { %7750 = vrot.lane.b32.xlu1 %v7744_v55, %s17392_s15 }
0x2506   : > { %v7747_v7 = vpop.permute.xlu0 %7746 }
0x2508   : > { %v7755_v24 = vpop.permute.xlu1 %7754 }
0x2509   : > { %v7818_v42 = vsel %vm2241_vm3, %v7755_v24, 0 }
0x250a   : > { %14625 = vmatpush3.bf16.xpose.msra.mxu0 %v7818_v42  ;;  %v7759_v9 = vpop.permute.xlu0 %7758 }
0x250b   : > { %14630 = vmatprep.subr.bf16.mxu0 %v17388_v0  ;;  %v7910_v5 = vsel %vm2241_vm3, %v7759_v9, 0 }
0x250c   : > { %v7757_v6 = vpop.permute.xlu1 %7756 }
0x250d   : > { %v7864_v8 = vsel %vm2241_vm3, %v7757_v6, 0 }
0x2510   : > { %v7749_v46 = vpop.permute.xlu1 %7748 }
0x2511   : > { %14627 = vmatmul.mubr.msk.bf16.vlgmr.msra.gmra.mxu0 %vm2241_vm3, %v7747_v7 }
0x2512   : > { %14631 = vmatpush3.bf16.xpose.msra.mxu0 %v7864_v8  ;;  %14632 = vmatprep.mubr.msk.bf16.mxu0 %vm17389_vm0, %v17388_v0 }
0x2513   : > { %14636 = vmatprep.subr.bf16.mxu0 %v17388_v0 }
0x2514   : > { %v7751_v35 = vpop.permute.xlu1 %7750 }
0x2519   : > { %14633 = vmatmul.mubr.msk.bf16.vlgmr.msra.gmra.mxu0 %vm2241_vm3, %v7749_v46 }
0x251a   : > { %14637 = vmatpush3.bf16.xpose.msra.mxu0 %v7910_v5  ;;  %14638 = vmatprep.mubr.msk.bf16.mxu0 %vm17389_vm0, %v17388_v0 }
0x251b   : > { %14648 = vmatprep.subr.bf16.mxu0 %v17388_v0 }
0x2521   : > { %14639 = vmatmul.mubr.msk.bf16.vlgmr.msra.gmra.mxu0 %vm2241_vm3, %v7751_v35 }
0x2522   : > { %14650 = vmatprep.mubr.msk.bf16.mxu0 %vm17389_vm0, %v17388_v0 }
0x255e   : > { %v7808_v10 = vpop.f32.mrf.mxu0 }
0x255f   : > { %v7952_v11 = vmul.f32 0.17677669, %v7808_v10 }
0x2560   : > { %v14622_v12 = vpop.f32.mrf.mxu0 }
0x2561   : > { %v7956_v53 = vadd.f32 %v7952_v11, %v18335_v13 }
0x2562   : > { %v7811_v14 = vpop.f32.mrf.mxu0 }
0x2563   : > { %v7960_v15 = vsel %vm1908_vm2, %v7956_v53, -inf }
0x2564   : > { %7961 = vmax.xlane.f32.xlu0 %v7960_v15  ;;  %v14623_v16 = vpop.f32.mrf.mxu0 }
0x25d1   : > { %v7854_v17 = vpop.f32.mrf.mxu0 }
0x25d2   : > { %v7953_v3 = vmul.f32 0.17677669, %v7854_v17 }
0x25d3   : > { %v14628_v37 = vpop.f32.mrf.mxu0 }
0x25d4   : > { %v7957_v18 = vadd.f32 %v7953_v3, %v18335_v13 }
0x25d5   : > { %v7857_v48 = vpop.f32.mrf.mxu0 }
0x25d6   : > { %v7963_v19 = vsel %vm1908_vm2, %v7957_v18, -inf }
0x25d7   : > { %7964 = vmax.xlane.f32.xlu1 %v7963_v19  ;;  %v14629_v20 = vpop.f32.mrf.mxu0 }
0x25d9   : > { %v7900_v21 = vpop.f32.mrf.mxu0 }
0x25da   : > { %v7954_v40 = vmul.f32 0.17677669, %v7900_v21 }
0x25db   : > { %v14634_v25 = vpop.f32.mrf.mxu0 }
0x25dc   : > { %v7958_v22 = vadd.f32 %v7954_v40, %v18335_v13  ;;  %v15760_v40 = vld [vmem:[#allocation31 + $0x78] sm:$0xff]  }
0x25dd   : > { %v7903_v26 = vpop.f32.mrf.mxu0 }
0x25de   : > { %v7966_v27 = vsel %vm1908_vm2, %v7958_v22, -inf }
0x25df   : > { %7967 = vmax.xlane.f32.xlu0 %v7966_v27  ;;  %v14635_v28 = vpop.f32.mrf.mxu0 }
0x25e0   : > { %v15762_v28 = vld [vmem:[#allocation31 + $0x68] sm:$0xff]  }
0x25e1   : > { %v7946_v30 = vpop.f32.mrf.mxu0 }
0x25e2   : > { %v7955_v31 = vmul.f32 0.17677669, %v7946_v30 }
0x25e3   : > { %v14640_v32 = vpop.f32.mrf.mxu0 }
0x25e4   : > { %v7959_v33 = vadd.f32 %v7955_v31, %v18335_v13  ;;  %v15763_v31 = vld [vmem:[#allocation31 + $0x60] sm:$0xff]   ;;  %v15764_v32 = vld [vmem:[#allocation31 + $0x58] sm:$0xff]  }
0x25e5   : > { %v7949_v36 = vpop.f32.mrf.mxu0 }
0x25e6   : > { %v7969_v38 = vsel %vm1908_vm2, %v7959_v33, -inf  ;;  %v15766_v36 = vld [vmem:[#allocation31 + $0x48] sm:$0xff]  }
0x25e7   : > { %7970 = vmax.xlane.f32.xlu0 %v7969_v38  ;;  %v14641_v44 = vpop.f32.mrf.mxu0  ;;  %v15767_v38 = vld [vmem:[#allocation31 + $0x40] sm:$0xff]  }
0x25e8   : > { %7762 = vrot.lane.b32.xlu1 %v18538_v56, %s17391_s2 }
0x25ed   : > { %v7962_v45 = vpop.xlane.xlu0 %7961 }
0x25ee   : > { %v7972_v63 = vsub.f32 %v7956_v53, %v7962_v45 }
0x25f0   : > { %v7976_v47 = vmul.f32 1.442695, %v7972_v63 }
0x25f2   : > { %16136 = vpow2.f32 %v7976_v47  ;;  %v15770_v47 = vld [vmem:[#allocation40 + $0xf4] ss:$8 sps:$4 sm:$0xff]  }
0x25ff   : > { %v16137_v49 = vpop.eup %16136 }
0x2600   : > { %v7984_v50 = vsel %vm1908_vm2, %v16137_v49, 0.0 }
0x260c   : > { %7985 = vadd.xlane.f32.xlu1 %v7984_v50 }
0x2660   : > { %v7965_v51 = vpop.xlane.xlu1 %7964 }
0x2661   : > { %v7973_v52 = vsub.f32 %v7957_v18, %v7965_v51 }
0x2663   : > { %v7978_v54 = vmul.f32 1.442695, %v7973_v52 }
0x2664   : > { %v7763_v55 = vpop.permute.xlu1 %7762 }
0x2665   : > { %16138 = vpow2.f32 %v7978_v54  ;;  %v8058_v57 = vsel %vm1912_vm1, %v7763_v55, 0 }
0x2666   : > { %14649 = vmatpush3.bf16.msra.mxu0 %v8058_v57 }
0x2667   : > { %14660 = vmatprep.subr.bf16.mxu0 %v17388_v0 }
0x2668   : > { %v7968_v58 = vpop.xlane.xlu0 %7967 }
0x2669   : > { %v7974_v60 = vsub.f32 %v7958_v22, %v7968_v58  ;;  %v15761_v22 = vld [vmem:[#allocation31 + $0x70] sm:$0xff]  }
0x266b   : > { %v7980_v61 = vmul.f32 1.442695, %v7974_v60 }
0x266d   : > { %16140 = vpow2.f32 %v7980_v61 }
0x2670   : > { %v7971_v62 = vpop.xlane.xlu0 %7970 }
0x2671   : > { %v7975_v1 = vsub.f32 %v7959_v33, %v7971_v62  ;;  %v15765_v33 = vld [vmem:[#allocation31 + $0x50] sm:$0xff]  }
0x2672   : > { %v16139_v2 = vpop.eup %16138 }
0x2673   : > { %v7982_v4 = vmul.f32 1.442695, %v7975_v1  ;;  %v7987_v24 = vsel %vm1908_vm2, %v16139_v2, 0.0 }
0x2674   : > { %7988 = vadd.xlane.f32.xlu0 %v7987_v24 }
0x2675   : > { %16142 = vpow2.f32 %v7982_v4 }
0x267a   : > { %v16141_v42 = vpop.eup %16140 }
0x267b   : > { %v7990_v6 = vsel %vm1908_vm2, %v16141_v42, 0.0 }
0x267c   : > { %7991 = vadd.xlane.f32.xlu1 %v7990_v6 }
0x2682   : > { %v16143_v7 = vpop.eup %16142 }
0x2683   : > { %v7993_v8 = vsel %vm1908_vm2, %v16143_v7, 0.0 }
0x2684   : > { %7994 = vadd.xlane.f32.xlu0 %v7993_v8  ;;  %v15771_v8 = vld [vmem:[#allocation40 + $0xe0] ss:$8 sps:$4 sm:$0xff]  }
0x268d   : > { %7766 = vrot.lane.b32.xlu1 %v18538_v56, %s17392_s15 }
0x2695   : > { %v7986_v9 = vpop.xlane.xlu1 %7985 }
0x2696   : > { %16144 = vrcp.f32 %v7986_v9  ;;  %v15776_v9 = vld [vmem:[#allocation40 + $0xd4] ss:$8 sps:$4 sm:$0xff]  }
0x269a   : > { %7764 = vrot.lane.b32.xlu0 %v18538_v56, %s17393_s26 }
0x26a3   : > { %v16145_v46 = vpop.eup %16144 }
0x26a4   : > { %v8000_v5 = vmul.f32 %v16145_v46, %v16137_v49  ;;  %v15774_v46 = vld [vmem:[#allocation40 + $0xd0] ss:$8 sps:$4 sm:$0xff]  }
0x26a6   : > { %v8004_v35 = vpack.c.bf16 %v8000_v5, %v8000_v5  ;;  %v15779_v5 = vld [vmem:[#allocation40 + $0xc4] ss:$8 sps:$4 sm:$0xff]  }
0x26a8   : > { %14645 = vmatmul.mubr.msk.bf16.vlgmr.msra.gmra.mxu1 %vm1908_vm2, %v8004_v35  ;;  %v15777_v35 = vld [vmem:[#allocation40 + $0xc0] ss:$8 sps:$4 sm:$0xff]  }
0x26a9   : > { %14656 = vmatprep.mubr.msk.bf16.mxu1 %vm17389_vm0, %v17388_v0 }
0x26fd   : > { %v7989_v10 = vpop.xlane.xlu0 %7988 }
0x26fe   : > { %16146 = vrcp.f32 %v7989_v10  ;;  %v15782_v10 = vld [vmem:[#allocation40 + $0xb4] ss:$8 sps:$4 sm:$0xff]  }
0x2705   : > { %v7992_v11 = vpop.xlane.xlu1 %7991 }
0x2706   : > { %16148 = vrcp.f32 %v7992_v11  ;;  %v15780_v11 = vld [vmem:[#allocation40 + $0xb0] ss:$8 sps:$4 sm:$0xff]  }
0x2709   : > { %v7767_v14 = vpop.permute.xlu1 %7766 }
0x270a   : > { %v8150_v56 = vsel %vm1912_vm1, %v7767_v14, 0  ;;  %v15788_v14 = vld [vmem:[#allocation40 + $0x94] ss:$8 sps:$4 sm:$0xff]  }
0x270b   : > { %v16147_v12 = vpop.eup %16146 }
0x270c   : > { %v8001_v53 = vmul.f32 %v16147_v12, %v16139_v2  ;;  %v15785_v12 = vld [vmem:[#allocation40 + $0xa4] ss:$8 sps:$4 sm:$0xff]  }
0x270d   : > { %v7995_v15 = vpop.xlane.xlu0 %7994 }
0x270e   : > { %v8005_v16 = vpack.c.bf16 %v8001_v53, %v8001_v53  ;;  %16150 = vrcp.f32 %v7995_v15  ;;  %v15783_v53 = vld [vmem:[#allocation40 + $0xa0] ss:$8 sps:$4 sm:$0xff]   ;;  %v15786_v15 = vld [vmem:[#allocation40 + $0x90] ss:$8 sps:$4 sm:$0xff]  }
0x2710   : > { %14651 = vmatmul.mubr.msk.bf16.vlgmr.msra.gmra.mxu0 %vm1908_vm2, %v8005_v16  ;;  %v15791_v16 = vld [vmem:[#allocation40 + $0x84] ss:$8 sps:$4 sm:$0xff]  }
0x2711   : > { %14661 = vmatpush3.bf16.msra.mxu0 %v8150_v56  ;;  %v7765_v17 = vpop.permute.xlu0 %7764  ;;  %14662 = vmatprep.mubr.msk.bf16.mxu0 %vm17389_vm0, %v17388_v0  ;;  %v15789_v56 = vld [vmem:[#allocation40 + $0x80] ss:$8 sps:$4 sm:$0xff]  }
0x2712   : > { %v8104_v3 = vsel %vm1912_vm1, %v7765_v17, 0  ;;  %14686 = vmatprep.subr.bf16.mxu0 %v17388_v0  ;;  %v13448_v17 = vld [vmem:[#allocation33 + $0x1] ss:$0 sm:$0xff] }
0x2713   : > { %v16149_v37 = vpop.eup %16148  ;;  %14655 = vmatpush3.bf16.msra.mxu1 %v8104_v3 }
0x2714   : > { %v8002_v18 = vmul.f32 %v16149_v37, %v16141_v42  ;;  %14666 = vmatprep.subr.bf16.mxu1 %v17388_v0  ;;  %v15768_v42 = vld [vmem:[#allocation40 + $0xf0] ss:$8 sps:$4 sm:$0xff]  }
0x2716   : > { %v8006_v48 = vpack.c.bf16 %v8002_v18, %v8002_v18 }
0x2718   : > { %14657 = vmatmul.mubr.msk.bf16.vlgmr.msra.gmra.mxu1 %vm1908_vm2, %v8006_v48 }
0x2719   : > { %14682 = vmatprep.mubr.msk.bf16.mxu1 %vm17389_vm0, %v17388_v0  ;;  %14667 = vmatpush3.bf16.msra.mxu1 %v15760_v40 }
0x271a   : > { %14668 = vmatprep.subr.bf16.mxu1 %v17388_v0 }
0x271b   : > { %v16151_v19 = vpop.eup %16150 }
0x271c   : > { %v8003_v20 = vmul.f32 %v16151_v19, %v16143_v7  ;;  %v15773_v7 = vld [vmem:[#allocation40 + $0xe4] ss:$8 sps:$4 sm:$0xff]  }
0x271d   : > { %14669 = vmatpush3.bf16.msra.mxu1 %v15761_v22 }
0x271e   : > { %v8007_v21 = vpack.c.bf16 %v8003_v20, %v8003_v20  ;;  %14670 = vmatprep.subr.bf16.mxu1 %v17388_v0 }
0x2720   : > { %14663 = vmatmul.mubr.msk.bf16.vlgmr.msra.gmra.mxu0 %vm1908_vm2, %v8007_v21  ;;  %v8483_v21 = vld [vmem:[#allocation42 + $0x2] sm:$0x3] }
0x2721   : > { %14702 = vmatprep.mubr.msk.bf16.mxu0 %vm17389_vm0, %v17388_v0  ;;  %14671 = vmatpush3.bf16.msra.mxu1 %v15762_v28  ;;  %v8488_v40 = vrot.slane %v8483_v21, %v18065_v41 }
0x2722   : > { %14672 = vmatprep.subr.bf16.mxu1 %v17388_v0 }
0x2725   : > { %14673 = vmatpush3.bf16.msra.mxu1 %v15763_v31 }
0x2726   : > { %14674 = vmatprep.subr.bf16.mxu1 %v17388_v0 }
0x2729   : > { %14675 = vmatpush3.bf16.msra.mxu1 %v15764_v32 }
0x272a   : > { %14676 = vmatprep.subr.bf16.mxu1 %v17388_v0 }
0x272d   : > { %14677 = vmatpush3.bf16.msra.mxu1 %v15765_v33 }
0x272e   : > { %14678 = vmatprep.subr.bf16.mxu1 %v17388_v0 }
0x2731   : > { %14679 = vmatpush3.bf16.msra.mxu1 %v15766_v36 }
0x2732   : > { %14680 = vmatprep.subr.bf16.mxu1 %v17388_v0 }
0x2735   : > { %14681 = vmatpush3.bf16.msra.mxu1 %v15767_v38 }
0x2736   : > { %8575 = vmatprep.subr.bf16.mxu1 %v15770_v47 }
0x2768   : > { %v8048_v25 = vpop.f32.mrf.mxu1 }
0x276a   : > { %v14646_v26 = vpop.f32.mrf.mxu1 }
0x276b   : > { %v15792_v26 = vld [vmem:[#allocation37 + $0x78] sm:$0xff]  }
0x276c   : > { %v8051_v27 = vpop.f32.mrf.mxu1  ;;  %14687 = vmatpush3.bf16.msra.mxu0 %v15792_v26 }
0x276d   : > { %14688 = vmatprep.subr.bf16.mxu0 %v17388_v0 }
0x276e   : > { %v14647_v30 = vpop.f32.mrf.mxu1 }
0x276f   : > { %v15793_v30 = vld [vmem:[#allocation37 + $0x70] sm:$0xff]  }
0x2770   : > { %14689 = vmatpush3.bf16.msra.mxu0 %v15793_v30 }
0x2771   : > { %14690 = vmatprep.subr.bf16.mxu0 %v17388_v0 }
0x27d0   : > { %v8094_v44 = vpop.f32.mrf.mxu0 }
0x27d1   : > { %8193 = vrot.lane.b32.xlu1 %v8094_v44, %s17392_s15 }
0x27d2   : > { %v14652_v45 = vpop.f32.mrf.mxu0 }
0x27d4   : > { %v8097_v63 = vpop.f32.mrf.mxu0 }
0x27d6   : > { %v14653_v49 = vpop.f32.mrf.mxu0 }
0x27d7   : > { %v15794_v49 = vld [vmem:[#allocation37 + $0x68] sm:$0xff]  }
0x27d8   : > { %v8140_v50 = vpop.f32.mrf.mxu1  ;;  %14691 = vmatpush3.bf16.msra.mxu0 %v15794_v49 }
0x27d9   : > { %8197 = vrot.lane.b32.xlu0 %v8140_v50, %s17393_s26  ;;  %14692 = vmatprep.subr.bf16.mxu0 %v17388_v0  ;;  %v15795_v50 = vld [vmem:[#allocation37 + $0x60] sm:$0xff]  }
0x27da   : > { %v14658_v51 = vpop.f32.mrf.mxu1 }
0x27db   : > { %v15796_v51 = vld [vmem:[#allocation37 + $0x58] sm:$0xff]  }
0x27dc   : > { %v8143_v52 = vpop.f32.mrf.mxu1  ;;  %14693 = vmatpush3.bf16.msra.mxu0 %v15795_v50 }
0x27dd   : > { %14694 = vmatprep.subr.bf16.mxu0 %v17388_v0  ;;  %v15797_v52 = vld [vmem:[#allocation37 + $0x50] sm:$0xff]  }
0x27de   : > { %v14659_v54 = vpop.f32.mrf.mxu1 }
0x27df   : > { %v15798_v54 = vld [vmem:[#allocation37 + $0x48] sm:$0xff]  }
0x27e0   : > { %v8186_v55 = vpop.f32.mrf.mxu0  ;;  %14695 = vmatpush3.bf16.msra.mxu0 %v15796_v51 }
0x27e1   : > { %8201 = vrot.lane.b32.xlu1 %v8186_v55, %s17391_s2  ;;  %14696 = vmatprep.subr.bf16.mxu0 %v17388_v0  ;;  %v15799_v55 = vld [vmem:[#allocation37 + $0x40] sm:$0xff]  }
0x27e2   : > { %v14664_v57 = vpop.f32.mrf.mxu0 }
0x27e4   : > { %v8189_v58 = vpop.f32.mrf.mxu0  ;;  %14697 = vmatpush3.bf16.msra.mxu0 %v15797_v52 }
0x27e5   : > { %14698 = vmatprep.subr.bf16.mxu0 %v17388_v0 }
0x27e6   : > { %v14665_v60 = vpop.f32.mrf.mxu0 }
0x27e8   : > { %14699 = vmatpush3.bf16.msra.mxu0 %v15798_v54 }
0x27e9   : > { %14700 = vmatprep.subr.bf16.mxu0 %v17388_v0 }
0x27ec   : > { %14701 = vmatpush3.bf16.msra.mxu0 %v15799_v55 }
0x27ed   : > { %14706 = vmatprep.subr.bf16.mxu0 %v17388_v0 }
0x2843   : > { %v8194_v61 = vpop.permute.xlu1 %8193 }
0x2844   : > { %v8204_v1 = vsel %vm2241_vm3, %v8048_v25, %v8194_v61  ;;  %v8492_v25 = vrot.slane %v8483_v21, %v18068_v43 }
0x284b   : > { %v8198_v62 = vpop.permute.xlu0 %8197 }
0x284c   : > { %v8205_v2 = vsel %vm2675_vm4, %v8204_v1, %v8198_v62  ;;  %v13457_v62 = vld [vmem:[#allocation34 + $0x1] ss:$0 sm:$0xff] }
0x2853   : > { %v8202_v4 = vpop.permute.xlu1 %8201 }
0x2854   : > { %v8206_v24 = vsel %vm2677_vm5, %v8205_v2, %v8202_v4  ;;  %v13458_v2 = vld [vmem:[#allocation36 + $0x1] ss:$0 sm:$0xff] }
0x2855   : > { %v8226_v6 = vpack.c.bf16 %v8206_v24, %v8206_v24 }
0x2857   : > { %14683 = vmatmul.mubr.bf16.vlgmr.msra.gmra.mxu1 %v8226_v6 }
0x2858   : > { %8576 = vmatpush1.bf16.msra.mxu1 %v15768_v42  ;;  %8607 = vmatprep.mubr.bf16.mxu1 %v17390_v29 }
0x2859   : > { %8577 = vmatprep.subr.bf16.mxu1 %v15773_v7  ;;  %v13459_v7 = vld [vmem:[#allocation39 + $0x1] ss:$0 sm:$0xff] }
0x285c   : > { %8578 = vmatpush1.bf16.msra.mxu1 %v15771_v8 }
0x285d   : > { %8579 = vmatprep.subr.bf16.mxu1 %v15776_v9 }
0x2860   : > { %8580 = vmatpush1.bf16.msra.mxu1 %v15774_v46 }
0x2861   : > { %8581 = vmatprep.subr.bf16.mxu1 %v15779_v5 }
0x2864   : > { %8582 = vmatpush1.bf16.msra.mxu1 %v15777_v35 }
0x2865   : > { %8583 = vmatprep.subr.bf16.mxu1 %v15782_v10 }
0x2868   : > { %8584 = vmatpush1.bf16.msra.mxu1 %v15780_v11 }
0x2869   : > { %8585 = vmatprep.subr.bf16.mxu1 %v15785_v12 }
0x286c   : > { %8586 = vmatpush1.bf16.msra.mxu1 %v15783_v53 }
0x286d   : > { %8587 = vmatprep.subr.bf16.mxu1 %v15788_v14 }
0x2870   : > { %8588 = vmatpush1.bf16.msra.mxu1 %v15786_v15 }
0x2871   : > { %8589 = vmatprep.subr.bf16.mxu1 %v15791_v16 }
0x2874   : > { %8590 = vmatpush1.bf16.msra.mxu1 %v15789_v56 }
0x2875   : > { %14730 = vmatprep.subr.bf16.mxu1 %v17388_v0 }
0x2877   : > { %8608 = vmatmul.mubr.bf16.vlgmr.msra.gmra.mxu1 %v18416_v39 }
0x2878   : > { %14732 = vmatprep.mubr.msk.bf16.mxu1 %vm17389_vm0, %v17388_v0 }
0x2917   : > { %v8315_v3 = vpop.f32.mrf.mxu1 }
0x2918   : > { %v8316_v37 = vadd.f32 %v13448_v17, %v8315_v3 }
0x2919   : > { %v14684_v18 = vpop.f32.mrf.mxu1 }
0x291a   : > { %v8321_v48 = vadd.f32 %v8316_v37, %v18527_v34 }
0x291b   : > { %v8318_v19 = vpop.f32.mrf.mxu1 }
0x291c   : > { %8326 = vadd.xlane.f32.xlu0 %v8321_v48 }
0x291d   : > { %v14685_v20 = vpop.f32.mrf.mxu1 }
0x2937   : > { %v8609_v22 = vpop.f32.mrf.mxu1 }
0x2938   : > { %v8610_v27 = vadd.f32 %v8609_v22, %v8488_v40 }
0x2939   : > { %v8611_v28 = vpop.f32.mrf.mxu1 }
0x293a   : > { %v8624_v31 = vpack.c.bf16 %v8610_v27, %v8610_v27  ;;  %v8612_v32 = vadd.f32 %v8611_v28, %v8492_v25 }
0x293b   : > { %v8613_v33 = vpop.f32.mrf.mxu1 }
0x293c   : > { %v18627_v34 = vpack.c.bf16 %v8612_v32, %v8612_v32  ;;  %8626 = vrot.lane.b32.xlu0 %v8624_v31, %s17391_s2  ;;  %v8644_v6 = vsel %vm2241_vm3, %v8624_v31, 0 }
0x293d   : > { %v8614_v36 = vpop.f32.mrf.mxu1 }
0x293e   : > { %v8880_v38 = vsel %vm1912_vm1, %v18627_v34, 0 }
0x293f   : > { %14731 = vmatpush3.bf16.msra.mxu1 %v8880_v38 }
0x2940   : > { %8628 = vrot.lane.b32.xlu0 %v8624_v31, %s17393_s26  ;;  %14742 = vmatprep.subr.bf16.mxu1 %v17388_v0 }
0x2944   : > { %8630 = vrot.lane.b32.xlu0 %v8624_v31, %s17392_s15 }
0x29a5   : > { %v8327_v44 = vpop.xlane.xlu0 %8326 }
0x29a6   : > { %v8328_v45 = vmul.f32 0.0078125, %v8327_v44 }
0x29a8   : > { %v8329_v63 = vsub.f32 %v8321_v48, %v8328_v45 }
0x29aa   : > { %v8330_v47 = vmul.f32 %v8329_v63, %v8329_v63 }
0x29ac   : > { %8331 = vadd.xlane.f32.xlu1 %v8330_v47 }
0x29ae   : > { %v8627_v46 = vpop.permute.xlu0 %8626 }
0x29af   : > { %v8690_v11 = vsel %vm2241_vm3, %v8627_v46, 0 }
0x29b2   : > { %v8629_v53 = vpop.permute.xlu0 %8628 }
0x29b3   : > { %v8736_v15 = vsel %vm2241_vm3, %v8629_v53, 0 }
0x29b6   : > { %v8631_v16 = vpop.permute.xlu0 %8630 }
0x29b7   : > { %v8782_v17 = vsel %vm2241_vm3, %v8631_v16, 0 }
0x2a35   : > { %v8332_v57 = vpop.xlane.xlu1 %8331 }
0x2a36   : > { %v8333_v58 = vmul.f32 0.0078125, %v8332_v57 }
0x2a38   : > { %v8334_v60 = vadd.f32 1e-05, %v8333_v58 }
0x2a3a   : > { %16152 = vrsqrt.f32 %v8334_v60 }
0x2a47   : > { %v16153_v61 = vpop.eup %16152 }
0x2a48   : > { %v8336_v1 = vmul.f32 %v16153_v61, %v8329_v63 }
0x2a4a   : > { %v8343_v4 = vmul.f32 %v13457_v62, %v8336_v1 }
0x2a4c   : > { %v18642_v24 = vadd.f32 %v13458_v2, %v8343_v4 }
0x2a4e   : > { %v8370_v42 = vpack.c.bf16 %v18642_v24, %v18642_v24 }
0x2a50   : > { %14703 = vmatmul.mubr.bf16.vlgmr.msra.gmra.mxu0 %v8370_v42 }
0x2a51   : > { %14707 = vmatpush3.bf16.xpose.msra.mxu0 %v8644_v6  ;;  %14708 = vmatprep.mubr.msk.bf16.mxu0 %vm17389_vm0, %v17388_v0 }
0x2a52   : > { %14712 = vmatprep.subr.bf16.mxu0 %v17388_v0 }
0x2b10   : > { %v8459_v8 = vpop.f32.mrf.mxu0 }
0x2b11   : > { %v8460_v9 = vadd.f32 %v13459_v7, %v8459_v8 }
0x2b12   : > { %v14704_v5 = vpop.f32.mrf.mxu0 }
0x2b13   : > { %v8616_v35 = vpack.c.bf16 %v8460_v9, %v8460_v9 }
0x2b14   : > { %v8462_v10 = vpop.f32.mrf.mxu0 }
0x2b15   : > { %8618 = vrot.lane.b32.xlu1 %v8616_v35, %s17391_s2  ;;  %14709 = vmatmul.mubr.msk.bf16.vlgmr.msra.gmra.mxu0 %vm2241_vm3, %v8616_v35 }
0x2b16   : > { %14713 = vmatpush3.bf16.xpose.msra.mxu0 %v8690_v11  ;;  %v14705_v12 = vpop.f32.mrf.mxu0  ;;  %14714 = vmatprep.mubr.msk.bf16.mxu0 %vm17389_vm0, %v17388_v0 }
0x2b17   : > { %14718 = vmatprep.subr.bf16.mxu0 %v17388_v0 }
0x2b19   : > { %8620 = vrot.lane.b32.xlu1 %v8616_v35, %s17393_s26 }
0x2b1d   : > { %8622 = vrot.lane.b32.xlu1 %v8616_v35, %s17392_s15 }
0x2b87   : > { %v8619_v14 = vpop.permute.xlu1 %8618 }
0x2b88   : > { %14715 = vmatmul.mubr.msk.bf16.vlgmr.msra.gmra.mxu0 %vm2241_vm3, %v8619_v14 }
0x2b89   : > { %14719 = vmatpush3.bf16.xpose.msra.mxu0 %v8736_v15  ;;  %14720 = vmatprep.mubr.msk.bf16.mxu0 %vm17389_vm0, %v17388_v0 }
0x2b8a   : > { %14724 = vmatprep.subr.bf16.mxu0 %v17388_v0 }
0x2b8b   : > { %v8621_v56 = vpop.permute.xlu1 %8620 }
0x2b8f   : > { %v8623_v3 = vpop.permute.xlu1 %8622 }
0x2b90   : > { %14721 = vmatmul.mubr.msk.bf16.vlgmr.msra.gmra.mxu0 %vm2241_vm3, %v8621_v56 }
0x2b91   : > { %14725 = vmatpush3.bf16.xpose.msra.mxu0 %v8782_v17  ;;  %14726 = vmatprep.mubr.msk.bf16.mxu0 %vm17389_vm0, %v17388_v0 }
0x2b92   : > { %14736 = vmatprep.subr.bf16.mxu0 %v17388_v0 }
0x2b98   : > { %14727 = vmatmul.mubr.msk.bf16.vlgmr.msra.gmra.mxu0 %vm2241_vm3, %v8623_v3 }
0x2b99   : > { %14738 = vmatprep.mubr.msk.bf16.mxu0 %vm17389_vm0, %v17388_v0 }
0x2bd5   : > { %v8680_v37 = vpop.f32.mrf.mxu0 }
0x2bd6   : > { %v8824_v18 = vmul.f32 0.17677669, %v8680_v37 }
0x2bd7   : > { %v14710_v48 = vpop.f32.mrf.mxu0 }
0x2bd8   : > { %v8828_v19 = vsel %vm1908_vm2, %v8824_v18, -inf }
0x2bd9   : > { %8829 = vmax.xlane.f32.xlu0 %v8828_v19  ;;  %v8683_v20 = vpop.f32.mrf.mxu0 }
0x2bdb   : > { %v14711_v21 = vpop.f32.mrf.mxu0 }
0x2c48   : > { %v8726_v40 = vpop.f32.mrf.mxu0 }
0x2c49   : > { %v8825_v25 = vmul.f32 0.17677669, %v8726_v40 }
0x2c4a   : > { %v14716_v22 = vpop.f32.mrf.mxu0 }
0x2c4b   : > { %v8831_v26 = vsel %vm1908_vm2, %v8825_v25, -inf }
0x2c4c   : > { %8832 = vmax.xlane.f32.xlu1 %v8831_v26  ;;  %v8729_v27 = vpop.f32.mrf.mxu0 }
0x2c4e   : > { %v14717_v28 = vpop.f32.mrf.mxu0 }
0x2c4f   : > { %v15800_v28 = vld [vmem:[#allocation43 + $0x78] sm:$0xff]  }
0x2c50   : > { %v8772_v30 = vpop.f32.mrf.mxu0 }
0x2c51   : > { %v8826_v31 = vmul.f32 0.17677669, %v8772_v30 }
0x2c52   : > { %v14722_v32 = vpop.f32.mrf.mxu0 }
0x2c53   : > { %v8834_v33 = vsel %vm1908_vm2, %v8826_v31, -inf }
0x2c54   : > { %8835 = vmax.xlane.f32.xlu0 %v8834_v33  ;;  %v8775_v36 = vpop.f32.mrf.mxu0 }
0x2c55   : > { %v15802_v36 = vld [vmem:[#allocation43 + $0x68] sm:$0xff]  }
0x2c56   : > { %v14723_v38 = vpop.f32.mrf.mxu0 }
0x2c58   : > { %v8818_v44 = vpop.f32.mrf.mxu0 }
0x2c59   : > { %v8827_v45 = vmul.f32 0.17677669, %v8818_v44  ;;  %v15803_v44 = vld [vmem:[#allocation43 + $0x60] sm:$0xff]  }
0x2c5a   : > { %v14728_v63 = vpop.f32.mrf.mxu0 }
0x2c5b   : > { %v8837_v47 = vsel %vm1908_vm2, %v8827_v45, -inf  ;;  %v15805_v63 = vld [vmem:[#allocation43 + $0x50] sm:$0xff]  }
0x2c5c   : > { %8838 = vmax.xlane.f32.xlu0 %v8837_v47  ;;  %v8821_v49 = vpop.f32.mrf.mxu0  ;;  %v15806_v47 = vld [vmem:[#allocation43 + $0x48] sm:$0xff]  }
0x2c5d   : > { %8634 = vrot.lane.b32.xlu1 %v18627_v34, %s17391_s2 }
0x2c5e   : > { %v14729_v50 = vpop.f32.mrf.mxu0 }
0x2c62   : > { %v8830_v51 = vpop.xlane.xlu0 %8829 }
0x2c63   : > { %v8840_v52 = vsub.f32 %v8824_v18, %v8830_v51  ;;  %v15807_v51 = vld [vmem:[#allocation43 + $0x40] sm:$0xff]  }
0x2c65   : > { %v8844_v54 = vmul.f32 1.442695, %v8840_v52 }
0x2c67   : > { %16154 = vpow2.f32 %v8844_v54 }
0x2c74   : > { %v16155_v55 = vpop.eup %16154 }
0x2c75   : > { %v8852_v57 = vsel %vm1908_vm2, %v16155_v55, 0.0 }
0x2c81   : > { %8853 = vadd.xlane.f32.xlu1 %v8852_v57 }
0x2cd5   : > { %v8833_v58 = vpop.xlane.xlu1 %8832 }
0x2cd6   : > { %v8841_v60 = vsub.f32 %v8825_v25, %v8833_v58 }
0x2cd8   : > { %v8846_v61 = vmul.f32 1.442695, %v8841_v60 }
0x2cd9   : > { %v8635_v62 = vpop.permute.xlu1 %8634 }
0x2cda   : > { %16156 = vpow2.f32 %v8846_v61  ;;  %v8926_v1 = vsel %vm1912_vm1, %v8635_v62, 0 }
0x2cdb   : > { %14737 = vmatpush3.bf16.msra.mxu0 %v8926_v1 }
0x2cdc   : > { %14748 = vmatprep.subr.bf16.mxu0 %v17388_v0 }
0x2cdd   : > { %v8836_v2 = vpop.xlane.xlu0 %8835 }
0x2cde   : > { %v8842_v4 = vsub.f32 %v8826_v31, %v8836_v2  ;;  %v15801_v31 = vld [vmem:[#allocation43 + $0x70] sm:$0xff]  }
0x2ce0   : > { %v8848_v42 = vmul.f32 1.442695, %v8842_v4 }
0x2ce2   : > { %16158 = vpow2.f32 %v8848_v42 }
0x2ce5   : > { %v8839_v6 = vpop.xlane.xlu0 %8838 }
0x2ce6   : > { %v8843_v7 = vsub.f32 %v8827_v45, %v8839_v6  ;;  %v15804_v45 = vld [vmem:[#allocation43 + $0x58] sm:$0xff]  }
0x2ce7   : > { %v16157_v8 = vpop.eup %16156 }
0x2ce8   : > { %v8850_v9 = vmul.f32 1.442695, %v8843_v7  ;;  %v8855_v46 = vsel %vm1908_vm2, %v16157_v8, 0.0 }
0x2ce9   : > { %8856 = vadd.xlane.f32.xlu0 %v8855_v46 }
0x2cea   : > { %16160 = vpow2.f32 %v8850_v9 }
0x2cef   : > { %v16159_v5 = vpop.eup %16158 }
0x2cf0   : > { %v8858_v35 = vsel %vm1908_vm2, %v16159_v5, 0.0 }
0x2cf1   : > { %8859 = vadd.xlane.f32.xlu1 %v8858_v35 }
0x2cf7   : > { %v16161_v10 = vpop.eup %16160 }
0x2cf8   : > { %v8861_v11 = vsel %vm1908_vm2, %v16161_v10, 0.0 }
0x2cf9   : > { %8862 = vadd.xlane.f32.xlu0 %v8861_v11 }
0x2d02   : > { %8638 = vrot.lane.b32.xlu1 %v18627_v34, %s17392_s15 }
0x2d0a   : > { %v8854_v12 = vpop.xlane.xlu1 %8853 }
0x2d0b   : > { %16162 = vrcp.f32 %v8854_v12 }
0x2d0f   : > { %8636 = vrot.lane.b32.xlu0 %v18627_v34, %s17393_s26 }
0x2d18   : > { %v16163_v53 = vpop.eup %16162 }
0x2d19   : > { %v8868_v14 = vmul.f32 %v16163_v53, %v16155_v55 }
0x2d1b   : > { %v8872_v15 = vpack.c.bf16 %v8868_v14, %v8868_v14 }
0x2d1d   : > { %14733 = vmatmul.mubr.msk.bf16.vlgmr.msra.gmra.mxu1 %vm1908_vm2, %v8872_v15  ;;  %v15808_v15 = vld [vmem:[#allocation49 + $0x1e0] ss:$16 sps:$4 sm:$0xff]  }
0x2d1e   : > { %14744 = vmatprep.mubr.msk.bf16.mxu1 %vm17389_vm0, %v17388_v0 }
0x2d72   : > { %v8857_v16 = vpop.xlane.xlu0 %8856 }
0x2d73   : > { %16164 = vrcp.f32 %v8857_v16  ;;  %v15810_v16 = vld [vmem:[#allocation49 + $0x1e4] ss:$16 sps:$4 sm:$0xff]  }
0x2d7a   : > { %v8860_v56 = vpop.xlane.xlu1 %8859 }
0x2d7b   : > { %16166 = vrcp.f32 %v8860_v56  ;;  %v15811_v56 = vld [vmem:[#allocation49 + $0x1e8] ss:$16 sps:$4 sm:$0xff]  }
0x2d7e   : > { %v8639_v37 = vpop.permute.xlu1 %8638 }
0x2d7f   : > { %v9018_v34 = vsel %vm1912_vm1, %v8639_v37, 0  ;;  %v15819_v37 = vld [vmem:[#allocation49 + $0x1cc] ss:$16 sps:$4 sm:$0xff]  }
0x2d80   : > { %v16165_v17 = vpop.eup %16164 }
0x2d81   : > { %v8869_v3 = vmul.f32 %v16165_v17, %v16157_v8  ;;  %v15813_v17 = vld [vmem:[#allocation49 + $0x1ec] ss:$16 sps:$4 sm:$0xff]  }
0x2d82   : > { %v8863_v18 = vpop.xlane.xlu0 %8862 }
0x2d83   : > { %v8873_v48 = vpack.c.bf16 %v8869_v3, %v8869_v3  ;;  %16168 = vrcp.f32 %v8863_v18  ;;  %v15816_v3 = vld [vmem:[#allocation49 + $0x1c4] ss:$16 sps:$4 sm:$0xff]   ;;  %v15814_v18 = vld [vmem:[#allocation49 + $0x1c0] ss:$16 sps:$4 sm:$0xff]  }
0x2d85   : > { %14739 = vmatmul.mubr.msk.bf16.vlgmr.msra.gmra.mxu0 %vm1908_vm2, %v8873_v48  ;;  %v15817_v48 = vld [vmem:[#allocation49 + $0x1c8] ss:$16 sps:$4 sm:$0xff]  }
0x2d86   : > { %14749 = vmatpush3.bf16.msra.mxu0 %v9018_v34  ;;  %v8637_v19 = vpop.permute.xlu0 %8636  ;;  %14750 = vmatprep.mubr.msk.bf16.mxu0 %vm17389_vm0, %v17388_v0 }
0x2d87   : > { %v8972_v20 = vsel %vm1912_vm1, %v8637_v19, 0  ;;  %9436 = vmatprep.subr.bf16.mxu0 %v15810_v16  ;;  %v15867_v16 = vld [vmem:[#allocation52 + $0x1a8] sm:$0xff]  }
0x2d88   : > { %v16167_v21 = vpop.eup %16166  ;;  %14743 = vmatpush3.bf16.msra.mxu1 %v8972_v20 }
0x2d89   : > { %v8870_v40 = vmul.f32 %v16167_v21, %v16159_v5  ;;  %14754 = vmatprep.subr.bf16.mxu1 %v17388_v0  ;;  %v13492_v5 = vld [vmem:[#allocation45 + $0x1] ss:$0 sm:$0xff] }
0x2d8a   : > { %v15822_v21 = vld [vmem:[#allocation49 + $0x1a4] ss:$16 sps:$4 sm:$0xff]  }
0x2d8b   : > { %v8874_v25 = vpack.c.bf16 %v8870_v40, %v8870_v40  ;;  %v15825_v40 = vld [vmem:[#allocation49 + $0x1ac] ss:$16 sps:$4 sm:$0xff]  }
0x2d8d   : > { %14745 = vmatmul.mubr.msk.bf16.vlgmr.msra.gmra.mxu1 %vm1908_vm2, %v8874_v25  ;;  %v15820_v25 = vld [vmem:[#allocation49 + $0x1a0] ss:$16 sps:$4 sm:$0xff]  }
0x2d8e   : > { %14770 = vmatprep.mubr.msk.bf16.mxu1 %vm17389_vm0, %v17388_v0  ;;  %14755 = vmatpush3.bf16.msra.mxu1 %v15800_v28  ;;  %v15826_v28 = vld [vmem:[#allocation49 + $0x180] ss:$16 sps:$4 sm:$0xff]  }
0x2d8f   : > { %14756 = vmatprep.subr.bf16.mxu1 %v17388_v0 }
0x2d90   : > { %v16169_v22 = vpop.eup %16168 }
0x2d91   : > { %v8871_v26 = vmul.f32 %v16169_v22, %v16161_v10  ;;  %v15823_v22 = vld [vmem:[#allocation49 + $0x1a8] ss:$16 sps:$4 sm:$0xff]  }
0x2d92   : > { %14757 = vmatpush3.bf16.msra.mxu1 %v15801_v31  ;;  %v15834_v31 = vld [vmem:[#allocation49 + $0x164] ss:$16 sps:$4 sm:$0xff]  }
0x2d93   : > { %v8875_v27 = vpack.c.bf16 %v8871_v26, %v8871_v26  ;;  %14758 = vmatprep.subr.bf16.mxu1 %v17388_v0  ;;  %v15828_v26 = vld [vmem:[#allocation49 + $0x184] ss:$16 sps:$4 sm:$0xff]  }
0x2d95   : > { %14751 = vmatmul.mubr.msk.bf16.vlgmr.msra.gmra.mxu0 %vm1908_vm2, %v8875_v27  ;;  %v15831_v27 = vld [vmem:[#allocation49 + $0x18c] ss:$16 sps:$4 sm:$0xff]  }
0x2d96   : > { %9468 = vmatprep.mubr.bf16.mxu0 %v17390_v29  ;;  %14759 = vmatpush3.bf16.msra.mxu1 %v15802_v36  ;;  %v15835_v36 = vld [vmem:[#allocation49 + $0x168] ss:$16 sps:$4 sm:$0xff]  }
0x2d97   : > { %14760 = vmatprep.subr.bf16.mxu1 %v17388_v0  ;;  %9437 = vmatpush1.bf16.msra.mxu0 %v15808_v15  ;;  %v15866_v15 = vld [vmem:[#allocation52 + $0x128] sm:$0xff]  }
0x2d98   : > { %9438 = vmatprep.subr.bf16.mxu0 %v15816_v3  ;;  %v15870_v3 = vld [vmem:[#allocation52 + $0x120] sm:$0xff]  }
0x2d9a   : > { %14761 = vmatpush3.bf16.msra.mxu1 %v15803_v44  ;;  %v15843_v44 = vld [vmem:[#allocation49 + $0x14c] ss:$16 sps:$4 sm:$0xff]  }
0x2d9b   : > { %14762 = vmatprep.subr.bf16.mxu1 %v17388_v0  ;;  %9439 = vmatpush1.bf16.msra.mxu0 %v15814_v18  ;;  %v15872_v18 = vld [vmem:[#allocation52 + $0x158] sm:$0xff]  }
0x2d9c   : > { %9440 = vmatprep.subr.bf16.mxu0 %v15822_v21  ;;  %v15878_v21 = vld [vmem:[#allocation52 + $0x110] sm:$0xff]  }
0x2d9e   : > { %14763 = vmatpush3.bf16.msra.mxu1 %v15804_v45  ;;  %v15838_v45 = vld [vmem:[#allocation49 + $0x140] ss:$16 sps:$4 sm:$0xff]  }
0x2d9f   : > { %14764 = vmatprep.subr.bf16.mxu1 %v17388_v0  ;;  %9441 = vmatpush1.bf16.msra.mxu0 %v15820_v25  ;;  %v15880_v25 = vld [vmem:[#allocation52 + $0x148] sm:$0xff]  }
0x2da0   : > { %9442 = vmatprep.subr.bf16.mxu0 %v15828_v26  ;;  %v15882_v26 = vld [vmem:[#allocation52 + $0x108] sm:$0xff]  }
0x2da2   : > { %14765 = vmatpush3.bf16.msra.mxu1 %v15805_v63  ;;  %v15841_v63 = vld [vmem:[#allocation49 + $0x148] ss:$16 sps:$4 sm:$0xff]  }
0x2da3   : > { %14766 = vmatprep.subr.bf16.mxu1 %v17388_v0  ;;  %9443 = vmatpush1.bf16.msra.mxu0 %v15826_v28  ;;  %v15884_v28 = vld [vmem:[#allocation52 + $0x140] sm:$0xff]  }
0x2da4   : > { %9444 = vmatprep.subr.bf16.mxu0 %v15834_v31  ;;  %v15886_v31 = vld [vmem:[#allocation52 + $0x100] sm:$0xff]  }
0x2da6   : > { %14767 = vmatpush3.bf16.msra.mxu1 %v15806_v47  ;;  %v15846_v47 = vld [vmem:[#allocation49 + $0x124] ss:$16 sps:$4 sm:$0xff]  }
0x2da7   : > { %14768 = vmatprep.subr.bf16.mxu1 %v17388_v0 }
0x2daa   : > { %14769 = vmatpush3.bf16.msra.mxu1 %v15807_v51  ;;  %v15847_v51 = vld [vmem:[#allocation49 + $0x128] ss:$16 sps:$4 sm:$0xff]  }
0x2dab   : > { %9477 = vmatprep.subr.bf16.mxu1 %v15813_v17  ;;  %v15869_v17 = vld [vmem:[#allocation52 + $0x1e0] sm:$0xff]  }
0x2ddd   : > { %v8916_v30 = vpop.f32.mrf.mxu1 }
0x2ddf   : > { %v14734_v32 = vpop.f32.mrf.mxu1 }
0x2de0   : > { %v15837_v32 = vld [vmem:[#allocation49 + $0x16c] ss:$16 sps:$4 sm:$0xff]  }
0x2de1   : > { %v8919_v33 = vpop.f32.mrf.mxu1 }
0x2de2   : > { %v15832_v33 = vld [vmem:[#allocation49 + $0x160] ss:$16 sps:$4 sm:$0xff]  }
0x2de3   : > { %v14735_v38 = vpop.f32.mrf.mxu1  ;;  %9445 = vmatpush1.bf16.msra.mxu0 %v15832_v33  ;;  %v9253_v33 = vld [vmem:[#allocation51 + $0x4] sm:$0xf] }
0x2de4   : > { %v15840_v38 = vld [vmem:[#allocation49 + $0x144] ss:$16 sps:$4 sm:$0xff]  }
0x2de5   : > { %9446 = vmatprep.subr.bf16.mxu0 %v15840_v38  ;;  %v9267_v38 = vrot.slane %v9253_v33, %v18084_v59 }
0x2de7   : > { %9447 = vmatpush1.bf16.msra.mxu0 %v15838_v45  ;;  %v9271_v45 = vrot.slane %v9253_v33, %v18158_v23 }
0x2de8   : > { %9448 = vmatprep.subr.bf16.mxu0 %v15846_v47 }
0x2e45   : > { %v8962_v49 = vpop.f32.mrf.mxu0 }
0x2e46   : > { %9061 = vrot.lane.b32.xlu1 %v8962_v49, %s17392_s15  ;;  %v15849_v49 = vld [vmem:[#allocation49 + $0x12c] ss:$16 sps:$4 sm:$0xff]  }
0x2e47   : > { %v14740_v50 = vpop.f32.mrf.mxu0 }
0x2e48   : > { %v15844_v50 = vld [vmem:[#allocation49 + $0x120] ss:$16 sps:$4 sm:$0xff]  }
0x2e49   : > { %v8965_v52 = vpop.f32.mrf.mxu0  ;;  %9449 = vmatpush1.bf16.msra.mxu0 %v15844_v50 }
0x2e4a   : > { %v15852_v52 = vld [vmem:[#allocation49 + $0x104] ss:$16 sps:$4 sm:$0xff]  }
0x2e4b   : > { %v14741_v54 = vpop.f32.mrf.mxu0  ;;  %9450 = vmatprep.subr.bf16.mxu0 %v15852_v52 }
0x2e4c   : > { %v15855_v54 = vld [vmem:[#allocation49 + $0x10c] ss:$16 sps:$4 sm:$0xff]  }
0x2e4d   : > { %v9008_v55 = vpop.f32.mrf.mxu1 }
0x2e4e   : > { %9065 = vrot.lane.b32.xlu0 %v9008_v55, %s17393_s26  ;;  %v15850_v55 = vld [vmem:[#allocation49 + $0x100] ss:$16 sps:$4 sm:$0xff]  }
0x2e4f   : > { %v14746_v57 = vpop.f32.mrf.mxu1  ;;  %9451 = vmatpush1.bf16.msra.mxu0 %v15850_v55 }
0x2e50   : > { %v15853_v57 = vld [vmem:[#allocation49 + $0x108] ss:$16 sps:$4 sm:$0xff]  }
0x2e51   : > { %v9011_v58 = vpop.f32.mrf.mxu1 }
0x2e52   : > { %v15856_v58 = vld [vmem:[#allocation52 + $0x178] sm:$0xff]  }
0x2e53   : > { %v14747_v60 = vpop.f32.mrf.mxu1  ;;  %14075 = vmatprep.subr.bf16.mxu0 %v15856_v58 }
0x2e54   : > { %v15857_v60 = vld [vmem:[#allocation52 + $0x1f8] sm:$0xff]  }
0x2e55   : > { %v9054_v61 = vpop.f32.mrf.mxu0 }
0x2e56   : > { %9069 = vrot.lane.b32.xlu1 %v9054_v61, %s17391_s2 }
0x2e57   : > { %v14752_v62 = vpop.f32.mrf.mxu0 }
0x2e59   : > { %v9057_v1 = vpop.f32.mrf.mxu0 }
0x2e5b   : > { %v14753_v2 = vpop.f32.mrf.mxu0 }
0x2eb8   : > { %v9062_v4 = vpop.permute.xlu1 %9061 }
0x2eb9   : > { %v9072_v6 = vsel %vm2241_vm3, %v8916_v30, %v9062_v4  ;;  %v15829_v30 = vld [vmem:[#allocation49 + $0x188] ss:$16 sps:$4 sm:$0xff]  }
0x2eba   : > { %v13501_v4 = vld [vmem:[#allocation46 + $0x1] ss:$0 sm:$0xff] }
0x2ec0   : > { %v9066_v42 = vpop.permute.xlu0 %9065 }
0x2ec1   : > { %v9073_v7 = vsel %vm2675_vm4, %v9072_v6, %v9066_v42  ;;  %v13502_v6 = vld [vmem:[#allocation48 + $0x1] ss:$0 sm:$0xff] }
0x2ec8   : > { %v9070_v8 = vpop.permute.xlu1 %9069 }
0x2ec9   : > { %v9074_v9 = vsel %vm2677_vm5, %v9073_v7, %v9070_v8 }
0x2eca   : > { %v9094_v46 = vpack.c.bf16 %v9074_v9, %v9074_v9  ;;  %v15858_v9 = vld [vmem:[#allocation52 + $0x138] sm:$0xff]  }
0x2ecc   : > { %14771 = vmatmul.mubr.bf16.vlgmr.msra.gmra.mxu1 %v9094_v46  ;;  %v15859_v46 = vld [vmem:[#allocation52 + $0x1b8] sm:$0xff]  }
0x2ecd   : > { %9509 = vmatprep.mubr.bf16.mxu1 %v17390_v29  ;;  %9478 = vmatpush1.bf16.msra.mxu1 %v15811_v56  ;;  %v15868_v56 = vld [vmem:[#allocation52 + $0x160] sm:$0xff]  }
0x2ece   : > { %9479 = vmatprep.subr.bf16.mxu1 %v15819_v37  ;;  %v15871_v37 = vld [vmem:[#allocation52 + $0x1a0] sm:$0xff]  }
0x2ed1   : > { %9480 = vmatpush1.bf16.msra.mxu1 %v15817_v48  ;;  %v15873_v48 = vld [vmem:[#allocation52 + $0x1d8] sm:$0xff]  }
0x2ed2   : > { %9481 = vmatprep.subr.bf16.mxu1 %v15825_v40  ;;  %v15879_v40 = vld [vmem:[#allocation52 + $0x190] sm:$0xff]  }
0x2ed5   : > { %9482 = vmatpush1.bf16.msra.mxu1 %v15823_v22  ;;  %v15881_v22 = vld [vmem:[#allocation52 + $0x1c8] sm:$0xff]  }
0x2ed6   : > { %9483 = vmatprep.subr.bf16.mxu1 %v15831_v27  ;;  %v15883_v27 = vld [vmem:[#allocation52 + $0x188] sm:$0xff]  }
0x2ed9   : > { %9484 = vmatpush1.bf16.msra.mxu1 %v15829_v30  ;;  %v15885_v30 = vld [vmem:[#allocation52 + $0x1c0] sm:$0xff]  }
0x2eda   : > { %9485 = vmatprep.subr.bf16.mxu1 %v15837_v32  ;;  %v15887_v32 = vld [vmem:[#allocation52 + $0x180] sm:$0xff]  }
0x2edd   : > { %9486 = vmatpush1.bf16.msra.mxu1 %v15835_v36  ;;  %v9259_v36 = vrot.slane %v9253_v33, %v18065_v41 }
0x2ede   : > { %9487 = vmatprep.subr.bf16.mxu1 %v15843_v44  ;;  %v9263_v44 = vrot.slane %v9253_v33, %v18068_v43  ;;  %v15904_v33 = vld [vmem:[#allocation28 + $0x1c8] ss:$12 sps:$4 sm:$0xff]  }
0x2ee1   : > { %9488 = vmatpush1.bf16.msra.mxu1 %v15841_v63 }
0x2ee2   : > { %9489 = vmatprep.subr.bf16.mxu1 %v15849_v49 }
0x2ee5   : > { %9490 = vmatpush1.bf16.msra.mxu1 %v15847_v51 }
0x2ee6   : > { %9491 = vmatprep.subr.bf16.mxu1 %v15855_v54 }
0x2ee9   : > { %9492 = vmatpush1.bf16.msra.mxu1 %v15853_v57 }
0x2eea   : > { %14097 = vmatprep.subr.bf16.mxu1 %v15857_v60 }
0x2f8c   : > { %v9183_v35 = vpop.f32.mrf.mxu1 }
0x2f8d   : > { %v9184_v10 = vadd.f32 %v13492_v5, %v9183_v35  ;;  %v15860_v35 = vld [vmem:[#allocation52 + $0x170] sm:$0xff]  }
0x2f8e   : > { %v14772_v11 = vpop.f32.mrf.mxu1 }
0x2f8f   : > { %v9189_v12 = vadd.f32 %v9184_v10, %v18642_v24  ;;  %v15861_v10 = vld [vmem:[#allocation52 + $0x1f0] sm:$0xff]  }
0x2f90   : > { %v9186_v53 = vpop.f32.mrf.mxu1  ;;  %v15862_v11 = vld [vmem:[#allocation52 + $0x130] sm:$0xff]  }
0x2f91   : > { %9194 = vadd.xlane.f32.xlu0 %v9189_v12  ;;  %v15864_v53 = vld [vmem:[#allocation52 + $0x168] sm:$0xff]  }
0x2f92   : > { %v14773_v14 = vpop.f32.mrf.mxu1 }
0x2f93   : > { %v15865_v14 = vld [vmem:[#allocation52 + $0x1e8] sm:$0xff]  }
0x301a   : > { %v9195_v24 = vpop.xlane.xlu0 %9194 }
0x301b   : > { %v9196_v34 = vmul.f32 0.0078125, %v9195_v24  ;;  %v15874_v24 = vld [vmem:[#allocation52 + $0x118] sm:$0xff]  }
0x301d   : > { %v9197_v19 = vsub.f32 %v9189_v12, %v9196_v34  ;;  %v15863_v12 = vld [vmem:[#allocation52 + $0x1b0] sm:$0xff]   ;;  %v15875_v34 = vld [vmem:[#allocation52 + $0x198] sm:$0xff]  }
0x301f   : > { %v9198_v20 = vmul.f32 %v9197_v19, %v9197_v19 }
0x3021   : > { %9199 = vadd.xlane.f32.xlu1 %v9198_v20  ;;  %v15877_v20 = vld [vmem:[#allocation52 + $0x1d0] sm:$0xff]  }
0x30aa   : > { %v9200_v61 = vpop.xlane.xlu1 %9199 }
0x30ab   : > { %v9201_v62 = vmul.f32 0.0078125, %v9200_v61 }
0x30ad   : > { %v9202_v1 = vadd.f32 1e-05, %v9201_v62 }
0x30af   : > { %16170 = vrsqrt.f32 %v9202_v1 }
0x30bc   : > { %v16171_v2 = vpop.eup %16170 }
0x30bd   : > { %v9204_v42 = vmul.f32 %v16171_v2, %v9197_v19  ;;  %v15876_v19 = vld [vmem:[#allocation52 + $0x150] sm:$0xff]  }
0x30bf   : > { %v9211_v7 = vmul.f32 %v13501_v4, %v9204_v42 }
0x30c1   : > { %v18716_v8 = vadd.f32 %v13502_v6, %v9211_v7 }
0x30c3   : > { %v9254_v5 = vpack.c.bf16 %v18716_v8, %v18716_v8 }
0x30c5   : > { %9469 = vmatmul.mubr.bf16.vlgmr.msra.gmra.mxu0 %v9254_v5  ;;  %9510 = vmatmul.mubr.bf16.vlgmr.msra.gmra.mxu1 %v9254_v5 }
0x30c6   : > { %14076 = vmatpush3.bf16.msra.mxu0 %v15858_v9  ;;  %14098 = vmatpush3.bf16.msra.mxu1 %v15859_v46 }
0x30c7   : > { %14077 = vmatprep.subr.bf16.mxu0 %v15860_v35  ;;  %14099 = vmatprep.subr.bf16.mxu1 %v15861_v10  ;;  %v13535_v35 = vld [vmem:[#allocation54 + $0x1] ss:$0 sm:$0xff] }
0x30ca   : > { %14078 = vmatpush3.bf16.msra.mxu0 %v15862_v11  ;;  %14100 = vmatpush3.bf16.msra.mxu1 %v15863_v12 }
0x30cb   : > { %14079 = vmatprep.subr.bf16.mxu0 %v15864_v53  ;;  %14101 = vmatprep.subr.bf16.mxu1 %v15865_v14 }
0x30ce   : > { %14080 = vmatpush3.bf16.msra.mxu0 %v15866_v15  ;;  %14102 = vmatpush3.bf16.msra.mxu1 %v15867_v16 }
0x30cf   : > { %14081 = vmatprep.subr.bf16.mxu0 %v15868_v56  ;;  %14103 = vmatprep.subr.bf16.mxu1 %v15869_v17 }
0x30d2   : > { %14082 = vmatpush3.bf16.msra.mxu0 %v15870_v3  ;;  %14104 = vmatpush3.bf16.msra.mxu1 %v15871_v37 }
0x30d3   : > { %14083 = vmatprep.subr.bf16.mxu0 %v15872_v18  ;;  %14105 = vmatprep.subr.bf16.mxu1 %v15873_v48  ;;  %v15888_v18 = vld [vmem:[#allocation28 + $0x228] ss:$12 sps:$4 sm:$0xff]   ;;  %v15890_v48 = vld [vmem:[#allocation28 + $0x22c] ss:$12 sps:$4 sm:$0xff]  }
0x30d6   : > { %14084 = vmatpush3.bf16.msra.mxu0 %v15874_v24  ;;  %14106 = vmatpush3.bf16.msra.mxu1 %v15875_v34  ;;  %v15891_v24 = vld [vmem:[#allocation28 + $0x230] ss:$12 sps:$4 sm:$0xff]   ;;  %v15894_v34 = vld [vmem:[#allocation28 + $0x214] ss:$12 sps:$4 sm:$0xff]  }
0x30d7   : > { %14085 = vmatprep.subr.bf16.mxu0 %v15876_v19  ;;  %14107 = vmatprep.subr.bf16.mxu1 %v15877_v20  ;;  %v15895_v19 = vld [vmem:[#allocation28 + $0x218] ss:$12 sps:$4 sm:$0xff]   ;;  %v15892_v20 = vld [vmem:[#allocation28 + $0x210] ss:$12 sps:$4 sm:$0xff]  }
0x30da   : > { %14086 = vmatpush3.bf16.msra.mxu0 %v15878_v21  ;;  %14108 = vmatpush3.bf16.msra.mxu1 %v15879_v40 }
0x30db   : > { %14087 = vmatprep.subr.bf16.mxu0 %v15880_v25  ;;  %14109 = vmatprep.subr.bf16.mxu1 %v15881_v22  ;;  %v15898_v22 = vld [vmem:[#allocation28 + $0x1fc] ss:$12 sps:$4 sm:$0xff]  }
0x30de   : > { %14088 = vmatpush3.bf16.msra.mxu0 %v15882_v26  ;;  %14110 = vmatpush3.bf16.msra.mxu1 %v15883_v27  ;;  %v15896_v26 = vld [vmem:[#allocation28 + $0x1f8] ss:$12 sps:$4 sm:$0xff]   ;;  %v15899_v27 = vld [vmem:[#allocation28 + $0x200] ss:$12 sps:$4 sm:$0xff]  }
0x30df   : > { %14089 = vmatprep.subr.bf16.mxu0 %v15884_v28  ;;  %14111 = vmatprep.subr.bf16.mxu1 %v15885_v30  ;;  %v15902_v28 = vld [vmem:[#allocation28 + $0x1e4] ss:$12 sps:$4 sm:$0xff]   ;;  %v15900_v30 = vld [vmem:[#allocation28 + $0x1e0] ss:$12 sps:$4 sm:$0xff]  }
0x30e2   : > { %14090 = vmatpush3.bf16.msra.mxu0 %v15886_v31  ;;  %14112 = vmatpush3.bf16.msra.mxu1 %v15887_v32  ;;  %v15903_v31 = vld [vmem:[#allocation28 + $0x1e8] ss:$12 sps:$4 sm:$0xff]   ;;  %v15906_v32 = vld [vmem:[#allocation28 + $0x1cc] ss:$12 sps:$4 sm:$0xff]  }
0x30e3   : > { %14774 = vmatprep.subr.bf16.mxu1 %v17388_v0  ;;  %10081 = vmatprep.subr.bf16.mxu0 %v15890_v48 }
0x3185   : > { %v9470_v63 = vpop.f32.mrf.mxu0  ;;  %v9511_v47 = vpop.f32.mrf.mxu1 }
0x3186   : > { %v9471_v49 = vadd.f32 %v9470_v63, %v9259_v36  ;;  %v9512_v50 = vadd.f32 %v9511_v47, %v9267_v38  ;;  %v15907_v36 = vld [vmem:[#allocation28 + $0x1d0] ss:$12 sps:$4 sm:$0xff]   ;;  %v15910_v38 = vld [vmem:[#allocation28 + $0x1b4] ss:$12 sps:$4 sm:$0xff]   ;;  %v15912_v47 = vld [vmem:[#allocation28 + $0x198] ss:$12 sps:$4 sm:$0xff]  }
0x3187   : > { %v9472_v51 = vpop.f32.mrf.mxu0  ;;  %v9513_v52 = vpop.f32.mrf.mxu1  ;;  %v15914_v63 = vld [vmem:[#allocation28 + $0x19c] ss:$12 sps:$4 sm:$0xff]  }
0x3188   : > { %v9473_v54 = vadd.f32 %v9472_v51, %v9263_v44  ;;  %v9514_v55 = vadd.f32 %v9513_v52, %v9271_v45  ;;  %v9518_v57 = vmax.f32 %v9471_v49, 0.0  ;;  %v9520_v58 = vmax.f32 %v9512_v50, 0.0  ;;  %v15908_v44 = vld [vmem:[#allocation28 + $0x1b0] ss:$12 sps:$4 sm:$0xff]   ;;  %v15911_v45 = vld [vmem:[#allocation28 + $0x1b8] ss:$12 sps:$4 sm:$0xff]  }
0x3189   : > { %v9474_v60 = vpop.f32.mrf.mxu0  ;;  %v9515_v61 = vpop.f32.mrf.mxu1  ;;  %v15915_v49 = vld [vmem:[#allocation28 + $0x1a0] ss:$12 sps:$4 sm:$0xff]   ;;  %v15918_v50 = vld [vmem:[#allocation28 + $0x184] ss:$12 sps:$4 sm:$0xff]   ;;  %v15919_v52 = vld [vmem:[#allocation28 + $0x188] ss:$12 sps:$4 sm:$0xff]  }
0x318a   : > { %v9519_v62 = vmax.f32 %v9473_v54, 0.0  ;;  %v9521_v1 = vmax.f32 %v9514_v55, 0.0  ;;  %v9589_v7 = vpack.c.bf16 %v9518_v57, %v9518_v57  ;;  %v9591_v9 = vpack.c.bf16 %v9520_v58, %v9520_v58  ;;  %v15916_v51 = vld [vmem:[#allocation28 + $0x180] ss:$12 sps:$4 sm:$0xff]   ;;  %v13568_v60 = vld [vmem:[#allocation55 + $0x1] ss:$0 sm:$0xff] }
0x318b   : > { %v9475_v2 = vpop.f32.mrf.mxu0  ;;  %v9516_v4 = vpop.f32.mrf.mxu1 }
0x318c   : > { %v9590_v42 = vpack.c.bf16 %v9519_v62, %v9519_v62  ;;  %v9592_v6 = vpack.c.bf16 %v9521_v1, %v9521_v1  ;;  %v13569_v62 = vld [vmem:[#allocation57 + $0x1] ss:$0 sm:$0xff] }
0x318e   : > { %9823 = vmatprep.mubr.bf16.mxu0 %v9590_v42  ;;  %9863 = vmatprep.mubr.bf16.mxu1 %v9592_v6  ;;  %v9935_v42 = vld [vmem:[#allocation30 + $0x6] sm:$0x7] }
0x318f   : > { %9824 = vmatmul.mubr.bf16.vlgmr.msra.gmra.mxu0 %v9589_v7  ;;  %9864 = vmatmul.mubr.bf16.vlgmr.msra.gmra.mxu1 %v9591_v9  ;;  %v9941_v6 = vrot.slane %v9935_v42, %v18065_v41  ;;  %v9949_v7 = vrot.slane %v9935_v42, %v18084_v59  ;;  %v9945_v9 = vrot.slane %v9935_v42, %v18068_v43 }
0x3190   : > { %10113 = vmatprep.mubr.bf16.mxu0 %v17390_v29  ;;  %14790 = vmatprep.mubr.msk.bf16.mxu1 %vm17389_vm0, %v17388_v0 }
0x3191   : > { %14775 = vmatpush3.bf16.msra.mxu1 %v15891_v24  ;;  %10082 = vmatpush1.bf16.msra.mxu0 %v15888_v18 }
0x3192   : > { %14776 = vmatprep.subr.bf16.mxu1 %v17388_v0  ;;  %10083 = vmatprep.subr.bf16.mxu0 %v15894_v34 }
0x3195   : > { %14777 = vmatpush3.bf16.msra.mxu1 %v15895_v19  ;;  %10084 = vmatpush1.bf16.msra.mxu0 %v15892_v20 }
0x3196   : > { %14778 = vmatprep.subr.bf16.mxu1 %v17388_v0  ;;  %10085 = vmatprep.subr.bf16.mxu0 %v15898_v22 }
0x3199   : > { %10086 = vmatpush1.bf16.msra.mxu0 %v15896_v26  ;;  %14779 = vmatpush3.bf16.msra.mxu1 %v15899_v27 }
0x319a   : > { %14780 = vmatprep.subr.bf16.mxu1 %v17388_v0  ;;  %10087 = vmatprep.subr.bf16.mxu0 %v15902_v28 }
0x319d   : > { %10088 = vmatpush1.bf16.msra.mxu0 %v15900_v30  ;;  %14781 = vmatpush3.bf16.msra.mxu1 %v15903_v31 }
0x319e   : > { %14782 = vmatprep.subr.bf16.mxu1 %v17388_v0  ;;  %10089 = vmatprep.subr.bf16.mxu0 %v15906_v32 }
0x31a1   : > { %10090 = vmatpush1.bf16.msra.mxu0 %v15904_v33  ;;  %14783 = vmatpush3.bf16.msra.mxu1 %v15907_v36 }
0x31a2   : > { %14784 = vmatprep.subr.bf16.mxu1 %v17388_v0  ;;  %10091 = vmatprep.subr.bf16.mxu0 %v15910_v38 }
0x31a5   : > { %10092 = vmatpush1.bf16.msra.mxu0 %v15908_v44  ;;  %14785 = vmatpush3.bf16.msra.mxu1 %v15911_v45 }
0x31a6   : > { %14786 = vmatprep.subr.bf16.mxu1 %v17388_v0  ;;  %10093 = vmatprep.subr.bf16.mxu0 %v15914_v63 }
0x31a9   : > { %10094 = vmatpush1.bf16.msra.mxu0 %v15912_v47  ;;  %14787 = vmatpush3.bf16.msra.mxu1 %v15915_v49 }
0x31aa   : > { %10095 = vmatprep.subr.bf16.mxu0 %v15918_v50  ;;  %14788 = vmatprep.subr.bf16.mxu1 %v17388_v0 }
0x31ad   : > { %10096 = vmatpush1.bf16.msra.mxu0 %v15916_v51  ;;  %14789 = vmatpush3.bf16.msra.mxu1 %v15919_v52 }
0x31ae   : > { %14818 = vmatprep.subr.bf16.mxu1 %v17388_v0  ;;  %14794 = vmatprep.subr.bf16.mxu0 %v17388_v0 }
0x324f   : > { %v14091_v46 = vpop.f32.mrf.mxu0  ;;  %v14113_v5 = vpop.f32.mrf.mxu1 }
0x3251   : > { %v14092_v10 = vpop.f32.mrf.mxu0  ;;  %v14114_v11 = vpop.f32.mrf.mxu1 }
0x3252   : > { %v14093_v12 = vadd.f32 %v14092_v10, %v14091_v46  ;;  %v14115_v16 = vadd.f32 %v14114_v11, %v14113_v5 }
0x3253   : > { %v14094_v53 = vpop.f32.mrf.mxu0  ;;  %v14116_v14 = vpop.f32.mrf.mxu1 }
0x3254   : > { %v9826_v15 = vadd.f32 %v14093_v12, %v13535_v35 }
0x3255   : > { %v14095_v56 = vpop.f32.mrf.mxu0  ;;  %v14117_v17 = vpop.f32.mrf.mxu1 }
0x3256   : > { %v9866_v3 = vadd.f32 %v14115_v16, %v9826_v15 }
0x3258   : > { %v9871_v37 = vadd.f32 %v9866_v3, %v18716_v8 }
0x325a   : > { %9876 = vadd.xlane.f32.xlu0 %v9871_v37 }
0x32e3   : > { %v9877_v21 = vpop.xlane.xlu0 %9876 }
0x32e4   : > { %v9878_v40 = vmul.f32 0.0078125, %v9877_v21 }
0x32e6   : > { %v9879_v8 = vsub.f32 %v9871_v37, %v9878_v40 }
0x32e8   : > { %v9880_v25 = vmul.f32 %v9879_v8, %v9879_v8 }
0x32ea   : > { %9881 = vadd.xlane.f32.xlu0 %v9880_v25 }
0x3373   : > { %v9882_v54 = vpop.xlane.xlu0 %9881 }
0x3374   : > { %v9883_v55 = vmul.f32 0.0078125, %v9882_v54 }
0x3376   : > { %v9884_v57 = vadd.f32 1e-05, %v9883_v55 }
0x3378   : > { %16172 = vrsqrt.f32 %v9884_v57 }
0x3385   : > { %v16173_v58 = vpop.eup %16172 }
0x3386   : > { %v9886_v61 = vmul.f32 %v16173_v58, %v9879_v8 }
0x3388   : > { %v9893_v1 = vmul.f32 %v13568_v60, %v9886_v61 }
0x338a   : > { %v18738_v2 = vadd.f32 %v13569_v62, %v9893_v1 }
0x338c   : > { %v9936_v4 = vpack.c.bf16 %v18738_v2, %v18738_v2 }
0x338e   : > { %10114 = vmatmul.mubr.bf16.vlgmr.msra.gmra.mxu0 %v9936_v4  ;;  %14791 = vmatmul.mubr.bf16.vlgmr.msra.gmra.mxu1 %v9936_v4 }
0x338f   : > { %14796 = vmatprep.mubr.msk.bf16.mxu0 %vm17389_vm0, %v17388_v0  ;;  %14820 = vmatprep.mubr.msk.bf16.mxu1 %vm17389_vm0, %v17388_v0 }
0x344e   : > { %v10115_v46 = vpop.f32.mrf.mxu0  ;;  %v10156_v5 = vpop.f32.mrf.mxu1 }
0x344f   : > { %v10116_v35 = vadd.f32 %v10115_v46, %v9941_v6  ;;  %v10157_v10 = vadd.f32 %v10156_v5, %v9949_v7 }
0x3450   : > { %v10117_v11 = vpop.f32.mrf.mxu0  ;;  %v14792_v12 = vpop.f32.mrf.mxu1 }
0x3451   : > { %v10162_v53 = vpack.c.bf16 %v10116_v35, %v10116_v35  ;;  %v18749_v14 = vpack.c.bf16 %v10157_v10, %v10157_v10  ;;  %v10118_v15 = vadd.f32 %v10117_v11, %v9945_v9 }
0x3452   : > { %v10119_v16 = vpop.f32.mrf.mxu0  ;;  %v10159_v56 = vpop.f32.mrf.mxu1 }
0x3453   : > { %v10170_v17 = vpack.c.bf16 %v10118_v15, %v10118_v15  ;;  %10164 = vrot.lane.b32.xlu0 %v10162_v53, %s17391_s2  ;;  %v10430_v3 = vsel %vm1912_vm1, %v18749_v14, 0 }
0x3454   : > { %v10120_v37 = vpop.f32.mrf.mxu0  ;;  %v14793_v18 = vpop.f32.mrf.mxu1  ;;  %14819 = vmatpush3.bf16.msra.mxu1 %v10430_v3 }
0x3455   : > { %10172 = vrot.lane.b32.xlu1 %v10170_v17, %s17391_s2  ;;  %v10190_v48 = vsel %vm2241_vm3, %v10170_v17, 0  ;;  %14830 = vmatprep.subr.bf16.mxu1 %v17388_v0 }
0x3456   : > { %14795 = vmatpush3.bf16.xpose.msra.mxu0 %v10190_v48 }
0x3457   : > { %10176 = vrot.lane.b32.xlu0 %v10170_v17, %s17392_s15  ;;  %14800 = vmatprep.subr.bf16.mxu0 %v17388_v0 }
0x3459   : > { %10174 = vrot.lane.b32.xlu1 %v10170_v17, %s17393_s26 }
0x345d   : > { %10166 = vrot.lane.b32.xlu1 %v10162_v53, %s17393_s26  ;;  %14797 = vmatmul.mubr.msk.bf16.vlgmr.msra.gmra.mxu0 %vm2241_vm3, %v10162_v53 }
0x345e   : > { %14802 = vmatprep.mubr.msk.bf16.mxu0 %vm17389_vm0, %v17388_v0 }
0x3461   : > { %10168 = vrot.lane.b32.xlu1 %v10162_v53, %s17392_s15 }
0x34c5   : > { %v10165_v20 = vpop.permute.xlu0 %10164 }
0x34c7   : > { %v10173_v24 = vpop.permute.xlu1 %10172 }
0x34c8   : > { %v10236_v34 = vsel %vm2241_vm3, %v10173_v24, 0 }
0x34c9   : > { %14801 = vmatpush3.bf16.xpose.msra.mxu0 %v10236_v34  ;;  %v10177_v40 = vpop.permute.xlu0 %10176 }
0x34ca   : > { %14806 = vmatprep.subr.bf16.mxu0 %v17388_v0  ;;  %v10328_v25 = vsel %vm2241_vm3, %v10177_v40, 0 }
0x34cb   : > { %v10175_v19 = vpop.permute.xlu1 %10174 }
0x34cc   : > { %v10282_v21 = vsel %vm2241_vm3, %v10175_v19, 0 }
0x34cf   : > { %v10167_v8 = vpop.permute.xlu1 %10166 }
0x34d0   : > { %14803 = vmatmul.mubr.msk.bf16.vlgmr.msra.gmra.mxu0 %vm2241_vm3, %v10165_v20 }
0x34d1   : > { %14807 = vmatpush3.bf16.xpose.msra.mxu0 %v10282_v21  ;;  %14808 = vmatprep.mubr.msk.bf16.mxu0 %vm17389_vm0, %v17388_v0 }
0x34d2   : > { %14812 = vmatprep.subr.bf16.mxu0 %v17388_v0 }
0x34d3   : > { %v10169_v22 = vpop.permute.xlu1 %10168 }
0x34d8   : > { %14809 = vmatmul.mubr.msk.bf16.vlgmr.msra.gmra.mxu0 %vm2241_vm3, %v10167_v8 }
0x34d9   : > { %14813 = vmatpush3.bf16.xpose.msra.mxu0 %v10328_v25  ;;  %14814 = vmatprep.mubr.msk.bf16.mxu0 %vm17389_vm0, %v17388_v0 }
0x34da   : > { %14824 = vmatprep.subr.bf16.mxu0 %v17388_v0 }
0x34e0   : > { %14815 = vmatmul.mubr.msk.bf16.vlgmr.msra.gmra.mxu0 %vm2241_vm3, %v10169_v22 }
0x34e1   : > { %14826 = vmatprep.mubr.msk.bf16.mxu0 %vm17389_vm0, %v17388_v0 }
0x351d   : > { %v10226_v26 = vpop.f32.mrf.mxu0 }
0x351e   : > { %v10370_v27 = vmul.f32 0.17677669, %v10226_v26 }
0x351f   : > { %v14798_v28 = vpop.f32.mrf.mxu0 }
0x3520   : > { %v10374_v30 = vadd.f32 %v10370_v27, %v18335_v13 }
0x3521   : > { %v10229_v31 = vpop.f32.mrf.mxu0 }
0x3522   : > { %v10378_v32 = vsel %vm1908_vm2, %v10374_v30, -inf }
0x3523   : > { %10379 = vmax.xlane.f32.xlu0 %v10378_v32  ;;  %v14799_v33 = vpop.f32.mrf.mxu0 }
0x3590   : > { %v10272_v36 = vpop.f32.mrf.mxu0 }
0x3591   : > { %v10371_v38 = vmul.f32 0.17677669, %v10272_v36 }
0x3592   : > { %v14804_v44 = vpop.f32.mrf.mxu0 }
0x3593   : > { %v10375_v45 = vadd.f32 %v10371_v38, %v18335_v13 }
0x3594   : > { %v10275_v63 = vpop.f32.mrf.mxu0 }
0x3595   : > { %v10381_v47 = vsel %vm1908_vm2, %v10375_v45, -inf }
0x3596   : > { %10382 = vmax.xlane.f32.xlu1 %v10381_v47  ;;  %v14805_v49 = vpop.f32.mrf.mxu0 }
0x3598   : > { %v10318_v50 = vpop.f32.mrf.mxu0 }
0x3599   : > { %v10372_v51 = vmul.f32 0.17677669, %v10318_v50  ;;  %v15920_v50 = vld [vmem:[#allocation31 + $0xb8] sm:$0xff]  }
0x359a   : > { %v14810_v52 = vpop.f32.mrf.mxu0 }
0x359b   : > { %v10376_v54 = vadd.f32 %v10372_v51, %v18335_v13  ;;  %v15921_v52 = vld [vmem:[#allocation31 + $0xb0] sm:$0xff]  }
0x359c   : > { %v10321_v55 = vpop.f32.mrf.mxu0 }
0x359d   : > { %v10384_v57 = vsel %vm1908_vm2, %v10376_v54, -inf }
0x359e   : > { %10385 = vmax.xlane.f32.xlu0 %v10384_v57  ;;  %v14811_v58 = vpop.f32.mrf.mxu0  ;;  %v15922_v57 = vld [vmem:[#allocation31 + $0xa8] sm:$0xff]  }
0x35a0   : > { %v10364_v60 = vpop.f32.mrf.mxu0 }
0x35a1   : > { %v10373_v61 = vmul.f32 0.17677669, %v10364_v60  ;;  %v15923_v60 = vld [vmem:[#allocation31 + $0xa0] sm:$0xff]  }
0x35a2   : > { %v14816_v62 = vpop.f32.mrf.mxu0 }
0x35a3   : > { %v10377_v1 = vadd.f32 %v10373_v61, %v18335_v13  ;;  %v15924_v61 = vld [vmem:[#allocation31 + $0x98] sm:$0xff]   ;;  %v15925_v62 = vld [vmem:[#allocation31 + $0x90] sm:$0xff]  }
0x35a4   : > { %v10367_v4 = vpop.f32.mrf.mxu0 }
0x35a5   : > { %v10387_v42 = vsel %vm1908_vm2, %v10377_v1, -inf  ;;  %v15927_v4 = vld [vmem:[#allocation31 + $0x80] sm:$0xff]  }
0x35a6   : > { %10388 = vmax.xlane.f32.xlu0 %v10387_v42  ;;  %v14817_v6 = vpop.f32.mrf.mxu0 }
0x35a7   : > { %10180 = vrot.lane.b32.xlu1 %v18749_v14, %s17391_s2 }
0x35ac   : > { %v10380_v7 = vpop.xlane.xlu0 %10379 }
0x35ad   : > { %v10390_v9 = vsub.f32 %v10374_v30, %v10380_v7 }
0x35af   : > { %v10394_v46 = vmul.f32 1.442695, %v10390_v9  ;;  %v15930_v9 = vld [vmem:[#allocation40 + $0x174] ss:$8 sps:$4 sm:$0xff]  }
0x35b1   : > { %16174 = vpow2.f32 %v10394_v46 }
0x35be   : > { %v16175_v5 = vpop.eup %16174 }
0x35bf   : > { %v10402_v35 = vsel %vm1908_vm2, %v16175_v5, 0.0 }
0x35cb   : > { %10403 = vadd.xlane.f32.xlu1 %v10402_v35 }
0x361f   : > { %v10383_v10 = vpop.xlane.xlu1 %10382 }
0x3620   : > { %v10391_v11 = vsub.f32 %v10375_v45, %v10383_v10 }
0x3622   : > { %v10396_v12 = vmul.f32 1.442695, %v10391_v11 }
0x3623   : > { %v10181_v13 = vpop.permute.xlu1 %10180 }
0x3624   : > { %16176 = vpow2.f32 %v10396_v12  ;;  %v10476_v53 = vsel %vm1912_vm1, %v10181_v13, 0 }
0x3625   : > { %14825 = vmatpush3.bf16.msra.mxu0 %v10476_v53 }
0x3626   : > { %14836 = vmatprep.subr.bf16.mxu0 %v17388_v0 }
0x3627   : > { %v10386_v15 = vpop.xlane.xlu0 %10385 }
0x3628   : > { %v10392_v16 = vsub.f32 %v10376_v54, %v10386_v15 }
0x362a   : > { %v10398_v56 = vmul.f32 1.442695, %v10392_v16 }
0x362c   : > { %16178 = vpow2.f32 %v10398_v56 }
0x362f   : > { %v10389_v17 = vpop.xlane.xlu0 %10388 }
0x3630   : > { %v10393_v3 = vsub.f32 %v10377_v1, %v10389_v17  ;;  %v15926_v1 = vld [vmem:[#allocation31 + $0x88] sm:$0xff]  }
0x3631   : > { %v16177_v37 = vpop.eup %16176 }
0x3632   : > { %v10400_v18 = vmul.f32 1.442695, %v10393_v3  ;;  %v10405_v48 = vsel %vm1908_vm2, %v16177_v37, 0.0 }
0x3633   : > { %10406 = vadd.xlane.f32.xlu0 %v10405_v48  ;;  %v15928_v48 = vld [vmem:[#allocation40 + $0x170] ss:$8 sps:$4 sm:$0xff]  }
0x3634   : > { %16180 = vpow2.f32 %v10400_v18 }
0x3639   : > { %v16179_v24 = vpop.eup %16178 }
0x363a   : > { %v10408_v34 = vsel %vm1908_vm2, %v16179_v24, 0.0 }
0x363b   : > { %10409 = vadd.xlane.f32.xlu1 %v10408_v34  ;;  %v15933_v34 = vld [vmem:[#allocation40 + $0x164] ss:$8 sps:$4 sm:$0xff]  }
0x3641   : > { %v16181_v19 = vpop.eup %16180 }
0x3642   : > { %v10411_v20 = vsel %vm1908_vm2, %v16181_v19, 0.0 }
0x3643   : > { %10412 = vadd.xlane.f32.xlu0 %v10411_v20  ;;  %v15936_v20 = vld [vmem:[#allocation40 + $0x154] ss:$8 sps:$4 sm:$0xff]  }
0x364c   : > { %10184 = vrot.lane.b32.xlu1 %v18749_v14, %s17392_s15 }
0x3654   : > { %v10404_v21 = vpop.xlane.xlu1 %10403 }
0x3655   : > { %16182 = vrcp.f32 %v10404_v21  ;;  %v15934_v21 = vld [vmem:[#allocation40 + $0x150] ss:$8 sps:$4 sm:$0xff]  }
0x3659   : > { %10182 = vrot.lane.b32.xlu0 %v18749_v14, %s17393_s26 }
0x3662   : > { %v16183_v40 = vpop.eup %16182 }
0x3663   : > { %v10418_v8 = vmul.f32 %v16183_v40, %v16175_v5  ;;  %v15939_v40 = vld [vmem:[#allocation40 + $0x144] ss:$8 sps:$4 sm:$0xff]  }
0x3665   : > { %v10422_v25 = vpack.c.bf16 %v10418_v8, %v10418_v8  ;;  %v15937_v8 = vld [vmem:[#allocation40 + $0x140] ss:$8 sps:$4 sm:$0xff]  }
0x3667   : > { %14821 = vmatmul.mubr.msk.bf16.vlgmr.msra.gmra.mxu1 %vm1908_vm2, %v10422_v25  ;;  %v15942_v25 = vld [vmem:[#allocation40 + $0x134] ss:$8 sps:$4 sm:$0xff]  }
0x3668   : > { %14832 = vmatprep.mubr.msk.bf16.mxu1 %vm17389_vm0, %v17388_v0 }
0x36bc   : > { %v10407_v22 = vpop.xlane.xlu0 %10406 }
0x36bd   : > { %16184 = vrcp.f32 %v10407_v22  ;;  %v15940_v22 = vld [vmem:[#allocation40 + $0x130] ss:$8 sps:$4 sm:$0xff]  }
0x36c4   : > { %v10410_v26 = vpop.xlane.xlu1 %10409 }
0x36c5   : > { %16186 = vrcp.f32 %v10410_v26  ;;  %v15945_v26 = vld [vmem:[#allocation40 + $0x124] ss:$8 sps:$4 sm:$0xff]  }
0x36c8   : > { %v10185_v30 = vpop.permute.xlu1 %10184 }
0x36c9   : > { %v10568_v14 = vsel %vm1912_vm1, %v10185_v30, 0  ;;  %v15946_v30 = vld [vmem:[#allocation40 + $0x110] ss:$8 sps:$4 sm:$0xff]  }
0x36ca   : > { %v16185_v27 = vpop.eup %16184 }
0x36cb   : > { %v10419_v28 = vmul.f32 %v16185_v27, %v16177_v37  ;;  %v15943_v27 = vld [vmem:[#allocation40 + $0x120] ss:$8 sps:$4 sm:$0xff]  }
0x36cc   : > { %v10413_v31 = vpop.xlane.xlu0 %10412 }
0x36cd   : > { %v10423_v32 = vpack.c.bf16 %v10419_v28, %v10419_v28  ;;  %16188 = vrcp.f32 %v10413_v31  ;;  %v15948_v28 = vld [vmem:[#allocation40 + $0x114] ss:$8 sps:$4 sm:$0xff]   ;;  %v15951_v31 = vld [vmem:[#allocation40 + $0x104] ss:$8 sps:$4 sm:$0xff]  }
0x36cf   : > { %14827 = vmatmul.mubr.msk.bf16.vlgmr.msra.gmra.mxu0 %vm1908_vm2, %v10423_v32  ;;  %v15949_v32 = vld [vmem:[#allocation40 + $0x100] ss:$8 sps:$4 sm:$0xff]  }
0x36d0   : > { %14837 = vmatpush3.bf16.msra.mxu0 %v10568_v14  ;;  %v10183_v33 = vpop.permute.xlu0 %10182  ;;  %14838 = vmatprep.mubr.msk.bf16.mxu0 %vm17389_vm0, %v17388_v0  ;;  %v13602_v14 = vld [vmem:[#allocation33 + $0x2] ss:$0 sm:$0xff] }
0x36d1   : > { %v10522_v36 = vsel %vm1912_vm1, %v10183_v33, 0  ;;  %14862 = vmatprep.subr.bf16.mxu0 %v17388_v0 }
0x36d2   : > { %v16187_v38 = vpop.eup %16186  ;;  %14831 = vmatpush3.bf16.msra.mxu1 %v10522_v36 }
0x36d3   : > { %v10420_v44 = vmul.f32 %v16187_v38, %v16179_v24  ;;  %14842 = vmatprep.subr.bf16.mxu1 %v17388_v0 }
0x36d5   : > { %v10424_v45 = vpack.c.bf16 %v10420_v44, %v10420_v44 }
0x36d7   : > { %14833 = vmatmul.mubr.msk.bf16.vlgmr.msra.gmra.mxu1 %vm1908_vm2, %v10424_v45 }
0x36d8   : > { %14858 = vmatprep.mubr.msk.bf16.mxu1 %vm17389_vm0, %v17388_v0  ;;  %14843 = vmatpush3.bf16.msra.mxu1 %v15920_v50 }
0x36d9   : > { %14844 = vmatprep.subr.bf16.mxu1 %v17388_v0 }
0x36da   : > { %v16189_v63 = vpop.eup %16188 }
0x36db   : > { %v10421_v47 = vmul.f32 %v16189_v63, %v16181_v19  ;;  %v15931_v19 = vld [vmem:[#allocation40 + $0x160] ss:$8 sps:$4 sm:$0xff]  }
0x36dc   : > { %14845 = vmatpush3.bf16.msra.mxu1 %v15921_v52  ;;  %v15952_v52 = vld [vmem:[#allocation37 + $0xb8] sm:$0xff]  }
0x36dd   : > { %v10425_v49 = vpack.c.bf16 %v10421_v47, %v10421_v47  ;;  %14846 = vmatprep.subr.bf16.mxu1 %v17388_v0  ;;  %v10901_v47 = vld [vmem:[#allocation42 + $0x4] sm:$0x3] }
0x36de   : > { %v10910_v50 = vrot.slane %v10901_v47, %v18068_v43 }
0x36df   : > { %14839 = vmatmul.mubr.msk.bf16.vlgmr.msra.gmra.mxu0 %vm1908_vm2, %v10425_v49  ;;  %v10906_v49 = vrot.slane %v10901_v47, %v18065_v41 }
0x36e0   : > { %14878 = vmatprep.mubr.msk.bf16.mxu0 %vm17389_vm0, %v17388_v0  ;;  %14847 = vmatpush3.bf16.msra.mxu1 %v15922_v57 }
0x36e1   : > { %14848 = vmatprep.subr.bf16.mxu1 %v17388_v0  ;;  %14863 = vmatpush3.bf16.msra.mxu0 %v15952_v52 }
0x36e2   : > { %14864 = vmatprep.subr.bf16.mxu0 %v17388_v0 }
0x36e4   : > { %14849 = vmatpush3.bf16.msra.mxu1 %v15923_v60 }
0x36e5   : > { %14850 = vmatprep.subr.bf16.mxu1 %v17388_v0 }
0x36e8   : > { %14851 = vmatpush3.bf16.msra.mxu1 %v15924_v61 }
0x36e9   : > { %14852 = vmatprep.subr.bf16.mxu1 %v17388_v0 }
0x36ec   : > { %14853 = vmatpush3.bf16.msra.mxu1 %v15925_v62 }
0x36ed   : > { %14854 = vmatprep.subr.bf16.mxu1 %v17388_v0 }
0x36f0   : > { %14855 = vmatpush3.bf16.msra.mxu1 %v15926_v1 }
0x36f1   : > { %14856 = vmatprep.subr.bf16.mxu1 %v17388_v0 }
0x36f4   : > { %14857 = vmatpush3.bf16.msra.mxu1 %v15927_v4 }
0x36f5   : > { %10993 = vmatprep.subr.bf16.mxu1 %v15930_v9  ;;  %v15955_v9 = vld [vmem:[#allocation37 + $0xa0] sm:$0xff]  }
0x3727   : > { %v10466_v51 = vpop.f32.mrf.mxu1 }
0x3729   : > { %v14822_v54 = vpop.f32.mrf.mxu1 }
0x372b   : > { %v10469_v55 = vpop.f32.mrf.mxu1 }
0x372c   : > { %v15953_v55 = vld [vmem:[#allocation37 + $0xb0] sm:$0xff]  }
0x372d   : > { %v14823_v58 = vpop.f32.mrf.mxu1  ;;  %14865 = vmatpush3.bf16.msra.mxu0 %v15953_v55 }
0x372e   : > { %14866 = vmatprep.subr.bf16.mxu0 %v17388_v0 }
0x378f   : > { %v10512_v42 = vpop.f32.mrf.mxu0 }
0x3790   : > { %10611 = vrot.lane.b32.xlu1 %v10512_v42, %s17392_s15 }
0x3791   : > { %v14828_v6 = vpop.f32.mrf.mxu0 }
0x3793   : > { %v10515_v7 = vpop.f32.mrf.mxu0 }
0x3794   : > { %v15954_v7 = vld [vmem:[#allocation37 + $0xa8] sm:$0xff]  }
0x3795   : > { %v14829_v46 = vpop.f32.mrf.mxu0  ;;  %14867 = vmatpush3.bf16.msra.mxu0 %v15954_v7 }
0x3796   : > { %14868 = vmatprep.subr.bf16.mxu0 %v17388_v0  ;;  %v15956_v46 = vld [vmem:[#allocation37 + $0x98] sm:$0xff]  }
0x3797   : > { %v10558_v5 = vpop.f32.mrf.mxu1 }
0x3798   : > { %10615 = vrot.lane.b32.xlu0 %v10558_v5, %s17393_s26  ;;  %v15957_v5 = vld [vmem:[#allocation37 + $0x90] sm:$0xff]  }
0x3799   : > { %v14834_v35 = vpop.f32.mrf.mxu1  ;;  %14869 = vmatpush3.bf16.msra.mxu0 %v15955_v9 }
0x379a   : > { %14870 = vmatprep.subr.bf16.mxu0 %v17388_v0  ;;  %v15958_v35 = vld [vmem:[#allocation37 + $0x88] sm:$0xff]  }
0x379b   : > { %v10561_v10 = vpop.f32.mrf.mxu1 }
0x379c   : > { %v15959_v10 = vld [vmem:[#allocation37 + $0x80] sm:$0xff]  }
0x379d   : > { %v14835_v11 = vpop.f32.mrf.mxu1  ;;  %14871 = vmatpush3.bf16.msra.mxu0 %v15956_v46 }
0x379e   : > { %14872 = vmatprep.subr.bf16.mxu0 %v17388_v0 }
0x379f   : > { %v10604_v12 = vpop.f32.mrf.mxu0 }
0x37a0   : > { %10619 = vrot.lane.b32.xlu1 %v10604_v12, %s17391_s2 }
0x37a1   : > { %v14840_v13 = vpop.f32.mrf.mxu0  ;;  %14873 = vmatpush3.bf16.msra.mxu0 %v15957_v5 }
0x37a2   : > { %14874 = vmatprep.subr.bf16.mxu0 %v17388_v0 }
0x37a3   : > { %v10607_v53 = vpop.f32.mrf.mxu0 }
0x37a5   : > { %v14841_v15 = vpop.f32.mrf.mxu0  ;;  %14875 = vmatpush3.bf16.msra.mxu0 %v15958_v35 }
0x37a6   : > { %14876 = vmatprep.subr.bf16.mxu0 %v17388_v0  ;;  %v13611_v15 = vld [vmem:[#allocation34 + $0x2] ss:$0 sm:$0xff] }
0x37a9   : > { %14877 = vmatpush3.bf16.msra.mxu0 %v15959_v10 }
0x37aa   : > { %14882 = vmatprep.subr.bf16.mxu0 %v17388_v0 }
0x3802   : > { %v10612_v16 = vpop.permute.xlu1 %10611 }
0x3803   : > { %v10622_v17 = vsel %vm2241_vm3, %v10466_v51, %v10612_v16 }
0x380a   : > { %v10616_v56 = vpop.permute.xlu0 %10615 }
0x380b   : > { %v10623_v3 = vsel %vm2675_vm4, %v10622_v17, %v10616_v56  ;;  %v13612_v56 = vld [vmem:[#allocation36 + $0x2] ss:$0 sm:$0xff] }
0x3812   : > { %v10620_v37 = vpop.permute.xlu1 %10619 }
0x3813   : > { %v10624_v18 = vsel %vm2677_vm5, %v10623_v3, %v10620_v37 }
0x3814   : > { %v10644_v24 = vpack.c.bf16 %v10624_v18, %v10624_v18 }
0x3816   : > { %14859 = vmatmul.mubr.bf16.vlgmr.msra.gmra.mxu1 %v10644_v24 }
0x3817   : > { %10994 = vmatpush1.bf16.msra.mxu1 %v15928_v48  ;;  %11025 = vmatprep.mubr.bf16.mxu1 %v17390_v29  ;;  %v13613_v48 = vld [vmem:[#allocation39 + $0x2] ss:$0 sm:$0xff] }
0x3818   : > { %10995 = vmatprep.subr.bf16.mxu1 %v15933_v34 }
0x381b   : > { %10996 = vmatpush1.bf16.msra.mxu1 %v15931_v19 }
0x381c   : > { %10997 = vmatprep.subr.bf16.mxu1 %v15936_v20 }
0x381f   : > { %10998 = vmatpush1.bf16.msra.mxu1 %v15934_v21 }
0x3820   : > { %10999 = vmatprep.subr.bf16.mxu1 %v15939_v40 }
0x3823   : > { %11000 = vmatpush1.bf16.msra.mxu1 %v15937_v8 }
0x3824   : > { %11001 = vmatprep.subr.bf16.mxu1 %v15942_v25 }
0x3827   : > { %11002 = vmatpush1.bf16.msra.mxu1 %v15940_v22 }
0x3828   : > { %11003 = vmatprep.subr.bf16.mxu1 %v15945_v26 }
0x382b   : > { %11004 = vmatpush1.bf16.msra.mxu1 %v15943_v27 }
0x382c   : > { %11005 = vmatprep.subr.bf16.mxu1 %v15948_v28 }
0x382f   : > { %11006 = vmatpush1.bf16.msra.mxu1 %v15946_v30 }
0x3830   : > { %11007 = vmatprep.subr.bf16.mxu1 %v15951_v31 }
0x3833   : > { %11008 = vmatpush1.bf16.msra.mxu1 %v15949_v32 }
0x3834   : > { %14906 = vmatprep.subr.bf16.mxu1 %v17388_v0 }
0x3836   : > { %11026 = vmatmul.mubr.bf16.vlgmr.msra.gmra.mxu1 %v18416_v39 }
0x3837   : > { %14908 = vmatprep.mubr.msk.bf16.mxu1 %vm17389_vm0, %v17388_v0 }
0x38d6   : > { %v10733_v33 = vpop.f32.mrf.mxu1 }
0x38d7   : > { %v10734_v36 = vadd.f32 %v13602_v14, %v10733_v33 }
0x38d8   : > { %v14860_v38 = vpop.f32.mrf.mxu1 }
0x38d9   : > { %v10739_v44 = vadd.f32 %v10734_v36, %v18738_v2 }
0x38da   : > { %v10736_v45 = vpop.f32.mrf.mxu1 }
0x38db   : > { %10744 = vadd.xlane.f32.xlu0 %v10739_v44 }
0x38dc   : > { %v14861_v63 = vpop.f32.mrf.mxu1 }
0x38f6   : > { %v11027_v51 = vpop.f32.mrf.mxu1 }
0x38f7   : > { %v11028_v39 = vadd.f32 %v11027_v51, %v10906_v49 }
0x38f8   : > { %v11029_v54 = vpop.f32.mrf.mxu1 }
0x38f9   : > { %v11042_v57 = vpack.c.bf16 %v11028_v39, %v11028_v39  ;;  %v11030_v58 = vadd.f32 %v11029_v54, %v10910_v50 }
0x38fa   : > { %v11031_v60 = vpop.f32.mrf.mxu1 }
0x38fb   : > { %v18838_v2 = vpack.c.bf16 %v11030_v58, %v11030_v58  ;;  %11044 = vrot.lane.b32.xlu0 %v11042_v57, %s17391_s2  ;;  %v11062_v18 = vsel %vm2241_vm3, %v11042_v57, 0 }
0x38fc   : > { %v11032_v61 = vpop.f32.mrf.mxu1 }
0x38fd   : > { %v11298_v62 = vsel %vm1912_vm1, %v18838_v2, 0 }
0x38fe   : > { %14907 = vmatpush3.bf16.msra.mxu1 %v11298_v62 }
0x38ff   : > { %11046 = vrot.lane.b32.xlu0 %v11042_v57, %s17393_s26  ;;  %14918 = vmatprep.subr.bf16.mxu1 %v17388_v0 }
0x3903   : > { %11048 = vrot.lane.b32.xlu0 %v11042_v57, %s17392_s15 }
0x3964   : > { %v10745_v1 = vpop.xlane.xlu0 %10744 }
0x3965   : > { %v10746_v4 = vmul.f32 0.0078125, %v10745_v1 }
0x3967   : > { %v10747_v42 = vsub.f32 %v10739_v44, %v10746_v4 }
0x3969   : > { %v10748_v6 = vmul.f32 %v10747_v42, %v10747_v42 }
0x396b   : > { %10749 = vadd.xlane.f32.xlu1 %v10748_v6 }
0x396d   : > { %v11045_v19 = vpop.permute.xlu0 %11044 }
0x396e   : > { %v11108_v8 = vsel %vm2241_vm3, %v11045_v19, 0 }
0x3971   : > { %v11047_v22 = vpop.permute.xlu0 %11046 }
0x3972   : > { %v11154_v27 = vsel %vm2241_vm3, %v11047_v22, 0 }
0x3975   : > { %v11049_v28 = vpop.permute.xlu0 %11048 }
0x3976   : > { %v11200_v31 = vsel %vm2241_vm3, %v11049_v28, 0 }
0x39f4   : > { %v10750_v11 = vpop.xlane.xlu1 %10749 }
0x39f5   : > { %v10751_v12 = vmul.f32 0.0078125, %v10750_v11 }
0x39f7   : > { %v10752_v13 = vadd.f32 1e-05, %v10751_v12 }
0x39f9   : > { %16190 = vrsqrt.f32 %v10752_v13 }
0x3a06   : > { %v16191_v53 = vpop.eup %16190 }
0x3a07   : > { %v10754_v16 = vmul.f32 %v16191_v53, %v10747_v42 }
0x3a09   : > { %v10761_v17 = vmul.f32 %v13611_v15, %v10754_v16 }
0x3a0b   : > { %v18853_v3 = vadd.f32 %v13612_v56, %v10761_v17 }
0x3a0d   : > { %v10788_v37 = vpack.c.bf16 %v18853_v3, %v18853_v3 }
0x3a0f   : > { %14879 = vmatmul.mubr.bf16.vlgmr.msra.gmra.mxu0 %v10788_v37 }
0x3a10   : > { %14883 = vmatpush3.bf16.xpose.msra.mxu0 %v11062_v18  ;;  %14884 = vmatprep.mubr.msk.bf16.mxu0 %vm17389_vm0, %v17388_v0 }
0x3a11   : > { %14888 = vmatprep.subr.bf16.mxu0 %v17388_v0 }
0x3acf   : > { %v10877_v24 = vpop.f32.mrf.mxu0 }
0x3ad0   : > { %v10878_v34 = vadd.f32 %v13613_v48, %v10877_v24 }
0x3ad1   : > { %v14880_v20 = vpop.f32.mrf.mxu0 }
0x3ad2   : > { %v11034_v21 = vpack.c.bf16 %v10878_v34, %v10878_v34 }
0x3ad3   : > { %v10880_v40 = vpop.f32.mrf.mxu0 }
0x3ad4   : > { %11036 = vrot.lane.b32.xlu1 %v11034_v21, %s17391_s2  ;;  %14885 = vmatmul.mubr.msk.bf16.vlgmr.msra.gmra.mxu0 %vm2241_vm3, %v11034_v21 }
0x3ad5   : > { %14889 = vmatpush3.bf16.xpose.msra.mxu0 %v11108_v8  ;;  %v14881_v25 = vpop.f32.mrf.mxu0  ;;  %14890 = vmatprep.mubr.msk.bf16.mxu0 %vm17389_vm0, %v17388_v0 }
0x3ad6   : > { %14894 = vmatprep.subr.bf16.mxu0 %v17388_v0 }
0x3ad8   : > { %11038 = vrot.lane.b32.xlu1 %v11034_v21, %s17393_s26 }
0x3adc   : > { %11040 = vrot.lane.b32.xlu1 %v11034_v21, %s17392_s15 }
0x3b46   : > { %v11037_v26 = vpop.permute.xlu1 %11036 }
0x3b47   : > { %14891 = vmatmul.mubr.msk.bf16.vlgmr.msra.gmra.mxu0 %vm2241_vm3, %v11037_v26 }
0x3b48   : > { %14895 = vmatpush3.bf16.xpose.msra.mxu0 %v11154_v27  ;;  %14896 = vmatprep.mubr.msk.bf16.mxu0 %vm17389_vm0, %v17388_v0 }
0x3b49   : > { %14900 = vmatprep.subr.bf16.mxu0 %v17388_v0 }
0x3b4a   : > { %v11039_v30 = vpop.permute.xlu1 %11038 }
0x3b4e   : > { %v11041_v32 = vpop.permute.xlu1 %11040 }
0x3b4f   : > { %14897 = vmatmul.mubr.msk.bf16.vlgmr.msra.gmra.mxu0 %vm2241_vm3, %v11039_v30 }
0x3b50   : > { %14901 = vmatpush3.bf16.xpose.msra.mxu0 %v11200_v31  ;;  %14902 = vmatprep.mubr.msk.bf16.mxu0 %vm17389_vm0, %v17388_v0 }
0x3b51   : > { %14912 = vmatprep.subr.bf16.mxu0 %v17388_v0 }
0x3b57   : > { %14903 = vmatmul.mubr.msk.bf16.vlgmr.msra.gmra.mxu0 %vm2241_vm3, %v11041_v32 }
0x3b58   : > { %14914 = vmatprep.mubr.msk.bf16.mxu0 %vm17389_vm0, %v17388_v0 }
0x3b94   : > { %v11098_v14 = vpop.f32.mrf.mxu0 }
0x3b95   : > { %v11242_v33 = vmul.f32 0.17677669, %v11098_v14 }
0x3b96   : > { %v14886_v36 = vpop.f32.mrf.mxu0 }
0x3b97   : > { %v11246_v38 = vsel %vm1908_vm2, %v11242_v33, -inf }
0x3b98   : > { %11247 = vmax.xlane.f32.xlu0 %v11246_v38  ;;  %v11101_v44 = vpop.f32.mrf.mxu0 }
0x3b9a   : > { %v14887_v45 = vpop.f32.mrf.mxu0 }
0x3c07   : > { %v11144_v63 = vpop.f32.mrf.mxu0 }
0x3c08   : > { %v11243_v47 = vmul.f32 0.17677669, %v11144_v63 }
0x3c09   : > { %v14892_v49 = vpop.f32.mrf.mxu0 }
0x3c0a   : > { %v11249_v50 = vsel %vm1908_vm2, %v11243_v47, -inf }
0x3c0b   : > { %11250 = vmax.xlane.f32.xlu1 %v11249_v50  ;;  %v11147_v51 = vpop.f32.mrf.mxu0  ;;  %v15960_v50 = vld [vmem:[#allocation43 + $0xb8] sm:$0xff]  }
0x3c0d   : > { %v14893_v52 = vpop.f32.mrf.mxu0 }
0x3c0e   : > { %v15961_v52 = vld [vmem:[#allocation43 + $0xb0] sm:$0xff]  }
0x3c0f   : > { %v11190_v39 = vpop.f32.mrf.mxu0 }
0x3c10   : > { %v11244_v54 = vmul.f32 0.17677669, %v11190_v39 }
0x3c11   : > { %v14898_v55 = vpop.f32.mrf.mxu0 }
0x3c12   : > { %v11252_v57 = vsel %vm1908_vm2, %v11244_v54, -inf  ;;  %v15962_v55 = vld [vmem:[#allocation43 + $0xa8] sm:$0xff]  }
0x3c13   : > { %11253 = vmax.xlane.f32.xlu0 %v11252_v57  ;;  %v11193_v58 = vpop.f32.mrf.mxu0 }
0x3c14   : > { %v15963_v58 = vld [vmem:[#allocation43 + $0xa0] sm:$0xff]  }
0x3c15   : > { %v14899_v60 = vpop.f32.mrf.mxu0 }
0x3c16   : > { %v15964_v60 = vld [vmem:[#allocation43 + $0x98] sm:$0xff]  }
0x3c17   : > { %v11236_v61 = vpop.f32.mrf.mxu0 }
0x3c18   : > { %v11245_v62 = vmul.f32 0.17677669, %v11236_v61  ;;  %v15965_v61 = vld [vmem:[#allocation43 + $0x90] sm:$0xff]  }
0x3c19   : > { %v14904_v1 = vpop.f32.mrf.mxu0 }
0x3c1a   : > { %v11255_v4 = vsel %vm1908_vm2, %v11245_v62, -inf }
0x3c1b   : > { %11256 = vmax.xlane.f32.xlu0 %v11255_v4  ;;  %v11239_v42 = vpop.f32.mrf.mxu0 }
0x3c1c   : > { %11052 = vrot.lane.b32.xlu1 %v18838_v2, %s17391_s2  ;;  %v15967_v42 = vld [vmem:[#allocation43 + $0x80] sm:$0xff]  }
0x3c1d   : > { %v14905_v6 = vpop.f32.mrf.mxu0 }
0x3c21   : > { %v11248_v7 = vpop.xlane.xlu0 %11247 }
0x3c22   : > { %v11258_v9 = vsub.f32 %v11242_v33, %v11248_v7 }
0x3c24   : > { %v11262_v46 = vmul.f32 1.442695, %v11258_v9 }
0x3c26   : > { %16192 = vpow2.f32 %v11262_v46 }
0x3c33   : > { %v16193_v5 = vpop.eup %16192 }
0x3c34   : > { %v11270_v35 = vsel %vm1908_vm2, %v16193_v5, 0.0 }
0x3c40   : > { %11271 = vadd.xlane.f32.xlu1 %v11270_v35 }
0x3c94   : > { %v11251_v10 = vpop.xlane.xlu1 %11250 }
0x3c95   : > { %v11259_v11 = vsub.f32 %v11243_v47, %v11251_v10 }
0x3c97   : > { %v11264_v12 = vmul.f32 1.442695, %v11259_v11 }
0x3c98   : > { %v11053_v13 = vpop.permute.xlu1 %11052 }
0x3c99   : > { %16194 = vpow2.f32 %v11264_v12  ;;  %v11344_v53 = vsel %vm1912_vm1, %v11053_v13, 0 }
0x3c9a   : > { %14913 = vmatpush3.bf16.msra.mxu0 %v11344_v53 }
0x3c9b   : > { %14924 = vmatprep.subr.bf16.mxu0 %v17388_v0 }
0x3c9c   : > { %v11254_v15 = vpop.xlane.xlu0 %11253 }
0x3c9d   : > { %v11260_v16 = vsub.f32 %v11244_v54, %v11254_v15 }
0x3c9f   : > { %v11266_v56 = vmul.f32 1.442695, %v11260_v16 }
0x3ca1   : > { %16196 = vpow2.f32 %v11266_v56 }
0x3ca4   : > { %v11257_v17 = vpop.xlane.xlu0 %11256 }
0x3ca5   : > { %v11261_v37 = vsub.f32 %v11245_v62, %v11257_v17  ;;  %v15966_v62 = vld [vmem:[#allocation43 + $0x88] sm:$0xff]  }
0x3ca6   : > { %v16195_v18 = vpop.eup %16194 }
0x3ca7   : > { %v11268_v48 = vmul.f32 1.442695, %v11261_v37  ;;  %v11273_v24 = vsel %vm1908_vm2, %v16195_v18, 0.0 }
0x3ca8   : > { %11274 = vadd.xlane.f32.xlu0 %v11273_v24 }
0x3ca9   : > { %16198 = vpow2.f32 %v11268_v48  ;;  %v13646_v48 = vld [vmem:[#allocation45 + $0x2] ss:$0 sm:$0xff] }
0x3cae   : > { %v16197_v34 = vpop.eup %16196 }
0x3caf   : > { %v11276_v19 = vsel %vm1908_vm2, %v16197_v34, 0.0 }
0x3cb0   : > { %11277 = vadd.xlane.f32.xlu1 %v11276_v19 }
0x3cb6   : > { %v16199_v20 = vpop.eup %16198 }
0x3cb7   : > { %v11279_v21 = vsel %vm1908_vm2, %v16199_v20, 0.0 }
0x3cb8   : > { %11280 = vadd.xlane.f32.xlu0 %v11279_v21 }
0x3cc1   : > { %11056 = vrot.lane.b32.xlu1 %v18838_v2, %s17392_s15 }
0x3cc9   : > { %v11272_v40 = vpop.xlane.xlu1 %11271 }
0x3cca   : > { %16200 = vrcp.f32 %v11272_v40 }
0x3cce   : > { %11054 = vrot.lane.b32.xlu0 %v18838_v2, %s17393_s26 }
0x3cd7   : > { %v16201_v8 = vpop.eup %16200 }
0x3cd8   : > { %v11286_v25 = vmul.f32 %v16201_v8, %v16193_v5  ;;  %v15968_v8 = vld [vmem:[#allocation49 + $0x2e0] ss:$16 sps:$4 sm:$0xff]  }
0x3cda   : > { %v11290_v22 = vpack.c.bf16 %v11286_v25, %v11286_v25  ;;  %v15970_v25 = vld [vmem:[#allocation49 + $0x2e4] ss:$16 sps:$4 sm:$0xff]  }
0x3cdc   : > { %14909 = vmatmul.mubr.msk.bf16.vlgmr.msra.gmra.mxu1 %vm1908_vm2, %v11290_v22  ;;  %v15971_v22 = vld [vmem:[#allocation49 + $0x2e8] ss:$16 sps:$4 sm:$0xff]  }
0x3cdd   : > { %14920 = vmatprep.mubr.msk.bf16.mxu1 %vm17389_vm0, %v17388_v0 }
0x3d31   : > { %v11275_v26 = vpop.xlane.xlu0 %11274 }
0x3d32   : > { %16202 = vrcp.f32 %v11275_v26  ;;  %v15973_v26 = vld [vmem:[#allocation49 + $0x2ec] ss:$16 sps:$4 sm:$0xff]  }
0x3d39   : > { %v11278_v27 = vpop.xlane.xlu1 %11277 }
0x3d3a   : > { %16204 = vrcp.f32 %v11278_v27  ;;  %v15976_v27 = vld [vmem:[#allocation49 + $0x2c4] ss:$16 sps:$4 sm:$0xff]  }
0x3d3d   : > { %v11057_v31 = vpop.permute.xlu1 %11056 }
0x3d3e   : > { %v11436_v2 = vsel %vm1912_vm1, %v11057_v31, 0 }
0x3d3f   : > { %v16203_v28 = vpop.eup %16202 }
0x3d40   : > { %v11287_v30 = vmul.f32 %v16203_v28, %v16195_v18  ;;  %v15979_v28 = vld [vmem:[#allocation49 + $0x2cc] ss:$16 sps:$4 sm:$0xff]  }
0x3d41   : > { %v11281_v32 = vpop.xlane.xlu0 %11280 }
0x3d42   : > { %v11291_v14 = vpack.c.bf16 %v11287_v30, %v11287_v30  ;;  %16206 = vrcp.f32 %v11281_v32  ;;  %v15974_v30 = vld [vmem:[#allocation49 + $0x2c0] ss:$16 sps:$4 sm:$0xff]  }
0x3d44   : > { %14915 = vmatmul.mubr.msk.bf16.vlgmr.msra.gmra.mxu0 %vm1908_vm2, %v11291_v14 }
0x3d45   : > { %14925 = vmatpush3.bf16.msra.mxu0 %v11436_v2  ;;  %v11055_v33 = vpop.permute.xlu0 %11054  ;;  %14926 = vmatprep.mubr.msk.bf16.mxu0 %vm17389_vm0, %v17388_v0  ;;  %v15982_v2 = vld [vmem:[#allocation49 + $0x2a4] ss:$16 sps:$4 sm:$0xff]  }
0x3d46   : > { %v11390_v36 = vsel %vm1912_vm1, %v11055_v33, 0  ;;  %11854 = vmatprep.subr.bf16.mxu0 %v15970_v25  ;;  %v15985_v33 = vld [vmem:[#allocation49 + $0x2ac] ss:$16 sps:$4 sm:$0xff]  }
0x3d47   : > { %v16205_v38 = vpop.eup %16204  ;;  %14919 = vmatpush3.bf16.msra.mxu1 %v11390_v36  ;;  %v15980_v36 = vld [vmem:[#allocation49 + $0x2a0] ss:$16 sps:$4 sm:$0xff]  }
0x3d48   : > { %v11288_v44 = vmul.f32 %v16205_v38, %v16197_v34  ;;  %14930 = vmatprep.subr.bf16.mxu1 %v17388_v0  ;;  %v15983_v38 = vld [vmem:[#allocation49 + $0x2a8] ss:$16 sps:$4 sm:$0xff]   ;;  %v16030_v25 = vld [vmem:[#allocation52 + $0x220] sm:$0xff]  }
0x3d4a   : > { %v11292_v45 = vpack.c.bf16 %v11288_v44, %v11288_v44  ;;  %v15988_v44 = vld [vmem:[#allocation49 + $0x284] ss:$16 sps:$4 sm:$0xff]  }
0x3d4c   : > { %14921 = vmatmul.mubr.msk.bf16.vlgmr.msra.gmra.mxu1 %vm1908_vm2, %v11292_v45  ;;  %v15991_v45 = vld [vmem:[#allocation49 + $0x28c] ss:$16 sps:$4 sm:$0xff]  }
0x3d4d   : > { %14946 = vmatprep.mubr.msk.bf16.mxu1 %vm17389_vm0, %v17388_v0  ;;  %14931 = vmatpush3.bf16.msra.mxu1 %v15960_v50  ;;  %v15997_v50 = vld [vmem:[#allocation49 + $0x26c] ss:$16 sps:$4 sm:$0xff]  }
0x3d4e   : > { %14932 = vmatprep.subr.bf16.mxu1 %v17388_v0 }
0x3d4f   : > { %v16207_v63 = vpop.eup %16206 }
0x3d50   : > { %v11289_v47 = vmul.f32 %v16207_v63, %v16199_v20  ;;  %v15986_v63 = vld [vmem:[#allocation49 + $0x280] ss:$16 sps:$4 sm:$0xff]  }
0x3d51   : > { %14933 = vmatpush3.bf16.msra.mxu1 %v15961_v52  ;;  %v15995_v52 = vld [vmem:[#allocation49 + $0x268] ss:$16 sps:$4 sm:$0xff]  }
0x3d52   : > { %v11293_v49 = vpack.c.bf16 %v11289_v47, %v11289_v47  ;;  %14934 = vmatprep.subr.bf16.mxu1 %v17388_v0  ;;  %v15989_v47 = vld [vmem:[#allocation49 + $0x288] ss:$16 sps:$4 sm:$0xff]  }
0x3d54   : > { %14927 = vmatmul.mubr.msk.bf16.vlgmr.msra.gmra.mxu0 %vm1908_vm2, %v11293_v49  ;;  %v15994_v49 = vld [vmem:[#allocation49 + $0x264] ss:$16 sps:$4 sm:$0xff]  }
0x3d55   : > { %11886 = vmatprep.mubr.bf16.mxu0 %v17390_v29  ;;  %14935 = vmatpush3.bf16.msra.mxu1 %v15962_v55  ;;  %v15998_v55 = vld [vmem:[#allocation49 + $0x240] ss:$16 sps:$4 sm:$0xff]  }
0x3d56   : > { %14936 = vmatprep.subr.bf16.mxu1 %v17388_v0  ;;  %11855 = vmatpush1.bf16.msra.mxu0 %v15968_v8  ;;  %v16029_v8 = vld [vmem:[#allocation52 + $0x2e0] sm:$0xff]  }
0x3d57   : > { %11856 = vmatprep.subr.bf16.mxu0 %v15976_v27  ;;  %v16033_v27 = vld [vmem:[#allocation52 + $0x2d8] sm:$0xff]  }
0x3d59   : > { %14937 = vmatpush3.bf16.msra.mxu1 %v15963_v58  ;;  %v16006_v58 = vld [vmem:[#allocation49 + $0x224] ss:$16 sps:$4 sm:$0xff]  }
0x3d5a   : > { %14938 = vmatprep.subr.bf16.mxu1 %v17388_v0  ;;  %11857 = vmatpush1.bf16.msra.mxu0 %v15974_v30  ;;  %v16035_v30 = vld [vmem:[#allocation52 + $0x298] sm:$0xff]  }
0x3d5b   : > { %11858 = vmatprep.subr.bf16.mxu0 %v15982_v2  ;;  %v16041_v2 = vld [vmem:[#allocation52 + $0x2c8] sm:$0xff]  }
0x3d5d   : > { %14939 = vmatpush3.bf16.msra.mxu1 %v15964_v60  ;;  %v16009_v60 = vld [vmem:[#allocation49 + $0x22c] ss:$16 sps:$4 sm:$0xff]  }
0x3d5e   : > { %14940 = vmatprep.subr.bf16.mxu1 %v17388_v0  ;;  %11859 = vmatpush1.bf16.msra.mxu0 %v15980_v36  ;;  %v16043_v36 = vld [vmem:[#allocation52 + $0x288] sm:$0xff]  }
0x3d5f   : > { %11860 = vmatprep.subr.bf16.mxu0 %v15988_v44  ;;  %v16045_v44 = vld [vmem:[#allocation52 + $0x2c0] sm:$0xff]  }
0x3d61   : > { %14941 = vmatpush3.bf16.msra.mxu1 %v15965_v61  ;;  %v16004_v61 = vld [vmem:[#allocation49 + $0x220] ss:$16 sps:$4 sm:$0xff]  }
0x3d62   : > { %14942 = vmatprep.subr.bf16.mxu1 %v17388_v0  ;;  %11861 = vmatpush1.bf16.msra.mxu0 %v15986_v63  ;;  %v16047_v63 = vld [vmem:[#allocation52 + $0x280] sm:$0xff]  }
0x3d63   : > { %11862 = vmatprep.subr.bf16.mxu0 %v15994_v49 }
0x3d65   : > { %14943 = vmatpush3.bf16.msra.mxu1 %v15966_v62  ;;  %v16007_v62 = vld [vmem:[#allocation49 + $0x228] ss:$16 sps:$4 sm:$0xff]  }
0x3d66   : > { %14944 = vmatprep.subr.bf16.mxu1 %v17388_v0 }
0x3d69   : > { %14945 = vmatpush3.bf16.msra.mxu1 %v15967_v42  ;;  %v16010_v42 = vld [vmem:[#allocation49 + $0x200] ss:$16 sps:$4 sm:$0xff]  }
0x3d6a   : > { %11895 = vmatprep.subr.bf16.mxu1 %v15973_v26  ;;  %v16032_v26 = vld [vmem:[#allocation52 + $0x258] sm:$0xff]  }
0x3d9c   : > { %v11334_v51 = vpop.f32.mrf.mxu1 }
0x3d9e   : > { %v14910_v39 = vpop.f32.mrf.mxu1 }
0x3d9f   : > { %v16000_v39 = vld [vmem:[#allocation49 + $0x244] ss:$16 sps:$4 sm:$0xff]  }
0x3da0   : > { %v11337_v54 = vpop.f32.mrf.mxu1 }
0x3da1   : > { %v16003_v54 = vld [vmem:[#allocation49 + $0x24c] ss:$16 sps:$4 sm:$0xff]  }
0x3da2   : > { %v14911_v57 = vpop.f32.mrf.mxu1 }
0x3da3   : > { %v16001_v57 = vld [vmem:[#allocation49 + $0x248] ss:$16 sps:$4 sm:$0xff]  }
0x3e04   : > { %v11380_v1 = vpop.f32.mrf.mxu0 }
0x3e05   : > { %11479 = vrot.lane.b32.xlu1 %v11380_v1, %s17392_s15  ;;  %v16012_v1 = vld [vmem:[#allocation49 + $0x204] ss:$16 sps:$4 sm:$0xff]  }
0x3e06   : > { %v14916_v4 = vpop.f32.mrf.mxu0 }
0x3e07   : > { %v16015_v4 = vld [vmem:[#allocation49 + $0x20c] ss:$16 sps:$4 sm:$0xff]  }
0x3e08   : > { %v11383_v6 = vpop.f32.mrf.mxu0 }
0x3e09   : > { %v16013_v6 = vld [vmem:[#allocation49 + $0x208] ss:$16 sps:$4 sm:$0xff]  }
0x3e0a   : > { %v14917_v7 = vpop.f32.mrf.mxu0 }
0x3e0b   : > { %v16016_v7 = vld [vmem:[#allocation52 + $0x278] sm:$0xff]  }
0x3e0c   : > { %v11426_v9 = vpop.f32.mrf.mxu1 }
0x3e0d   : > { %11483 = vrot.lane.b32.xlu0 %v11426_v9, %s17393_s26  ;;  %v16017_v9 = vld [vmem:[#allocation52 + $0x2f8] sm:$0xff]  }
0x3e0e   : > { %v14922_v46 = vpop.f32.mrf.mxu1 }
0x3e10   : > { %v11429_v5 = vpop.f32.mrf.mxu1 }
0x3e12   : > { %v14923_v35 = vpop.f32.mrf.mxu1 }
0x3e14   : > { %v11472_v10 = vpop.f32.mrf.mxu0 }
0x3e15   : > { %11487 = vrot.lane.b32.xlu1 %v11472_v10, %s17391_s2 }
0x3e16   : > { %v14928_v11 = vpop.f32.mrf.mxu0 }
0x3e17   : > { %v13655_v11 = vld [vmem:[#allocation46 + $0x2] ss:$0 sm:$0xff] }
0x3e18   : > { %v11475_v12 = vpop.f32.mrf.mxu0 }
0x3e1a   : > { %v14929_v13 = vpop.f32.mrf.mxu0 }
0x3e1b   : > { %v13656_v13 = vld [vmem:[#allocation48 + $0x2] ss:$0 sm:$0xff] }
0x3e77   : > { %v11480_v53 = vpop.permute.xlu1 %11479 }
0x3e78   : > { %v11490_v16 = vsel %vm2241_vm3, %v11334_v51, %v11480_v53  ;;  %v15992_v51 = vld [vmem:[#allocation49 + $0x260] ss:$16 sps:$4 sm:$0xff]  }
0x3e79   : > { %11863 = vmatpush1.bf16.msra.mxu0 %v15992_v51 }
0x3e7a   : > { %11864 = vmatprep.subr.bf16.mxu0 %v16000_v39 }
0x3e7d   : > { %11865 = vmatpush1.bf16.msra.mxu0 %v15998_v55 }
0x3e7e   : > { %11866 = vmatprep.subr.bf16.mxu0 %v16006_v58 }
0x3e7f   : > { %v11484_v15 = vpop.permute.xlu0 %11483 }
0x3e80   : > { %v11491_v56 = vsel %vm2675_vm4, %v11490_v16, %v11484_v15  ;;  %v16018_v16 = vld [vmem:[#allocation52 + $0x238] sm:$0xff]  }
0x3e81   : > { %11867 = vmatpush1.bf16.msra.mxu0 %v16004_v61 }
0x3e82   : > { %11868 = vmatprep.subr.bf16.mxu0 %v16012_v1 }
0x3e85   : > { %11869 = vmatpush1.bf16.msra.mxu0 %v16010_v42 }
0x3e86   : > { %14187 = vmatprep.subr.bf16.mxu0 %v16016_v7 }
0x3e87   : > { %v11488_v17 = vpop.permute.xlu1 %11487 }
0x3e88   : > { %v11492_v37 = vsel %vm2677_vm5, %v11491_v56, %v11488_v17  ;;  %v16019_v56 = vld [vmem:[#allocation52 + $0x2b8] sm:$0xff]  }
0x3e89   : > { %v11512_v18 = vpack.c.bf16 %v11492_v37, %v11492_v37  ;;  %v16020_v37 = vld [vmem:[#allocation52 + $0x270] sm:$0xff]  }
0x3e8b   : > { %14947 = vmatmul.mubr.bf16.vlgmr.msra.gmra.mxu1 %v11512_v18  ;;  %v16021_v18 = vld [vmem:[#allocation52 + $0x2f0] sm:$0xff]  }
0x3e8c   : > { %11927 = vmatprep.mubr.bf16.mxu1 %v17390_v29  ;;  %11896 = vmatpush1.bf16.msra.mxu1 %v15971_v22  ;;  %v15977_v29 = vld [vmem:[#allocation49 + $0x2c8] ss:$16 sps:$4 sm:$0xff]   ;;  %v16031_v22 = vld [vmem:[#allocation52 + $0x2a0] sm:$0xff]  }
0x3e8d   : > { %11897 = vmatprep.subr.bf16.mxu1 %v15979_v28  ;;  %v16034_v28 = vld [vmem:[#allocation52 + $0x218] sm:$0xff]  }
0x3e90   : > { %11898 = vmatpush1.bf16.msra.mxu1 %v15977_v29  ;;  %v16036_v29 = vld [vmem:[#allocation52 + $0x250] sm:$0xff]  }
0x3e91   : > { %11899 = vmatprep.subr.bf16.mxu1 %v15985_v33  ;;  %v16042_v33 = vld [vmem:[#allocation52 + $0x208] sm:$0xff]  }
0x3e94   : > { %11900 = vmatpush1.bf16.msra.mxu1 %v15983_v38  ;;  %v16044_v38 = vld [vmem:[#allocation52 + $0x240] sm:$0xff]  }
0x3e95   : > { %11901 = vmatprep.subr.bf16.mxu1 %v15991_v45  ;;  %v16046_v45 = vld [vmem:[#allocation52 + $0x200] sm:$0xff]  }
0x3e98   : > { %11902 = vmatpush1.bf16.msra.mxu1 %v15989_v47  ;;  %v11671_v47 = vld [vmem:[#allocation51 + $0x8] sm:$0xf] }
0x3e99   : > { %11903 = vmatprep.subr.bf16.mxu1 %v15997_v50  ;;  %v11677_v49 = vrot.slane %v11671_v47, %v18065_v41  ;;  %v11685_v50 = vrot.slane %v11671_v47, %v18084_v59  ;;  %v11681_v51 = vrot.slane %v11671_v47, %v18068_v43 }
0x3e9c   : > { %11904 = vmatpush1.bf16.msra.mxu1 %v15995_v52  ;;  %v11689_v52 = vrot.slane %v11671_v47, %v18158_v23  ;;  %v16055_v47 = vld [vmem:[#allocation61] sm:$0xff]  }
0x3e9d   : > { %11905 = vmatprep.subr.bf16.mxu1 %v16003_v54 }
0x3ea0   : > { %11906 = vmatpush1.bf16.msra.mxu1 %v16001_v57 }
0x3ea1   : > { %11907 = vmatprep.subr.bf16.mxu1 %v16009_v60 }
0x3ea4   : > { %11908 = vmatpush1.bf16.msra.mxu1 %v16007_v62 }
0x3ea5   : > { %11909 = vmatprep.subr.bf16.mxu1 %v16015_v4 }
0x3ea8   : > { %11910 = vmatpush1.bf16.msra.mxu1 %v16013_v6 }
0x3ea9   : > { %14209 = vmatprep.subr.bf16.mxu1 %v16017_v9 }
0x3f4b   : > { %v11601_v24 = vpop.f32.mrf.mxu1 }
0x3f4c   : > { %v11602_v34 = vadd.f32 %v13646_v48, %v11601_v24  ;;  %v16022_v48 = vld [vmem:[#allocation52 + $0x230] sm:$0xff]  }
0x3f4d   : > { %v14948_v19 = vpop.f32.mrf.mxu1  ;;  %v16023_v24 = vld [vmem:[#allocation52 + $0x2b0] sm:$0xff]  }
0x3f4e   : > { %v11607_v20 = vadd.f32 %v11602_v34, %v18853_v3  ;;  %v16024_v34 = vld [vmem:[#allocation52 + $0x268] sm:$0xff]  }
0x3f4f   : > { %v11604_v21 = vpop.f32.mrf.mxu1  ;;  %v16025_v19 = vld [vmem:[#allocation52 + $0x2e8] sm:$0xff]  }
0x3f50   : > { %11612 = vadd.xlane.f32.xlu0 %v11607_v20  ;;  %v16027_v21 = vld [vmem:[#allocation52 + $0x2a8] sm:$0xff]  }
0x3f51   : > { %v14949_v40 = vpop.f32.mrf.mxu1 }
0x3f52   : > { %v16028_v40 = vld [vmem:[#allocation52 + $0x260] sm:$0xff]  }
0x3fd9   : > { %v11613_v3 = vpop.xlane.xlu0 %11612 }
0x3fda   : > { %v11614_v31 = vmul.f32 0.0078125, %v11613_v3  ;;  %v16037_v3 = vld [vmem:[#allocation52 + $0x2d0] sm:$0xff]  }
0x3fdc   : > { %v11615_v32 = vsub.f32 %v11607_v20, %v11614_v31  ;;  %v16026_v20 = vld [vmem:[#allocation52 + $0x228] sm:$0xff]   ;;  %v16038_v31 = vld [vmem:[#allocation52 + $0x210] sm:$0xff]  }
0x3fde   : > { %v11616_v14 = vmul.f32 %v11615_v32, %v11615_v32 }
0x3fe0   : > { %11617 = vadd.xlane.f32.xlu1 %v11616_v14  ;;  %v16040_v14 = vld [vmem:[#allocation52 + $0x248] sm:$0xff]  }
0x4069   : > { %v11618_v46 = vpop.xlane.xlu1 %11617 }
0x406a   : > { %v11619_v5 = vmul.f32 0.0078125, %v11618_v46 }
0x406c   : > { %v11620_v35 = vadd.f32 1e-05, %v11619_v5 }
0x406e   : > { %16208 = vrsqrt.f32 %v11620_v35 }
0x407b   : > { %v16209_v10 = vpop.eup %16208 }
0x407c   : > { %v11622_v12 = vmul.f32 %v16209_v10, %v11615_v32  ;;  %v16039_v32 = vld [vmem:[#allocation52 + $0x290] sm:$0xff]  }
0x407e   : > { %v11629_v53 = vmul.f32 %v13655_v11, %v11622_v12  ;;  %v13689_v11 = vld [vmem:[#allocation54 + $0x2] ss:$0 sm:$0xff] }
0x4080   : > { %v18927_v15 = vadd.f32 %v13656_v13, %v11629_v53 }
0x4082   : > { %v11672_v17 = vpack.c.bf16 %v18927_v15, %v18927_v15 }
0x4084   : > { %11887 = vmatmul.mubr.bf16.vlgmr.msra.gmra.mxu0 %v11672_v17  ;;  %11928 = vmatmul.mubr.bf16.vlgmr.msra.gmra.mxu1 %v11672_v17 }
0x4085   : > { %14188 = vmatpush3.bf16.msra.mxu0 %v16018_v16  ;;  %14210 = vmatpush3.bf16.msra.mxu1 %v16019_v56 }
0x4086   : > { %14189 = vmatprep.subr.bf16.mxu0 %v16020_v37  ;;  %14211 = vmatprep.subr.bf16.mxu1 %v16021_v18 }
0x4089   : > { %14190 = vmatpush3.bf16.msra.mxu0 %v16022_v48  ;;  %14212 = vmatpush3.bf16.msra.mxu1 %v16023_v24 }
0x408a   : > { %14191 = vmatprep.subr.bf16.mxu0 %v16024_v34  ;;  %14213 = vmatprep.subr.bf16.mxu1 %v16025_v19 }
0x408d   : > { %14192 = vmatpush3.bf16.msra.mxu0 %v16026_v20  ;;  %14214 = vmatpush3.bf16.msra.mxu1 %v16027_v21 }
0x408e   : > { %14193 = vmatprep.subr.bf16.mxu0 %v16028_v40  ;;  %14215 = vmatprep.subr.bf16.mxu1 %v16029_v8 }
0x4091   : > { %14194 = vmatpush3.bf16.msra.mxu0 %v16030_v25  ;;  %14216 = vmatpush3.bf16.msra.mxu1 %v16031_v22 }
0x4092   : > { %14195 = vmatprep.subr.bf16.mxu0 %v16032_v26  ;;  %14217 = vmatprep.subr.bf16.mxu1 %v16033_v27  ;;  %v13722_v27 = vld [vmem:[#allocation55 + $0x2] ss:$0 sm:$0xff] }
0x4095   : > { %14196 = vmatpush3.bf16.msra.mxu0 %v16034_v28  ;;  %14218 = vmatpush3.bf16.msra.mxu1 %v16035_v30  ;;  %v13723_v30 = vld [vmem:[#allocation57 + $0x2] ss:$0 sm:$0xff] }
0x4096   : > { %14197 = vmatprep.subr.bf16.mxu0 %v16036_v29  ;;  %14219 = vmatprep.subr.bf16.mxu1 %v16037_v3 }
0x4099   : > { %14198 = vmatpush3.bf16.msra.mxu0 %v16038_v31  ;;  %14220 = vmatpush3.bf16.msra.mxu1 %v16039_v32  ;;  %v16048_v31 = vld [vmem:[#allocation61 + $0x38] sm:$0xff]  }
0x409a   : > { %14199 = vmatprep.subr.bf16.mxu0 %v16040_v14  ;;  %14221 = vmatprep.subr.bf16.mxu1 %v16041_v2 }
0x409d   : > { %14200 = vmatpush3.bf16.msra.mxu0 %v16042_v33  ;;  %14222 = vmatpush3.bf16.msra.mxu1 %v16043_v36  ;;  %v16050_v36 = vld [vmem:[#allocation61 + $0x28] sm:$0xff]  }
0x409e   : > { %14201 = vmatprep.subr.bf16.mxu0 %v16044_v38  ;;  %14223 = vmatprep.subr.bf16.mxu1 %v16045_v44  ;;  %v16051_v38 = vld [vmem:[#allocation61 + $0x20] sm:$0xff]   ;;  %v16052_v44 = vld [vmem:[#allocation61 + $0x18] sm:$0xff]  }
0x40a1   : > { %14202 = vmatpush3.bf16.msra.mxu0 %v16046_v45  ;;  %14224 = vmatpush3.bf16.msra.mxu1 %v16047_v63  ;;  %v16053_v45 = vld [vmem:[#allocation61 + $0x10] sm:$0xff]   ;;  %v16054_v63 = vld [vmem:[#allocation61 + $0x8] sm:$0xff]  }
0x40a2   : > { %14950 = vmatprep.subr.bf16.mxu0 %v17388_v0 }
0x4144   : > { %v11888_v39 = vpop.f32.mrf.mxu0  ;;  %v11929_v54 = vpop.f32.mrf.mxu1 }
0x4145   : > { %v11889_v55 = vadd.f32 %v11888_v39, %v11677_v49  ;;  %v11930_v57 = vadd.f32 %v11929_v54, %v11685_v50  ;;  %v13724_v39 = vld [vmem:[#allocation58] ss:$0 sm:$0xff] }
0x4146   : > { %v11890_v58 = vpop.f32.mrf.mxu0  ;;  %v11931_v60 = vpop.f32.mrf.mxu1 }
0x4147   : > { %v11891_v61 = vadd.f32 %v11890_v58, %v11681_v51  ;;  %v11932_v62 = vadd.f32 %v11931_v60, %v11689_v52  ;;  %v11936_v1 = vmax.f32 %v11889_v55, 0.0  ;;  %v11938_v4 = vmax.f32 %v11930_v57, 0.0  ;;  %v13725_v55 = vld [vmem:[#allocation60] ss:$0 sm:$0xff] }
0x4148   : > { %v11892_v42 = vpop.f32.mrf.mxu0  ;;  %v11933_v6 = vpop.f32.mrf.mxu1 }
0x4149   : > { %v11937_v7 = vmax.f32 %v11891_v61, 0.0  ;;  %v11939_v41 = vmax.f32 %v11932_v62, 0.0  ;;  %v12007_v5 = vpack.c.bf16 %v11936_v1, %v11936_v1  ;;  %v12009_v23 = vpack.c.bf16 %v11938_v4, %v11938_v4  ;;  %v13726_v61 = vld [vmem:[#allocation63] ss:$0 sm:$0xff] }
0x414a   : > { %v11893_v9 = vpop.f32.mrf.mxu0  ;;  %v11934_v59 = vpop.f32.mrf.mxu1 }
0x414b   : > { %v12008_v46 = vpack.c.bf16 %v11937_v7, %v11937_v7  ;;  %v12010_v43 = vpack.c.bf16 %v11939_v41, %v11939_v41 }
0x414d   : > { %12241 = vmatprep.mubr.bf16.mxu0 %v12008_v46  ;;  %12281 = vmatprep.mubr.bf16.mxu1 %v12010_v43 }
0x414e   : > { %12242 = vmatmul.mubr.bf16.vlgmr.msra.gmra.mxu0 %v12007_v5  ;;  %12282 = vmatmul.mubr.bf16.vlgmr.msra.gmra.mxu1 %v12009_v23 }
0x414f   : > { %14966 = vmatprep.mubr.msk.bf16.mxu0 %vm17389_vm0, %v17388_v0  ;;  %14951 = vmatpush3.bf16.msra.mxu0 %v16048_v31 }
0x4150   : > { %14952 = vmatprep.subr.bf16.mxu0 %v17388_v0 }
0x420e   : > { %v14203_v35 = vpop.f32.mrf.mxu0  ;;  %v14225_v10 = vpop.f32.mrf.mxu1 }
0x4210   : > { %v14204_v12 = vpop.f32.mrf.mxu0  ;;  %v14226_v13 = vpop.f32.mrf.mxu1 }
0x4211   : > { %v14205_v53 = vadd.f32 %v14204_v12, %v14203_v35  ;;  %v14227_v37 = vadd.f32 %v14226_v13, %v14225_v10 }
0x4212   : > { %v14206_v16 = vpop.f32.mrf.mxu0  ;;  %v14228_v56 = vpop.f32.mrf.mxu1 }
0x4213   : > { %v12244_v17 = vadd.f32 %v14205_v53, %v13689_v11 }
0x4214   : > { %v14207_v18 = vpop.f32.mrf.mxu0  ;;  %v14229_v48 = vpop.f32.mrf.mxu1 }
0x4215   : > { %v12284_v24 = vadd.f32 %v14227_v37, %v12244_v17 }
0x4217   : > { %v12289_v34 = vadd.f32 %v12284_v24, %v18927_v15  ;;  %v16049_v15 = vld [vmem:[#allocation61 + $0x30] sm:$0xff]  }
0x4218   : > { %14953 = vmatpush3.bf16.msra.mxu0 %v16049_v15 }
0x4219   : > { %12294 = vadd.xlane.f32.xlu0 %v12289_v34  ;;  %14954 = vmatprep.subr.bf16.mxu0 %v17388_v0 }
0x421c   : > { %14955 = vmatpush3.bf16.msra.mxu0 %v16050_v36 }
0x421d   : > { %14956 = vmatprep.subr.bf16.mxu0 %v17388_v0 }
0x4220   : > { %14957 = vmatpush3.bf16.msra.mxu0 %v16051_v38 }
0x4221   : > { %14958 = vmatprep.subr.bf16.mxu0 %v17388_v0 }
0x4224   : > { %14959 = vmatpush3.bf16.msra.mxu0 %v16052_v44 }
0x4225   : > { %14960 = vmatprep.subr.bf16.mxu0 %v17388_v0 }
0x4228   : > { %14961 = vmatpush3.bf16.msra.mxu0 %v16053_v45 }
0x4229   : > { %14962 = vmatprep.subr.bf16.mxu0 %v17388_v0 }
0x422c   : > { %14963 = vmatpush3.bf16.msra.mxu0 %v16054_v63 }
0x422d   : > { %14964 = vmatprep.subr.bf16.mxu0 %v17388_v0 }
0x4230   : > { %14965 = vmatpush3.bf16.msra.mxu0 %v16055_v47 }
0x42a2   : > { %v12295_v19 = vpop.xlane.xlu0 %12294 }
0x42a3   : > { %v12296_v20 = vmul.f32 0.0078125, %v12295_v19 }
0x42a5   : > { %v12297_v21 = vsub.f32 %v12289_v34, %v12296_v20 }
0x42a7   : > { %v12298_v40 = vmul.f32 %v12297_v21, %v12297_v21 }
0x42a9   : > { %12299 = vadd.xlane.f32.xlu0 %v12298_v40 }
0x4332   : > { %v12300_v8 = vpop.xlane.xlu0 %12299 }
0x4333   : > { %v12301_v25 = vmul.f32 0.0078125, %v12300_v8 }
0x4335   : > { %v12302_v22 = vadd.f32 1e-05, %v12301_v25 }
0x4337   : > { %16210 = vrsqrt.f32 %v12302_v22 }
0x4344   : > { %v16211_v26 = vpop.eup %16210 }
0x4345   : > { %v12304_v28 = vmul.f32 %v16211_v26, %v12297_v21 }
0x4347   : > { %v12311_v29 = vmul.f32 %v13722_v27, %v12304_v28 }
0x4349   : > { %v12318_v3 = vadd.f32 %v13723_v30, %v12311_v29 }
0x434b   : > { %12321 = vadd.xlane.f32.xlu1 %v12318_v3 }
0x43d4   : > { %v12322_v32 = vpop.xlane.xlu1 %12321 }
0x43d5   : > { %v12323_v14 = vmul.f32 0.0078125, %v12322_v32 }
0x43d7   : > { %v12324_v2 = vsub.f32 %v12318_v3, %v12323_v14 }
0x43d9   : > { %v12325_v33 = vmul.f32 %v12324_v2, %v12324_v2 }
0x43db   : > { %12326 = vadd.xlane.f32.xlu0 %v12325_v33 }
0x4464   : > { %v12327_v49 = vpop.xlane.xlu0 %12326 }
0x4465   : > { %v12328_v50 = vmul.f32 0.0078125, %v12327_v49 }
0x4467   : > { %v12329_v51 = vadd.f32 1e-05, %v12328_v50 }
0x4469   : > { %16212 = vrsqrt.f32 %v12329_v51 }
0x4476   : > { %v16213_v52 = vpop.eup %16212 }
0x4477   : > { %v12331_v54 = vmul.f32 %v16213_v52, %v12324_v2 }
0x4479   : > { %v12338_v57 = vmul.f32 %v13724_v39, %v12331_v54 }
0x447b   : > { %v12345_v58 = vadd.f32 %v13725_v55, %v12338_v57 }
0x447d   : > { %v12363_v60 = vpack.c.bf16 %v12345_v58, %v12345_v58 }
0x447f   : > { %14967 = vmatmul.mubr.bf16.vlgmr.msra.gmra.mxu0 %v12363_v60 }
0x453f   : > { %v12452_v62 = vpop.f32.mrf.mxu0 }
0x4540   : > { %v12453_v1 = vadd.f32 %v13726_v61, %v12452_v62 }
0x4541   : > { %v14968_v4 = vpop.f32.mrf.mxu0 }
0x4542   : > { %12458 = vst [vmem:[%s1896_s22] sm:$0xff] %v12453_v1 }
0x4543   : > { %v12455_v0 = vpop.f32.mrf.mxu0 }
0x4545   : > { %v14969_v42 = vpop.f32.mrf.mxu0 }
0x4546 PF: > { %s120_s0 = sadd.s32 1, %s17288_s0  }
0x4547   : > { %p117_p3 = scmp.ge.s32.totalorder %s120_s0, 4  }
0x4549   :  { %119 = sbr.rel (!%p117_p3) target bundleno = 101 (0x65), region = 487 }
0x454e   :  { %12478 = vsyncpa [#allocation3], 1 }
0x454f   :  { %12480 = vsyncpa [#allocation3 + $0x1], 1 }
0x4550   :  { %12481 = vsyncpa [#allocation5], 1 }
0x4551   :  { %12482 = vsyncpa [#allocation8], 1 }
0x4552   :  { %12483 = vsyncpa [#allocation11], 1 }
0x4553   :  { %12484 = vsyncpa [#allocation14], 1 }
0x4554   :  { %12485 = vsyncpa [#allocation17], 1 }
0x4555   :  { %12486 = vsyncpa [#allocation20], 1 }
0x4556   :  { %12487 = vsyncpa [#allocation23], 1 }
0x4557   :  { %12488 = vsyncpa [#allocation26], 1 }
0x4558   :  { %12489 = vsyncpa [#allocation29], 1 }
0x4559   :  { %12490 = vsyncpa [#allocation32], 1 }
0x455a   :  { %12491 = vsyncpa [#allocation35], 1 }
0x455b   :  { %12492 = vsyncpa [#allocation38], 1 }
0x455c   :  { %12493 = vsyncpa [#allocation41], 1 }
0x455d   :  { %12494 = vsyncpa [#allocation44], 1 }
0x455e   :  { %12495 = vsyncpa [#allocation47], 1 }
0x455f   :  { %12496 = vsyncpa [#allocation50], 1 }
0x4560   :  { %12497 = vsyncpa [#allocation53], 1 }
0x4561   :  { %12498 = vsyncpa [#allocation56], 1 }
0x4562   :  { %12499 = vsyncpa [#allocation59], 1 }
0x4563   :  { %12500 = vsyncpa [#allocation62], 1 }

</bundles_post_ra>
